<compile_context>
chip_gen: v7x
topology: tpu7x:2x2x1
jax: 0.10.0
libtpu: 0.0.40
codegen_flags: <defaults>
</compile_context>

<pallas_src>
import functools

import jax
import jax.numpy as jnp
from jax.experimental import pallas as pl
from jax.experimental.pallas import tpu as pltpu

NEG_SLOPE = 0.01   # nn.LeakyReLU default negative_slope
BN_EPS = 1e-5      # nn.BatchNorm2d default eps
POOL_EPS = 1e-6    # the "+ 1e-06" in the module


def _round_up(x, m):
    return (x + m - 1) // m * m


# ------------------------------ fused kernel ------------------------------
def _tripool_kernel(x_ref, m_ref, w_ref, scale_ref, shift_ref, ecnt_ref,
                    o_ref, fm_ref, hs_ref, hm_ref, *,
                    pool, h_out, w_out, wp_pad):
    """Per-batch fused tripool forward (flat, channels-last layout).

    x_ref    : (npix, ctot)     zero-padded image, flattened rows, mask last ch
    m_ref    : (npix, 1)        zero-padded mask column (lane 0)
    w_ref    : (ctot, c_out)    1x1 conv weight, zero row for the mask channel
    scale_ref, shift_ref : (1, c_out)   conv-bias + inference-BN folded
    ecnt_ref : (h_out, w_out, 1)  POOL_EPS * valid-count (count_include_pad=F)
    o_ref    : (h_out, w_out, c_out)  output block (lane-dense, 256 lanes)
    fm_ref   : VMEM (npix, c_out)     masked conv features
    hs_ref   : VMEM (hp, w_out, c_out) horizontal window sums of features
    hm_ref   : VMEM (hp, w_out, 1)     horizontal window sums of the mask
    """
    # ---- stage 1: single MXU matmul + fused epilogue, lane-dense store ----
    y = jnp.dot(x_ref[...], w_ref[...],
                preferred_element_type=jnp.float32,
                precision=jax.lax.Precision.HIGHEST)
    y = y * scale_ref[...] + shift_ref[...]            # folded conv bias + BN
    y = jnp.where(y >= 0.0, y, NEG_SLOPE * y)          # LeakyReLU
    fm_ref[...] = y * m_ref[...]                       # * mask  (npix, c_out)

    # ---- stage 2: separable pooling, horizontal pass (one read per fm row) --
    n_rows = h_out + pool - 1                          # = hp (padded height)
    for r in range(n_rows):
        base = r * wp_pad                              # sublane-aligned start
        acc = fm_ref[base:base + w_out, :]
        mac = m_ref[base:base + w_out, :]
        for dx in range(1, pool):
            acc = acc + fm_ref[base + dx:base + dx + w_out, :]
            mac = mac + m_ref[base + dx:base + dx + w_out, :]
        hs_ref[r] = acc                                # (w_out, c_out) aligned
        hm_ref[r] = mac                                # (w_out, 1)

    # ---- stage 3: vertical pass + masked-average divide, lane-dense store ---
    for h in range(h_out):
        acc = hs_ref[h]
        mac = hm_ref[h]
        for dy in range(1, pool):
            acc = acc + hs_ref[h + dy]
            mac = mac + hm_ref[h + dy]
        inv = pl.reciprocal(mac + ecnt_ref[h], approx=True)   # (w_out, 1) EUP
        o_ref[h] = acc * inv                           # (w_out, c_out) store


# ------------------------------ wrapper glue ------------------------------
def _valid_count(h_in, w_in, pool, pad):
    """count_include_pad=False divisor map (stride=1), shape (h_out, w_out)."""
    oh = jnp.arange(h_in + 2 * pad - pool + 1)
    ow = jnp.arange(w_in + 2 * pad - pool + 1)
    cy = jnp.minimum(oh - pad + pool - 1, h_in - 1) - jnp.maximum(oh - pad, 0) + 1
    cx = jnp.minimum(ow - pad + pool - 1, w_in - 1) - jnp.maximum(ow - pad, 0) + 1
    return (cy[:, None] * cx[None, :]).astype(jnp.float32)


def tripool_forward(params, supp_feat_c, *, pool_size, stride=1,
                    channels_last=False):
    if stride != 1:
        raise NotImplementedError("tripool Pallas kernel: stride=1 only")
    B, ctot, H, W = supp_feat_c.shape
    cin = ctot - 1
    c_out = params['conv_w'].shape[1]
    pad = (pool_size - 1) // 2
    hp, wp = H + 2 * pad, W + 2 * pad
    h_out = hp - pool_size + 1
    w_out = wp - pool_size + 1
    wp_pad = _round_up(wp, 8)          # 8-aligned rows -> unmasked vst/vld
    npix = hp * wp_pad

    # layout glue: NCHW -> NHWC, zero pad (conv pad + width alignment), flatten.
    x = jnp.transpose(supp_feat_c, (0, 2, 3, 1)).astype(jnp.float32)
    xpad = jnp.pad(x, ((0, 0), (pad, pad), (pad, pad + wp_pad - wp), (0, 0)))
    xflat = xpad.reshape(B, npix, ctot)                 # (B, npix, ctot)
    mflat = xflat[:, :, cin:]                           # (B, npix, 1) lane-0

    # conv weight with a zero row for the mask channel -> single full matmul.
    w_pad = jnp.concatenate(
        [params['conv_w'].astype(jnp.float32),
         jnp.zeros((1, c_out), jnp.float32)], axis=0)   # (ctot, c_out)

    # fold conv bias + BatchNorm (inference running stats) into scale/shift.
    s = params['bn_gamma'] / jnp.sqrt(params['bn_var'] + BN_EPS)
    scale = s.reshape(1, c_out).astype(jnp.float32)
    shift = ((params['conv_b'] - params['bn_mean']) * s
             + params['bn_beta']).reshape(1, c_out).astype(jnp.float32)

    # eps * valid-count (count_include_pad=False), per output row/col.
    ecnt = (POOL_EPS * _valid_count(H, W, pool_size, pad))[:, :, None]

    kern = functools.partial(_tripool_kernel, pool=pool_size, h_out=h_out,
                             w_out=w_out, wp_pad=wp_pad)

    # VMEM budget from the actual buffers (lane dim pads to 128 internally).
    lane = 128
    est = (2 * npix * lane * 4          # x block (9 lanes -> 128), double-buf
           + 2 * npix * lane * 4        # mask block
           + 3 * npix * c_out * 4       # fm scratch + matmul/epilogue temps
           + hp * w_out * c_out * 4     # hs scratch
           + hp * w_out * lane * 4      # hm scratch
           + 2 * h_out * w_out * c_out * 4   # output block, double-buffered
           + 2 * h_out * w_out * lane * 4)   # ecnt block
    vmem_limit = int(min(64 << 20, max(32 << 20, 2 * est)))

    out = pl.pallas_call(
        kern,
        out_shape=jax.ShapeDtypeStruct((B, h_out, w_out, c_out), jnp.float32),
        grid=(B,),
        in_specs=[
            pl.BlockSpec((None, npix, ctot), lambda b: (b, 0, 0)),
            pl.BlockSpec((None, npix, 1), lambda b: (b, 0, 0)),
            pl.BlockSpec((ctot, c_out), lambda b: (0, 0)),
            pl.BlockSpec((1, c_out), lambda b: (0, 0)),
            pl.BlockSpec((1, c_out), lambda b: (0, 0)),
            pl.BlockSpec((h_out, w_out, 1), lambda b: (0, 0, 0)),
        ],
        out_specs=pl.BlockSpec((None, h_out, w_out, c_out),
                               lambda b: (b, 0, 0, 0)),
        scratch_shapes=[
            pltpu.VMEM((npix, c_out), jnp.float32),        # fm
            pltpu.VMEM((hp, w_out, c_out), jnp.float32),   # hsum (features)
            pltpu.VMEM((hp, w_out, 1), jnp.float32),       # hsum (mask)
        ],
        compiler_params=pltpu.CompilerParams(
            dimension_semantics=("parallel",),
            vmem_limit_bytes=vmem_limit),
    )(xflat, mflat, w_pad, scale, shift, ecnt)

    if channels_last:
        return out                                      # (B, h_out, w_out, C)
    # PyTorch module returns NCHW; this transpose is an extra HBM pass --
    # pass channels_last=True to skip it if the consumer takes NHWC.
    return jnp.transpose(out, (0, 3, 1, 2))


# ------------------------------ reference ------------------------------
def tripool_reference(params, supp_feat_c, *, pool_size):
    """Pure-JAX reference matching PyTorch tripool (inference-mode BN)."""
    B, ctot, H, W = supp_feat_c.shape
    cin = ctot - 1
    pad = (pool_size - 1) // 2
    x = jnp.transpose(supp_feat_c, (0, 2, 3, 1)).astype(jnp.float32)
    feat, mask = x[..., :cin], x[..., cin:]

    s = params['bn_gamma'] / jnp.sqrt(params['bn_var'] + BN_EPS)
    shift = (params['conv_b'] - params['bn_mean']) * s + params['bn_beta']
    y = jnp.einsum('bhwc,cd->bhwd', feat, params['conv_w'],
                   precision=jax.lax.Precision.HIGHEST)
    y = y * s + shift
    y = jnp.where(y >= 0, y, NEG_SLOPE * y)
    ym = y * mask

    ympad = jnp.pad(ym, ((0, 0), (pad, pad), (pad, pad), (0, 0)))
    mpad = jnp.pad(mask, ((0, 0), (pad, pad), (pad, pad), (0, 0)))
    h_out = H + 2 * pad - pool_size + 1
    w_out = W + 2 * pad - pool_size + 1
    num = sum(ympad[:, dy:dy + h_out, dx:dx + w_out, :]
              for dy in range(pool_size) for dx in range(pool_size))
    msum = sum(mpad[:, dy:dy + h_out, dx:dx + w_out, :]
               for dy in range(pool_size) for dx in range(pool_size))
    cnt = _valid_count(H, W, pool_size, pad)[None, :, :, None]
    out = (num / cnt) / (msum / cnt + POOL_EPS)        # count_include_pad=False
    return jnp.transpose(out, (0, 3, 1, 2))


def init_params(key, channels, out_channels=256):
    k1, k2 = jax.random.split(key)
    return dict(
        conv_w=jax.random.normal(k1, (channels, out_channels), jnp.float32)
        / jnp.sqrt(float(channels)),
        conv_b=0.1 * jax.random.normal(k2, (out_channels,), jnp.float32),
        bn_gamma=jnp.ones((out_channels,), jnp.float32),
        bn_beta=jnp.zeros((out_channels,), jnp.float32),
        bn_mean=jnp.zeros((out_channels,), jnp.float32),
        bn_var=jnp.ones((out_channels,), jnp.float32),
    )


if __name__ == "__main__":
    key = jax.random.PRNGKey(0)
    kx, km, kp = jax.random.split(key, 3)

    B, C, H, W = 2, 8, 16, 16       # channels=8 -> supp_feat_c has 9 channels
    pool_size = 3                   # stride=1 (module default)

    feat = jax.random.normal(kx, (B, C, H, W), jnp.float32)
    mask = (jax.random.uniform(km, (B, 1, H, W)) > 0.5).astype(jnp.float32)
    supp_feat_c = jnp.concatenate([feat, mask], axis=1)    # (B, C+1, H, W)

    params = init_params(kp, C)

    y = tripool_forward(params, supp_feat_c, pool_size=pool_size, stride=1)
    jax.block_until_ready(y)
    assert y.shape == (B, 256, H, W), y.shape

    y_ref = tripool_reference(params, supp_feat_c, pool_size=pool_size)
    err = float(jnp.max(jnp.abs(y - y_ref)))
    assert err < 2e-2, f"max abs error vs reference: {err}"

    print("KERNEL_OK")
</pallas_src>

<mosaic_0001>
module attributes {stable_mosaic.version = 11 : i64} {
  func.func @_tripool_kernel(%arg0: i32, %arg1: memref<1x432x9xf32, #tpu.memory_space<vmem>>, %arg2: memref<1x432x1xf32, #tpu.memory_space<vmem>>, %arg3: memref<9x256xf32, #tpu.memory_space<vmem>>, %arg4: memref<1x256xf32, #tpu.memory_space<vmem>>, %arg5: memref<1x256xf32, #tpu.memory_space<vmem>>, %arg6: memref<16x16x1xf32, #tpu.memory_space<vmem>>, %arg7: memref<1x16x16x256xf32, #tpu.memory_space<vmem>>, %arg8: memref<432x256xf32, #tpu.memory_space<vmem>>, %arg9: memref<18x16x256xf32, #tpu.memory_space<vmem>>, %arg10: memref<18x16x1xf32, #tpu.memory_space<vmem>>) attributes {dimension_semantics = [#tpu.dimension_semantics<parallel>], iteration_bounds = array<i64: 2>, scalar_prefetch = 0 : i64, scratch_operands = 3 : i64, tpu.core_type = #tpu.core_type<tc>, window_params = [{transform_indices = @transform_0, window_bounds = array<i64: 1, 432, 9>}, {transform_indices = @transform_1, window_bounds = array<i64: 1, 432, 1>}, {pipeline_mode = #tpu.pipeline_mode<synchronous>, transform_indices = @transform_2, window_bounds = array<i64: 9, 256>}, {pipeline_mode = #tpu.pipeline_mode<synchronous>, transform_indices = @transform_3, window_bounds = array<i64: 1, 256>}, {pipeline_mode = #tpu.pipeline_mode<synchronous>, transform_indices = @transform_4, window_bounds = array<i64: 1, 256>}, {pipeline_mode = #tpu.pipeline_mode<synchronous>, transform_indices = @transform_5, window_bounds = array<i64: 16, 16, 1>}, {transform_indices = @transform_6, window_bounds = array<i64: 1, 16, 16, 256>}]} {
    %c0 = arith.constant 0 : index
    %c0_0 = arith.constant 0 : index
    %c0_1 = arith.constant 0 : index
    %0 = vector.load %arg1[%c0, %c0_0, %c0_1] : memref<1x432x9xf32, #tpu.memory_space<vmem>>, vector<1x432x9xf32>
    %1 = vector.shape_cast %0 : vector<1x432x9xf32> to vector<432x9xf32>
    %c0_2 = arith.constant 0 : index
    %c0_3 = arith.constant 0 : index
    %2 = vector.load %arg3[%c0_2, %c0_3] : memref<9x256xf32, #tpu.memory_space<vmem>>, vector<9x256xf32>
    %cst = arith.constant dense<0.000000e+00> : vector<432x256xf32>
    %3 = tpu.matmul %1, %2, %cst {dimension_numbers = #tpu.dot_dimension_numbers<[1], [0], [0], [1], [0, 0, 1, 1], [], []>, precision = #tpu.contract_precision<fp32>} : vector<432x9xf32>, vector<9x256xf32>, vector<432x256xf32> -> vector<432x256xf32>
    %c0_4 = arith.constant 0 : index
    %c0_5 = arith.constant 0 : index
    %4 = vector.load %arg4[%c0_4, %c0_5] : memref<1x256xf32, #tpu.memory_space<vmem>>, vector<1x256xf32>
    %5 = vector.broadcast %4 : vector<1x256xf32> to vector<432x256xf32>
    %6 = arith.mulf %3, %5 : vector<432x256xf32>
    %c0_6 = arith.constant 0 : index
    %c0_7 = arith.constant 0 : index
    %7 = vector.load %arg5[%c0_6, %c0_7] : memref<1x256xf32, #tpu.memory_space<vmem>>, vector<1x256xf32>
    %8 = vector.broadcast %7 : vector<1x256xf32> to vector<432x256xf32>
    %9 = arith.addf %6, %8 : vector<432x256xf32>
    %cst_8 = arith.constant 0.000000e+00 : f32
    %10 = vector.broadcast %cst_8 : f32 to vector<432x256xf32>
    %11 = arith.cmpf oge, %9, %10 : vector<432x256xf32>
    %cst_9 = arith.constant 0.00999999977 : f32
    %12 = vector.broadcast %cst_9 : f32 to vector<432x256xf32>
    %13 = arith.mulf %12, %9 : vector<432x256xf32>
    %14 = arith.select %11, %9, %13 : vector<432x256xi1>, vector<432x256xf32>
    %c0_10 = arith.constant 0 : index
    %c0_11 = arith.constant 0 : index
    %c0_12 = arith.constant 0 : index
    %15 = vector.load %arg2[%c0_10, %c0_11, %c0_12] : memref<1x432x1xf32, #tpu.memory_space<vmem>>, vector<1x432x1xf32>
    %16 = vector.shape_cast %15 : vector<1x432x1xf32> to vector<432x1xf32>
    %17 = vector.broadcast %16 : vector<432x1xf32> to vector<432x256xf32>
    %18 = arith.mulf %14, %17 : vector<432x256xf32>
    %c0_13 = arith.constant 0 : index
    %c0_14 = arith.constant 0 : index
    %19 = vector.load %arg8[%c0_13, %c0_14] : memref<432x256xf32, #tpu.memory_space<vmem>>, vector<432x256xf32>
    tpu.vector_store %arg8[%c0_13, %c0_14], %18 {strides = array<i32>} : memref<432x256xf32, #tpu.memory_space<vmem>>, vector<432x256xf32>,
    %c0_15 = arith.constant 0 : index
    %c0_16 = arith.constant 0 : index
    %20 = vector.load %arg8[%c0_15, %c0_16] : memref<432x256xf32, #tpu.memory_space<vmem>>, vector<16x256xf32>
    %c0_17 = arith.constant 0 : index
    %c0_18 = arith.constant 0 : index
    %c0_19 = arith.constant 0 : index
    %21 = vector.load %arg2[%c0_17, %c0_18, %c0_19] : memref<1x432x1xf32, #tpu.memory_space<vmem>>, vector<1x16x1xf32>
    %22 = vector.shape_cast %21 : vector<1x16x1xf32> to vector<16x1xf32>
    %c1 = arith.constant 1 : index
    %c0_20 = arith.constant 0 : index
    %23 = vector.load %arg8[%c1, %c0_20] : memref<432x256xf32, #tpu.memory_space<vmem>>, vector<16x256xf32>
    %24 = arith.addf %20, %23 : vector<16x256xf32>
    %c0_21 = arith.constant 0 : index
    %c1_22 = arith.constant 1 : index
    %c0_23 = arith.constant 0 : index
    %25 = vector.load %arg2[%c0_21, %c1_22, %c0_23] : memref<1x432x1xf32, #tpu.memory_space<vmem>>, vector<1x16x1xf32>
    %26 = vector.shape_cast %25 : vector<1x16x1xf32> to vector<16x1xf32>
    %27 = arith.addf %22, %26 : vector<16x1xf32>
    %c2 = arith.constant 2 : index
    %c0_24 = arith.constant 0 : index
    %28 = vector.load %arg8[%c2, %c0_24] : memref<432x256xf32, #tpu.memory_space<vmem>>, vector<16x256xf32>
    %29 = arith.addf %24, %28 : vector<16x256xf32>
    %c0_25 = arith.constant 0 : index
    %c2_26 = arith.constant 2 : index
    %c0_27 = arith.constant 0 : index
    %30 = vector.load %arg2[%c0_25, %c2_26, %c0_27] : memref<1x432x1xf32, #tpu.memory_space<vmem>>, vector<1x16x1xf32>
    %31 = vector.shape_cast %30 : vector<1x16x1xf32> to vector<16x1xf32>
    %32 = arith.addf %27, %31 : vector<16x1xf32>
    %c0_28 = arith.constant 0 : index
    %c0_29 = arith.constant 0 : index
    %c0_30 = arith.constant 0 : index
    %33 = vector.load %arg9[%c0_28, %c0_29, %c0_30] : memref<18x16x256xf32, #tpu.memory_space<vmem>>, vector<1x16x256xf32>
    %34 = vector.shape_cast %33 : vector<1x16x256xf32> to vector<16x256xf32>
    %35 = vector.shape_cast %29 : vector<16x256xf32> to vector<1x16x256xf32>
    tpu.vector_store %arg9[%c0_28, %c0_29, %c0_30], %35 {strides = array<i32>} : memref<18x16x256xf32, #tpu.memory_space<vmem>>, vector<1x16x256xf32>,
    %c0_31 = arith.constant 0 : index
    %c0_32 = arith.constant 0 : index
    %c0_33 = arith.constant 0 : index
    %36 = vector.load %arg10[%c0_31, %c0_32, %c0_33] : memref<18x16x1xf32, #tpu.memory_space<vmem>>, vector<1x16x1xf32>
    %37 = vector.shape_cast %36 : vector<1x16x1xf32> to vector<16x1xf32>
    %38 = vector.shape_cast %32 : vector<16x1xf32> to vector<1x16x1xf32>
    tpu.vector_store %arg10[%c0_31, %c0_32, %c0_33], %38 {strides = array<i32>} : memref<18x16x1xf32, #tpu.memory_space<vmem>>, vector<1x16x1xf32>,
    %c24 = arith.constant 24 : index
    %c0_34 = arith.constant 0 : index
    %39 = vector.load %arg8[%c24, %c0_34] : memref<432x256xf32, #tpu.memory_space<vmem>>, vector<16x256xf32>
    %c0_35 = arith.constant 0 : index
    %c24_36 = arith.constant 24 : index
    %c0_37 = arith.constant 0 : index
    %40 = vector.load %arg2[%c0_35, %c24_36, %c0_37] : memref<1x432x1xf32, #tpu.memory_space<vmem>>, vector<1x16x1xf32>
    %41 = vector.shape_cast %40 : vector<1x16x1xf32> to vector<16x1xf32>
    %c25 = arith.constant 25 : index
    %c0_38 = arith.constant 0 : index
    %42 = vector.load %arg8[%c25, %c0_38] : memref<432x256xf32, #tpu.memory_space<vmem>>, vector<16x256xf32>
    %43 = arith.addf %39, %42 : vector<16x256xf32>
    %c0_39 = arith.constant 0 : index
    %c25_40 = arith.constant 25 : index
    %c0_41 = arith.constant 0 : index
    %44 = vector.load %arg2[%c0_39, %c25_40, %c0_41] : memref<1x432x1xf32, #tpu.memory_space<vmem>>, vector<1x16x1xf32>
    %45 = vector.shape_cast %44 : vector<1x16x1xf32> to vector<16x1xf32>
    %46 = arith.addf %41, %45 : vector<16x1xf32>
    %c26 = arith.constant 26 : index
    %c0_42 = arith.constant 0 : index
    %47 = vector.load %arg8[%c26, %c0_42] : memref<432x256xf32, #tpu.memory_space<vmem>>, vector<16x256xf32>
    %48 = arith.addf %43, %47 : vector<16x256xf32>
    %c0_43 = arith.constant 0 : index
    %c26_44 = arith.constant 26 : index
    %c0_45 = arith.constant 0 : index
    %49 = vector.load %arg2[%c0_43, %c26_44, %c0_45] : memref<1x432x1xf32, #tpu.memory_space<vmem>>, vector<1x16x1xf32>
    %50 = vector.shape_cast %49 : vector<1x16x1xf32> to vector<16x1xf32>
    %51 = arith.addf %46, %50 : vector<16x1xf32>
    %c1_46 = arith.constant 1 : index
    %c0_47 = arith.constant 0 : index
    %c0_48 = arith.constant 0 : index
    %52 = vector.load %arg9[%c1_46, %c0_47, %c0_48] : memref<18x16x256xf32, #tpu.memory_space<vmem>>, vector<1x16x256xf32>
    %53 = vector.shape_cast %52 : vector<1x16x256xf32> to vector<16x256xf32>
    %54 = vector.shape_cast %48 : vector<16x256xf32> to vector<1x16x256xf32>
    tpu.vector_store %arg9[%c1_46, %c0_47, %c0_48], %54 {strides = array<i32>} : memref<18x16x256xf32, #tpu.memory_space<vmem>>, vector<1x16x256xf32>,
    %c1_49 = arith.constant 1 : index
    %c0_50 = arith.constant 0 : index
    %c0_51 = arith.constant 0 : index
    %55 = vector.load %arg10[%c1_49, %c0_50, %c0_51] : memref<18x16x1xf32, #tpu.memory_space<vmem>>, vector<1x16x1xf32>
    %56 = vector.shape_cast %55 : vector<1x16x1xf32> to vector<16x1xf32>
    %57 = vector.shape_cast %51 : vector<16x1xf32> to vector<1x16x1xf32>
    tpu.vector_store %arg10[%c1_49, %c0_50, %c0_51], %57 {strides = array<i32>} : memref<18x16x1xf32, #tpu.memory_space<vmem>>, vector<1x16x1xf32>,
    %c48 = arith.constant 48 : index
    %c0_52 = arith.constant 0 : index
    %58 = vector.load %arg8[%c48, %c0_52] : memref<432x256xf32, #tpu.memory_space<vmem>>, vector<16x256xf32>
    %c0_53 = arith.constant 0 : index
    %c48_54 = arith.constant 48 : index
    %c0_55 = arith.constant 0 : index
    %59 = vector.load %arg2[%c0_53, %c48_54, %c0_55] : memref<1x432x1xf32, #tpu.memory_space<vmem>>, vector<1x16x1xf32>
    %60 = vector.shape_cast %59 : vector<1x16x1xf32> to vector<16x1xf32>
    %c49 = arith.constant 49 : index
    %c0_56 = arith.constant 0 : index
    %61 = vector.load %arg8[%c49, %c0_56] : memref<432x256xf32, #tpu.memory_space<vmem>>, vector<16x256xf32>
    %62 = arith.addf %58, %61 : vector<16x256xf32>
    %c0_57 = arith.constant 0 : index
    %c49_58 = arith.constant 49 : index
    %c0_59 = arith.constant 0 : index
    %63 = vector.load %arg2[%c0_57, %c49_58, %c0_59] : memref<1x432x1xf32, #tpu.memory_space<vmem>>, vector<1x16x1xf32>
    %64 = vector.shape_cast %63 : vector<1x16x1xf32> to vector<16x1xf32>
    %65 = arith.addf %60, %64 : vector<16x1xf32>
    %c50 = arith.constant 50 : index
    %c0_60 = arith.constant 0 : index
    %66 = vector.load %arg8[%c50, %c0_60] : memref<432x256xf32, #tpu.memory_space<vmem>>, vector<16x256xf32>
    %67 = arith.addf %62, %66 : vector<16x256xf32>
    %c0_61 = arith.constant 0 : index
    %c50_62 = arith.constant 50 : index
    %c0_63 = arith.constant 0 : index
    %68 = vector.load %arg2[%c0_61, %c50_62, %c0_63] : memref<1x432x1xf32, #tpu.memory_space<vmem>>, vector<1x16x1xf32>
    %69 = vector.shape_cast %68 : vector<1x16x1xf32> to vector<16x1xf32>
    %70 = arith.addf %65, %69 : vector<16x1xf32>
    %c2_64 = arith.constant 2 : index
    %c0_65 = arith.constant 0 : index
    %c0_66 = arith.constant 0 : index
    %71 = vector.load %arg9[%c2_64, %c0_65, %c0_66] : memref<18x16x256xf32, #tpu.memory_space<vmem>>, vector<1x16x256xf32>
    %72 = vector.shape_cast %71 : vector<1x16x256xf32> to vector<16x256xf32>
    %73 = vector.shape_cast %67 : vector<16x256xf32> to vector<1x16x256xf32>
    tpu.vector_store %arg9[%c2_64, %c0_65, %c0_66], %73 {strides = array<i32>} : memref<18x16x256xf32, #tpu.memory_space<vmem>>, vector<1x16x256xf32>,
    %c2_67 = arith.constant 2 : index
    %c0_68 = arith.constant 0 : index
    %c0_69 = arith.constant 0 : index
    %74 = vector.load %arg10[%c2_67, %c0_68, %c0_69] : memref<18x16x1xf32, #tpu.memory_space<vmem>>, vector<1x16x1xf32>
    %75 = vector.shape_cast %74 : vector<1x16x1xf32> to vector<16x1xf32>
    %76 = vector.shape_cast %70 : vector<16x1xf32> to vector<1x16x1xf32>
    tpu.vector_store %arg10[%c2_67, %c0_68, %c0_69], %76 {strides = array<i32>} : memref<18x16x1xf32, #tpu.memory_space<vmem>>, vector<1x16x1xf32>,
    %c72 = arith.constant 72 : index
    %c0_70 = arith.constant 0 : index
    %77 = vector.load %arg8[%c72, %c0_70] : memref<432x256xf32, #tpu.memory_space<vmem>>, vector<16x256xf32>
    %c0_71 = arith.constant 0 : index
    %c72_72 = arith.constant 72 : index
    %c0_73 = arith.constant 0 : index
    %78 = vector.load %arg2[%c0_71, %c72_72, %c0_73] : memref<1x432x1xf32, #tpu.memory_space<vmem>>, vector<1x16x1xf32>
    %79 = vector.shape_cast %78 : vector<1x16x1xf32> to vector<16x1xf32>
    %c73 = arith.constant 73 : index
    %c0_74 = arith.constant 0 : index
    %80 = vector.load %arg8[%c73, %c0_74] : memref<432x256xf32, #tpu.memory_space<vmem>>, vector<16x256xf32>
    %81 = arith.addf %77, %80 : vector<16x256xf32>
    %c0_75 = arith.constant 0 : index
    %c73_76 = arith.constant 73 : index
    %c0_77 = arith.constant 0 : index
    %82 = vector.load %arg2[%c0_75, %c73_76, %c0_77] : memref<1x432x1xf32, #tpu.memory_space<vmem>>, vector<1x16x1xf32>
    %83 = vector.shape_cast %82 : vector<1x16x1xf32> to vector<16x1xf32>
    %84 = arith.addf %79, %83 : vector<16x1xf32>
    %c74 = arith.constant 74 : index
    %c0_78 = arith.constant 0 : index
    %85 = vector.load %arg8[%c74, %c0_78] : memref<432x256xf32, #tpu.memory_space<vmem>>, vector<16x256xf32>
    %86 = arith.addf %81, %85 : vector<16x256xf32>
    %c0_79 = arith.constant 0 : index
    %c74_80 = arith.constant 74 : index
    %c0_81 = arith.constant 0 : index
    %87 = vector.load %arg2[%c0_79, %c74_80, %c0_81] : memref<1x432x1xf32, #tpu.memory_space<vmem>>, vector<1x16x1xf32>
    %88 = vector.shape_cast %87 : vector<1x16x1xf32> to vector<16x1xf32>
    %89 = arith.addf %84, %88 : vector<16x1xf32>
    %c3 = arith.constant 3 : index
    %c0_82 = arith.constant 0 : index
    %c0_83 = arith.constant 0 : index
    %90 = vector.load %arg9[%c3, %c0_82, %c0_83] : memref<18x16x256xf32, #tpu.memory_space<vmem>>, vector<1x16x256xf32>
    %91 = vector.shape_cast %90 : vector<1x16x256xf32> to vector<16x256xf32>
    %92 = vector.shape_cast %86 : vector<16x256xf32> to vector<1x16x256xf32>
    tpu.vector_store %arg9[%c3, %c0_82, %c0_83], %92 {strides = array<i32>} : memref<18x16x256xf32, #tpu.memory_space<vmem>>, vector<1x16x256xf32>,
    %c3_84 = arith.constant 3 : index
    %c0_85 = arith.constant 0 : index
    %c0_86 = arith.constant 0 : index
    %93 = vector.load %arg10[%c3_84, %c0_85, %c0_86] : memref<18x16x1xf32, #tpu.memory_space<vmem>>, vector<1x16x1xf32>
    %94 = vector.shape_cast %93 : vector<1x16x1xf32> to vector<16x1xf32>
    %95 = vector.shape_cast %89 : vector<16x1xf32> to vector<1x16x1xf32>
    tpu.vector_store %arg10[%c3_84, %c0_85, %c0_86], %95 {strides = array<i32>} : memref<18x16x1xf32, #tpu.memory_space<vmem>>, vector<1x16x1xf32>,
    %c96 = arith.constant 96 : index
    %c0_87 = arith.constant 0 : index
    %96 = vector.load %arg8[%c96, %c0_87] : memref<432x256xf32, #tpu.memory_space<vmem>>, vector<16x256xf32>
    %c0_88 = arith.constant 0 : index
    %c96_89 = arith.constant 96 : index
    %c0_90 = arith.constant 0 : index
    %97 = vector.load %arg2[%c0_88, %c96_89, %c0_90] : memref<1x432x1xf32, #tpu.memory_space<vmem>>, vector<1x16x1xf32>
    %98 = vector.shape_cast %97 : vector<1x16x1xf32> to vector<16x1xf32>
    %c97 = arith.constant 97 : index
    %c0_91 = arith.constant 0 : index
    %99 = vector.load %arg8[%c97, %c0_91] : memref<432x256xf32, #tpu.memory_space<vmem>>, vector<16x256xf32>
    %100 = arith.addf %96, %99 : vector<16x256xf32>
    %c0_92 = arith.constant 0 : index
    %c97_93 = arith.constant 97 : index
    %c0_94 = arith.constant 0 : index
    %101 = vector.load %arg2[%c0_92, %c97_93, %c0_94] : memref<1x432x1xf32, #tpu.memory_space<vmem>>, vector<1x16x1xf32>
    %102 = vector.shape_cast %101 : vector<1x16x1xf32> to vector<16x1xf32>
    %103 = arith.addf %98, %102 : vector<16x1xf32>
    %c98 = arith.constant 98 : index
    %c0_95 = arith.constant 0 : index
    %104 = vector.load %arg8[%c98, %c0_95] : memref<432x256xf32, #tpu.memory_space<vmem>>, vector<16x256xf32>
    %105 = arith.addf %100, %104 : vector<16x256xf32>
    %c0_96 = arith.constant 0 : index
    %c98_97 = arith.constant 98 : index
    %c0_98 = arith.constant 0 : index
    %106 = vector.load %arg2[%c0_96, %c98_97, %c0_98] : memref<1x432x1xf32, #tpu.memory_space<vmem>>, vector<1x16x1xf32>
    %107 = vector.shape_cast %106 : vector<1x16x1xf32> to vector<16x1xf32>
    %108 = arith.addf %103, %107 : vector<16x1xf32>
    %c4 = arith.constant 4 : index
    %c0_99 = arith.constant 0 : index
    %c0_100 = arith.constant 0 : index
    %109 = vector.load %arg9[%c4, %c0_99, %c0_100] : memref<18x16x256xf32, #tpu.memory_space<vmem>>, vector<1x16x256xf32>
    %110 = vector.shape_cast %109 : vector<1x16x256xf32> to vector<16x256xf32>
    %111 = vector.shape_cast %105 : vector<16x256xf32> to vector<1x16x256xf32>
    tpu.vector_store %arg9[%c4, %c0_99, %c0_100], %111 {strides = array<i32>} : memref<18x16x256xf32, #tpu.memory_space<vmem>>, vector<1x16x256xf32>,
    %c4_101 = arith.constant 4 : index
    %c0_102 = arith.constant 0 : index
    %c0_103 = arith.constant 0 : index
    %112 = vector.load %arg10[%c4_101, %c0_102, %c0_103] : memref<18x16x1xf32, #tpu.memory_space<vmem>>, vector<1x16x1xf32>
    %113 = vector.shape_cast %112 : vector<1x16x1xf32> to vector<16x1xf32>
    %114 = vector.shape_cast %108 : vector<16x1xf32> to vector<1x16x1xf32>
    tpu.vector_store %arg10[%c4_101, %c0_102, %c0_103], %114 {strides = array<i32>} : memref<18x16x1xf32, #tpu.memory_space<vmem>>, vector<1x16x1xf32>,
    %c120 = arith.constant 120 : index
    %c0_104 = arith.constant 0 : index
    %115 = vector.load %arg8[%c120, %c0_104] : memref<432x256xf32, #tpu.memory_space<vmem>>, vector<16x256xf32>
    %c0_105 = arith.constant 0 : index
    %c120_106 = arith.constant 120 : index
    %c0_107 = arith.constant 0 : index
    %116 = vector.load %arg2[%c0_105, %c120_106, %c0_107] : memref<1x432x1xf32, #tpu.memory_space<vmem>>, vector<1x16x1xf32>
    %117 = vector.shape_cast %116 : vector<1x16x1xf32> to vector<16x1xf32>
    %c121 = arith.constant 121 : index
    %c0_108 = arith.constant 0 : index
    %118 = vector.load %arg8[%c121, %c0_108] : memref<432x256xf32, #tpu.memory_space<vmem>>, vector<16x256xf32>
    %119 = arith.addf %115, %118 : vector<16x256xf32>
    %c0_109 = arith.constant 0 : index
    %c121_110 = arith.constant 121 : index
    %c0_111 = arith.constant 0 : index
    %120 = vector.load %arg2[%c0_109, %c121_110, %c0_111] : memref<1x432x1xf32, #tpu.memory_space<vmem>>, vector<1x16x1xf32>
    %121 = vector.shape_cast %120 : vector<1x16x1xf32> to vector<16x1xf32>
    %122 = arith.addf %117, %121 : vector<16x1xf32>
    %c122 = arith.constant 122 : index
    %c0_112 = arith.constant 0 : index
    %123 = vector.load %arg8[%c122, %c0_112] : memref<432x256xf32, #tpu.memory_space<vmem>>, vector<16x256xf32>
    %124 = arith.addf %119, %123 : vector<16x256xf32>
    %c0_113 = arith.constant 0 : index
    %c122_114 = arith.constant 122 : index
    %c0_115 = arith.constant 0 : index
    %125 = vector.load %arg2[%c0_113, %c122_114, %c0_115] : memref<1x432x1xf32, #tpu.memory_space<vmem>>, vector<1x16x1xf32>
    %126 = vector.shape_cast %125 : vector<1x16x1xf32> to vector<16x1xf32>
    %127 = arith.addf %122, %126 : vector<16x1xf32>
    %c5 = arith.constant 5 : index
    %c0_116 = arith.constant 0 : index
    %c0_117 = arith.constant 0 : index
    %128 = vector.load %arg9[%c5, %c0_116, %c0_117] : memref<18x16x256xf32, #tpu.memory_space<vmem>>, vector<1x16x256xf32>
    %129 = vector.shape_cast %128 : vector<1x16x256xf32> to vector<16x256xf32>
    %130 = vector.shape_cast %124 : vector<16x256xf32> to vector<1x16x256xf32>
    tpu.vector_store %arg9[%c5, %c0_116, %c0_117], %130 {strides = array<i32>} : memref<18x16x256xf32, #tpu.memory_space<vmem>>, vector<1x16x256xf32>,
    %c5_118 = arith.constant 5 : index
    %c0_119 = arith.constant 0 : index
    %c0_120 = arith.constant 0 : index
    %131 = vector.load %arg10[%c5_118, %c0_119, %c0_120] : memref<18x16x1xf32, #tpu.memory_space<vmem>>, vector<1x16x1xf32>
    %132 = vector.shape_cast %131 : vector<1x16x1xf32> to vector<16x1xf32>
    %133 = vector.shape_cast %127 : vector<16x1xf32> to vector<1x16x1xf32>
    tpu.vector_store %arg10[%c5_118, %c0_119, %c0_120], %133 {strides = array<i32>} : memref<18x16x1xf32, #tpu.memory_space<vmem>>, vector<1x16x1xf32>,
    %c144 = arith.constant 144 : index
    %c0_121 = arith.constant 0 : index
    %134 = vector.load %arg8[%c144, %c0_121] : memref<432x256xf32, #tpu.memory_space<vmem>>, vector<16x256xf32>
    %c0_122 = arith.constant 0 : index
    %c144_123 = arith.constant 144 : index
    %c0_124 = arith.constant 0 : index
    %135 = vector.load %arg2[%c0_122, %c144_123, %c0_124] : memref<1x432x1xf32, #tpu.memory_space<vmem>>, vector<1x16x1xf32>
    %136 = vector.shape_cast %135 : vector<1x16x1xf32> to vector<16x1xf32>
    %c145 = arith.constant 145 : index
    %c0_125 = arith.constant 0 : index
    %137 = vector.load %arg8[%c145, %c0_125] : memref<432x256xf32, #tpu.memory_space<vmem>>, vector<16x256xf32>
    %138 = arith.addf %134, %137 : vector<16x256xf32>
    %c0_126 = arith.constant 0 : index
    %c145_127 = arith.constant 145 : index
    %c0_128 = arith.constant 0 : index
    %139 = vector.load %arg2[%c0_126, %c145_127, %c0_128] : memref<1x432x1xf32, #tpu.memory_space<vmem>>, vector<1x16x1xf32>
    %140 = vector.shape_cast %139 : vector<1x16x1xf32> to vector<16x1xf32>
    %141 = arith.addf %136, %140 : vector<16x1xf32>
    %c146 = arith.constant 146 : index
    %c0_129 = arith.constant 0 : index
    %142 = vector.load %arg8[%c146, %c0_129] : memref<432x256xf32, #tpu.memory_space<vmem>>, vector<16x256xf32>
    %143 = arith.addf %138, %142 : vector<16x256xf32>
    %c0_130 = arith.constant 0 : index
    %c146_131 = arith.constant 146 : index
    %c0_132 = arith.constant 0 : index
    %144 = vector.load %arg2[%c0_130, %c146_131, %c0_132] : memref<1x432x1xf32, #tpu.memory_space<vmem>>, vector<1x16x1xf32>
    %145 = vector.shape_cast %144 : vector<1x16x1xf32> to vector<16x1xf32>
    %146 = arith.addf %141, %145 : vector<16x1xf32>
    %c6 = arith.constant 6 : index
    %c0_133 = arith.constant 0 : index
    %c0_134 = arith.constant 0 : index
    %147 = vector.load %arg9[%c6, %c0_133, %c0_134] : memref<18x16x256xf32, #tpu.memory_space<vmem>>, vector<1x16x256xf32>
    %148 = vector.shape_cast %147 : vector<1x16x256xf32> to vector<16x256xf32>
    %149 = vector.shape_cast %143 : vector<16x256xf32> to vector<1x16x256xf32>
    tpu.vector_store %arg9[%c6, %c0_133, %c0_134], %149 {strides = array<i32>} : memref<18x16x256xf32, #tpu.memory_space<vmem>>, vector<1x16x256xf32>,
    %c6_135 = arith.constant 6 : index
    %c0_136 = arith.constant 0 : index
    %c0_137 = arith.constant 0 : index
    %150 = vector.load %arg10[%c6_135, %c0_136, %c0_137] : memref<18x16x1xf32, #tpu.memory_space<vmem>>, vector<1x16x1xf32>
    %151 = vector.shape_cast %150 : vector<1x16x1xf32> to vector<16x1xf32>
    %152 = vector.shape_cast %146 : vector<16x1xf32> to vector<1x16x1xf32>
    tpu.vector_store %arg10[%c6_135, %c0_136, %c0_137], %152 {strides = array<i32>} : memref<18x16x1xf32, #tpu.memory_space<vmem>>, vector<1x16x1xf32>,
    %c168 = arith.constant 168 : index
    %c0_138 = arith.constant 0 : index
    %153 = vector.load %arg8[%c168, %c0_138] : memref<432x256xf32, #tpu.memory_space<vmem>>, vector<16x256xf32>
    %c0_139 = arith.constant 0 : index
    %c168_140 = arith.constant 168 : index
    %c0_141 = arith.constant 0 : index
    %154 = vector.load %arg2[%c0_139, %c168_140, %c0_141] : memref<1x432x1xf32, #tpu.memory_space<vmem>>, vector<1x16x1xf32>
    %155 = vector.shape_cast %154 : vector<1x16x1xf32> to vector<16x1xf32>
    %c169 = arith.constant 169 : index
    %c0_142 = arith.constant 0 : index
    %156 = vector.load %arg8[%c169, %c0_142] : memref<432x256xf32, #tpu.memory_space<vmem>>, vector<16x256xf32>
    %157 = arith.addf %153, %156 : vector<16x256xf32>
    %c0_143 = arith.constant 0 : index
    %c169_144 = arith.constant 169 : index
    %c0_145 = arith.constant 0 : index
    %158 = vector.load %arg2[%c0_143, %c169_144, %c0_145] : memref<1x432x1xf32, #tpu.memory_space<vmem>>, vector<1x16x1xf32>
    %159 = vector.shape_cast %158 : vector<1x16x1xf32> to vector<16x1xf32>
    %160 = arith.addf %155, %159 : vector<16x1xf32>
    %c170 = arith.constant 170 : index
    %c0_146 = arith.constant 0 : index
    %161 = vector.load %arg8[%c170, %c0_146] : memref<432x256xf32, #tpu.memory_space<vmem>>, vector<16x256xf32>
    %162 = arith.addf %157, %161 : vector<16x256xf32>
    %c0_147 = arith.constant 0 : index
    %c170_148 = arith.constant 170 : index
    %c0_149 = arith.constant 0 : index
    %163 = vector.load %arg2[%c0_147, %c170_148, %c0_149] : memref<1x432x1xf32, #tpu.memory_space<vmem>>, vector<1x16x1xf32>
    %164 = vector.shape_cast %163 : vector<1x16x1xf32> to vector<16x1xf32>
    %165 = arith.addf %160, %164 : vector<16x1xf32>
    %c7 = arith.constant 7 : index
    %c0_150 = arith.constant 0 : index
    %c0_151 = arith.constant 0 : index
    %166 = vector.load %arg9[%c7, %c0_150, %c0_151] : memref<18x16x256xf32, #tpu.memory_space<vmem>>, vector<1x16x256xf32>
    %167 = vector.shape_cast %166 : vector<1x16x256xf32> to vector<16x256xf32>
    %168 = vector.shape_cast %162 : vector<16x256xf32> to vector<1x16x256xf32>
    tpu.vector_store %arg9[%c7, %c0_150, %c0_151], %168 {strides = array<i32>} : memref<18x16x256xf32, #tpu.memory_space<vmem>>, vector<1x16x256xf32>,
    %c7_152 = arith.constant 7 : index
    %c0_153 = arith.constant 0 : index
    %c0_154 = arith.constant 0 : index
    %169 = vector.load %arg10[%c7_152, %c0_153, %c0_154] : memref<18x16x1xf32, #tpu.memory_space<vmem>>, vector<1x16x1xf32>
    %170 = vector.shape_cast %169 : vector<1x16x1xf32> to vector<16x1xf32>
    %171 = vector.shape_cast %165 : vector<16x1xf32> to vector<1x16x1xf32>
    tpu.vector_store %arg10[%c7_152, %c0_153, %c0_154], %171 {strides = array<i32>} : memref<18x16x1xf32, #tpu.memory_space<vmem>>, vector<1x16x1xf32>,
    %c192 = arith.constant 192 : index
    %c0_155 = arith.constant 0 : index
    %172 = vector.load %arg8[%c192, %c0_155] : memref<432x256xf32, #tpu.memory_space<vmem>>, vector<16x256xf32>
    %c0_156 = arith.constant 0 : index
    %c192_157 = arith.constant 192 : index
    %c0_158 = arith.constant 0 : index
    %173 = vector.load %arg2[%c0_156, %c192_157, %c0_158] : memref<1x432x1xf32, #tpu.memory_space<vmem>>, vector<1x16x1xf32>
    %174 = vector.shape_cast %173 : vector<1x16x1xf32> to vector<16x1xf32>
    %c193 = arith.constant 193 : index
    %c0_159 = arith.constant 0 : index
    %175 = vector.load %arg8[%c193, %c0_159] : memref<432x256xf32, #tpu.memory_space<vmem>>, vector<16x256xf32>
    %176 = arith.addf %172, %175 : vector<16x256xf32>
    %c0_160 = arith.constant 0 : index
    %c193_161 = arith.constant 193 : index
    %c0_162 = arith.constant 0 : index
    %177 = vector.load %arg2[%c0_160, %c193_161, %c0_162] : memref<1x432x1xf32, #tpu.memory_space<vmem>>, vector<1x16x1xf32>
    %178 = vector.shape_cast %177 : vector<1x16x1xf32> to vector<16x1xf32>
    %179 = arith.addf %174, %178 : vector<16x1xf32>
    %c194 = arith.constant 194 : index
    %c0_163 = arith.constant 0 : index
    %180 = vector.load %arg8[%c194, %c0_163] : memref<432x256xf32, #tpu.memory_space<vmem>>, vector<16x256xf32>
    %181 = arith.addf %176, %180 : vector<16x256xf32>
    %c0_164 = arith.constant 0 : index
    %c194_165 = arith.constant 194 : index
    %c0_166 = arith.constant 0 : index
    %182 = vector.load %arg2[%c0_164, %c194_165, %c0_166] : memref<1x432x1xf32, #tpu.memory_space<vmem>>, vector<1x16x1xf32>
    %183 = vector.shape_cast %182 : vector<1x16x1xf32> to vector<16x1xf32>
    %184 = arith.addf %179, %183 : vector<16x1xf32>
    %c8 = arith.constant 8 : index
    %c0_167 = arith.constant 0 : index
    %c0_168 = arith.constant 0 : index
    %185 = vector.load %arg9[%c8, %c0_167, %c0_168] : memref<18x16x256xf32, #tpu.memory_space<vmem>>, vector<1x16x256xf32>
    %186 = vector.shape_cast %185 : vector<1x16x256xf32> to vector<16x256xf32>
    %187 = vector.shape_cast %181 : vector<16x256xf32> to vector<1x16x256xf32>
    tpu.vector_store %arg9[%c8, %c0_167, %c0_168], %187 {strides = array<i32>} : memref<18x16x256xf32, #tpu.memory_space<vmem>>, vector<1x16x256xf32>,
    %c8_169 = arith.constant 8 : index
    %c0_170 = arith.constant 0 : index
    %c0_171 = arith.constant 0 : index
    %188 = vector.load %arg10[%c8_169, %c0_170, %c0_171] : memref<18x16x1xf32, #tpu.memory_space<vmem>>, vector<1x16x1xf32>
    %189 = vector.shape_cast %188 : vector<1x16x1xf32> to vector<16x1xf32>
    %190 = vector.shape_cast %184 : vector<16x1xf32> to vector<1x16x1xf32>
    tpu.vector_store %arg10[%c8_169, %c0_170, %c0_171], %190 {strides = array<i32>} : memref<18x16x1xf32, #tpu.memory_space<vmem>>, vector<1x16x1xf32>,
    %c216 = arith.constant 216 : index
    %c0_172 = arith.constant 0 : index
    %191 = vector.load %arg8[%c216, %c0_172] : memref<432x256xf32, #tpu.memory_space<vmem>>, vector<16x256xf32>
    %c0_173 = arith.constant 0 : index
    %c216_174 = arith.constant 216 : index
    %c0_175 = arith.constant 0 : index
    %192 = vector.load %arg2[%c0_173, %c216_174, %c0_175] : memref<1x432x1xf32, #tpu.memory_space<vmem>>, vector<1x16x1xf32>
    %193 = vector.shape_cast %192 : vector<1x16x1xf32> to vector<16x1xf32>
    %c217 = arith.constant 217 : index
    %c0_176 = arith.constant 0 : index
    %194 = vector.load %arg8[%c217, %c0_176] : memref<432x256xf32, #tpu.memory_space<vmem>>, vector<16x256xf32>
    %195 = arith.addf %191, %194 : vector<16x256xf32>
    %c0_177 = arith.constant 0 : index
    %c217_178 = arith.constant 217 : index
    %c0_179 = arith.constant 0 : index
    %196 = vector.load %arg2[%c0_177, %c217_178, %c0_179] : memref<1x432x1xf32, #tpu.memory_space<vmem>>, vector<1x16x1xf32>
    %197 = vector.shape_cast %196 : vector<1x16x1xf32> to vector<16x1xf32>
    %198 = arith.addf %193, %197 : vector<16x1xf32>
    %c218 = arith.constant 218 : index
    %c0_180 = arith.constant 0 : index
    %199 = vector.load %arg8[%c218, %c0_180] : memref<432x256xf32, #tpu.memory_space<vmem>>, vector<16x256xf32>
    %200 = arith.addf %195, %199 : vector<16x256xf32>
    %c0_181 = arith.constant 0 : index
    %c218_182 = arith.constant 218 : index
    %c0_183 = arith.constant 0 : index
    %201 = vector.load %arg2[%c0_181, %c218_182, %c0_183] : memref<1x432x1xf32, #tpu.memory_space<vmem>>, vector<1x16x1xf32>
    %202 = vector.shape_cast %201 : vector<1x16x1xf32> to vector<16x1xf32>
    %203 = arith.addf %198, %202 : vector<16x1xf32>
    %c9 = arith.constant 9 : index
    %c0_184 = arith.constant 0 : index
    %c0_185 = arith.constant 0 : index
    %204 = vector.load %arg9[%c9, %c0_184, %c0_185] : memref<18x16x256xf32, #tpu.memory_space<vmem>>, vector<1x16x256xf32>
    %205 = vector.shape_cast %204 : vector<1x16x256xf32> to vector<16x256xf32>
    %206 = vector.shape_cast %200 : vector<16x256xf32> to vector<1x16x256xf32>
    tpu.vector_store %arg9[%c9, %c0_184, %c0_185], %206 {strides = array<i32>} : memref<18x16x256xf32, #tpu.memory_space<vmem>>, vector<1x16x256xf32>,
    %c9_186 = arith.constant 9 : index
    %c0_187 = arith.constant 0 : index
    %c0_188 = arith.constant 0 : index
    %207 = vector.load %arg10[%c9_186, %c0_187, %c0_188] : memref<18x16x1xf32, #tpu.memory_space<vmem>>, vector<1x16x1xf32>
    %208 = vector.shape_cast %207 : vector<1x16x1xf32> to vector<16x1xf32>
    %209 = vector.shape_cast %203 : vector<16x1xf32> to vector<1x16x1xf32>
    tpu.vector_store %arg10[%c9_186, %c0_187, %c0_188], %209 {strides = array<i32>} : memref<18x16x1xf32, #tpu.memory_space<vmem>>, vector<1x16x1xf32>,
    %c240 = arith.constant 240 : index
    %c0_189 = arith.constant 0 : index
    %210 = vector.load %arg8[%c240, %c0_189] : memref<432x256xf32, #tpu.memory_space<vmem>>, vector<16x256xf32>
    %c0_190 = arith.constant 0 : index
    %c240_191 = arith.constant 240 : index
    %c0_192 = arith.constant 0 : index
    %211 = vector.load %arg2[%c0_190, %c240_191, %c0_192] : memref<1x432x1xf32, #tpu.memory_space<vmem>>, vector<1x16x1xf32>
    %212 = vector.shape_cast %211 : vector<1x16x1xf32> to vector<16x1xf32>
    %c241 = arith.constant 241 : index
    %c0_193 = arith.constant 0 : index
    %213 = vector.load %arg8[%c241, %c0_193] : memref<432x256xf32, #tpu.memory_space<vmem>>, vector<16x256xf32>
    %214 = arith.addf %210, %213 : vector<16x256xf32>
    %c0_194 = arith.constant 0 : index
    %c241_195 = arith.constant 241 : index
    %c0_196 = arith.constant 0 : index
    %215 = vector.load %arg2[%c0_194, %c241_195, %c0_196] : memref<1x432x1xf32, #tpu.memory_space<vmem>>, vector<1x16x1xf32>
    %216 = vector.shape_cast %215 : vector<1x16x1xf32> to vector<16x1xf32>
    %217 = arith.addf %212, %216 : vector<16x1xf32>
    %c242 = arith.constant 242 : index
    %c0_197 = arith.constant 0 : index
    %218 = vector.load %arg8[%c242, %c0_197] : memref<432x256xf32, #tpu.memory_space<vmem>>, vector<16x256xf32>
    %219 = arith.addf %214, %218 : vector<16x256xf32>
    %c0_198 = arith.constant 0 : index
    %c242_199 = arith.constant 242 : index
    %c0_200 = arith.constant 0 : index
    %220 = vector.load %arg2[%c0_198, %c242_199, %c0_200] : memref<1x432x1xf32, #tpu.memory_space<vmem>>, vector<1x16x1xf32>
    %221 = vector.shape_cast %220 : vector<1x16x1xf32> to vector<16x1xf32>
    %222 = arith.addf %217, %221 : vector<16x1xf32>
    %c10 = arith.constant 10 : index
    %c0_201 = arith.constant 0 : index
    %c0_202 = arith.constant 0 : index
    %223 = vector.load %arg9[%c10, %c0_201, %c0_202] : memref<18x16x256xf32, #tpu.memory_space<vmem>>, vector<1x16x256xf32>
    %224 = vector.shape_cast %223 : vector<1x16x256xf32> to vector<16x256xf32>
    %225 = vector.shape_cast %219 : vector<16x256xf32> to vector<1x16x256xf32>
    tpu.vector_store %arg9[%c10, %c0_201, %c0_202], %225 {strides = array<i32>} : memref<18x16x256xf32, #tpu.memory_space<vmem>>, vector<1x16x256xf32>,
    %c10_203 = arith.constant 10 : index
    %c0_204 = arith.constant 0 : index
    %c0_205 = arith.constant 0 : index
    %226 = vector.load %arg10[%c10_203, %c0_204, %c0_205] : memref<18x16x1xf32, #tpu.memory_space<vmem>>, vector<1x16x1xf32>
    %227 = vector.shape_cast %226 : vector<1x16x1xf32> to vector<16x1xf32>
    %228 = vector.shape_cast %222 : vector<16x1xf32> to vector<1x16x1xf32>
    tpu.vector_store %arg10[%c10_203, %c0_204, %c0_205], %228 {strides = array<i32>} : memref<18x16x1xf32, #tpu.memory_space<vmem>>, vector<1x16x1xf32>,
    %c264 = arith.constant 264 : index
    %c0_206 = arith.constant 0 : index
    %229 = vector.load %arg8[%c264, %c0_206] : memref<432x256xf32, #tpu.memory_space<vmem>>, vector<16x256xf32>
    %c0_207 = arith.constant 0 : index
    %c264_208 = arith.constant 264 : index
    %c0_209 = arith.constant 0 : index
    %230 = vector.load %arg2[%c0_207, %c264_208, %c0_209] : memref<1x432x1xf32, #tpu.memory_space<vmem>>, vector<1x16x1xf32>
    %231 = vector.shape_cast %230 : vector<1x16x1xf32> to vector<16x1xf32>
    %c265 = arith.constant 265 : index
    %c0_210 = arith.constant 0 : index
    %232 = vector.load %arg8[%c265, %c0_210] : memref<432x256xf32, #tpu.memory_space<vmem>>, vector<16x256xf32>
    %233 = arith.addf %229, %232 : vector<16x256xf32>
    %c0_211 = arith.constant 0 : index
    %c265_212 = arith.constant 265 : index
    %c0_213 = arith.constant 0 : index
    %234 = vector.load %arg2[%c0_211, %c265_212, %c0_213] : memref<1x432x1xf32, #tpu.memory_space<vmem>>, vector<1x16x1xf32>
    %235 = vector.shape_cast %234 : vector<1x16x1xf32> to vector<16x1xf32>
    %236 = arith.addf %231, %235 : vector<16x1xf32>
    %c266 = arith.constant 266 : index
    %c0_214 = arith.constant 0 : index
    %237 = vector.load %arg8[%c266, %c0_214] : memref<432x256xf32, #tpu.memory_space<vmem>>, vector<16x256xf32>
    %238 = arith.addf %233, %237 : vector<16x256xf32>
    %c0_215 = arith.constant 0 : index
    %c266_216 = arith.constant 266 : index
    %c0_217 = arith.constant 0 : index
    %239 = vector.load %arg2[%c0_215, %c266_216, %c0_217] : memref<1x432x1xf32, #tpu.memory_space<vmem>>, vector<1x16x1xf32>
    %240 = vector.shape_cast %239 : vector<1x16x1xf32> to vector<16x1xf32>
    %241 = arith.addf %236, %240 : vector<16x1xf32>
    %c11 = arith.constant 11 : index
    %c0_218 = arith.constant 0 : index
    %c0_219 = arith.constant 0 : index
    %242 = vector.load %arg9[%c11, %c0_218, %c0_219] : memref<18x16x256xf32, #tpu.memory_space<vmem>>, vector<1x16x256xf32>
    %243 = vector.shape_cast %242 : vector<1x16x256xf32> to vector<16x256xf32>
    %244 = vector.shape_cast %238 : vector<16x256xf32> to vector<1x16x256xf32>
    tpu.vector_store %arg9[%c11, %c0_218, %c0_219], %244 {strides = array<i32>} : memref<18x16x256xf32, #tpu.memory_space<vmem>>, vector<1x16x256xf32>,
    %c11_220 = arith.constant 11 : index
    %c0_221 = arith.constant 0 : index
    %c0_222 = arith.constant 0 : index
    %245 = vector.load %arg10[%c11_220, %c0_221, %c0_222] : memref<18x16x1xf32, #tpu.memory_space<vmem>>, vector<1x16x1xf32>
    %246 = vector.shape_cast %245 : vector<1x16x1xf32> to vector<16x1xf32>
    %247 = vector.shape_cast %241 : vector<16x1xf32> to vector<1x16x1xf32>
    tpu.vector_store %arg10[%c11_220, %c0_221, %c0_222], %247 {strides = array<i32>} : memref<18x16x1xf32, #tpu.memory_space<vmem>>, vector<1x16x1xf32>,
    %c288 = arith.constant 288 : index
    %c0_223 = arith.constant 0 : index
    %248 = vector.load %arg8[%c288, %c0_223] : memref<432x256xf32, #tpu.memory_space<vmem>>, vector<16x256xf32>
    %c0_224 = arith.constant 0 : index
    %c288_225 = arith.constant 288 : index
    %c0_226 = arith.constant 0 : index
    %249 = vector.load %arg2[%c0_224, %c288_225, %c0_226] : memref<1x432x1xf32, #tpu.memory_space<vmem>>, vector<1x16x1xf32>
    %250 = vector.shape_cast %249 : vector<1x16x1xf32> to vector<16x1xf32>
    %c289 = arith.constant 289 : index
    %c0_227 = arith.constant 0 : index
    %251 = vector.load %arg8[%c289, %c0_227] : memref<432x256xf32, #tpu.memory_space<vmem>>, vector<16x256xf32>
    %252 = arith.addf %248, %251 : vector<16x256xf32>
    %c0_228 = arith.constant 0 : index
    %c289_229 = arith.constant 289 : index
    %c0_230 = arith.constant 0 : index
    %253 = vector.load %arg2[%c0_228, %c289_229, %c0_230] : memref<1x432x1xf32, #tpu.memory_space<vmem>>, vector<1x16x1xf32>
    %254 = vector.shape_cast %253 : vector<1x16x1xf32> to vector<16x1xf32>
    %255 = arith.addf %250, %254 : vector<16x1xf32>
    %c290 = arith.constant 290 : index
    %c0_231 = arith.constant 0 : index
    %256 = vector.load %arg8[%c290, %c0_231] : memref<432x256xf32, #tpu.memory_space<vmem>>, vector<16x256xf32>
    %257 = arith.addf %252, %256 : vector<16x256xf32>
    %c0_232 = arith.constant 0 : index
    %c290_233 = arith.constant 290 : index
    %c0_234 = arith.constant 0 : index
    %258 = vector.load %arg2[%c0_232, %c290_233, %c0_234] : memref<1x432x1xf32, #tpu.memory_space<vmem>>, vector<1x16x1xf32>
    %259 = vector.shape_cast %258 : vector<1x16x1xf32> to vector<16x1xf32>
    %260 = arith.addf %255, %259 : vector<16x1xf32>
    %c12 = arith.constant 12 : index
    %c0_235 = arith.constant 0 : index
    %c0_236 = arith.constant 0 : index
    %261 = vector.load %arg9[%c12, %c0_235, %c0_236] : memref<18x16x256xf32, #tpu.memory_space<vmem>>, vector<1x16x256xf32>
    %262 = vector.shape_cast %261 : vector<1x16x256xf32> to vector<16x256xf32>
    %263 = vector.shape_cast %257 : vector<16x256xf32> to vector<1x16x256xf32>
    tpu.vector_store %arg9[%c12, %c0_235, %c0_236], %263 {strides = array<i32>} : memref<18x16x256xf32, #tpu.memory_space<vmem>>, vector<1x16x256xf32>,
    %c12_237 = arith.constant 12 : index
    %c0_238 = arith.constant 0 : index
    %c0_239 = arith.constant 0 : index
    %264 = vector.load %arg10[%c12_237, %c0_238, %c0_239] : memref<18x16x1xf32, #tpu.memory_space<vmem>>, vector<1x16x1xf32>
    %265 = vector.shape_cast %264 : vector<1x16x1xf32> to vector<16x1xf32>
    %266 = vector.shape_cast %260 : vector<16x1xf32> to vector<1x16x1xf32>
    tpu.vector_store %arg10[%c12_237, %c0_238, %c0_239], %266 {strides = array<i32>} : memref<18x16x1xf32, #tpu.memory_space<vmem>>, vector<1x16x1xf32>,
    %c312 = arith.constant 312 : index
    %c0_240 = arith.constant 0 : index
    %267 = vector.load %arg8[%c312, %c0_240] : memref<432x256xf32, #tpu.memory_space<vmem>>, vector<16x256xf32>
    %c0_241 = arith.constant 0 : index
    %c312_242 = arith.constant 312 : index
    %c0_243 = arith.constant 0 : index
    %268 = vector.load %arg2[%c0_241, %c312_242, %c0_243] : memref<1x432x1xf32, #tpu.memory_space<vmem>>, vector<1x16x1xf32>
    %269 = vector.shape_cast %268 : vector<1x16x1xf32> to vector<16x1xf32>
    %c313 = arith.constant 313 : index
    %c0_244 = arith.constant 0 : index
    %270 = vector.load %arg8[%c313, %c0_244] : memref<432x256xf32, #tpu.memory_space<vmem>>, vector<16x256xf32>
    %271 = arith.addf %267, %270 : vector<16x256xf32>
    %c0_245 = arith.constant 0 : index
    %c313_246 = arith.constant 313 : index
    %c0_247 = arith.constant 0 : index
    %272 = vector.load %arg2[%c0_245, %c313_246, %c0_247] : memref<1x432x1xf32, #tpu.memory_space<vmem>>, vector<1x16x1xf32>
    %273 = vector.shape_cast %272 : vector<1x16x1xf32> to vector<16x1xf32>
    %274 = arith.addf %269, %273 : vector<16x1xf32>
    %c314 = arith.constant 314 : index
    %c0_248 = arith.constant 0 : index
    %275 = vector.load %arg8[%c314, %c0_248] : memref<432x256xf32, #tpu.memory_space<vmem>>, vector<16x256xf32>
    %276 = arith.addf %271, %275 : vector<16x256xf32>
    %c0_249 = arith.constant 0 : index
    %c314_250 = arith.constant 314 : index
    %c0_251 = arith.constant 0 : index
    %277 = vector.load %arg2[%c0_249, %c314_250, %c0_251] : memref<1x432x1xf32, #tpu.memory_space<vmem>>, vector<1x16x1xf32>
    %278 = vector.shape_cast %277 : vector<1x16x1xf32> to vector<16x1xf32>
    %279 = arith.addf %274, %278 : vector<16x1xf32>
    %c13 = arith.constant 13 : index
    %c0_252 = arith.constant 0 : index
    %c0_253 = arith.constant 0 : index
    %280 = vector.load %arg9[%c13, %c0_252, %c0_253] : memref<18x16x256xf32, #tpu.memory_space<vmem>>, vector<1x16x256xf32>
    %281 = vector.shape_cast %280 : vector<1x16x256xf32> to vector<16x256xf32>
    %282 = vector.shape_cast %276 : vector<16x256xf32> to vector<1x16x256xf32>
    tpu.vector_store %arg9[%c13, %c0_252, %c0_253], %282 {strides = array<i32>} : memref<18x16x256xf32, #tpu.memory_space<vmem>>, vector<1x16x256xf32>,
    %c13_254 = arith.constant 13 : index
    %c0_255 = arith.constant 0 : index
    %c0_256 = arith.constant 0 : index
    %283 = vector.load %arg10[%c13_254, %c0_255, %c0_256] : memref<18x16x1xf32, #tpu.memory_space<vmem>>, vector<1x16x1xf32>
    %284 = vector.shape_cast %283 : vector<1x16x1xf32> to vector<16x1xf32>
    %285 = vector.shape_cast %279 : vector<16x1xf32> to vector<1x16x1xf32>
    tpu.vector_store %arg10[%c13_254, %c0_255, %c0_256], %285 {strides = array<i32>} : memref<18x16x1xf32, #tpu.memory_space<vmem>>, vector<1x16x1xf32>,
    %c336 = arith.constant 336 : index
    %c0_257 = arith.constant 0 : index
    %286 = vector.load %arg8[%c336, %c0_257] : memref<432x256xf32, #tpu.memory_space<vmem>>, vector<16x256xf32>
    %c0_258 = arith.constant 0 : index
    %c336_259 = arith.constant 336 : index
    %c0_260 = arith.constant 0 : index
    %287 = vector.load %arg2[%c0_258, %c336_259, %c0_260] : memref<1x432x1xf32, #tpu.memory_space<vmem>>, vector<1x16x1xf32>
    %288 = vector.shape_cast %287 : vector<1x16x1xf32> to vector<16x1xf32>
    %c337 = arith.constant 337 : index
    %c0_261 = arith.constant 0 : index
    %289 = vector.load %arg8[%c337, %c0_261] : memref<432x256xf32, #tpu.memory_space<vmem>>, vector<16x256xf32>
    %290 = arith.addf %286, %289 : vector<16x256xf32>
    %c0_262 = arith.constant 0 : index
    %c337_263 = arith.constant 337 : index
    %c0_264 = arith.constant 0 : index
    %291 = vector.load %arg2[%c0_262, %c337_263, %c0_264] : memref<1x432x1xf32, #tpu.memory_space<vmem>>, vector<1x16x1xf32>
    %292 = vector.shape_cast %291 : vector<1x16x1xf32> to vector<16x1xf32>
    %293 = arith.addf %288, %292 : vector<16x1xf32>
    %c338 = arith.constant 338 : index
    %c0_265 = arith.constant 0 : index
    %294 = vector.load %arg8[%c338, %c0_265] : memref<432x256xf32, #tpu.memory_space<vmem>>, vector<16x256xf32>
    %295 = arith.addf %290, %294 : vector<16x256xf32>
    %c0_266 = arith.constant 0 : index
    %c338_267 = arith.constant 338 : index
    %c0_268 = arith.constant 0 : index
    %296 = vector.load %arg2[%c0_266, %c338_267, %c0_268] : memref<1x432x1xf32, #tpu.memory_space<vmem>>, vector<1x16x1xf32>
    %297 = vector.shape_cast %296 : vector<1x16x1xf32> to vector<16x1xf32>
    %298 = arith.addf %293, %297 : vector<16x1xf32>
    %c14 = arith.constant 14 : index
    %c0_269 = arith.constant 0 : index
    %c0_270 = arith.constant 0 : index
    %299 = vector.load %arg9[%c14, %c0_269, %c0_270] : memref<18x16x256xf32, #tpu.memory_space<vmem>>, vector<1x16x256xf32>
    %300 = vector.shape_cast %299 : vector<1x16x256xf32> to vector<16x256xf32>
    %301 = vector.shape_cast %295 : vector<16x256xf32> to vector<1x16x256xf32>
    tpu.vector_store %arg9[%c14, %c0_269, %c0_270], %301 {strides = array<i32>} : memref<18x16x256xf32, #tpu.memory_space<vmem>>, vector<1x16x256xf32>,
    %c14_271 = arith.constant 14 : index
    %c0_272 = arith.constant 0 : index
    %c0_273 = arith.constant 0 : index
    %302 = vector.load %arg10[%c14_271, %c0_272, %c0_273] : memref<18x16x1xf32, #tpu.memory_space<vmem>>, vector<1x16x1xf32>
    %303 = vector.shape_cast %302 : vector<1x16x1xf32> to vector<16x1xf32>
    %304 = vector.shape_cast %298 : vector<16x1xf32> to vector<1x16x1xf32>
    tpu.vector_store %arg10[%c14_271, %c0_272, %c0_273], %304 {strides = array<i32>} : memref<18x16x1xf32, #tpu.memory_space<vmem>>, vector<1x16x1xf32>,
    %c360 = arith.constant 360 : index
    %c0_274 = arith.constant 0 : index
    %305 = vector.load %arg8[%c360, %c0_274] : memref<432x256xf32, #tpu.memory_space<vmem>>, vector<16x256xf32>
    %c0_275 = arith.constant 0 : index
    %c360_276 = arith.constant 360 : index
    %c0_277 = arith.constant 0 : index
    %306 = vector.load %arg2[%c0_275, %c360_276, %c0_277] : memref<1x432x1xf32, #tpu.memory_space<vmem>>, vector<1x16x1xf32>
    %307 = vector.shape_cast %306 : vector<1x16x1xf32> to vector<16x1xf32>
    %c361 = arith.constant 361 : index
    %c0_278 = arith.constant 0 : index
    %308 = vector.load %arg8[%c361, %c0_278] : memref<432x256xf32, #tpu.memory_space<vmem>>, vector<16x256xf32>
    %309 = arith.addf %305, %308 : vector<16x256xf32>
    %c0_279 = arith.constant 0 : index
    %c361_280 = arith.constant 361 : index
    %c0_281 = arith.constant 0 : index
    %310 = vector.load %arg2[%c0_279, %c361_280, %c0_281] : memref<1x432x1xf32, #tpu.memory_space<vmem>>, vector<1x16x1xf32>
    %311 = vector.shape_cast %310 : vector<1x16x1xf32> to vector<16x1xf32>
    %312 = arith.addf %307, %311 : vector<16x1xf32>
    %c362 = arith.constant 362 : index
    %c0_282 = arith.constant 0 : index
    %313 = vector.load %arg8[%c362, %c0_282] : memref<432x256xf32, #tpu.memory_space<vmem>>, vector<16x256xf32>
    %314 = arith.addf %309, %313 : vector<16x256xf32>
    %c0_283 = arith.constant 0 : index
    %c362_284 = arith.constant 362 : index
    %c0_285 = arith.constant 0 : index
    %315 = vector.load %arg2[%c0_283, %c362_284, %c0_285] : memref<1x432x1xf32, #tpu.memory_space<vmem>>, vector<1x16x1xf32>
    %316 = vector.shape_cast %315 : vector<1x16x1xf32> to vector<16x1xf32>
    %317 = arith.addf %312, %316 : vector<16x1xf32>
    %c15 = arith.constant 15 : index
    %c0_286 = arith.constant 0 : index
    %c0_287 = arith.constant 0 : index
    %318 = vector.load %arg9[%c15, %c0_286, %c0_287] : memref<18x16x256xf32, #tpu.memory_space<vmem>>, vector<1x16x256xf32>
    %319 = vector.shape_cast %318 : vector<1x16x256xf32> to vector<16x256xf32>
    %320 = vector.shape_cast %314 : vector<16x256xf32> to vector<1x16x256xf32>
    tpu.vector_store %arg9[%c15, %c0_286, %c0_287], %320 {strides = array<i32>} : memref<18x16x256xf32, #tpu.memory_space<vmem>>, vector<1x16x256xf32>,
    %c15_288 = arith.constant 15 : index
    %c0_289 = arith.constant 0 : index
    %c0_290 = arith.constant 0 : index
    %321 = vector.load %arg10[%c15_288, %c0_289, %c0_290] : memref<18x16x1xf32, #tpu.memory_space<vmem>>, vector<1x16x1xf32>
    %322 = vector.shape_cast %321 : vector<1x16x1xf32> to vector<16x1xf32>
    %323 = vector.shape_cast %317 : vector<16x1xf32> to vector<1x16x1xf32>
    tpu.vector_store %arg10[%c15_288, %c0_289, %c0_290], %323 {strides = array<i32>} : memref<18x16x1xf32, #tpu.memory_space<vmem>>, vector<1x16x1xf32>,
    %c384 = arith.constant 384 : index
    %c0_291 = arith.constant 0 : index
    %324 = vector.load %arg8[%c384, %c0_291] : memref<432x256xf32, #tpu.memory_space<vmem>>, vector<16x256xf32>
    %c0_292 = arith.constant 0 : index
    %c384_293 = arith.constant 384 : index
    %c0_294 = arith.constant 0 : index
    %325 = vector.load %arg2[%c0_292, %c384_293, %c0_294] : memref<1x432x1xf32, #tpu.memory_space<vmem>>, vector<1x16x1xf32>
    %326 = vector.shape_cast %325 : vector<1x16x1xf32> to vector<16x1xf32>
    %c385 = arith.constant 385 : index
    %c0_295 = arith.constant 0 : index
    %327 = vector.load %arg8[%c385, %c0_295] : memref<432x256xf32, #tpu.memory_space<vmem>>, vector<16x256xf32>
    %328 = arith.addf %324, %327 : vector<16x256xf32>
    %c0_296 = arith.constant 0 : index
    %c385_297 = arith.constant 385 : index
    %c0_298 = arith.constant 0 : index
    %329 = vector.load %arg2[%c0_296, %c385_297, %c0_298] : memref<1x432x1xf32, #tpu.memory_space<vmem>>, vector<1x16x1xf32>
    %330 = vector.shape_cast %329 : vector<1x16x1xf32> to vector<16x1xf32>
    %331 = arith.addf %326, %330 : vector<16x1xf32>
    %c386 = arith.constant 386 : index
    %c0_299 = arith.constant 0 : index
    %332 = vector.load %arg8[%c386, %c0_299] : memref<432x256xf32, #tpu.memory_space<vmem>>, vector<16x256xf32>
    %333 = arith.addf %328, %332 : vector<16x256xf32>
    %c0_300 = arith.constant 0 : index
    %c386_301 = arith.constant 386 : index
    %c0_302 = arith.constant 0 : index
    %334 = vector.load %arg2[%c0_300, %c386_301, %c0_302] : memref<1x432x1xf32, #tpu.memory_space<vmem>>, vector<1x16x1xf32>
    %335 = vector.shape_cast %334 : vector<1x16x1xf32> to vector<16x1xf32>
    %336 = arith.addf %331, %335 : vector<16x1xf32>
    %c16 = arith.constant 16 : index
    %c0_303 = arith.constant 0 : index
    %c0_304 = arith.constant 0 : index
    %337 = vector.load %arg9[%c16, %c0_303, %c0_304] : memref<18x16x256xf32, #tpu.memory_space<vmem>>, vector<1x16x256xf32>
    %338 = vector.shape_cast %337 : vector<1x16x256xf32> to vector<16x256xf32>
    %339 = vector.shape_cast %333 : vector<16x256xf32> to vector<1x16x256xf32>
    tpu.vector_store %arg9[%c16, %c0_303, %c0_304], %339 {strides = array<i32>} : memref<18x16x256xf32, #tpu.memory_space<vmem>>, vector<1x16x256xf32>,
    %c16_305 = arith.constant 16 : index
    %c0_306 = arith.constant 0 : index
    %c0_307 = arith.constant 0 : index
    %340 = vector.load %arg10[%c16_305, %c0_306, %c0_307] : memref<18x16x1xf32, #tpu.memory_space<vmem>>, vector<1x16x1xf32>
    %341 = vector.shape_cast %340 : vector<1x16x1xf32> to vector<16x1xf32>
    %342 = vector.shape_cast %336 : vector<16x1xf32> to vector<1x16x1xf32>
    tpu.vector_store %arg10[%c16_305, %c0_306, %c0_307], %342 {strides = array<i32>} : memref<18x16x1xf32, #tpu.memory_space<vmem>>, vector<1x16x1xf32>,
    %c408 = arith.constant 408 : index
    %c0_308 = arith.constant 0 : index
    %343 = vector.load %arg8[%c408, %c0_308] : memref<432x256xf32, #tpu.memory_space<vmem>>, vector<16x256xf32>
    %c0_309 = arith.constant 0 : index
    %c408_310 = arith.constant 408 : index
    %c0_311 = arith.constant 0 : index
    %344 = vector.load %arg2[%c0_309, %c408_310, %c0_311] : memref<1x432x1xf32, #tpu.memory_space<vmem>>, vector<1x16x1xf32>
    %345 = vector.shape_cast %344 : vector<1x16x1xf32> to vector<16x1xf32>
    %c409 = arith.constant 409 : index
    %c0_312 = arith.constant 0 : index
    %346 = vector.load %arg8[%c409, %c0_312] : memref<432x256xf32, #tpu.memory_space<vmem>>, vector<16x256xf32>
    %347 = arith.addf %343, %346 : vector<16x256xf32>
    %c0_313 = arith.constant 0 : index
    %c409_314 = arith.constant 409 : index
    %c0_315 = arith.constant 0 : index
    %348 = vector.load %arg2[%c0_313, %c409_314, %c0_315] : memref<1x432x1xf32, #tpu.memory_space<vmem>>, vector<1x16x1xf32>
    %349 = vector.shape_cast %348 : vector<1x16x1xf32> to vector<16x1xf32>
    %350 = arith.addf %345, %349 : vector<16x1xf32>
    %c410 = arith.constant 410 : index
    %c0_316 = arith.constant 0 : index
    %351 = vector.load %arg8[%c410, %c0_316] : memref<432x256xf32, #tpu.memory_space<vmem>>, vector<16x256xf32>
    %352 = arith.addf %347, %351 : vector<16x256xf32>
    %c0_317 = arith.constant 0 : index
    %c410_318 = arith.constant 410 : index
    %c0_319 = arith.constant 0 : index
    %353 = vector.load %arg2[%c0_317, %c410_318, %c0_319] : memref<1x432x1xf32, #tpu.memory_space<vmem>>, vector<1x16x1xf32>
    %354 = vector.shape_cast %353 : vector<1x16x1xf32> to vector<16x1xf32>
    %355 = arith.addf %350, %354 : vector<16x1xf32>
    %c17 = arith.constant 17 : index
    %c0_320 = arith.constant 0 : index
    %c0_321 = arith.constant 0 : index
    %356 = vector.load %arg9[%c17, %c0_320, %c0_321] : memref<18x16x256xf32, #tpu.memory_space<vmem>>, vector<1x16x256xf32>
    %357 = vector.shape_cast %356 : vector<1x16x256xf32> to vector<16x256xf32>
    %358 = vector.shape_cast %352 : vector<16x256xf32> to vector<1x16x256xf32>
    tpu.vector_store %arg9[%c17, %c0_320, %c0_321], %358 {strides = array<i32>} : memref<18x16x256xf32, #tpu.memory_space<vmem>>, vector<1x16x256xf32>,
    %c17_322 = arith.constant 17 : index
    %c0_323 = arith.constant 0 : index
    %c0_324 = arith.constant 0 : index
    %359 = vector.load %arg10[%c17_322, %c0_323, %c0_324] : memref<18x16x1xf32, #tpu.memory_space<vmem>>, vector<1x16x1xf32>
    %360 = vector.shape_cast %359 : vector<1x16x1xf32> to vector<16x1xf32>
    %361 = vector.shape_cast %355 : vector<16x1xf32> to vector<1x16x1xf32>
    tpu.vector_store %arg10[%c17_322, %c0_323, %c0_324], %361 {strides = array<i32>} : memref<18x16x1xf32, #tpu.memory_space<vmem>>, vector<1x16x1xf32>,
    %c0_325 = arith.constant 0 : index
    %c0_326 = arith.constant 0 : index
    %c0_327 = arith.constant 0 : index
    %362 = vector.load %arg9[%c0_325, %c0_326, %c0_327] : memref<18x16x256xf32, #tpu.memory_space<vmem>>, vector<1x16x256xf32>
    %363 = vector.shape_cast %362 : vector<1x16x256xf32> to vector<16x256xf32>
    %c0_328 = arith.constant 0 : index
    %c0_329 = arith.constant 0 : index
    %c0_330 = arith.constant 0 : index
    %364 = vector.load %arg10[%c0_328, %c0_329, %c0_330] : memref<18x16x1xf32, #tpu.memory_space<vmem>>, vector<1x16x1xf32>
    %365 = vector.shape_cast %364 : vector<1x16x1xf32> to vector<16x1xf32>
    %c1_331 = arith.constant 1 : index
    %c0_332 = arith.constant 0 : index
    %c0_333 = arith.constant 0 : index
    %366 = vector.load %arg9[%c1_331, %c0_332, %c0_333] : memref<18x16x256xf32, #tpu.memory_space<vmem>>, vector<1x16x256xf32>
    %367 = vector.shape_cast %366 : vector<1x16x256xf32> to vector<16x256xf32>
    %368 = arith.addf %363, %367 : vector<16x256xf32>
    %c1_334 = arith.constant 1 : index
    %c0_335 = arith.constant 0 : index
    %c0_336 = arith.constant 0 : index
    %369 = vector.load %arg10[%c1_334, %c0_335, %c0_336] : memref<18x16x1xf32, #tpu.memory_space<vmem>>, vector<1x16x1xf32>
    %370 = vector.shape_cast %369 : vector<1x16x1xf32> to vector<16x1xf32>
    %371 = arith.addf %365, %370 : vector<16x1xf32>
    %c2_337 = arith.constant 2 : index
    %c0_338 = arith.constant 0 : index
    %c0_339 = arith.constant 0 : index
    %372 = vector.load %arg9[%c2_337, %c0_338, %c0_339] : memref<18x16x256xf32, #tpu.memory_space<vmem>>, vector<1x16x256xf32>
    %373 = vector.shape_cast %372 : vector<1x16x256xf32> to vector<16x256xf32>
    %374 = arith.addf %368, %373 : vector<16x256xf32>
    %c2_340 = arith.constant 2 : index
    %c0_341 = arith.constant 0 : index
    %c0_342 = arith.constant 0 : index
    %375 = vector.load %arg10[%c2_340, %c0_341, %c0_342] : memref<18x16x1xf32, #tpu.memory_space<vmem>>, vector<1x16x1xf32>
    %376 = vector.shape_cast %375 : vector<1x16x1xf32> to vector<16x1xf32>
    %377 = arith.addf %371, %376 : vector<16x1xf32>
    %c0_343 = arith.constant 0 : index
    %c0_344 = arith.constant 0 : index
    %c0_345 = arith.constant 0 : index
    %378 = vector.load %arg6[%c0_343, %c0_344, %c0_345] : memref<16x16x1xf32, #tpu.memory_space<vmem>>, vector<1x16x1xf32>
    %379 = vector.shape_cast %378 : vector<1x16x1xf32> to vector<16x1xf32>
    %380 = arith.addf %377, %379 : vector<16x1xf32>
    %381 = tpu.reciprocal %380 {approx = true} : vector<16x1xf32> -> vector<16x1xf32>
    %382 = vector.broadcast %381 : vector<16x1xf32> to vector<16x256xf32>
    %383 = arith.mulf %374, %382 : vector<16x256xf32>
    %c0_346 = arith.constant 0 : index
    %c0_347 = arith.constant 0 : index
    %c0_348 = arith.constant 0 : index
    %c0_349 = arith.constant 0 : index
    %384 = vector.load %arg7[%c0_346, %c0_347, %c0_348, %c0_349] : memref<1x16x16x256xf32, #tpu.memory_space<vmem>>, vector<1x1x16x256xf32>
    %385 = vector.shape_cast %384 : vector<1x1x16x256xf32> to vector<16x256xf32>
    %386 = vector.shape_cast %383 : vector<16x256xf32> to vector<1x1x16x256xf32>
    tpu.vector_store %arg7[%c0_346, %c0_347, %c0_348, %c0_349], %386 {strides = array<i32>} : memref<1x16x16x256xf32, #tpu.memory_space<vmem>>, vector<1x1x16x256xf32>,
    %c1_350 = arith.constant 1 : index
    %c0_351 = arith.constant 0 : index
    %c0_352 = arith.constant 0 : index
    %387 = vector.load %arg9[%c1_350, %c0_351, %c0_352] : memref<18x16x256xf32, #tpu.memory_space<vmem>>, vector<1x16x256xf32>
    %388 = vector.shape_cast %387 : vector<1x16x256xf32> to vector<16x256xf32>
    %c1_353 = arith.constant 1 : index
    %c0_354 = arith.constant 0 : index
    %c0_355 = arith.constant 0 : index
    %389 = vector.load %arg10[%c1_353, %c0_354, %c0_355] : memref<18x16x1xf32, #tpu.memory_space<vmem>>, vector<1x16x1xf32>
    %390 = vector.shape_cast %389 : vector<1x16x1xf32> to vector<16x1xf32>
    %c2_356 = arith.constant 2 : index
    %c0_357 = arith.constant 0 : index
    %c0_358 = arith.constant 0 : index
    %391 = vector.load %arg9[%c2_356, %c0_357, %c0_358] : memref<18x16x256xf32, #tpu.memory_space<vmem>>, vector<1x16x256xf32>
    %392 = vector.shape_cast %391 : vector<1x16x256xf32> to vector<16x256xf32>
    %393 = arith.addf %388, %392 : vector<16x256xf32>
    %c2_359 = arith.constant 2 : index
    %c0_360 = arith.constant 0 : index
    %c0_361 = arith.constant 0 : index
    %394 = vector.load %arg10[%c2_359, %c0_360, %c0_361] : memref<18x16x1xf32, #tpu.memory_space<vmem>>, vector<1x16x1xf32>
    %395 = vector.shape_cast %394 : vector<1x16x1xf32> to vector<16x1xf32>
    %396 = arith.addf %390, %395 : vector<16x1xf32>
    %c3_362 = arith.constant 3 : index
    %c0_363 = arith.constant 0 : index
    %c0_364 = arith.constant 0 : index
    %397 = vector.load %arg9[%c3_362, %c0_363, %c0_364] : memref<18x16x256xf32, #tpu.memory_space<vmem>>, vector<1x16x256xf32>
    %398 = vector.shape_cast %397 : vector<1x16x256xf32> to vector<16x256xf32>
    %399 = arith.addf %393, %398 : vector<16x256xf32>
    %c3_365 = arith.constant 3 : index
    %c0_366 = arith.constant 0 : index
    %c0_367 = arith.constant 0 : index
    %400 = vector.load %arg10[%c3_365, %c0_366, %c0_367] : memref<18x16x1xf32, #tpu.memory_space<vmem>>, vector<1x16x1xf32>
    %401 = vector.shape_cast %400 : vector<1x16x1xf32> to vector<16x1xf32>
    %402 = arith.addf %396, %401 : vector<16x1xf32>
    %c1_368 = arith.constant 1 : index
    %c0_369 = arith.constant 0 : index
    %c0_370 = arith.constant 0 : index
    %403 = vector.load %arg6[%c1_368, %c0_369, %c0_370] : memref<16x16x1xf32, #tpu.memory_space<vmem>>, vector<1x16x1xf32>
    %404 = vector.shape_cast %403 : vector<1x16x1xf32> to vector<16x1xf32>
    %405 = arith.addf %402, %404 : vector<16x1xf32>
    %406 = tpu.reciprocal %405 {approx = true} : vector<16x1xf32> -> vector<16x1xf32>
    %407 = vector.broadcast %406 : vector<16x1xf32> to vector<16x256xf32>
    %408 = arith.mulf %399, %407 : vector<16x256xf32>
    %c0_371 = arith.constant 0 : index
    %c1_372 = arith.constant 1 : index
    %c0_373 = arith.constant 0 : index
    %c0_374 = arith.constant 0 : index
    %409 = vector.load %arg7[%c0_371, %c1_372, %c0_373, %c0_374] : memref<1x16x16x256xf32, #tpu.memory_space<vmem>>, vector<1x1x16x256xf32>
    %410 = vector.shape_cast %409 : vector<1x1x16x256xf32> to vector<16x256xf32>
    %411 = vector.shape_cast %408 : vector<16x256xf32> to vector<1x1x16x256xf32>
    tpu.vector_store %arg7[%c0_371, %c1_372, %c0_373, %c0_374], %411 {strides = array<i32>} : memref<1x16x16x256xf32, #tpu.memory_space<vmem>>, vector<1x1x16x256xf32>,
    %c2_375 = arith.constant 2 : index
    %c0_376 = arith.constant 0 : index
    %c0_377 = arith.constant 0 : index
    %412 = vector.load %arg9[%c2_375, %c0_376, %c0_377] : memref<18x16x256xf32, #tpu.memory_space<vmem>>, vector<1x16x256xf32>
    %413 = vector.shape_cast %412 : vector<1x16x256xf32> to vector<16x256xf32>
    %c2_378 = arith.constant 2 : index
    %c0_379 = arith.constant 0 : index
    %c0_380 = arith.constant 0 : index
    %414 = vector.load %arg10[%c2_378, %c0_379, %c0_380] : memref<18x16x1xf32, #tpu.memory_space<vmem>>, vector<1x16x1xf32>
    %415 = vector.shape_cast %414 : vector<1x16x1xf32> to vector<16x1xf32>
    %c3_381 = arith.constant 3 : index
    %c0_382 = arith.constant 0 : index
    %c0_383 = arith.constant 0 : index
    %416 = vector.load %arg9[%c3_381, %c0_382, %c0_383] : memref<18x16x256xf32, #tpu.memory_space<vmem>>, vector<1x16x256xf32>
    %417 = vector.shape_cast %416 : vector<1x16x256xf32> to vector<16x256xf32>
    %418 = arith.addf %413, %417 : vector<16x256xf32>
    %c3_384 = arith.constant 3 : index
    %c0_385 = arith.constant 0 : index
    %c0_386 = arith.constant 0 : index
    %419 = vector.load %arg10[%c3_384, %c0_385, %c0_386] : memref<18x16x1xf32, #tpu.memory_space<vmem>>, vector<1x16x1xf32>
    %420 = vector.shape_cast %419 : vector<1x16x1xf32> to vector<16x1xf32>
    %421 = arith.addf %415, %420 : vector<16x1xf32>
    %c4_387 = arith.constant 4 : index
    %c0_388 = arith.constant 0 : index
    %c0_389 = arith.constant 0 : index
    %422 = vector.load %arg9[%c4_387, %c0_388, %c0_389] : memref<18x16x256xf32, #tpu.memory_space<vmem>>, vector<1x16x256xf32>
    %423 = vector.shape_cast %422 : vector<1x16x256xf32> to vector<16x256xf32>
    %424 = arith.addf %418, %423 : vector<16x256xf32>
    %c4_390 = arith.constant 4 : index
    %c0_391 = arith.constant 0 : index
    %c0_392 = arith.constant 0 : index
    %425 = vector.load %arg10[%c4_390, %c0_391, %c0_392] : memref<18x16x1xf32, #tpu.memory_space<vmem>>, vector<1x16x1xf32>
    %426 = vector.shape_cast %425 : vector<1x16x1xf32> to vector<16x1xf32>
    %427 = arith.addf %421, %426 : vector<16x1xf32>
    %c2_393 = arith.constant 2 : index
    %c0_394 = arith.constant 0 : index
    %c0_395 = arith.constant 0 : index
    %428 = vector.load %arg6[%c2_393, %c0_394, %c0_395] : memref<16x16x1xf32, #tpu.memory_space<vmem>>, vector<1x16x1xf32>
    %429 = vector.shape_cast %428 : vector<1x16x1xf32> to vector<16x1xf32>
    %430 = arith.addf %427, %429 : vector<16x1xf32>
    %431 = tpu.reciprocal %430 {approx = true} : vector<16x1xf32> -> vector<16x1xf32>
    %432 = vector.broadcast %431 : vector<16x1xf32> to vector<16x256xf32>
    %433 = arith.mulf %424, %432 : vector<16x256xf32>
    %c0_396 = arith.constant 0 : index
    %c2_397 = arith.constant 2 : index
    %c0_398 = arith.constant 0 : index
    %c0_399 = arith.constant 0 : index
    %434 = vector.load %arg7[%c0_396, %c2_397, %c0_398, %c0_399] : memref<1x16x16x256xf32, #tpu.memory_space<vmem>>, vector<1x1x16x256xf32>
    %435 = vector.shape_cast %434 : vector<1x1x16x256xf32> to vector<16x256xf32>
    %436 = vector.shape_cast %433 : vector<16x256xf32> to vector<1x1x16x256xf32>
    tpu.vector_store %arg7[%c0_396, %c2_397, %c0_398, %c0_399], %436 {strides = array<i32>} : memref<1x16x16x256xf32, #tpu.memory_space<vmem>>, vector<1x1x16x256xf32>,
    %c3_400 = arith.constant 3 : index
    %c0_401 = arith.constant 0 : index
    %c0_402 = arith.constant 0 : index
    %437 = vector.load %arg9[%c3_400, %c0_401, %c0_402] : memref<18x16x256xf32, #tpu.memory_space<vmem>>, vector<1x16x256xf32>
    %438 = vector.shape_cast %437 : vector<1x16x256xf32> to vector<16x256xf32>
    %c3_403 = arith.constant 3 : index
    %c0_404 = arith.constant 0 : index
    %c0_405 = arith.constant 0 : index
    %439 = vector.load %arg10[%c3_403, %c0_404, %c0_405] : memref<18x16x1xf32, #tpu.memory_space<vmem>>, vector<1x16x1xf32>
    %440 = vector.shape_cast %439 : vector<1x16x1xf32> to vector<16x1xf32>
    %c4_406 = arith.constant 4 : index
    %c0_407 = arith.constant 0 : index
    %c0_408 = arith.constant 0 : index
    %441 = vector.load %arg9[%c4_406, %c0_407, %c0_408] : memref<18x16x256xf32, #tpu.memory_space<vmem>>, vector<1x16x256xf32>
    %442 = vector.shape_cast %441 : vector<1x16x256xf32> to vector<16x256xf32>
    %443 = arith.addf %438, %442 : vector<16x256xf32>
    %c4_409 = arith.constant 4 : index
    %c0_410 = arith.constant 0 : index
    %c0_411 = arith.constant 0 : index
    %444 = vector.load %arg10[%c4_409, %c0_410, %c0_411] : memref<18x16x1xf32, #tpu.memory_space<vmem>>, vector<1x16x1xf32>
    %445 = vector.shape_cast %444 : vector<1x16x1xf32> to vector<16x1xf32>
    %446 = arith.addf %440, %445 : vector<16x1xf32>
    %c5_412 = arith.constant 5 : index
    %c0_413 = arith.constant 0 : index
    %c0_414 = arith.constant 0 : index
    %447 = vector.load %arg9[%c5_412, %c0_413, %c0_414] : memref<18x16x256xf32, #tpu.memory_space<vmem>>, vector<1x16x256xf32>
    %448 = vector.shape_cast %447 : vector<1x16x256xf32> to vector<16x256xf32>
    %449 = arith.addf %443, %448 : vector<16x256xf32>
    %c5_415 = arith.constant 5 : index
    %c0_416 = arith.constant 0 : index
    %c0_417 = arith.constant 0 : index
    %450 = vector.load %arg10[%c5_415, %c0_416, %c0_417] : memref<18x16x1xf32, #tpu.memory_space<vmem>>, vector<1x16x1xf32>
    %451 = vector.shape_cast %450 : vector<1x16x1xf32> to vector<16x1xf32>
    %452 = arith.addf %446, %451 : vector<16x1xf32>
    %c3_418 = arith.constant 3 : index
    %c0_419 = arith.constant 0 : index
    %c0_420 = arith.constant 0 : index
    %453 = vector.load %arg6[%c3_418, %c0_419, %c0_420] : memref<16x16x1xf32, #tpu.memory_space<vmem>>, vector<1x16x1xf32>
    %454 = vector.shape_cast %453 : vector<1x16x1xf32> to vector<16x1xf32>
    %455 = arith.addf %452, %454 : vector<16x1xf32>
    %456 = tpu.reciprocal %455 {approx = true} : vector<16x1xf32> -> vector<16x1xf32>
    %457 = vector.broadcast %456 : vector<16x1xf32> to vector<16x256xf32>
    %458 = arith.mulf %449, %457 : vector<16x256xf32>
    %c0_421 = arith.constant 0 : index
    %c3_422 = arith.constant 3 : index
    %c0_423 = arith.constant 0 : index
    %c0_424 = arith.constant 0 : index
    %459 = vector.load %arg7[%c0_421, %c3_422, %c0_423, %c0_424] : memref<1x16x16x256xf32, #tpu.memory_space<vmem>>, vector<1x1x16x256xf32>
    %460 = vector.shape_cast %459 : vector<1x1x16x256xf32> to vector<16x256xf32>
    %461 = vector.shape_cast %458 : vector<16x256xf32> to vector<1x1x16x256xf32>
    tpu.vector_store %arg7[%c0_421, %c3_422, %c0_423, %c0_424], %461 {strides = array<i32>} : memref<1x16x16x256xf32, #tpu.memory_space<vmem>>, vector<1x1x16x256xf32>,
    %c4_425 = arith.constant 4 : index
    %c0_426 = arith.constant 0 : index
    %c0_427 = arith.constant 0 : index
    %462 = vector.load %arg9[%c4_425, %c0_426, %c0_427] : memref<18x16x256xf32, #tpu.memory_space<vmem>>, vector<1x16x256xf32>
    %463 = vector.shape_cast %462 : vector<1x16x256xf32> to vector<16x256xf32>
    %c4_428 = arith.constant 4 : index
    %c0_429 = arith.constant 0 : index
    %c0_430 = arith.constant 0 : index
    %464 = vector.load %arg10[%c4_428, %c0_429, %c0_430] : memref<18x16x1xf32, #tpu.memory_space<vmem>>, vector<1x16x1xf32>
    %465 = vector.shape_cast %464 : vector<1x16x1xf32> to vector<16x1xf32>
    %c5_431 = arith.constant 5 : index
    %c0_432 = arith.constant 0 : index
    %c0_433 = arith.constant 0 : index
    %466 = vector.load %arg9[%c5_431, %c0_432, %c0_433] : memref<18x16x256xf32, #tpu.memory_space<vmem>>, vector<1x16x256xf32>
    %467 = vector.shape_cast %466 : vector<1x16x256xf32> to vector<16x256xf32>
    %468 = arith.addf %463, %467 : vector<16x256xf32>
    %c5_434 = arith.constant 5 : index
    %c0_435 = arith.constant 0 : index
    %c0_436 = arith.constant 0 : index
    %469 = vector.load %arg10[%c5_434, %c0_435, %c0_436] : memref<18x16x1xf32, #tpu.memory_space<vmem>>, vector<1x16x1xf32>
    %470 = vector.shape_cast %469 : vector<1x16x1xf32> to vector<16x1xf32>
    %471 = arith.addf %465, %470 : vector<16x1xf32>
    %c6_437 = arith.constant 6 : index
    %c0_438 = arith.constant 0 : index
    %c0_439 = arith.constant 0 : index
    %472 = vector.load %arg9[%c6_437, %c0_438, %c0_439] : memref<18x16x256xf32, #tpu.memory_space<vmem>>, vector<1x16x256xf32>
    %473 = vector.shape_cast %472 : vector<1x16x256xf32> to vector<16x256xf32>
    %474 = arith.addf %468, %473 : vector<16x256xf32>
    %c6_440 = arith.constant 6 : index
    %c0_441 = arith.constant 0 : index
    %c0_442 = arith.constant 0 : index
    %475 = vector.load %arg10[%c6_440, %c0_441, %c0_442] : memref<18x16x1xf32, #tpu.memory_space<vmem>>, vector<1x16x1xf32>
    %476 = vector.shape_cast %475 : vector<1x16x1xf32> to vector<16x1xf32>
    %477 = arith.addf %471, %476 : vector<16x1xf32>
    %c4_443 = arith.constant 4 : index
    %c0_444 = arith.constant 0 : index
    %c0_445 = arith.constant 0 : index
    %478 = vector.load %arg6[%c4_443, %c0_444, %c0_445] : memref<16x16x1xf32, #tpu.memory_space<vmem>>, vector<1x16x1xf32>
    %479 = vector.shape_cast %478 : vector<1x16x1xf32> to vector<16x1xf32>
    %480 = arith.addf %477, %479 : vector<16x1xf32>
    %481 = tpu.reciprocal %480 {approx = true} : vector<16x1xf32> -> vector<16x1xf32>
    %482 = vector.broadcast %481 : vector<16x1xf32> to vector<16x256xf32>
    %483 = arith.mulf %474, %482 : vector<16x256xf32>
    %c0_446 = arith.constant 0 : index
    %c4_447 = arith.constant 4 : index
    %c0_448 = arith.constant 0 : index
    %c0_449 = arith.constant 0 : index
    %484 = vector.load %arg7[%c0_446, %c4_447, %c0_448, %c0_449] : memref<1x16x16x256xf32, #tpu.memory_space<vmem>>, vector<1x1x16x256xf32>
    %485 = vector.shape_cast %484 : vector<1x1x16x256xf32> to vector<16x256xf32>
    %486 = vector.shape_cast %483 : vector<16x256xf32> to vector<1x1x16x256xf32>
    tpu.vector_store %arg7[%c0_446, %c4_447, %c0_448, %c0_449], %486 {strides = array<i32>} : memref<1x16x16x256xf32, #tpu.memory_space<vmem>>, vector<1x1x16x256xf32>,
    %c5_450 = arith.constant 5 : index
    %c0_451 = arith.constant 0 : index
    %c0_452 = arith.constant 0 : index
    %487 = vector.load %arg9[%c5_450, %c0_451, %c0_452] : memref<18x16x256xf32, #tpu.memory_space<vmem>>, vector<1x16x256xf32>
    %488 = vector.shape_cast %487 : vector<1x16x256xf32> to vector<16x256xf32>
    %c5_453 = arith.constant 5 : index
    %c0_454 = arith.constant 0 : index
    %c0_455 = arith.constant 0 : index
    %489 = vector.load %arg10[%c5_453, %c0_454, %c0_455] : memref<18x16x1xf32, #tpu.memory_space<vmem>>, vector<1x16x1xf32>
    %490 = vector.shape_cast %489 : vector<1x16x1xf32> to vector<16x1xf32>
    %c6_456 = arith.constant 6 : index
    %c0_457 = arith.constant 0 : index
    %c0_458 = arith.constant 0 : index
    %491 = vector.load %arg9[%c6_456, %c0_457, %c0_458] : memref<18x16x256xf32, #tpu.memory_space<vmem>>, vector<1x16x256xf32>
    %492 = vector.shape_cast %491 : vector<1x16x256xf32> to vector<16x256xf32>
    %493 = arith.addf %488, %492 : vector<16x256xf32>
    %c6_459 = arith.constant 6 : index
    %c0_460 = arith.constant 0 : index
    %c0_461 = arith.constant 0 : index
    %494 = vector.load %arg10[%c6_459, %c0_460, %c0_461] : memref<18x16x1xf32, #tpu.memory_space<vmem>>, vector<1x16x1xf32>
    %495 = vector.shape_cast %494 : vector<1x16x1xf32> to vector<16x1xf32>
    %496 = arith.addf %490, %495 : vector<16x1xf32>
    %c7_462 = arith.constant 7 : index
    %c0_463 = arith.constant 0 : index
    %c0_464 = arith.constant 0 : index
    %497 = vector.load %arg9[%c7_462, %c0_463, %c0_464] : memref<18x16x256xf32, #tpu.memory_space<vmem>>, vector<1x16x256xf32>
    %498 = vector.shape_cast %497 : vector<1x16x256xf32> to vector<16x256xf32>
    %499 = arith.addf %493, %498 : vector<16x256xf32>
    %c7_465 = arith.constant 7 : index
    %c0_466 = arith.constant 0 : index
    %c0_467 = arith.constant 0 : index
    %500 = vector.load %arg10[%c7_465, %c0_466, %c0_467] : memref<18x16x1xf32, #tpu.memory_space<vmem>>, vector<1x16x1xf32>
    %501 = vector.shape_cast %500 : vector<1x16x1xf32> to vector<16x1xf32>
    %502 = arith.addf %496, %501 : vector<16x1xf32>
    %c5_468 = arith.constant 5 : index
    %c0_469 = arith.constant 0 : index
    %c0_470 = arith.constant 0 : index
    %503 = vector.load %arg6[%c5_468, %c0_469, %c0_470] : memref<16x16x1xf32, #tpu.memory_space<vmem>>, vector<1x16x1xf32>
    %504 = vector.shape_cast %503 : vector<1x16x1xf32> to vector<16x1xf32>
    %505 = arith.addf %502, %504 : vector<16x1xf32>
    %506 = tpu.reciprocal %505 {approx = true} : vector<16x1xf32> -> vector<16x1xf32>
    %507 = vector.broadcast %506 : vector<16x1xf32> to vector<16x256xf32>
    %508 = arith.mulf %499, %507 : vector<16x256xf32>
    %c0_471 = arith.constant 0 : index
    %c5_472 = arith.constant 5 : index
    %c0_473 = arith.constant 0 : index
    %c0_474 = arith.constant 0 : index
    %509 = vector.load %arg7[%c0_471, %c5_472, %c0_473, %c0_474] : memref<1x16x16x256xf32, #tpu.memory_space<vmem>>, vector<1x1x16x256xf32>
    %510 = vector.shape_cast %509 : vector<1x1x16x256xf32> to vector<16x256xf32>
    %511 = vector.shape_cast %508 : vector<16x256xf32> to vector<1x1x16x256xf32>
    tpu.vector_store %arg7[%c0_471, %c5_472, %c0_473, %c0_474], %511 {strides = array<i32>} : memref<1x16x16x256xf32, #tpu.memory_space<vmem>>, vector<1x1x16x256xf32>,
    %c6_475 = arith.constant 6 : index
    %c0_476 = arith.constant 0 : index
    %c0_477 = arith.constant 0 : index
    %512 = vector.load %arg9[%c6_475, %c0_476, %c0_477] : memref<18x16x256xf32, #tpu.memory_space<vmem>>, vector<1x16x256xf32>
    %513 = vector.shape_cast %512 : vector<1x16x256xf32> to vector<16x256xf32>
    %c6_478 = arith.constant 6 : index
    %c0_479 = arith.constant 0 : index
    %c0_480 = arith.constant 0 : index
    %514 = vector.load %arg10[%c6_478, %c0_479, %c0_480] : memref<18x16x1xf32, #tpu.memory_space<vmem>>, vector<1x16x1xf32>
    %515 = vector.shape_cast %514 : vector<1x16x1xf32> to vector<16x1xf32>
    %c7_481 = arith.constant 7 : index
    %c0_482 = arith.constant 0 : index
    %c0_483 = arith.constant 0 : index
    %516 = vector.load %arg9[%c7_481, %c0_482, %c0_483] : memref<18x16x256xf32, #tpu.memory_space<vmem>>, vector<1x16x256xf32>
    %517 = vector.shape_cast %516 : vector<1x16x256xf32> to vector<16x256xf32>
    %518 = arith.addf %513, %517 : vector<16x256xf32>
    %c7_484 = arith.constant 7 : index
    %c0_485 = arith.constant 0 : index
    %c0_486 = arith.constant 0 : index
    %519 = vector.load %arg10[%c7_484, %c0_485, %c0_486] : memref<18x16x1xf32, #tpu.memory_space<vmem>>, vector<1x16x1xf32>
    %520 = vector.shape_cast %519 : vector<1x16x1xf32> to vector<16x1xf32>
    %521 = arith.addf %515, %520 : vector<16x1xf32>
    %c8_487 = arith.constant 8 : index
    %c0_488 = arith.constant 0 : index
    %c0_489 = arith.constant 0 : index
    %522 = vector.load %arg9[%c8_487, %c0_488, %c0_489] : memref<18x16x256xf32, #tpu.memory_space<vmem>>, vector<1x16x256xf32>
    %523 = vector.shape_cast %522 : vector<1x16x256xf32> to vector<16x256xf32>
    %524 = arith.addf %518, %523 : vector<16x256xf32>
    %c8_490 = arith.constant 8 : index
    %c0_491 = arith.constant 0 : index
    %c0_492 = arith.constant 0 : index
    %525 = vector.load %arg10[%c8_490, %c0_491, %c0_492] : memref<18x16x1xf32, #tpu.memory_space<vmem>>, vector<1x16x1xf32>
    %526 = vector.shape_cast %525 : vector<1x16x1xf32> to vector<16x1xf32>
    %527 = arith.addf %521, %526 : vector<16x1xf32>
    %c6_493 = arith.constant 6 : index
    %c0_494 = arith.constant 0 : index
    %c0_495 = arith.constant 0 : index
    %528 = vector.load %arg6[%c6_493, %c0_494, %c0_495] : memref<16x16x1xf32, #tpu.memory_space<vmem>>, vector<1x16x1xf32>
    %529 = vector.shape_cast %528 : vector<1x16x1xf32> to vector<16x1xf32>
    %530 = arith.addf %527, %529 : vector<16x1xf32>
    %531 = tpu.reciprocal %530 {approx = true} : vector<16x1xf32> -> vector<16x1xf32>
    %532 = vector.broadcast %531 : vector<16x1xf32> to vector<16x256xf32>
    %533 = arith.mulf %524, %532 : vector<16x256xf32>
    %c0_496 = arith.constant 0 : index
    %c6_497 = arith.constant 6 : index
    %c0_498 = arith.constant 0 : index
    %c0_499 = arith.constant 0 : index
    %534 = vector.load %arg7[%c0_496, %c6_497, %c0_498, %c0_499] : memref<1x16x16x256xf32, #tpu.memory_space<vmem>>, vector<1x1x16x256xf32>
    %535 = vector.shape_cast %534 : vector<1x1x16x256xf32> to vector<16x256xf32>
    %536 = vector.shape_cast %533 : vector<16x256xf32> to vector<1x1x16x256xf32>
    tpu.vector_store %arg7[%c0_496, %c6_497, %c0_498, %c0_499], %536 {strides = array<i32>} : memref<1x16x16x256xf32, #tpu.memory_space<vmem>>, vector<1x1x16x256xf32>,
    %c7_500 = arith.constant 7 : index
    %c0_501 = arith.constant 0 : index
    %c0_502 = arith.constant 0 : index
    %537 = vector.load %arg9[%c7_500, %c0_501, %c0_502] : memref<18x16x256xf32, #tpu.memory_space<vmem>>, vector<1x16x256xf32>
    %538 = vector.shape_cast %537 : vector<1x16x256xf32> to vector<16x256xf32>
    %c7_503 = arith.constant 7 : index
    %c0_504 = arith.constant 0 : index
    %c0_505 = arith.constant 0 : index
    %539 = vector.load %arg10[%c7_503, %c0_504, %c0_505] : memref<18x16x1xf32, #tpu.memory_space<vmem>>, vector<1x16x1xf32>
    %540 = vector.shape_cast %539 : vector<1x16x1xf32> to vector<16x1xf32>
    %c8_506 = arith.constant 8 : index
    %c0_507 = arith.constant 0 : index
    %c0_508 = arith.constant 0 : index
    %541 = vector.load %arg9[%c8_506, %c0_507, %c0_508] : memref<18x16x256xf32, #tpu.memory_space<vmem>>, vector<1x16x256xf32>
    %542 = vector.shape_cast %541 : vector<1x16x256xf32> to vector<16x256xf32>
    %543 = arith.addf %538, %542 : vector<16x256xf32>
    %c8_509 = arith.constant 8 : index
    %c0_510 = arith.constant 0 : index
    %c0_511 = arith.constant 0 : index
    %544 = vector.load %arg10[%c8_509, %c0_510, %c0_511] : memref<18x16x1xf32, #tpu.memory_space<vmem>>, vector<1x16x1xf32>
    %545 = vector.shape_cast %544 : vector<1x16x1xf32> to vector<16x1xf32>
    %546 = arith.addf %540, %545 : vector<16x1xf32>
    %c9_512 = arith.constant 9 : index
    %c0_513 = arith.constant 0 : index
    %c0_514 = arith.constant 0 : index
    %547 = vector.load %arg9[%c9_512, %c0_513, %c0_514] : memref<18x16x256xf32, #tpu.memory_space<vmem>>, vector<1x16x256xf32>
    %548 = vector.shape_cast %547 : vector<1x16x256xf32> to vector<16x256xf32>
    %549 = arith.addf %543, %548 : vector<16x256xf32>
    %c9_515 = arith.constant 9 : index
    %c0_516 = arith.constant 0 : index
    %c0_517 = arith.constant 0 : index
    %550 = vector.load %arg10[%c9_515, %c0_516, %c0_517] : memref<18x16x1xf32, #tpu.memory_space<vmem>>, vector<1x16x1xf32>
    %551 = vector.shape_cast %550 : vector<1x16x1xf32> to vector<16x1xf32>
    %552 = arith.addf %546, %551 : vector<16x1xf32>
    %c7_518 = arith.constant 7 : index
    %c0_519 = arith.constant 0 : index
    %c0_520 = arith.constant 0 : index
    %553 = vector.load %arg6[%c7_518, %c0_519, %c0_520] : memref<16x16x1xf32, #tpu.memory_space<vmem>>, vector<1x16x1xf32>
    %554 = vector.shape_cast %553 : vector<1x16x1xf32> to vector<16x1xf32>
    %555 = arith.addf %552, %554 : vector<16x1xf32>
    %556 = tpu.reciprocal %555 {approx = true} : vector<16x1xf32> -> vector<16x1xf32>
    %557 = vector.broadcast %556 : vector<16x1xf32> to vector<16x256xf32>
    %558 = arith.mulf %549, %557 : vector<16x256xf32>
    %c0_521 = arith.constant 0 : index
    %c7_522 = arith.constant 7 : index
    %c0_523 = arith.constant 0 : index
    %c0_524 = arith.constant 0 : index
    %559 = vector.load %arg7[%c0_521, %c7_522, %c0_523, %c0_524] : memref<1x16x16x256xf32, #tpu.memory_space<vmem>>, vector<1x1x16x256xf32>
    %560 = vector.shape_cast %559 : vector<1x1x16x256xf32> to vector<16x256xf32>
    %561 = vector.shape_cast %558 : vector<16x256xf32> to vector<1x1x16x256xf32>
    tpu.vector_store %arg7[%c0_521, %c7_522, %c0_523, %c0_524], %561 {strides = array<i32>} : memref<1x16x16x256xf32, #tpu.memory_space<vmem>>, vector<1x1x16x256xf32>,
    %c8_525 = arith.constant 8 : index
    %c0_526 = arith.constant 0 : index
    %c0_527 = arith.constant 0 : index
    %562 = vector.load %arg9[%c8_525, %c0_526, %c0_527] : memref<18x16x256xf32, #tpu.memory_space<vmem>>, vector<1x16x256xf32>
    %563 = vector.shape_cast %562 : vector<1x16x256xf32> to vector<16x256xf32>
    %c8_528 = arith.constant 8 : index
    %c0_529 = arith.constant 0 : index
    %c0_530 = arith.constant 0 : index
    %564 = vector.load %arg10[%c8_528, %c0_529, %c0_530] : memref<18x16x1xf32, #tpu.memory_space<vmem>>, vector<1x16x1xf32>
    %565 = vector.shape_cast %564 : vector<1x16x1xf32> to vector<16x1xf32>
    %c9_531 = arith.constant 9 : index
    %c0_532 = arith.constant 0 : index
    %c0_533 = arith.constant 0 : index
    %566 = vector.load %arg9[%c9_531, %c0_532, %c0_533] : memref<18x16x256xf32, #tpu.memory_space<vmem>>, vector<1x16x256xf32>
    %567 = vector.shape_cast %566 : vector<1x16x256xf32> to vector<16x256xf32>
    %568 = arith.addf %563, %567 : vector<16x256xf32>
    %c9_534 = arith.constant 9 : index
    %c0_535 = arith.constant 0 : index
    %c0_536 = arith.constant 0 : index
    %569 = vector.load %arg10[%c9_534, %c0_535, %c0_536] : memref<18x16x1xf32, #tpu.memory_space<vmem>>, vector<1x16x1xf32>
    %570 = vector.shape_cast %569 : vector<1x16x1xf32> to vector<16x1xf32>
    %571 = arith.addf %565, %570 : vector<16x1xf32>
    %c10_537 = arith.constant 10 : index
    %c0_538 = arith.constant 0 : index
    %c0_539 = arith.constant 0 : index
    %572 = vector.load %arg9[%c10_537, %c0_538, %c0_539] : memref<18x16x256xf32, #tpu.memory_space<vmem>>, vector<1x16x256xf32>
    %573 = vector.shape_cast %572 : vector<1x16x256xf32> to vector<16x256xf32>
    %574 = arith.addf %568, %573 : vector<16x256xf32>
    %c10_540 = arith.constant 10 : index
    %c0_541 = arith.constant 0 : index
    %c0_542 = arith.constant 0 : index
    %575 = vector.load %arg10[%c10_540, %c0_541, %c0_542] : memref<18x16x1xf32, #tpu.memory_space<vmem>>, vector<1x16x1xf32>
    %576 = vector.shape_cast %575 : vector<1x16x1xf32> to vector<16x1xf32>
    %577 = arith.addf %571, %576 : vector<16x1xf32>
    %c8_543 = arith.constant 8 : index
    %c0_544 = arith.constant 0 : index
    %c0_545 = arith.constant 0 : index
    %578 = vector.load %arg6[%c8_543, %c0_544, %c0_545] : memref<16x16x1xf32, #tpu.memory_space<vmem>>, vector<1x16x1xf32>
    %579 = vector.shape_cast %578 : vector<1x16x1xf32> to vector<16x1xf32>
    %580 = arith.addf %577, %579 : vector<16x1xf32>
    %581 = tpu.reciprocal %580 {approx = true} : vector<16x1xf32> -> vector<16x1xf32>
    %582 = vector.broadcast %581 : vector<16x1xf32> to vector<16x256xf32>
    %583 = arith.mulf %574, %582 : vector<16x256xf32>
    %c0_546 = arith.constant 0 : index
    %c8_547 = arith.constant 8 : index
    %c0_548 = arith.constant 0 : index
    %c0_549 = arith.constant 0 : index
    %584 = vector.load %arg7[%c0_546, %c8_547, %c0_548, %c0_549] : memref<1x16x16x256xf32, #tpu.memory_space<vmem>>, vector<1x1x16x256xf32>
    %585 = vector.shape_cast %584 : vector<1x1x16x256xf32> to vector<16x256xf32>
    %586 = vector.shape_cast %583 : vector<16x256xf32> to vector<1x1x16x256xf32>
    tpu.vector_store %arg7[%c0_546, %c8_547, %c0_548, %c0_549], %586 {strides = array<i32>} : memref<1x16x16x256xf32, #tpu.memory_space<vmem>>, vector<1x1x16x256xf32>,
    %c9_550 = arith.constant 9 : index
    %c0_551 = arith.constant 0 : index
    %c0_552 = arith.constant 0 : index
    %587 = vector.load %arg9[%c9_550, %c0_551, %c0_552] : memref<18x16x256xf32, #tpu.memory_space<vmem>>, vector<1x16x256xf32>
    %588 = vector.shape_cast %587 : vector<1x16x256xf32> to vector<16x256xf32>
    %c9_553 = arith.constant 9 : index
    %c0_554 = arith.constant 0 : index
    %c0_555 = arith.constant 0 : index
    %589 = vector.load %arg10[%c9_553, %c0_554, %c0_555] : memref<18x16x1xf32, #tpu.memory_space<vmem>>, vector<1x16x1xf32>
    %590 = vector.shape_cast %589 : vector<1x16x1xf32> to vector<16x1xf32>
    %c10_556 = arith.constant 10 : index
    %c0_557 = arith.constant 0 : index
    %c0_558 = arith.constant 0 : index
    %591 = vector.load %arg9[%c10_556, %c0_557, %c0_558] : memref<18x16x256xf32, #tpu.memory_space<vmem>>, vector<1x16x256xf32>
    %592 = vector.shape_cast %591 : vector<1x16x256xf32> to vector<16x256xf32>
    %593 = arith.addf %588, %592 : vector<16x256xf32>
    %c10_559 = arith.constant 10 : index
    %c0_560 = arith.constant 0 : index
    %c0_561 = arith.constant 0 : index
    %594 = vector.load %arg10[%c10_559, %c0_560, %c0_561] : memref<18x16x1xf32, #tpu.memory_space<vmem>>, vector<1x16x1xf32>
    %595 = vector.shape_cast %594 : vector<1x16x1xf32> to vector<16x1xf32>
    %596 = arith.addf %590, %595 : vector<16x1xf32>
    %c11_562 = arith.constant 11 : index
    %c0_563 = arith.constant 0 : index
    %c0_564 = arith.constant 0 : index
    %597 = vector.load %arg9[%c11_562, %c0_563, %c0_564] : memref<18x16x256xf32, #tpu.memory_space<vmem>>, vector<1x16x256xf32>
    %598 = vector.shape_cast %597 : vector<1x16x256xf32> to vector<16x256xf32>
    %599 = arith.addf %593, %598 : vector<16x256xf32>
    %c11_565 = arith.constant 11 : index
    %c0_566 = arith.constant 0 : index
    %c0_567 = arith.constant 0 : index
    %600 = vector.load %arg10[%c11_565, %c0_566, %c0_567] : memref<18x16x1xf32, #tpu.memory_space<vmem>>, vector<1x16x1xf32>
    %601 = vector.shape_cast %600 : vector<1x16x1xf32> to vector<16x1xf32>
    %602 = arith.addf %596, %601 : vector<16x1xf32>
    %c9_568 = arith.constant 9 : index
    %c0_569 = arith.constant 0 : index
    %c0_570 = arith.constant 0 : index
    %603 = vector.load %arg6[%c9_568, %c0_569, %c0_570] : memref<16x16x1xf32, #tpu.memory_space<vmem>>, vector<1x16x1xf32>
    %604 = vector.shape_cast %603 : vector<1x16x1xf32> to vector<16x1xf32>
    %605 = arith.addf %602, %604 : vector<16x1xf32>
    %606 = tpu.reciprocal %605 {approx = true} : vector<16x1xf32> -> vector<16x1xf32>
    %607 = vector.broadcast %606 : vector<16x1xf32> to vector<16x256xf32>
    %608 = arith.mulf %599, %607 : vector<16x256xf32>
    %c0_571 = arith.constant 0 : index
    %c9_572 = arith.constant 9 : index
    %c0_573 = arith.constant 0 : index
    %c0_574 = arith.constant 0 : index
    %609 = vector.load %arg7[%c0_571, %c9_572, %c0_573, %c0_574] : memref<1x16x16x256xf32, #tpu.memory_space<vmem>>, vector<1x1x16x256xf32>
    %610 = vector.shape_cast %609 : vector<1x1x16x256xf32> to vector<16x256xf32>
    %611 = vector.shape_cast %608 : vector<16x256xf32> to vector<1x1x16x256xf32>
    tpu.vector_store %arg7[%c0_571, %c9_572, %c0_573, %c0_574], %611 {strides = array<i32>} : memref<1x16x16x256xf32, #tpu.memory_space<vmem>>, vector<1x1x16x256xf32>,
    %c10_575 = arith.constant 10 : index
    %c0_576 = arith.constant 0 : index
    %c0_577 = arith.constant 0 : index
    %612 = vector.load %arg9[%c10_575, %c0_576, %c0_577] : memref<18x16x256xf32, #tpu.memory_space<vmem>>, vector<1x16x256xf32>
    %613 = vector.shape_cast %612 : vector<1x16x256xf32> to vector<16x256xf32>
    %c10_578 = arith.constant 10 : index
    %c0_579 = arith.constant 0 : index
    %c0_580 = arith.constant 0 : index
    %614 = vector.load %arg10[%c10_578, %c0_579, %c0_580] : memref<18x16x1xf32, #tpu.memory_space<vmem>>, vector<1x16x1xf32>
    %615 = vector.shape_cast %614 : vector<1x16x1xf32> to vector<16x1xf32>
    %c11_581 = arith.constant 11 : index
    %c0_582 = arith.constant 0 : index
    %c0_583 = arith.constant 0 : index
    %616 = vector.load %arg9[%c11_581, %c0_582, %c0_583] : memref<18x16x256xf32, #tpu.memory_space<vmem>>, vector<1x16x256xf32>
    %617 = vector.shape_cast %616 : vector<1x16x256xf32> to vector<16x256xf32>
    %618 = arith.addf %613, %617 : vector<16x256xf32>
    %c11_584 = arith.constant 11 : index
    %c0_585 = arith.constant 0 : index
    %c0_586 = arith.constant 0 : index
    %619 = vector.load %arg10[%c11_584, %c0_585, %c0_586] : memref<18x16x1xf32, #tpu.memory_space<vmem>>, vector<1x16x1xf32>
    %620 = vector.shape_cast %619 : vector<1x16x1xf32> to vector<16x1xf32>
    %621 = arith.addf %615, %620 : vector<16x1xf32>
    %c12_587 = arith.constant 12 : index
    %c0_588 = arith.constant 0 : index
    %c0_589 = arith.constant 0 : index
    %622 = vector.load %arg9[%c12_587, %c0_588, %c0_589] : memref<18x16x256xf32, #tpu.memory_space<vmem>>, vector<1x16x256xf32>
    %623 = vector.shape_cast %622 : vector<1x16x256xf32> to vector<16x256xf32>
    %624 = arith.addf %618, %623 : vector<16x256xf32>
    %c12_590 = arith.constant 12 : index
    %c0_591 = arith.constant 0 : index
    %c0_592 = arith.constant 0 : index
    %625 = vector.load %arg10[%c12_590, %c0_591, %c0_592] : memref<18x16x1xf32, #tpu.memory_space<vmem>>, vector<1x16x1xf32>
    %626 = vector.shape_cast %625 : vector<1x16x1xf32> to vector<16x1xf32>
    %627 = arith.addf %621, %626 : vector<16x1xf32>
    %c10_593 = arith.constant 10 : index
    %c0_594 = arith.constant 0 : index
    %c0_595 = arith.constant 0 : index
    %628 = vector.load %arg6[%c10_593, %c0_594, %c0_595] : memref<16x16x1xf32, #tpu.memory_space<vmem>>, vector<1x16x1xf32>
    %629 = vector.shape_cast %628 : vector<1x16x1xf32> to vector<16x1xf32>
    %630 = arith.addf %627, %629 : vector<16x1xf32>
    %631 = tpu.reciprocal %630 {approx = true} : vector<16x1xf32> -> vector<16x1xf32>
    %632 = vector.broadcast %631 : vector<16x1xf32> to vector<16x256xf32>
    %633 = arith.mulf %624, %632 : vector<16x256xf32>
    %c0_596 = arith.constant 0 : index
    %c10_597 = arith.constant 10 : index
    %c0_598 = arith.constant 0 : index
    %c0_599 = arith.constant 0 : index
    %634 = vector.load %arg7[%c0_596, %c10_597, %c0_598, %c0_599] : memref<1x16x16x256xf32, #tpu.memory_space<vmem>>, vector<1x1x16x256xf32>
    %635 = vector.shape_cast %634 : vector<1x1x16x256xf32> to vector<16x256xf32>
    %636 = vector.shape_cast %633 : vector<16x256xf32> to vector<1x1x16x256xf32>
    tpu.vector_store %arg7[%c0_596, %c10_597, %c0_598, %c0_599], %636 {strides = array<i32>} : memref<1x16x16x256xf32, #tpu.memory_space<vmem>>, vector<1x1x16x256xf32>,
    %c11_600 = arith.constant 11 : index
    %c0_601 = arith.constant 0 : index
    %c0_602 = arith.constant 0 : index
    %637 = vector.load %arg9[%c11_600, %c0_601, %c0_602] : memref<18x16x256xf32, #tpu.memory_space<vmem>>, vector<1x16x256xf32>
    %638 = vector.shape_cast %637 : vector<1x16x256xf32> to vector<16x256xf32>
    %c11_603 = arith.constant 11 : index
    %c0_604 = arith.constant 0 : index
    %c0_605 = arith.constant 0 : index
    %639 = vector.load %arg10[%c11_603, %c0_604, %c0_605] : memref<18x16x1xf32, #tpu.memory_space<vmem>>, vector<1x16x1xf32>
    %640 = vector.shape_cast %639 : vector<1x16x1xf32> to vector<16x1xf32>
    %c12_606 = arith.constant 12 : index
    %c0_607 = arith.constant 0 : index
    %c0_608 = arith.constant 0 : index
    %641 = vector.load %arg9[%c12_606, %c0_607, %c0_608] : memref<18x16x256xf32, #tpu.memory_space<vmem>>, vector<1x16x256xf32>
    %642 = vector.shape_cast %641 : vector<1x16x256xf32> to vector<16x256xf32>
    %643 = arith.addf %638, %642 : vector<16x256xf32>
    %c12_609 = arith.constant 12 : index
    %c0_610 = arith.constant 0 : index
    %c0_611 = arith.constant 0 : index
    %644 = vector.load %arg10[%c12_609, %c0_610, %c0_611] : memref<18x16x1xf32, #tpu.memory_space<vmem>>, vector<1x16x1xf32>
    %645 = vector.shape_cast %644 : vector<1x16x1xf32> to vector<16x1xf32>
    %646 = arith.addf %640, %645 : vector<16x1xf32>
    %c13_612 = arith.constant 13 : index
    %c0_613 = arith.constant 0 : index
    %c0_614 = arith.constant 0 : index
    %647 = vector.load %arg9[%c13_612, %c0_613, %c0_614] : memref<18x16x256xf32, #tpu.memory_space<vmem>>, vector<1x16x256xf32>
    %648 = vector.shape_cast %647 : vector<1x16x256xf32> to vector<16x256xf32>
    %649 = arith.addf %643, %648 : vector<16x256xf32>
    %c13_615 = arith.constant 13 : index
    %c0_616 = arith.constant 0 : index
    %c0_617 = arith.constant 0 : index
    %650 = vector.load %arg10[%c13_615, %c0_616, %c0_617] : memref<18x16x1xf32, #tpu.memory_space<vmem>>, vector<1x16x1xf32>
    %651 = vector.shape_cast %650 : vector<1x16x1xf32> to vector<16x1xf32>
    %652 = arith.addf %646, %651 : vector<16x1xf32>
    %c11_618 = arith.constant 11 : index
    %c0_619 = arith.constant 0 : index
    %c0_620 = arith.constant 0 : index
    %653 = vector.load %arg6[%c11_618, %c0_619, %c0_620] : memref<16x16x1xf32, #tpu.memory_space<vmem>>, vector<1x16x1xf32>
    %654 = vector.shape_cast %653 : vector<1x16x1xf32> to vector<16x1xf32>
    %655 = arith.addf %652, %654 : vector<16x1xf32>
    %656 = tpu.reciprocal %655 {approx = true} : vector<16x1xf32> -> vector<16x1xf32>
    %657 = vector.broadcast %656 : vector<16x1xf32> to vector<16x256xf32>
    %658 = arith.mulf %649, %657 : vector<16x256xf32>
    %c0_621 = arith.constant 0 : index
    %c11_622 = arith.constant 11 : index
    %c0_623 = arith.constant 0 : index
    %c0_624 = arith.constant 0 : index
    %659 = vector.load %arg7[%c0_621, %c11_622, %c0_623, %c0_624] : memref<1x16x16x256xf32, #tpu.memory_space<vmem>>, vector<1x1x16x256xf32>
    %660 = vector.shape_cast %659 : vector<1x1x16x256xf32> to vector<16x256xf32>
    %661 = vector.shape_cast %658 : vector<16x256xf32> to vector<1x1x16x256xf32>
    tpu.vector_store %arg7[%c0_621, %c11_622, %c0_623, %c0_624], %661 {strides = array<i32>} : memref<1x16x16x256xf32, #tpu.memory_space<vmem>>, vector<1x1x16x256xf32>,
    %c12_625 = arith.constant 12 : index
    %c0_626 = arith.constant 0 : index
    %c0_627 = arith.constant 0 : index
    %662 = vector.load %arg9[%c12_625, %c0_626, %c0_627] : memref<18x16x256xf32, #tpu.memory_space<vmem>>, vector<1x16x256xf32>
    %663 = vector.shape_cast %662 : vector<1x16x256xf32> to vector<16x256xf32>
    %c12_628 = arith.constant 12 : index
    %c0_629 = arith.constant 0 : index
    %c0_630 = arith.constant 0 : index
    %664 = vector.load %arg10[%c12_628, %c0_629, %c0_630] : memref<18x16x1xf32, #tpu.memory_space<vmem>>, vector<1x16x1xf32>
    %665 = vector.shape_cast %664 : vector<1x16x1xf32> to vector<16x1xf32>
    %c13_631 = arith.constant 13 : index
    %c0_632 = arith.constant 0 : index
    %c0_633 = arith.constant 0 : index
    %666 = vector.load %arg9[%c13_631, %c0_632, %c0_633] : memref<18x16x256xf32, #tpu.memory_space<vmem>>, vector<1x16x256xf32>
    %667 = vector.shape_cast %666 : vector<1x16x256xf32> to vector<16x256xf32>
    %668 = arith.addf %663, %667 : vector<16x256xf32>
    %c13_634 = arith.constant 13 : index
    %c0_635 = arith.constant 0 : index
    %c0_636 = arith.constant 0 : index
    %669 = vector.load %arg10[%c13_634, %c0_635, %c0_636] : memref<18x16x1xf32, #tpu.memory_space<vmem>>, vector<1x16x1xf32>
    %670 = vector.shape_cast %669 : vector<1x16x1xf32> to vector<16x1xf32>
    %671 = arith.addf %665, %670 : vector<16x1xf32>
    %c14_637 = arith.constant 14 : index
    %c0_638 = arith.constant 0 : index
    %c0_639 = arith.constant 0 : index
    %672 = vector.load %arg9[%c14_637, %c0_638, %c0_639] : memref<18x16x256xf32, #tpu.memory_space<vmem>>, vector<1x16x256xf32>
    %673 = vector.shape_cast %672 : vector<1x16x256xf32> to vector<16x256xf32>
    %674 = arith.addf %668, %673 : vector<16x256xf32>
    %c14_640 = arith.constant 14 : index
    %c0_641 = arith.constant 0 : index
    %c0_642 = arith.constant 0 : index
    %675 = vector.load %arg10[%c14_640, %c0_641, %c0_642] : memref<18x16x1xf32, #tpu.memory_space<vmem>>, vector<1x16x1xf32>
    %676 = vector.shape_cast %675 : vector<1x16x1xf32> to vector<16x1xf32>
    %677 = arith.addf %671, %676 : vector<16x1xf32>
    %c12_643 = arith.constant 12 : index
    %c0_644 = arith.constant 0 : index
    %c0_645 = arith.constant 0 : index
    %678 = vector.load %arg6[%c12_643, %c0_644, %c0_645] : memref<16x16x1xf32, #tpu.memory_space<vmem>>, vector<1x16x1xf32>
    %679 = vector.shape_cast %678 : vector<1x16x1xf32> to vector<16x1xf32>
    %680 = arith.addf %677, %679 : vector<16x1xf32>
    %681 = tpu.reciprocal %680 {approx = true} : vector<16x1xf32> -> vector<16x1xf32>
    %682 = vector.broadcast %681 : vector<16x1xf32> to vector<16x256xf32>
    %683 = arith.mulf %674, %682 : vector<16x256xf32>
    %c0_646 = arith.constant 0 : index
    %c12_647 = arith.constant 12 : index
    %c0_648 = arith.constant 0 : index
    %c0_649 = arith.constant 0 : index
    %684 = vector.load %arg7[%c0_646, %c12_647, %c0_648, %c0_649] : memref<1x16x16x256xf32, #tpu.memory_space<vmem>>, vector<1x1x16x256xf32>
    %685 = vector.shape_cast %684 : vector<1x1x16x256xf32> to vector<16x256xf32>
    %686 = vector.shape_cast %683 : vector<16x256xf32> to vector<1x1x16x256xf32>
    tpu.vector_store %arg7[%c0_646, %c12_647, %c0_648, %c0_649], %686 {strides = array<i32>} : memref<1x16x16x256xf32, #tpu.memory_space<vmem>>, vector<1x1x16x256xf32>,
    %c13_650 = arith.constant 13 : index
    %c0_651 = arith.constant 0 : index
    %c0_652 = arith.constant 0 : index
    %687 = vector.load %arg9[%c13_650, %c0_651, %c0_652] : memref<18x16x256xf32, #tpu.memory_space<vmem>>, vector<1x16x256xf32>
    %688 = vector.shape_cast %687 : vector<1x16x256xf32> to vector<16x256xf32>
    %c13_653 = arith.constant 13 : index
    %c0_654 = arith.constant 0 : index
    %c0_655 = arith.constant 0 : index
    %689 = vector.load %arg10[%c13_653, %c0_654, %c0_655] : memref<18x16x1xf32, #tpu.memory_space<vmem>>, vector<1x16x1xf32>
    %690 = vector.shape_cast %689 : vector<1x16x1xf32> to vector<16x1xf32>
    %c14_656 = arith.constant 14 : index
    %c0_657 = arith.constant 0 : index
    %c0_658 = arith.constant 0 : index
    %691 = vector.load %arg9[%c14_656, %c0_657, %c0_658] : memref<18x16x256xf32, #tpu.memory_space<vmem>>, vector<1x16x256xf32>
    %692 = vector.shape_cast %691 : vector<1x16x256xf32> to vector<16x256xf32>
    %693 = arith.addf %688, %692 : vector<16x256xf32>
    %c14_659 = arith.constant 14 : index
    %c0_660 = arith.constant 0 : index
    %c0_661 = arith.constant 0 : index
    %694 = vector.load %arg10[%c14_659, %c0_660, %c0_661] : memref<18x16x1xf32, #tpu.memory_space<vmem>>, vector<1x16x1xf32>
    %695 = vector.shape_cast %694 : vector<1x16x1xf32> to vector<16x1xf32>
    %696 = arith.addf %690, %695 : vector<16x1xf32>
    %c15_662 = arith.constant 15 : index
    %c0_663 = arith.constant 0 : index
    %c0_664 = arith.constant 0 : index
    %697 = vector.load %arg9[%c15_662, %c0_663, %c0_664] : memref<18x16x256xf32, #tpu.memory_space<vmem>>, vector<1x16x256xf32>
    %698 = vector.shape_cast %697 : vector<1x16x256xf32> to vector<16x256xf32>
    %699 = arith.addf %693, %698 : vector<16x256xf32>
    %c15_665 = arith.constant 15 : index
    %c0_666 = arith.constant 0 : index
    %c0_667 = arith.constant 0 : index
    %700 = vector.load %arg10[%c15_665, %c0_666, %c0_667] : memref<18x16x1xf32, #tpu.memory_space<vmem>>, vector<1x16x1xf32>
    %701 = vector.shape_cast %700 : vector<1x16x1xf32> to vector<16x1xf32>
    %702 = arith.addf %696, %701 : vector<16x1xf32>
    %c13_668 = arith.constant 13 : index
    %c0_669 = arith.constant 0 : index
    %c0_670 = arith.constant 0 : index
    %703 = vector.load %arg6[%c13_668, %c0_669, %c0_670] : memref<16x16x1xf32, #tpu.memory_space<vmem>>, vector<1x16x1xf32>
    %704 = vector.shape_cast %703 : vector<1x16x1xf32> to vector<16x1xf32>
    %705 = arith.addf %702, %704 : vector<16x1xf32>
    %706 = tpu.reciprocal %705 {approx = true} : vector<16x1xf32> -> vector<16x1xf32>
    %707 = vector.broadcast %706 : vector<16x1xf32> to vector<16x256xf32>
    %708 = arith.mulf %699, %707 : vector<16x256xf32>
    %c0_671 = arith.constant 0 : index
    %c13_672 = arith.constant 13 : index
    %c0_673 = arith.constant 0 : index
    %c0_674 = arith.constant 0 : index
    %709 = vector.load %arg7[%c0_671, %c13_672, %c0_673, %c0_674] : memref<1x16x16x256xf32, #tpu.memory_space<vmem>>, vector<1x1x16x256xf32>
    %710 = vector.shape_cast %709 : vector<1x1x16x256xf32> to vector<16x256xf32>
    %711 = vector.shape_cast %708 : vector<16x256xf32> to vector<1x1x16x256xf32>
    tpu.vector_store %arg7[%c0_671, %c13_672, %c0_673, %c0_674], %711 {strides = array<i32>} : memref<1x16x16x256xf32, #tpu.memory_space<vmem>>, vector<1x1x16x256xf32>,
    %c14_675 = arith.constant 14 : index
    %c0_676 = arith.constant 0 : index
    %c0_677 = arith.constant 0 : index
    %712 = vector.load %arg9[%c14_675, %c0_676, %c0_677] : memref<18x16x256xf32, #tpu.memory_space<vmem>>, vector<1x16x256xf32>
    %713 = vector.shape_cast %712 : vector<1x16x256xf32> to vector<16x256xf32>
    %c14_678 = arith.constant 14 : index
    %c0_679 = arith.constant 0 : index
    %c0_680 = arith.constant 0 : index
    %714 = vector.load %arg10[%c14_678, %c0_679, %c0_680] : memref<18x16x1xf32, #tpu.memory_space<vmem>>, vector<1x16x1xf32>
    %715 = vector.shape_cast %714 : vector<1x16x1xf32> to vector<16x1xf32>
    %c15_681 = arith.constant 15 : index
    %c0_682 = arith.constant 0 : index
    %c0_683 = arith.constant 0 : index
    %716 = vector.load %arg9[%c15_681, %c0_682, %c0_683] : memref<18x16x256xf32, #tpu.memory_space<vmem>>, vector<1x16x256xf32>
    %717 = vector.shape_cast %716 : vector<1x16x256xf32> to vector<16x256xf32>
    %718 = arith.addf %713, %717 : vector<16x256xf32>
    %c15_684 = arith.constant 15 : index
    %c0_685 = arith.constant 0 : index
    %c0_686 = arith.constant 0 : index
    %719 = vector.load %arg10[%c15_684, %c0_685, %c0_686] : memref<18x16x1xf32, #tpu.memory_space<vmem>>, vector<1x16x1xf32>
    %720 = vector.shape_cast %719 : vector<1x16x1xf32> to vector<16x1xf32>
    %721 = arith.addf %715, %720 : vector<16x1xf32>
    %c16_687 = arith.constant 16 : index
    %c0_688 = arith.constant 0 : index
    %c0_689 = arith.constant 0 : index
    %722 = vector.load %arg9[%c16_687, %c0_688, %c0_689] : memref<18x16x256xf32, #tpu.memory_space<vmem>>, vector<1x16x256xf32>
    %723 = vector.shape_cast %722 : vector<1x16x256xf32> to vector<16x256xf32>
    %724 = arith.addf %718, %723 : vector<16x256xf32>
    %c16_690 = arith.constant 16 : index
    %c0_691 = arith.constant 0 : index
    %c0_692 = arith.constant 0 : index
    %725 = vector.load %arg10[%c16_690, %c0_691, %c0_692] : memref<18x16x1xf32, #tpu.memory_space<vmem>>, vector<1x16x1xf32>
    %726 = vector.shape_cast %725 : vector<1x16x1xf32> to vector<16x1xf32>
    %727 = arith.addf %721, %726 : vector<16x1xf32>
    %c14_693 = arith.constant 14 : index
    %c0_694 = arith.constant 0 : index
    %c0_695 = arith.constant 0 : index
    %728 = vector.load %arg6[%c14_693, %c0_694, %c0_695] : memref<16x16x1xf32, #tpu.memory_space<vmem>>, vector<1x16x1xf32>
    %729 = vector.shape_cast %728 : vector<1x16x1xf32> to vector<16x1xf32>
    %730 = arith.addf %727, %729 : vector<16x1xf32>
    %731 = tpu.reciprocal %730 {approx = true} : vector<16x1xf32> -> vector<16x1xf32>
    %732 = vector.broadcast %731 : vector<16x1xf32> to vector<16x256xf32>
    %733 = arith.mulf %724, %732 : vector<16x256xf32>
    %c0_696 = arith.constant 0 : index
    %c14_697 = arith.constant 14 : index
    %c0_698 = arith.constant 0 : index
    %c0_699 = arith.constant 0 : index
    %734 = vector.load %arg7[%c0_696, %c14_697, %c0_698, %c0_699] : memref<1x16x16x256xf32, #tpu.memory_space<vmem>>, vector<1x1x16x256xf32>
    %735 = vector.shape_cast %734 : vector<1x1x16x256xf32> to vector<16x256xf32>
    %736 = vector.shape_cast %733 : vector<16x256xf32> to vector<1x1x16x256xf32>
    tpu.vector_store %arg7[%c0_696, %c14_697, %c0_698, %c0_699], %736 {strides = array<i32>} : memref<1x16x16x256xf32, #tpu.memory_space<vmem>>, vector<1x1x16x256xf32>,
    %c15_700 = arith.constant 15 : index
    %c0_701 = arith.constant 0 : index
    %c0_702 = arith.constant 0 : index
    %737 = vector.load %arg9[%c15_700, %c0_701, %c0_702] : memref<18x16x256xf32, #tpu.memory_space<vmem>>, vector<1x16x256xf32>
    %738 = vector.shape_cast %737 : vector<1x16x256xf32> to vector<16x256xf32>
    %c15_703 = arith.constant 15 : index
    %c0_704 = arith.constant 0 : index
    %c0_705 = arith.constant 0 : index
    %739 = vector.load %arg10[%c15_703, %c0_704, %c0_705] : memref<18x16x1xf32, #tpu.memory_space<vmem>>, vector<1x16x1xf32>
    %740 = vector.shape_cast %739 : vector<1x16x1xf32> to vector<16x1xf32>
    %c16_706 = arith.constant 16 : index
    %c0_707 = arith.constant 0 : index
    %c0_708 = arith.constant 0 : index
    %741 = vector.load %arg9[%c16_706, %c0_707, %c0_708] : memref<18x16x256xf32, #tpu.memory_space<vmem>>, vector<1x16x256xf32>
    %742 = vector.shape_cast %741 : vector<1x16x256xf32> to vector<16x256xf32>
    %743 = arith.addf %738, %742 : vector<16x256xf32>
    %c16_709 = arith.constant 16 : index
    %c0_710 = arith.constant 0 : index
    %c0_711 = arith.constant 0 : index
    %744 = vector.load %arg10[%c16_709, %c0_710, %c0_711] : memref<18x16x1xf32, #tpu.memory_space<vmem>>, vector<1x16x1xf32>
    %745 = vector.shape_cast %744 : vector<1x16x1xf32> to vector<16x1xf32>
    %746 = arith.addf %740, %745 : vector<16x1xf32>
    %c17_712 = arith.constant 17 : index
    %c0_713 = arith.constant 0 : index
    %c0_714 = arith.constant 0 : index
    %747 = vector.load %arg9[%c17_712, %c0_713, %c0_714] : memref<18x16x256xf32, #tpu.memory_space<vmem>>, vector<1x16x256xf32>
    %748 = vector.shape_cast %747 : vector<1x16x256xf32> to vector<16x256xf32>
    %749 = arith.addf %743, %748 : vector<16x256xf32>
    %c17_715 = arith.constant 17 : index
    %c0_716 = arith.constant 0 : index
    %c0_717 = arith.constant 0 : index
    %750 = vector.load %arg10[%c17_715, %c0_716, %c0_717] : memref<18x16x1xf32, #tpu.memory_space<vmem>>, vector<1x16x1xf32>
    %751 = vector.shape_cast %750 : vector<1x16x1xf32> to vector<16x1xf32>
    %752 = arith.addf %746, %751 : vector<16x1xf32>
    %c15_718 = arith.constant 15 : index
    %c0_719 = arith.constant 0 : index
    %c0_720 = arith.constant 0 : index
    %753 = vector.load %arg6[%c15_718, %c0_719, %c0_720] : memref<16x16x1xf32, #tpu.memory_space<vmem>>, vector<1x16x1xf32>
    %754 = vector.shape_cast %753 : vector<1x16x1xf32> to vector<16x1xf32>
    %755 = arith.addf %752, %754 : vector<16x1xf32>
    %756 = tpu.reciprocal %755 {approx = true} : vector<16x1xf32> -> vector<16x1xf32>
    %757 = vector.broadcast %756 : vector<16x1xf32> to vector<16x256xf32>
    %758 = arith.mulf %749, %757 : vector<16x256xf32>
    %c0_721 = arith.constant 0 : index
    %c15_722 = arith.constant 15 : index
    %c0_723 = arith.constant 0 : index
    %c0_724 = arith.constant 0 : index
    %759 = vector.load %arg7[%c0_721, %c15_722, %c0_723, %c0_724] : memref<1x16x16x256xf32, #tpu.memory_space<vmem>>, vector<1x1x16x256xf32>
    %760 = vector.shape_cast %759 : vector<1x1x16x256xf32> to vector<16x256xf32>
    %761 = vector.shape_cast %758 : vector<16x256xf32> to vector<1x1x16x256xf32>
    tpu.vector_store %arg7[%c0_721, %c15_722, %c0_723, %c0_724], %761 {strides = array<i32>} : memref<1x16x16x256xf32, #tpu.memory_space<vmem>>, vector<1x1x16x256xf32>,
    return
  }
  func.func @transform_0(%arg0: i32) -> (i32, i32, i32) {
    %c0_i32 = arith.constant 0 : i32
    %c0_i32_0 = arith.constant 0 : i32
    %c0_i32_1 = arith.constant 0 : i32
    return %arg0, %c0_i32, %c0_i32_0 : i32, i32, i32
  }
  func.func @transform_1(%arg0: i32) -> (i32, i32, i32) {
    %c0_i32 = arith.constant 0 : i32
    %c0_i32_0 = arith.constant 0 : i32
    %c0_i32_1 = arith.constant 0 : i32
    return %arg0, %c0_i32, %c0_i32_0 : i32, i32, i32
  }
  func.func @transform_2(%arg0: i32) -> (i32, i32) {
    %c0_i32 = arith.constant 0 : i32
    %c0_i32_0 = arith.constant 0 : i32
    %c0_i32_1 = arith.constant 0 : i32
    return %c0_i32, %c0_i32_0 : i32, i32
  }
  func.func @transform_3(%arg0: i32) -> (i32, i32) {
    %c0_i32 = arith.constant 0 : i32
    %c0_i32_0 = arith.constant 0 : i32
    %c0_i32_1 = arith.constant 0 : i32
    return %c0_i32, %c0_i32_0 : i32, i32
  }
  func.func @transform_4(%arg0: i32) -> (i32, i32) {
    %c0_i32 = arith.constant 0 : i32
    %c0_i32_0 = arith.constant 0 : i32
    %c0_i32_1 = arith.constant 0 : i32
    return %c0_i32, %c0_i32_0 : i32, i32
  }
  func.func @transform_5(%arg0: i32) -> (i32, i32, i32) {
    %c0_i32 = arith.constant 0 : i32
    %c0_i32_0 = arith.constant 0 : i32
    %c0_i32_1 = arith.constant 0 : i32
    %c0_i32_2 = arith.constant 0 : i32
    return %c0_i32, %c0_i32_0, %c0_i32_1 : i32, i32, i32
  }
  func.func @transform_6(%arg0: i32) -> (i32, i32, i32, i32) {
    %c0_i32 = arith.constant 0 : i32
    %c0_i32_0 = arith.constant 0 : i32
    %c0_i32_1 = arith.constant 0 : i32
    %c0_i32_2 = arith.constant 0 : i32
    return %arg0, %c0_i32, %c0_i32_0, %c0_i32_1 : i32, i32, i32, i32
  }
}

</mosaic_0001>

<bundles_post_ra>
// kernel: tpu_custom_call.1
= control target key start
LH: loop header
LB: loop body
LE: loop exit
PB: predicated region body
PF: predicated region fallthrough
CT: control target
= control target key end

     0   :  { %11 = vsyncpa [#allocation6], 0  ;;  %s11843_s0 = inlined_call_operand.vmem [shape: f32[2,432,9], index: 0, kind: input, shape index: {}]   ;;  %s11844_s1 = inlined_call_operand.vmem [shape: f32[2,432,1], index: 1, kind: input, shape index: {}]   ;;  %s11845_s2 = inlined_call_operand.vmem [shape: f32[9,256], index: 2, kind: input, shape index: {}]   ;;  %s11846_s3 = inlined_call_operand.vmem [shape: f32[1,256], index: 3, kind: input, shape index: {}]   ;;  %s11847_s4 = inlined_call_operand.vmem [shape: f32[1,256], index: 4, kind: input, shape index: {}]   ;;  %s11848_s5 = inlined_call_operand.vmem [shape: f32[16,16,1], index: 5, kind: input, shape index: {}]   ;;  %s11849_s6 = inlined_call_operand.hbm [shape: f32[2,16,16,256], index: 6, kind: output, shape index: {}]  }
   0x1   :  { %13 = vsyncpa [#allocation6 + $0x1], 0  ;;  %s7924_s21 = smov 0   ;;  %s7926_s22 = smov 0  }
   0x2   :  { %s7928_s23 = smov 0   ;;  %s7930_s24 = smov 0  }
   0x3 LB: > { %s7945_s25 = sadd.s32 4294967295, %s7882_s24   ;;  %s7043_s26 = sadd.s32 4294967294, %s7882_s24   ;;  %s7882_s24 = sphi %s7930_s24, %s12498_s24   ;;  %s7878_s23 = sphi %s7928_s23, %s12497_s23   ;;  %s7874_s22 = sphi %s7926_s22, %s12496_s22   ;;  %s7870_s21 = sphi %s7924_s21, %s12495_s21  }
   0x4   : > { %s7949_s27 = sadd.s32 1, %s7882_s24   ;;  %s162_s28 = sadd.s32 1, %s7878_s23 }
   0x5   : > { %s159_s29 = ssub.s32 %s7882_s24, %s7949_s27  ;;  %p172_p0 = scmp.ne.s32.totalorder %s7878_s23, %s7874_s22 }
   0x6   : > { %p160_p1 = scmp.eq.s32.totalorder %s159_s29, 0  ;;  %p173_p2 = scmp.eq.s32.totalorder %s7945_s25, 1 }
   0x7   : > { %p178_p3 = scmp.ne.s32.totalorder %s7874_s22, %s7870_s21  ;;  %p179_p4 = scmp.eq.s32.totalorder %s7043_s26, 1 }
   0x8   : > { %s7960_s30 = scalar_select %p160_p1, %s7878_s23, %s162_s28  }
   0x9   : > { %p7962_p5 = por %p173_p2, %p172_p0  ;;  %p7966_p6 = por %p179_p4, %p178_p3 }
   0xa   : > { %p7046_p7 = scmp.ge.s32.totalorder %s7882_s24, 1  ;;  %p225_p8 = scmp.lt.s32.totalorder %s7882_s24, 3 }
   0xc   : > { %p226_p9 = pnand %p7046_p7, %p225_p8 }
   0xe   : > { %229 = sbr.rel (%p226_p9) target bundleno = 1107 (0x453), region = 44 }
  0x15   : > { %v325_v0 = vld [vmem:[%s11845_s2 + $0x8] sm:$0xff]  ;;  %v327_v1 = vld [vmem:[%s11845_s2 + $0x18] sm:$0x1]  ;;  %vm491_vm0 = vcmask 1040384   ;;  %v324_v2 = vld [vmem:[%s11845_s2] sm:$0xff]  ;;  %v11858_v7 = vmov 0.0  }
  0x16   : > { %v496_v3 = vsel %vm491_vm0, %v327_v1, 0  ;;  %v498_v4 = vand.u32 4294901760, %v325_v0  ;;  %v326_v5 = vld [vmem:[%s11845_s2 + $0x10] sm:$0x1]  ;;  %v500_v6 = vand.u32 4294901760, %v324_v2  ;;  %2197 = vmatprep.mubr.f32.mxu0 %v11858_v7  ;;  %p260_p10 = scmp.lt.s32.totalorder %s7945_s25, 1  ;;  %566 = vmatprep.mubr.f32.mxu1 %v11858_v7 }
  0x17   : > { %v502_v8 = vand.u32 4294901760, %v496_v3  ;;  %v493_v9 = vsel %vm491_vm0, %v326_v5, 0  ;;  %vm328_vm1 = vcmask 72704   ;;  %vm4764_vm2 = vcmask 7168   ;;  %s7145_s29 = sshll.u32 %s7945_s25, 13 }
  0x18   : > { %v7987_v10 = vsub.f32 %v325_v0, %v498_v4  ;;  %v504_v11 = vand.u32 4294901760, %v493_v9  ;;  %v7989_v12 = vsub.f32 %v324_v2, %v500_v6  ;;  %s7992_s17 = scalar_select %p260_p10, %s7945_s25, 1  ;;  %vm4706_vm7 = vcmask 1046528  }
  0x19   : > { %v7146_v13 = vpack.c.bf16 %v502_v8, %v498_v4  ;;  %v7994_v14 = vsub.f32 %v496_v3, %v502_v8  ;;  %vm4737_vm9 = vcmask 1045504   ;;  %s11795_s13 = scalar_lea.hbm %s11849_s6, %s7145_s29  ;;  %s7886_s25 = smov [#allocation5]  }
  0x1a   : > { %v7996_v15 = vpack.c.bf16 %v504_v11, %v500_v6  ;;  %v7998_v16 = vsub.f32 %v493_v9, %v504_v11  ;;  %s7710_s18 = smul.u32 432, %s7992_s17  ;;  %v1163_v17 = vand.u32 4294901760, %v7987_v10  ;;  %v1169_v18 = vand.u32 4294901760, %v7989_v12  ;;  %s7824_s16 = sshll.u32 %s7886_s25, 4  ;;  %s7825_s16 = int_to_ptr.vmem [resolvable:$false] %s7824_s16 }
  0x1b   : > { %7159 = vmatprep.subr.bf16.mxu0 %v7146_v13  ;;  %7147 = vmatprep.subr.bf16.mxu1 %v7146_v13  ;;  %v1175_v19 = vand.u32 4294901760, %v7994_v14  ;;  %s7826_s17 = scalar_lea.vmem %s7825_s16, 16384 }
  0x1c   : > { %7161 = vmatpush1.bf16.msra.mxu0 %v7996_v15  ;;  %7149 = vmatpush1.bf16.msra.mxu1 %v7996_v15  ;;  %s8011_s26 = scalar_lea.vmem %s11843_s0, %s7710_s18  ;;  %v1164_v20 = vsub.f32 %v7987_v10, %v1163_v17  ;;  %v1170_v21 = vsub.f32 %v7989_v12, %v1169_v18  ;;  %v1181_v22 = vand.u32 4294901760, %v7998_v16  ;;  %s8698_s9 = scalar_lea.vmem %s11844_s1, %s7710_s18 }
  0x1d   : > { %v270_v23 = vld [vmem:[%s8011_s26] sm:$0xff]  ;;  %v1176_v24 = vsub.f32 %v7994_v14, %v1175_v19  ;;  %v7162_v25 = vpack.c.bf16 %v1175_v19, %v1163_v17  ;;  %v271_v26 = vld [vmem:[%s8011_s26 + $0x8] sm:$0xff]  ;;  %v272_v27 = vld [vmem:[%s8011_s26 + $0x10] sm:$0xff] }
  0x1e   : > { %v330_v28 = vsel %vm328_vm1, %v270_v23, 0  ;;  %v1165_v29 = vand.u32 4294901760, %v1164_v20  ;;  %v1182_v30 = vsub.f32 %v7998_v16, %v1181_v22  ;;  %v273_v31 = vld [vmem:[%s8011_s26 + $0x18] sm:$0xff]  ;;  %v333_v34 = vsel %vm328_vm1, %v271_v26, 0  ;;  %v274_v35 = vld [vmem:[%s8011_s26 + $0x20] sm:$0xff]  ;;  %v275_v44 = vld [vmem:[%s8011_s26 + $0x28] sm:$0xff] }
  0x1f   : > { %v8023_v32 = vand.u32 4294901760, %v330_v28  ;;  %v1177_v33 = vand.u32 4294901760, %v1176_v24  ;;  %7163 = vmatprep.subr.bf16.mxu0 %v7162_v25  ;;  %v1171_v36 = vand.u32 4294901760, %v1170_v21  ;;  %v8027_v37 = vand.u32 4294901760, %v333_v34  ;;  %v276_v60 = vld [vmem:[%s8011_s26 + $0x30] sm:$0xff]  ;;  %v277_v2 = vld [vmem:[%s8011_s26 + $0x38] sm:$0xff] }
  0x20   : > { %v336_v38 = vsel %vm328_vm1, %v272_v27, 0  ;;  %v339_v39 = vsel %vm328_vm1, %v273_v31, 0  ;;  %v1183_v45 = vand.u32 4294901760, %v1182_v30  ;;  %v7164_v47 = vpack.c.bf16 %v1181_v22, %v1169_v18  ;;  %v279_v23 = vld [vmem:[%s8011_s26 + $0x48] sm:$0xff]  ;;  %v280_v30 = vld [vmem:[%s8011_s26 + $0x50] sm:$0xff] }
  0x21   : > { %v8032_v40 = vsub.f32 %v330_v28, %v8023_v32  ;;  %v7150_v41 = vpack.c.bf16 %v1177_v33, %v1165_v29  ;;  %v8034_v42 = vand.u32 4294901760, %v336_v38  ;;  %v8036_v43 = vand.u32 4294901760, %v339_v39 }
  0x22   : > { %v8040_v46 = vsub.f32 %v333_v34, %v8027_v37  ;;  %v342_v48 = vsel %vm328_vm1, %v274_v35, 0  ;;  %v345_v52 = vsel %vm328_vm1, %v275_v44, 0  ;;  %v7152_v57 = vpack.c.bf16 %v1183_v45, %v1171_v36 }
  0x23   : > { %12006 = vst [vmem:[#allocation8_spill] sm:$0xff] %v8032_v40  ;;  %v569_v49 = vand.u32 4294901760, %v8032_v40  ;;  %7151 = vmatprep.subr.bf16.mxu1 %v7150_v41  ;;  %v8045_v50 = vsub.f32 %v336_v38, %v8034_v42  ;;  %v8052_v55 = vsub.f32 %v339_v39, %v8036_v43  ;;  %v8054_v56 = vand.u32 4294901760, %v342_v48  ;;  %v281_v38 = vld [vmem:[%s8011_s26 + $0x58] sm:$0xff] }
  0x24   : > { %12007 = vst [vmem:[#allocation9_spill] sm:$0xff] %v8040_v46  ;;  %v580_v51 = vand.u32 4294901760, %v8040_v46  ;;  %v8059_v61 = vand.u32 4294901760, %v345_v52  ;;  %v348_v3 = vsel %vm328_vm1, %v276_v60, 0  ;;  %v351_v5 = vsel %vm328_vm1, %v277_v2, 0  ;;  %v283_v60 = vld [vmem:[%s8011_s26 + $0x68] sm:$0xff] }
  0x25   : > { %12008 = vst [vmem:[#allocation10_spill] sm:$0xff] %v8045_v50  ;;  %2201 = vmatmul.mubr.f32.vlgmr.msra.gmra.mrb[0].mxu0 %v569_v49  ;;  %v570_v53 = vsub.f32 %v8032_v40, %v569_v49  ;;  %v591_v54 = vand.u32 4294901760, %v8045_v50  ;;  %12009 = vst [vmem:[#allocation11_spill] sm:$0xff] %v8052_v55  ;;  %v602_v0 = vand.u32 4294901760, %v8052_v55  ;;  %v8064_v1 = vsub.f32 %v342_v48, %v8054_v56 }
  0x26   : > { %2206 = vmatprep.mubr.f32.mxu0 %v11858_v7  ;;  %7165 = vmatpush1.bf16.msra.mxu0 %v7164_v47  ;;  %v581_v58 = vsub.f32 %v8040_v46, %v580_v51  ;;  %v8071_v4 = vsub.f32 %v345_v52, %v8059_v61  ;;  %v8076_v11 = vand.u32 4294901760, %v348_v3  ;;  %v8081_v17 = vand.u32 4294901760, %v351_v5 }
  0x27   : > { %v571_v59 = vand.u32 4294901760, %v570_v53  ;;  %7167 = vmatprep.subr.bf16.mxu0 %v7146_v13  ;;  %v592_v63 = vsub.f32 %v8045_v50, %v591_v54  ;;  %12010 = vst [vmem:[#allocation12_spill] sm:$0xff] %v8064_v1  ;;  %v603_v8 = vsub.f32 %v8052_v55, %v602_v0  ;;  %v613_v9 = vand.u32 4294901760, %v8064_v1  ;;  %v278_v13 = vld [vmem:[%s8011_s26 + $0x40] sm:$0xff]  ;;  %v312_v55 = vld [vmem:[%s8011_s26 + $0x150] sm:$0xff] }
  0x28   : > { %v582_v62 = vand.u32 4294901760, %v581_v58  ;;  %12011 = vst [vmem:[#allocation13_spill] sm:$0xff] %v8071_v4  ;;  %v624_v20 = vand.u32 4294901760, %v8071_v4  ;;  %v8086_v21 = vsub.f32 %v348_v3, %v8076_v11  ;;  %v354_v22 = vsel %vm328_vm1, %v278_v13, 0 }
  0x29   : > { %572 = vmatmul.mubr.f32.vlgmr.msra.gmra.mrb[0].mxu1 %v571_v59  ;;  %2210 = vmatmul.mubr.f32.gmra.mrb[2].mxu0 %v580_v51  ;;  %v593_v6 = vand.u32 4294901760, %v592_v63  ;;  %v604_v18 = vand.u32 4294901760, %v603_v8  ;;  %v614_v19 = vsub.f32 %v8064_v1, %v613_v9  ;;  %v8093_v24 = vsub.f32 %v351_v5, %v8081_v17  ;;  %v282_v51 = vld [vmem:[%s8011_s26 + $0x60] sm:$0xff] }
  0x2a   : > { %7153 = vmatpush1.bf16.msra.mxu1 %v7152_v57  ;;  %577 = vmatprep.mubr.f32.mxu1 %v11858_v7  ;;  %12012 = vst [vmem:[#allocation14_spill] sm:$0xff] %v8086_v21  ;;  %v625_v26 = vsub.f32 %v8071_v4, %v624_v20  ;;  %v635_v27 = vand.u32 4294901760, %v8086_v21  ;;  %v8097_v28 = vand.u32 4294901760, %v354_v22  ;;  %v357_v29 = vsel %vm328_vm1, %v279_v23, 0 }
  0x2b   : > { %2215 = vmatprep.mubr.f32.mxu0 %v11858_v7  ;;  %12013 = vst [vmem:[#allocation15_spill] sm:$0xff] %v8093_v24  ;;  %v615_v25 = vand.u32 4294901760, %v614_v19  ;;  %v646_v31 = vand.u32 4294901760, %v8093_v24  ;;  %v8108_v36 = vand.u32 4294901760, %v357_v29  ;;  %v360_v39 = vsel %vm328_vm1, %v280_v30, 0 }
  0x2c   : > { %v626_v33 = vand.u32 4294901760, %v625_v26  ;;  %v636_v34 = vsub.f32 %v8086_v21, %v635_v27  ;;  %v8106_v35 = vsub.f32 %v354_v22, %v8097_v28  ;;  %v363_v44 = vsel %vm328_vm1, %v281_v38, 0  ;;  %v285_v22 = vld [vmem:[%s8011_s26 + $0x78] sm:$0xff]  ;;  %v310_v21 = vld [vmem:[%s8011_s26 + $0x140] sm:$0xff] }
  0x2d   : > { %583 = vmatmul.mubr.f32.gmra.mrb[2].mxu1 %v582_v62  ;;  %2219 = vmatmul.mubr.f32.gmra.mrb[4].mxu0 %v591_v54  ;;  %v647_v41 = vsub.f32 %v8093_v24, %v646_v31  ;;  %v8118_v48 = vsub.f32 %v357_v29, %v8108_v36  ;;  %v8120_v49 = vand.u32 4294901760, %v360_v39  ;;  %v8125_v52 = vand.u32 4294901760, %v363_v44 }
  0x2e   : > { %588 = vmatprep.mubr.f32.mxu1 %v11858_v7  ;;  %2224 = vmatprep.mubr.f32.mxu0 %v11858_v7  ;;  %12014 = vst [vmem:[#allocation16_spill] sm:$0xff] %v8106_v35  ;;  %v637_v45 = vand.u32 4294901760, %v636_v34  ;;  %v657_v47 = vand.u32 4294901760, %v8106_v35  ;;  %v366_v53 = vsel %vm328_vm1, %v282_v51, 0  ;;  %v369_v5 = vsel %vm328_vm1, %v283_v60, 0  ;;  %v288_v60 = vld [vmem:[%s8011_s26 + $0x90] sm:$0xff] }
  0x2f   : > { %12015 = vst [vmem:[#allocation17_spill] sm:$0xff] %v8118_v48  ;;  %v648_v54 = vand.u32 4294901760, %v647_v41  ;;  %v668_v58 = vand.u32 4294901760, %v8118_v48  ;;  %v8131_v59 = vsub.f32 %v360_v39, %v8120_v49  ;;  %v8137_v62 = vsub.f32 %v363_v44, %v8125_v52 }
  0x30   : > { %v658_v57 = vsub.f32 %v8106_v35, %v657_v47  ;;  %v8139_v63 = vand.u32 4294901760, %v366_v53  ;;  %v375_v30 = vsel %vm328_vm1, %v285_v22, 0 }
  0x31   : > { %594 = vmatmul.mubr.f32.gmra.mrb[4].mxu1 %v593_v6  ;;  %2228 = vmatmul.mubr.f32.gmra.mrb[6].mxu0 %v602_v0  ;;  %12016 = vst [vmem:[#allocation18_spill] sm:$0xff] %v8131_v59  ;;  %12017 = vst [vmem:[#allocation19_spill] sm:$0xff] %v8137_v62  ;;  %v669_v2 = vsub.f32 %v8118_v48, %v668_v58  ;;  %v679_v3 = vand.u32 4294901760, %v8131_v59  ;;  %v284_v6 = vld [vmem:[%s8011_s26 + $0x70] sm:$0xff]  ;;  %v690_v19 = vand.u32 4294901760, %v8137_v62  ;;  %v8174_v41 = vand.u32 4294901760, %v375_v30 }
  0x32   : > { %599 = vmatprep.mubr.f32.mxu1 %v11858_v7  ;;  %2233 = vmatprep.mubr.f32.mxu0 %v11858_v7  ;;  %v659_v0 = vand.u32 4294901760, %v658_v57  ;;  %v8148_v8 = vsub.f32 %v366_v53, %v8139_v63  ;;  %v306_v48 = vld [vmem:[%s8011_s26 + $0x120] sm:$0xff] }
  0x33   : > { %v670_v13 = vand.u32 4294901760, %v669_v2  ;;  %v691_v26 = vsub.f32 %v8137_v62, %v690_v19  ;;  %12022 = vst [vmem:[#allocation24_spill] sm:$0xff] %v8174_v41 }
  0x34   : > { %12018 = vst [vmem:[#allocation20_spill] sm:$0xff] %v8148_v8 }
  0x35   : > { %605 = vmatmul.mubr.f32.gmra.mrb[6].mxu1 %v604_v18  ;;  %2237 = vmatmul.mubr.f32.gmra.mrb[8].mxu0 %v613_v9  ;;  %v8150_v9 = vand.u32 4294901760, %v369_v5  ;;  %v680_v18 = vsub.f32 %v8131_v59, %v679_v3  ;;  %v692_v34 = vand.u32 4294901760, %v691_v26 }
  0x36   : > { %610 = vmatprep.mubr.f32.mxu1 %v11858_v7  ;;  %2242 = vmatprep.mubr.f32.mxu0 %v11858_v7 }
  0x37   : > { %v8163_v29 = vsub.f32 %v369_v5, %v8150_v9 }
  0x39   : > { %616 = vmatmul.mubr.f32.gmra.mrb[8].mxu1 %v615_v25  ;;  %2246 = vmatmul.mubr.f32.gmra.mrb[10].mxu0 %v624_v20  ;;  %v372_v20 = vsel %vm328_vm1, %v284_v6, 0  ;;  %v681_v25 = vand.u32 4294901760, %v680_v18  ;;  %12020 = vst [vmem:[#allocation22_spill] sm:$0xff] %v8163_v29  ;;  %v712_v39 = vand.u32 4294901760, %v8163_v29  ;;  %v384_v18 = vsel %vm328_vm1, %v288_v60, 0 }
  0x3a   : > { %621 = vmatprep.mubr.f32.mxu1 %v11858_v7  ;;  %2251 = vmatprep.mubr.f32.mxu0 %v11858_v7  ;;  %v8158_v23 = vand.u32 4294901760, %v372_v20 }
  0x3b   : > { %v713_v53 = vsub.f32 %v8163_v29, %v712_v39  ;;  %v303_v29 = vld [vmem:[%s8011_s26 + $0x108] sm:$0xff] }
  0x3c   : > { %12019 = vst [vmem:[#allocation21_spill] sm:$0xff] %v8158_v23 }
  0x3d   : > { %627 = vmatmul.mubr.f32.gmra.mrb[10].mxu1 %v626_v33  ;;  %2255 = vmatmul.mubr.f32.gmra.mrb[12].mxu0 %v635_v27  ;;  %v701_v27 = vand.u32 4294901760, %v8148_v8  ;;  %v8170_v33 = vsub.f32 %v372_v20, %v8158_v23  ;;  %v714_v2 = vand.u32 4294901760, %v713_v53 }
  0x3e   : > { %632 = vmatprep.mubr.f32.mxu1 %v11858_v7  ;;  %2260 = vmatprep.mubr.f32.mxu0 %v11858_v7 }
  0x3f   : > { %12021 = vst [vmem:[#allocation23_spill] sm:$0xff] %v8170_v33  ;;  %v702_v38 = vsub.f32 %v8148_v8, %v701_v27 }
  0x41   : > { %638 = vmatmul.mubr.f32.gmra.mrb[12].mxu1 %v637_v45  ;;  %2264 = vmatmul.mubr.f32.gmra.mrb[14].mxu0 %v646_v31  ;;  %v286_v31 = vld [vmem:[%s8011_s26 + $0x80] sm:$0xff]  ;;  %v287_v45 = vld [vmem:[%s8011_s26 + $0x88] sm:$0xff]  ;;  %v703_v51 = vand.u32 4294901760, %v702_v38 }
  0x42   : > { %643 = vmatprep.mubr.f32.mxu1 %v11858_v7  ;;  %2269 = vmatprep.mubr.f32.mxu0 %v11858_v7  ;;  %v378_v44 = vsel %vm328_vm1, %v286_v31, 0 }
  0x43   : > { %v8185_v57 = vand.u32 4294901760, %v378_v44 }
  0x45   : > { %649 = vmatmul.mubr.f32.gmra.mrb[14].mxu1 %v648_v54  ;;  %2273 = vmatmul.mubr.f32.gmra.mrb[16].mxu0 %v657_v47  ;;  %v723_v47 = vand.u32 4294901760, %v8170_v33  ;;  %v8183_v54 = vsub.f32 %v375_v30, %v8174_v41  ;;  %12024 = vst [vmem:[#allocation26_spill] sm:$0xff] %v8185_v57  ;;  %v8194_v5 = vsub.f32 %v378_v44, %v8185_v57  ;;  %v290_v30 = vld [vmem:[%s8011_s26 + $0xa0] sm:$0xff] }
  0x46   : > { %654 = vmatprep.mubr.f32.mxu1 %v11858_v7  ;;  %2278 = vmatprep.mubr.f32.mxu0 %v11858_v7 }
  0x47   : > { %12023 = vst [vmem:[#allocation25_spill] sm:$0xff] %v8183_v54  ;;  %12025 = vst [vmem:[#allocation27_spill] sm:$0xff] %v8194_v5 }
  0x49   : > { %660 = vmatmul.mubr.f32.gmra.mrb[16].mxu1 %v659_v0  ;;  %2282 = vmatmul.mubr.f32.gmra.mrb[18].mxu0 %v668_v58  ;;  %v381_v58 = vsel %vm328_vm1, %v287_v45, 0  ;;  %v724_v0 = vsub.f32 %v8170_v33, %v723_v47 }
  0x4a   : > { %665 = vmatprep.mubr.f32.mxu1 %v11858_v7  ;;  %2287 = vmatprep.mubr.f32.mxu0 %v11858_v7  ;;  %v8196_v6 = vand.u32 4294901760, %v381_v58 }
  0x4c   : > { %12026 = vst [vmem:[#allocation28_spill] sm:$0xff] %v8196_v6  ;;  %v8206_v26 = vsub.f32 %v381_v58, %v8196_v6 }
  0x4d   : > { %671 = vmatmul.mubr.f32.gmra.mrb[18].mxu1 %v670_v13  ;;  %2291 = vmatmul.mubr.f32.gmra.mrb[20].mxu0 %v679_v3  ;;  %v734_v3 = vand.u32 4294901760, %v8183_v54  ;;  %v289_v13 = vld [vmem:[%s8011_s26 + $0x98] sm:$0xff] }
  0x4e   : > { %676 = vmatprep.mubr.f32.mxu1 %v11858_v7  ;;  %2296 = vmatprep.mubr.f32.mxu0 %v11858_v7  ;;  %v387_v20 = vsel %vm328_vm1, %v289_v13, 0  ;;  %12027 = vst [vmem:[#allocation29_spill] sm:$0xff] %v8206_v26  ;;  %v756_v44 = vand.u32 4294901760, %v8206_v26 }
  0x4f   : > { %v735_v22 = vsub.f32 %v8183_v54, %v734_v3  ;;  %v8213_v31 = vand.u32 4294901760, %v387_v20  ;;  %v7154_v54 = vpack.c.bf16 %v7994_v14, %v7987_v10  ;;  %v299_v10 = vld [vmem:[%s8011_s26 + $0xe8] sm:$0xff] }
  0x50   : > { %v757_v58 = vsub.f32 %v8206_v26, %v756_v44 }
  0x51   : > { %682 = vmatmul.mubr.f32.gmra.mrb[20].mxu1 %v681_v25  ;;  %2300 = vmatmul.mubr.f32.gmra.mrb[22].mxu0 %v690_v19  ;;  %v725_v19 = vand.u32 4294901760, %v724_v0  ;;  %v745_v25 = vand.u32 4294901760, %v8194_v5  ;;  %12029 = vst [vmem:[#allocation31_spill] sm:$0xff] %v8213_v31  ;;  %v736_v38 = vand.u32 4294901760, %v735_v22  ;;  %v8229_v0 = vsub.f32 %v387_v20, %v8213_v31 }
  0x52   : > { %687 = vmatprep.mubr.f32.mxu1 %v11858_v7  ;;  %2305 = vmatprep.mubr.f32.mxu0 %v11858_v7 }
  0x53   : > { %12032 = vst [vmem:[#allocation34_spill] sm:$0xff] %v8229_v0  ;;  %v778_v20 = vand.u32 4294901760, %v8229_v0  ;;  %7155 = vmatprep.subr.bf16.mxu1 %v7154_v54 }
  0x55   : > { %693 = vmatmul.mubr.f32.gmra.mrb[22].mxu1 %v692_v34  ;;  %2309 = vmatmul.mubr.f32.gmra.mrb[24].mxu0 %v701_v27  ;;  %v8208_v27 = vand.u32 4294901760, %v384_v18  ;;  %v390_v34 = vsel %vm328_vm1, %v290_v30, 0  ;;  %v293_v30 = vld [vmem:[%s8011_s26 + $0xb8] sm:$0xff] }
  0x56   : > { %698 = vmatprep.mubr.f32.mxu1 %v11858_v7  ;;  %2314 = vmatprep.mubr.f32.mxu0 %v11858_v7 }
  0x57   : > { %12028 = vst [vmem:[#allocation30_spill] sm:$0xff] %v8208_v27  ;;  %v8219_v45 = vsub.f32 %v384_v18, %v8208_v27 }
  0x59   : > { %704 = vmatmul.mubr.f32.gmra.mrb[24].mxu1 %v703_v51  ;;  %2318 = vmatmul.mubr.f32.gmra.mrb[26].mxu0 %v712_v39  ;;  %v746_v39 = vsub.f32 %v8194_v5, %v745_v25  ;;  %12030 = vst [vmem:[#allocation32_spill] sm:$0xff] %v8219_v45  ;;  %v8224_v51 = vand.u32 4294901760, %v390_v34  ;;  %v767_v60 = vand.u32 4294901760, %v8219_v45 }
  0x5a   : > { %709 = vmatprep.mubr.f32.mxu1 %v11858_v7  ;;  %2323 = vmatprep.mubr.f32.mxu0 %v11858_v7 }
  0x5b   : > { %12031 = vst [vmem:[#allocation33_spill] sm:$0xff] %v8224_v51  ;;  %v747_v53 = vand.u32 4294901760, %v746_v39  ;;  %v8236_v13 = vsub.f32 %v390_v34, %v8224_v51  ;;  %v768_v22 = vsub.f32 %v8219_v45, %v767_v60 }
  0x5d   : > { %715 = vmatmul.mubr.f32.gmra.mrb[26].mxu1 %v714_v2  ;;  %2327 = vmatmul.mubr.f32.gmra.mrb[28].mxu0 %v723_v47  ;;  %v291_v47 = vld [vmem:[%s8011_s26 + $0xa8] sm:$0xff]  ;;  %v292_v2 = vld [vmem:[%s8011_s26 + $0xb0] sm:$0xff]  ;;  %12033 = vst [vmem:[#allocation35_spill] sm:$0xff] %v8236_v13  ;;  %v789_v34 = vand.u32 4294901760, %v8236_v13  ;;  %v769_v39 = vand.u32 4294901760, %v768_v22 }
  0x5e   : > { %720 = vmatprep.mubr.f32.mxu1 %v11858_v7  ;;  %2332 = vmatprep.mubr.f32.mxu0 %v11858_v7  ;;  %v396_v18 = vsel %vm328_vm1, %v292_v2, 0 }
  0x5f   : > { %v790_v2 = vsub.f32 %v8236_v13, %v789_v34 }
  0x61   : > { %726 = vmatmul.mubr.f32.gmra.mrb[28].mxu1 %v725_v19  ;;  %2336 = vmatmul.mubr.f32.gmra.mrb[30].mxu0 %v734_v3  ;;  %v393_v3 = vsel %vm328_vm1, %v291_v47, 0  ;;  %v758_v19 = vand.u32 4294901760, %v757_v58  ;;  %v294_v58 = vld [vmem:[%s8011_s26 + $0xc0] sm:$0xff] }
  0x62   : > { %731 = vmatprep.mubr.f32.mxu1 %v11858_v7  ;;  %2341 = vmatprep.mubr.f32.mxu0 %v11858_v7  ;;  %v402_v22 = vsel %vm328_vm1, %v294_v58, 0  ;;  %v296_v58 = vld [vmem:[%s8011_s26 + $0xd0] sm:$0xff] }
  0x65   : > { %737 = vmatmul.mubr.f32.gmra.mrb[30].mxu1 %v736_v38  ;;  %2345 = vmatmul.mubr.f32.gmra.mrb[32].mxu0 %v745_v25  ;;  %v8241_v25 = vand.u32 4294901760, %v393_v3  ;;  %v8247_v38 = vand.u32 4294901760, %v396_v18 }
  0x66   : > { %742 = vmatprep.mubr.f32.mxu1 %v11858_v7  ;;  %2350 = vmatprep.mubr.f32.mxu0 %v11858_v7 }
  0x67   : > { %12034 = vst [vmem:[#allocation36_spill] sm:$0xff] %v8241_v25  ;;  %12035 = vst [vmem:[#allocation37_spill] sm:$0xff] %v8247_v38  ;;  %v8251_v47 = vsub.f32 %v393_v3, %v8241_v25  ;;  %v8259_v45 = vsub.f32 %v396_v18, %v8247_v38 }
  0x69   : > { %748 = vmatmul.mubr.f32.gmra.mrb[32].mxu1 %v747_v53  ;;  %2354 = vmatmul.mubr.f32.gmra.mrb[34].mxu0 %v756_v44  ;;  %v779_v44 = vsub.f32 %v8229_v0, %v778_v20  ;;  %12036 = vst [vmem:[#allocation38_spill] sm:$0xff] %v8251_v47  ;;  %v399_v53 = vsel %vm328_vm1, %v293_v30, 0  ;;  %12037 = vst [vmem:[#allocation39_spill] sm:$0xff] %v8259_v45  ;;  %v295_v30 = vld [vmem:[%s8011_s26 + $0xc8] sm:$0xff]  ;;  %v791_v0 = vand.u32 4294901760, %v790_v2  ;;  %v811_v13 = vand.u32 4294901760, %v8259_v45 }
  0x6a   : > { %753 = vmatprep.mubr.f32.mxu1 %v11858_v7  ;;  %2359 = vmatprep.mubr.f32.mxu0 %v11858_v7  ;;  %v8262_v3 = vand.u32 4294901760, %v399_v53 }
  0x6b   : > { %v812_v2 = vsub.f32 %v8259_v45, %v811_v13 }
  0x6c   : > { %12038 = vst [vmem:[#allocation40_spill] sm:$0xff] %v8262_v3 }
  0x6d   : > { %759 = vmatmul.mubr.f32.gmra.mrb[34].mxu1 %v758_v19  ;;  %2363 = vmatmul.mubr.f32.gmra.mrb[36].mxu0 %v767_v60  ;;  %v780_v60 = vand.u32 4294901760, %v779_v44  ;;  %v800_v19 = vand.u32 4294901760, %v8251_v47  ;;  %v405_v44 = vsel %vm328_vm1, %v295_v30, 0  ;;  %v408_v30 = vsel %vm328_vm1, %v296_v58, 0  ;;  %v298_v58 = vld [vmem:[%s8011_s26 + $0xe0] sm:$0xff] }
  0x6e   : > { %764 = vmatprep.mubr.f32.mxu1 %v11858_v7  ;;  %2368 = vmatprep.mubr.f32.mxu0 %v11858_v7  ;;  %v8280_v26 = vand.u32 4294901760, %v405_v44  ;;  %v8290_v5 = vand.u32 4294901760, %v408_v30 }
  0x6f   : > { %v801_v18 = vsub.f32 %v8251_v47, %v800_v19  ;;  %v297_v47 = vld [vmem:[%s8011_s26 + $0xd8] sm:$0xff] }
  0x70   : > { %12041 = vst [vmem:[#allocation43_spill] sm:$0xff] %v8280_v26  ;;  %12043 = vst [vmem:[#allocation45_spill] sm:$0xff] %v8290_v5  ;;  %v411_v45 = vsel %vm328_vm1, %v297_v47, 0  ;;  %v8304_v47 = vsub.f32 %v408_v30, %v8290_v5 }
  0x71   : > { %770 = vmatmul.mubr.f32.gmra.mrb[36].mxu1 %v769_v39  ;;  %2372 = vmatmul.mubr.f32.gmra.mrb[38].mxu0 %v778_v20  ;;  %v8271_v20 = vsub.f32 %v399_v53, %v8262_v3  ;;  %v8273_v39 = vand.u32 4294901760, %v402_v22 }
  0x72   : > { %775 = vmatprep.mubr.f32.mxu1 %v11858_v7  ;;  %2377 = vmatprep.mubr.f32.mxu0 %v11858_v7  ;;  %12045 = vst [vmem:[#allocation47_spill] sm:$0xff] %v8304_v47 }
  0x73   : > { %12039 = vst [vmem:[#allocation41_spill] sm:$0xff] %v8271_v20  ;;  %12040 = vst [vmem:[#allocation42_spill] sm:$0xff] %v8273_v39  ;;  %v8284_v53 = vsub.f32 %v402_v22, %v8273_v39  ;;  %v8296_v22 = vsub.f32 %v405_v44, %v8280_v26 }
  0x75   : > { %781 = vmatmul.mubr.f32.gmra.mrb[38].mxu1 %v780_v60  ;;  %2381 = vmatmul.mubr.f32.gmra.mrb[40].mxu0 %v789_v34  ;;  %v802_v34 = vand.u32 4294901760, %v801_v18  ;;  %v822_v60 = vand.u32 4294901760, %v8271_v20  ;;  %12042 = vst [vmem:[#allocation44_spill] sm:$0xff] %v8284_v53  ;;  %v833_v18 = vand.u32 4294901760, %v8284_v53  ;;  %12044 = vst [vmem:[#allocation46_spill] sm:$0xff] %v8296_v22 }
  0x76   : > { %786 = vmatprep.mubr.f32.mxu1 %v11858_v7  ;;  %2386 = vmatprep.mubr.f32.mxu0 %v11858_v7 }
  0x77   : > { %v834_v44 = vsub.f32 %v8284_v53, %v833_v18 }
  0x79   : > { %792 = vmatmul.mubr.f32.gmra.mrb[40].mxu1 %v791_v0  ;;  %2390 = vmatmul.mubr.f32.gmra.mrb[42].mxu0 %v800_v19  ;;  %v813_v0 = vand.u32 4294901760, %v812_v2  ;;  %v823_v19 = vsub.f32 %v8271_v20, %v822_v60  ;;  %v12047_v20 = vmov 0.0   ;;  %v835_v54 = vand.u32 4294901760, %v834_v44 }
  0x7a   : > { %797 = vmatprep.mubr.f32.mxu1 %v11858_v7  ;;  %2395 = vmatprep.mubr.f32.mxu0 %v11858_v7 }
  0x7b   : > { %v824_v2 = vand.u32 4294901760, %v823_v19  ;;  %v417_v19 = vsel %vm328_vm1, %v299_v10, 0 }
  0x7c   : > { %v8325_v53 = vand.u32 4294901760, %v417_v19 }
  0x7d   : > { %803 = vmatmul.mubr.f32.gmra.mrb[42].mxu1 %v802_v34  ;;  %2399 = vmatmul.mubr.f32.gmra.mrb[44].mxu0 %v811_v13  ;;  %v8306_v13 = vand.u32 4294901760, %v411_v45  ;;  %v844_v34 = vand.u32 4294901760, %v8296_v22 }
  0x7e   : > { %808 = vmatprep.mubr.f32.mxu1 %v11858_v7  ;;  %2404 = vmatprep.mubr.f32.mxu0 %v11858_v7  ;;  %v414_v7 = vsel %vm328_vm1, %v298_v58, 0  ;;  %v300_v58 = vld [vmem:[%s8011_s26 + $0xf0] sm:$0xff]  ;;  %12050 = vst [vmem:[#allocation51_spill] sm:$0xff] %v8325_v53  ;;  %v8337_v33 = vsub.f32 %v417_v19, %v8325_v53 }
  0x7f   : > { %12046 = vst [vmem:[#allocation48_spill] sm:$0xff] %v8306_v13  ;;  %v8315_v14 = vsub.f32 %v411_v45, %v8306_v13  ;;  %v8317_v30 = vand.u32 4294901760, %v414_v7  ;;  %v420_v10 = vsel %vm328_vm1, %v300_v58, 0 }
  0x80   : > { %12052 = vst [vmem:[#allocation53_spill] sm:$0xff] %v8337_v33  ;;  %v888_v19 = vand.u32 4294901760, %v8337_v33 }
  0x81   : > { %814 = vmatmul.mubr.f32.gmra.mrb[44].mxu1 %v813_v0  ;;  %2408 = vmatmul.mubr.f32.gmra.mrb[46].mxu0 %v822_v60  ;;  %12048 = vst [vmem:[#allocation49_spill] sm:$0xff] %v8315_v14  ;;  %12049 = vst [vmem:[#allocation50_spill] sm:$0xff] %v8317_v30  ;;  %v845_v60 = vsub.f32 %v8296_v22, %v844_v34  ;;  %v855_v0 = vand.u32 4294901760, %v8304_v47  ;;  %v8330_v44 = vsub.f32 %v414_v7, %v8317_v30  ;;  %v301_v22 = vld [vmem:[%s8011_s26 + $0xf8] sm:$0xff] }
  0x82   : > { %819 = vmatprep.mubr.f32.mxu1 %v12047_v20  ;;  %2413 = vmatprep.mubr.f32.mxu0 %v12047_v20  ;;  %v8341_v7 = vand.u32 4294901760, %v420_v10  ;;  %v423_v58 = vsel %vm328_vm1, %v301_v22, 0  ;;  %v889_v8 = vsub.f32 %v8337_v33, %v888_v19 }
  0x83   : > { %v846_v45 = vand.u32 4294901760, %v845_v60  ;;  %12051 = vst [vmem:[#allocation52_spill] sm:$0xff] %v8330_v44  ;;  %v877_v60 = vand.u32 4294901760, %v8330_v44 }
  0x84   : > { %12053 = vst [vmem:[#allocation54_spill] sm:$0xff] %v8341_v7 }
  0x85   : > { %825 = vmatmul.mubr.f32.gmra.mrb[46].mxu1 %v824_v2  ;;  %2417 = vmatmul.mubr.f32.gmra.mrb[48].mxu0 %v833_v18  ;;  %v856_v18 = vsub.f32 %v8304_v47, %v855_v0  ;;  %v866_v2 = vand.u32 4294901760, %v8315_v14  ;;  %v302_v47 = vld [vmem:[%s8011_s26 + $0x100] sm:$0xff] }
  0x86   : > { %830 = vmatprep.mubr.f32.mxu1 %v12047_v20  ;;  %2422 = vmatprep.mubr.f32.mxu0 %v12047_v20  ;;  %v426_v22 = vsel %vm328_vm1, %v302_v47, 0  ;;  %v304_v47 = vld [vmem:[%s8011_s26 + $0x110] sm:$0xff] }
  0x87   : > { %v432_v33 = vsel %vm328_vm1, %v304_v47, 0 }
  0x89   : > { %836 = vmatmul.mubr.f32.gmra.mrb[48].mxu1 %v835_v54  ;;  %2426 = vmatmul.mubr.f32.gmra.mrb[50].mxu0 %v844_v34  ;;  %v857_v34 = vand.u32 4294901760, %v856_v18  ;;  %v867_v54 = vsub.f32 %v8315_v14, %v866_v2  ;;  %v8350_v18 = vsub.f32 %v420_v10, %v8341_v7  ;;  %v8352_v14 = vand.u32 4294901760, %v423_v58 }
  0x8a   : > { %841 = vmatprep.mubr.f32.mxu1 %v12047_v20  ;;  %2431 = vmatprep.mubr.f32.mxu0 %v12047_v20 }
  0x8b   : > { %12054 = vst [vmem:[#allocation55_spill] sm:$0xff] %v8350_v18  ;;  %12055 = vst [vmem:[#allocation56_spill] sm:$0xff] %v8352_v14  ;;  %v899_v10 = vand.u32 4294901760, %v8350_v18 }
  0x8d   : > { %847 = vmatmul.mubr.f32.gmra.mrb[50].mxu1 %v846_v45  ;;  %2435 = vmatmul.mubr.f32.gmra.mrb[52].mxu0 %v855_v0  ;;  %v868_v0 = vand.u32 4294901760, %v867_v54  ;;  %v878_v45 = vsub.f32 %v8330_v44, %v877_v60  ;;  %v8362_v54 = vsub.f32 %v423_v58, %v8352_v14  ;;  %v8364_v44 = vand.u32 4294901760, %v426_v22 }
  0x8e   : > { %852 = vmatprep.mubr.f32.mxu1 %v12047_v20  ;;  %2440 = vmatprep.mubr.f32.mxu0 %v12047_v20 }
  0x8f   : > { %12056 = vst [vmem:[#allocation57_spill] sm:$0xff] %v8362_v54  ;;  %12057 = vst [vmem:[#allocation58_spill] sm:$0xff] %v8364_v44  ;;  %v8374_v58 = vsub.f32 %v426_v22, %v8364_v44 }
  0x91   : > { %858 = vmatmul.mubr.f32.gmra.mrb[52].mxu1 %v857_v34  ;;  %2444 = vmatmul.mubr.f32.gmra.mrb[54].mxu0 %v866_v2  ;;  %v429_v2 = vsel %vm328_vm1, %v303_v29, 0  ;;  %v879_v34 = vand.u32 4294901760, %v878_v45  ;;  %v890_v29 = vand.u32 4294901760, %v889_v8  ;;  %12059 = vst [vmem:[#allocation60_spill] sm:$0xff] %v8374_v58  ;;  %v305_v45 = vld [vmem:[%s8011_s26 + $0x118] sm:$0xff]  ;;  %v921_v22 = vand.u32 4294901760, %v8374_v58 }
  0x92   : > { %863 = vmatprep.mubr.f32.mxu1 %v12047_v20  ;;  %2449 = vmatprep.mubr.f32.mxu0 %v12047_v20  ;;  %v8369_v62 = vand.u32 4294901760, %v429_v2  ;;  %v435_v8 = vsel %vm328_vm1, %v305_v45, 0 }
  0x93   : > { %v8391_v47 = vand.u32 4294901760, %v435_v8 }
  0x94   : > { %12058 = vst [vmem:[#allocation59_spill] sm:$0xff] %v8369_v62  ;;  %v8381_v59 = vsub.f32 %v429_v2, %v8369_v62  ;;  %v438_v2 = vsel %vm328_vm1, %v306_v48, 0 }
  0x95   : > { %869 = vmatmul.mubr.f32.gmra.mrb[54].mxu1 %v868_v0  ;;  %2453 = vmatmul.mubr.f32.gmra.mrb[56].mxu0 %v877_v60  ;;  %v900_v60 = vsub.f32 %v8350_v18, %v899_v10  ;;  %v910_v0 = vand.u32 4294901760, %v8362_v54  ;;  %v8386_v18 = vand.u32 4294901760, %v432_v33  ;;  %12062 = vst [vmem:[#allocation63_spill] sm:$0xff] %v8391_v47  ;;  %v8402_v35 = vand.u32 4294901760, %v438_v2 }
  0x96   : > { %874 = vmatprep.mubr.f32.mxu1 %v12047_v20  ;;  %2458 = vmatprep.mubr.f32.mxu0 %v12047_v20  ;;  %12060 = vst [vmem:[#allocation61_spill] sm:$0xff] %v8381_v59 }
  0x97   : > { %12061 = vst [vmem:[#allocation62_spill] sm:$0xff] %v8386_v18  ;;  %v8397_v45 = vsub.f32 %v432_v33, %v8386_v18  ;;  %12064 = vst [vmem:[#allocation65_spill] sm:$0xff] %v8402_v35  ;;  %v8414_v24 = vsub.f32 %v438_v2, %v8402_v35 }
  0x99   : > { %880 = vmatmul.mubr.f32.gmra.mrb[56].mxu1 %v879_v34  ;;  %2462 = vmatmul.mubr.f32.gmra.mrb[58].mxu0 %v888_v19  ;;  %v901_v19 = vand.u32 4294901760, %v900_v60  ;;  %v911_v34 = vsub.f32 %v8362_v54, %v910_v0  ;;  %v932_v60 = vand.u32 4294901760, %v8381_v59  ;;  %12063 = vst [vmem:[#allocation64_spill] sm:$0xff] %v8397_v45  ;;  %v307_v54 = vld [vmem:[%s8011_s26 + $0x128] sm:$0xff]  ;;  %12066 = vst [vmem:[#allocation67_spill] sm:$0xff] %v8414_v24  ;;  %v965_v2 = vand.u32 4294901760, %v8414_v24 }
  0x9a   : > { %885 = vmatprep.mubr.f32.mxu1 %v12047_v20  ;;  %2467 = vmatprep.mubr.f32.mxu0 %v12047_v20  ;;  %v441_v33 = vsel %vm328_vm1, %v307_v54, 0 }
  0x9b   : > { %v966_v4 = vsub.f32 %v8414_v24, %v965_v2 }
  0x9d   : > { %891 = vmatmul.mubr.f32.gmra.mrb[58].mxu1 %v890_v29  ;;  %2471 = vmatmul.mubr.f32.gmra.mrb[60].mxu0 %v899_v10  ;;  %v912_v10 = vand.u32 4294901760, %v911_v34  ;;  %v922_v29 = vsub.f32 %v8374_v58, %v921_v22  ;;  %v8407_v34 = vsub.f32 %v435_v8, %v8391_v47  ;;  %v308_v58 = vld [vmem:[%s8011_s26 + $0x130] sm:$0xff]  ;;  %v8418_v8 = vand.u32 4294901760, %v441_v33 }
  0x9e   : > { %896 = vmatprep.mubr.f32.mxu1 %v12047_v20  ;;  %2476 = vmatprep.mubr.f32.mxu0 %v12047_v20  ;;  %v444_v54 = vsel %vm328_vm1, %v308_v58, 0  ;;  %v967_v1 = vand.u32 4294901760, %v966_v4 }
  0x9f   : > { %v923_v48 = vand.u32 4294901760, %v922_v29  ;;  %12065 = vst [vmem:[#allocation66_spill] sm:$0xff] %v8407_v34  ;;  %v954_v29 = vand.u32 4294901760, %v8407_v34  ;;  %12067 = vst [vmem:[#allocation68_spill] sm:$0xff] %v8418_v8 }
  0xa1   : > { %902 = vmatmul.mubr.f32.gmra.mrb[60].mxu1 %v901_v19  ;;  %2480 = vmatmul.mubr.f32.gmra.mrb[62].mxu0 %v910_v0  ;;  %v933_v0 = vsub.f32 %v8381_v59, %v932_v60  ;;  %v943_v19 = vand.u32 4294901760, %v8397_v45  ;;  %v309_v59 = vld [vmem:[%s8011_s26 + $0x138] sm:$0xff] }
  0xa2   : > { %907 = vmatprep.mubr.f32.mxu1 %v12047_v20  ;;  %2485 = vmatprep.mubr.f32.mxu0 %v12047_v20  ;;  %v447_v58 = vsel %vm328_vm1, %v309_v59, 0  ;;  %v450_v59 = vsel %vm328_vm1, %v310_v21, 0  ;;  %v456_v21 = vsel %vm328_vm1, %v312_v55, 0 }
  0xa3   : > { %v8452_v24 = vand.u32 4294901760, %v450_v59  ;;  %v8468_v50 = vand.u32 4294901760, %v456_v21 }
  0xa5   : > { %913 = vmatmul.mubr.f32.gmra.mrb[62].mxu1 %v912_v10  ;;  %2489 = vmatmul.mubr.f32.gmra.mrb[64].mxu0 %v921_v22  ;;  %v934_v22 = vand.u32 4294901760, %v933_v0  ;;  %v944_v10 = vsub.f32 %v8397_v45, %v943_v19  ;;  %v8427_v0 = vsub.f32 %v441_v33, %v8418_v8  ;;  %v8429_v45 = vand.u32 4294901760, %v444_v54  ;;  %12074 = vst [vmem:[#allocation75_spill] sm:$0xff] %v8468_v50 }
  0xa6   : > { %918 = vmatprep.mubr.f32.mxu1 %v12047_v20  ;;  %2494 = vmatprep.mubr.f32.mxu0 %v12047_v20 }
  0xa7   : > { %12068 = vst [vmem:[#allocation69_spill] sm:$0xff] %v8427_v0  ;;  %12069 = vst [vmem:[#allocation70_spill] sm:$0xff] %v8429_v45  ;;  %v8438_v33 = vsub.f32 %v444_v54, %v8429_v45 }
  0xa9   : > { %924 = vmatmul.mubr.f32.gmra.mrb[64].mxu1 %v923_v48  ;;  %2498 = vmatmul.mubr.f32.gmra.mrb[66].mxu0 %v932_v60  ;;  %v945_v60 = vand.u32 4294901760, %v944_v10  ;;  %v955_v48 = vsub.f32 %v8407_v34, %v954_v29  ;;  %12070 = vst [vmem:[#allocation71_spill] sm:$0xff] %v8438_v33  ;;  %v8440_v10 = vand.u32 4294901760, %v447_v58  ;;  %v311_v34 = vld [vmem:[%s8011_s26 + $0x148] sm:$0xff]  ;;  %v987_v54 = vand.u32 4294901760, %v8438_v33 }
  0xaa   : > { %929 = vmatprep.mubr.f32.mxu1 %v12047_v20  ;;  %2503 = vmatprep.mubr.f32.mxu0 %v12047_v20 }
  0xab   : > { %12071 = vst [vmem:[#allocation72_spill] sm:$0xff] %v8440_v10 }
  0xad   : > { %935 = vmatmul.mubr.f32.gmra.mrb[66].mxu1 %v934_v22  ;;  %2507 = vmatmul.mubr.f32.gmra.mrb[68].mxu0 %v943_v19  ;;  %v956_v19 = vand.u32 4294901760, %v955_v48  ;;  %v976_v22 = vand.u32 4294901760, %v8427_v0  ;;  %v8450_v48 = vsub.f32 %v447_v58, %v8440_v10 }
  0xae   : > { %940 = vmatprep.mubr.f32.mxu1 %v12047_v20  ;;  %2512 = vmatprep.mubr.f32.mxu0 %v12047_v20 }
  0xaf   : > { %12072 = vst [vmem:[#allocation73_spill] sm:$0xff] %v8450_v48  ;;  %v998_v58 = vand.u32 4294901760, %v8450_v48 }
  0xb1   : > { %946 = vmatmul.mubr.f32.gmra.mrb[68].mxu1 %v945_v60  ;;  %2516 = vmatmul.mubr.f32.gmra.mrb[70].mxu0 %v954_v29  ;;  %v453_v60 = vsel %vm328_vm1, %v311_v34, 0  ;;  %v977_v29 = vsub.f32 %v8427_v0, %v976_v22  ;;  %v313_v0 = vld [vmem:[%s8011_s26 + $0x158] sm:$0xff] }
  0xb2   : > { %951 = vmatprep.mubr.f32.mxu1 %v12047_v20  ;;  %2521 = vmatprep.mubr.f32.mxu0 %v12047_v20  ;;  %v8457_v4 = vand.u32 4294901760, %v453_v60  ;;  %v459_v55 = vsel %vm328_vm1, %v313_v0, 0 }
  0xb3   : > { %v978_v34 = vand.u32 4294901760, %v977_v29  ;;  %v8479_v46 = vand.u32 4294901760, %v459_v55 }
  0xb5   : > { %957 = vmatmul.mubr.f32.gmra.mrb[70].mxu1 %v956_v19  ;;  %2525 = vmatmul.mubr.f32.gmra.mrb[72].mxu0 %v965_v2  ;;  %v988_v2 = vsub.f32 %v8438_v33, %v987_v54  ;;  %v8463_v19 = vsub.f32 %v450_v59, %v8452_v24  ;;  %v8474_v59 = vsub.f32 %v453_v60, %v8457_v4  ;;  %v314_v33 = vld [vmem:[%s8011_s26 + $0x160] sm:$0xff] }
  0xb6   : > { %962 = vmatprep.mubr.f32.mxu1 %v12047_v20  ;;  %2530 = vmatprep.mubr.f32.mxu0 %v12047_v20  ;;  %12076 = vst [vmem:[#allocation77_spill] sm:$0xff] %v8479_v46  ;;  %v462_v0 = vsel %vm328_vm1, %v314_v33, 0  ;;  %v8485_v60 = vsub.f32 %v456_v21, %v8468_v50 }
  0xb7   : > { %12073 = vst [vmem:[#allocation74_spill] sm:$0xff] %v8463_v19  ;;  %v1009_v29 = vand.u32 4294901760, %v8463_v19  ;;  %12075 = vst [vmem:[#allocation76_spill] sm:$0xff] %v8474_v59  ;;  %v8490_v40 = vand.u32 4294901760, %v462_v0 }
  0xb8   : > { %12077 = vst [vmem:[#allocation78_spill] sm:$0xff] %v8485_v60 }
  0xb9   : > { %968 = vmatmul.mubr.f32.gmra.mrb[72].mxu1 %v967_v1  ;;  %2534 = vmatmul.mubr.f32.gmra.mrb[74].mxu0 %v976_v22  ;;  %v989_v1 = vand.u32 4294901760, %v988_v2  ;;  %v999_v22 = vsub.f32 %v8450_v48, %v998_v58  ;;  %v1020_v2 = vand.u32 4294901760, %v8474_v59  ;;  %v315_v48 = vld [vmem:[%s8011_s26 + $0x168] sm:$0xff]  ;;  %12078 = vst [vmem:[#allocation79_spill] sm:$0xff] %v8490_v40  ;;  %v8502_v50 = vsub.f32 %v462_v0, %v8490_v40  ;;  %v318_v40 = vld [vmem:[%s8011_s26 + $0x180] sm:$0xff] }
  0xba   : > { %973 = vmatprep.mubr.f32.mxu1 %v12047_v20  ;;  %2539 = vmatprep.mubr.f32.mxu0 %v12047_v20  ;;  %v465_v21 = vsel %vm328_vm1, %v315_v48, 0 }
  0xbb   : > { %12080 = vst [vmem:[#allocation81_spill] sm:$0xff] %v8502_v50  ;;  %v1053_v0 = vand.u32 4294901760, %v8502_v50 }
  0xbd   : > { %979 = vmatmul.mubr.f32.gmra.mrb[74].mxu1 %v978_v34  ;;  %2543 = vmatmul.mubr.f32.gmra.mrb[76].mxu0 %v987_v54  ;;  %v1000_v54 = vand.u32 4294901760, %v999_v22  ;;  %v1010_v34 = vsub.f32 %v8463_v19, %v1009_v29  ;;  %v8495_v22 = vsub.f32 %v459_v55, %v8479_v46  ;;  %v316_v19 = vld [vmem:[%s8011_s26 + $0x170] sm:$0xff]  ;;  %v8506_v55 = vand.u32 4294901760, %v465_v21 }
  0xbe   : > { %984 = vmatprep.mubr.f32.mxu1 %v12047_v20  ;;  %2548 = vmatprep.mubr.f32.mxu0 %v12047_v20  ;;  %v468_v48 = vsel %vm328_vm1, %v316_v19, 0  ;;  %v1054_v46 = vsub.f32 %v8502_v50, %v1053_v0 }
  0xbf   : > { %v1011_v33 = vand.u32 4294901760, %v1010_v34  ;;  %12079 = vst [vmem:[#allocation80_spill] sm:$0xff] %v8495_v22  ;;  %v1042_v34 = vand.u32 4294901760, %v8495_v22  ;;  %12081 = vst [vmem:[#allocation82_spill] sm:$0xff] %v8506_v55 }
  0xc1   : > { %990 = vmatmul.mubr.f32.gmra.mrb[76].mxu1 %v989_v1  ;;  %2552 = vmatmul.mubr.f32.gmra.mrb[78].mxu0 %v998_v58  ;;  %v1021_v58 = vsub.f32 %v8474_v59, %v1020_v2  ;;  %v1031_v1 = vand.u32 4294901760, %v8485_v60  ;;  %v317_v59 = vld [vmem:[%s8011_s26 + $0x178] sm:$0xff] }
  0xc2   : > { %995 = vmatprep.mubr.f32.mxu1 %v12047_v20  ;;  %2557 = vmatprep.mubr.f32.mxu0 %v12047_v20  ;;  %v471_v19 = vsel %vm328_vm1, %v317_v59, 0  ;;  %v474_v59 = vsel %vm328_vm1, %v318_v40, 0 }
  0xc3   : > { %v8540_v50 = vand.u32 4294901760, %v474_v59 }
  0xc5   : > { %1001 = vmatmul.mubr.f32.gmra.mrb[78].mxu1 %v1000_v54  ;;  %2561 = vmatmul.mubr.f32.gmra.mrb[80].mxu0 %v1009_v29  ;;  %v1022_v29 = vand.u32 4294901760, %v1021_v58  ;;  %v1032_v54 = vsub.f32 %v8485_v60, %v1031_v1  ;;  %v8515_v58 = vsub.f32 %v465_v21, %v8506_v55  ;;  %v8517_v60 = vand.u32 4294901760, %v468_v48  ;;  %12087 = vst [vmem:[#allocation88_spill] sm:$0xff] %v8540_v50 }
  0xc6   : > { %1006 = vmatprep.mubr.f32.mxu1 %v12047_v20  ;;  %2566 = vmatprep.mubr.f32.mxu0 %v12047_v20  ;;  %v1055_v55 = vand.u32 4294901760, %v1054_v46 }
  0xc7   : > { %12082 = vst [vmem:[#allocation83_spill] sm:$0xff] %v8515_v58  ;;  %12083 = vst [vmem:[#allocation84_spill] sm:$0xff] %v8517_v60  ;;  %v8526_v21 = vsub.f32 %v468_v48, %v8517_v60  ;;  %v320_v60 = vld [vmem:[%s8011_s26 + $0x190] sm:$0xff] }
  0xc8   : > { %v480_v46 = vsel %vm328_vm1, %v320_v60, 0 }
  0xc9   : > { %1012 = vmatmul.mubr.f32.gmra.mrb[80].mxu1 %v1011_v33  ;;  %2570 = vmatmul.mubr.f32.gmra.mrb[82].mxu0 %v1020_v2  ;;  %v1033_v2 = vand.u32 4294901760, %v1032_v54  ;;  %v1043_v33 = vsub.f32 %v8495_v22, %v1042_v34  ;;  %12084 = vst [vmem:[#allocation85_spill] sm:$0xff] %v8526_v21  ;;  %v8528_v54 = vand.u32 4294901760, %v471_v19  ;;  %v319_v22 = vld [vmem:[%s8011_s26 + $0x188] sm:$0xff] }
  0xca   : > { %1017 = vmatprep.mubr.f32.mxu1 %v12047_v20  ;;  %2575 = vmatprep.mubr.f32.mxu0 %v12047_v20 }
  0xcb   : > { %12085 = vst [vmem:[#allocation86_spill] sm:$0xff] %v8528_v54  ;;  %v8538_v48 = vsub.f32 %v471_v19, %v8528_v54  ;;  %v8556_v54 = vand.u32 4294901760, %v480_v46 }
  0xcd   : > { %1023 = vmatmul.mubr.f32.gmra.mrb[82].mxu1 %v1022_v29  ;;  %2579 = vmatmul.mubr.f32.gmra.mrb[84].mxu0 %v1031_v1  ;;  %v1044_v1 = vand.u32 4294901760, %v1043_v33  ;;  %v1064_v29 = vand.u32 4294901760, %v8515_v58  ;;  %v1075_v33 = vand.u32 4294901760, %v8526_v21  ;;  %12086 = vst [vmem:[#allocation87_spill] sm:$0xff] %v8538_v48  ;;  %v1086_v19 = vand.u32 4294901760, %v8538_v48 }
  0xce   : > { %1028 = vmatprep.mubr.f32.mxu1 %v12047_v20  ;;  %2584 = vmatprep.mubr.f32.mxu0 %v12047_v20 }
  0xd1   : > { %1034 = vmatmul.mubr.f32.gmra.mrb[84].mxu1 %v1033_v2  ;;  %2588 = vmatmul.mubr.f32.gmra.mrb[86].mxu0 %v1042_v34  ;;  %v477_v2 = vsel %vm328_vm1, %v319_v22, 0  ;;  %v1065_v34 = vsub.f32 %v8515_v58, %v1064_v29  ;;  %v321_v58 = vld [vmem:[%s8011_s26 + $0x198] sm:$0xff] }
  0xd2   : > { %1039 = vmatprep.mubr.f32.mxu1 %v12047_v20  ;;  %2593 = vmatprep.mubr.f32.mxu0 %v12047_v20  ;;  %v8545_v40 = vand.u32 4294901760, %v477_v2 }
  0xd3   : > { %v1066_v22 = vand.u32 4294901760, %v1065_v34 }
  0xd4   : > { %12088 = vst [vmem:[#allocation89_spill] sm:$0xff] %v8545_v40  ;;  %v8561_v34 = vsub.f32 %v477_v2, %v8545_v40 }
  0xd5   : > { %1045 = vmatmul.mubr.f32.gmra.mrb[86].mxu1 %v1044_v1  ;;  %2597 = vmatmul.mubr.f32.gmra.mrb[88].mxu0 %v1053_v0  ;;  %v1076_v0 = vsub.f32 %v8526_v21, %v1075_v33  ;;  %v8551_v1 = vsub.f32 %v474_v59, %v8540_v50  ;;  %v483_v59 = vsel %vm328_vm1, %v321_v58, 0  ;;  %v322_v21 = vld [vmem:[%s8011_s26 + $0x1a0] sm:$0xff]  ;;  %v8568_v50 = vsub.f32 %v480_v46, %v8556_v54  ;;  %v323_v58 = vld [vmem:[%s8011_s26 + $0x1a8] sm:$0xff]  ;;  %s257_s26 = sand.u32 1, %s7874_s22  }
  0xd6   : > { %1050 = vmatprep.mubr.f32.mxu1 %v12047_v20  ;;  %2602 = vmatprep.mubr.f32.mxu0 %v12047_v20  ;;  %12090 = vst [vmem:[#allocation91_spill] sm:$0xff] %v8561_v34  ;;  %v486_v2 = vsel %vm328_vm1, %v322_v21, 0  ;;  %s11802_s14 = scalar_lea.sflag [#allocation6], %s257_s26 }
  0xd7   : > { %12089 = vst [vmem:[#allocation90_spill] sm:$0xff] %v8551_v1  ;;  %v1077_v60 = vand.u32 4294901760, %v1076_v0  ;;  %12091 = vst [vmem:[#allocation92_spill] sm:$0xff] %v8568_v50  ;;  %v1108_v0 = vand.u32 4294901760, %v8561_v34  ;;  %v1119_v40 = vand.u32 4294901760, %v8568_v50 }
  0xd9   : > { %1056 = vmatmul.mubr.f32.gmra.mrb[88].mxu1 %v1055_v55  ;;  %2606 = vmatmul.mubr.f32.gmra.mrb[90].mxu0 %v1064_v29  ;;  %v1087_v55 = vsub.f32 %v8538_v48, %v1086_v19  ;;  %v1097_v29 = vand.u32 4294901760, %v8551_v1  ;;  %v8572_v48 = vand.u32 4294901760, %v483_v59  ;;  %v1120_v21 = vsub.f32 %v8568_v50, %v1119_v40  ;;  %v4173_v50 = vld [vmem:[%s8698_s9 + $0xb8] sm:$0xff] }
  0xda   : > { %1061 = vmatprep.mubr.f32.mxu1 %v12047_v20  ;;  %2611 = vmatprep.mubr.f32.mxu0 %v12047_v20 }
  0xdd   : > { %1067 = vmatmul.mubr.f32.gmra.mrb[90].mxu1 %v1066_v22  ;;  %2615 = vmatmul.mubr.f32.gmra.mrb[92].mxu0 %v1075_v33  ;;  %v1088_v33 = vand.u32 4294901760, %v1087_v55  ;;  %v1098_v22 = vsub.f32 %v8551_v1, %v1097_v29  ;;  %v8583_v55 = vand.u32 4294901760, %v486_v2  ;;  %v489_v1 = vsel %vm328_vm1, %v323_v58, 0 }
  0xde   : > { %1072 = vmatprep.mubr.f32.mxu1 %v12047_v20  ;;  %2620 = vmatprep.mubr.f32.mxu0 %v12047_v20 }
  0xdf   : > { %v1099_v46 = vand.u32 4294901760, %v1098_v22  ;;  %v8591_v22 = vsub.f32 %v486_v2, %v8583_v55 }
  0xe1   : > { %1078 = vmatmul.mubr.f32.gmra.mrb[92].mxu1 %v1077_v60  ;;  %2624 = vmatmul.mubr.f32.gmra.mrb[94].mxu0 %v1086_v19  ;;  %v1109_v19 = vsub.f32 %v8561_v34, %v1108_v0  ;;  %v8581_v60 = vsub.f32 %v483_v59, %v8572_v48  ;;  %12093 = vst [vmem:[#allocation94_spill] sm:$0xff] %v8591_v22  ;;  %v8593_v59 = vand.u32 4294901760, %v489_v1  ;;  %v1121_v34 = vand.u32 4294901760, %v1120_v21 }
  0xe2   : > { %1083 = vmatprep.mubr.f32.mxu1 %v12047_v20  ;;  %2629 = vmatprep.mubr.f32.mxu0 %v12047_v20  ;;  %v7156_v21 = vpack.c.bf16 %v7998_v16, %v7989_v12  ;;  %v7885_v12 = vmov 0   ;;  %v8706_v16 = vld [vmem:[%s8698_s9] sm:$0xff] }
  0xe3   : > { %12092 = vst [vmem:[#allocation93_spill] sm:$0xff] %v8581_v60  ;;  %7755 = vset.pattern.permute.xlu1 %v7885_v12  ;;  %7754 = vset.pattern.permute.xlu0 %v7885_v12  ;;  %v8765_v12 = vld [vmem:[%s8698_s9 + $0x68] sm:$0xff] }
  0xe4   : > { %4206 = vperm.xlu0 %7754, %v8706_v16  }
  0xe5   : > { %1089 = vmatmul.mubr.f32.gmra.mrb[94].mxu1 %v1088_v33  ;;  %2633 = vmatmul.mubr.f32.gmra.mrb[96].mxu0 %v1097_v29  ;;  %v1110_v33 = vand.u32 4294901760, %v1109_v19  ;;  %v1130_v29 = vand.u32 4294901760, %v8581_v60 }
  0xe6   : > { %1094 = vmatprep.mubr.f32.mxu1 %v12047_v20  ;;  %2638 = vmatprep.mubr.f32.mxu0 %v12047_v20 }
  0xe7   : > { %v1131_v58 = vsub.f32 %v8581_v60, %v1130_v29  ;;  %v4170_v60 = vld [vmem:[%s8698_s9 + $0xa0] sm:$0xff] }
  0xe9   : > { %1100 = vmatmul.mubr.f32.gmra.mrb[96].mxu1 %v1099_v46  ;;  %2642 = vmatmul.mubr.f32.gmra.mrb[98].mxu0 %v1108_v0  ;;  %v1141_v46 = vand.u32 4294901760, %v8591_v22  ;;  %v8600_v0 = vsub.f32 %v489_v1, %v8593_v59  ;;  %v1132_v2 = vand.u32 4294901760, %v1131_v58  ;;  %v8717_v58 = vld [vmem:[%s8698_s9 + $0x8] sm:$0xff] }
  0xea   : > { %1105 = vmatprep.mubr.f32.mxu1 %v12047_v20  ;;  %2647 = vmatprep.mubr.f32.mxu0 %v12047_v20 }
  0xeb   : > { %12094 = vst [vmem:[#allocation95_spill] sm:$0xff] %v8600_v0  ;;  %v1142_v19 = vsub.f32 %v8591_v22, %v1141_v46  ;;  %4211 = vperm.xlu0 %7754, %v8717_v58   ;;  %v8798_v22 = vld [vmem:[%s8698_s9 + $0x90] sm:$0xff] }
  0xed   : > { %1111 = vmatmul.mubr.f32.gmra.mrb[98].mxu1 %v1110_v33  ;;  %2651 = vmatmul.mubr.f32.gmra.mrb[100].mxu0 %v1119_v40  ;;  %v1152_v33 = vand.u32 4294901760, %v8600_v0  ;;  %v1143_v40 = vand.u32 4294901760, %v1142_v19  ;;  %v8735_v19 = vld [vmem:[%s8698_s9 + $0x38] sm:$0xff] }
  0xee   : > { %1116 = vmatprep.mubr.f32.mxu1 %v12047_v20  ;;  %2656 = vmatprep.mubr.f32.mxu0 %v12047_v20 }
  0xef   : > { %v1153_v1 = vsub.f32 %v8600_v0, %v1152_v33  ;;  %v8787_v0 = vld [vmem:[%s8698_s9 + $0x80] sm:$0xff] }
  0xf1   : > { %1122 = vmatmul.mubr.f32.gmra.mrb[100].mxu1 %v1121_v34  ;;  %2660 = vmatmul.mubr.f32.gmra.mrb[102].mxu0 %v1130_v29  ;;  %v1154_v34 = vand.u32 4294901760, %v1153_v1  ;;  %v8714_v29 = vld [vmem:[%s8698_s9 + $0x18] sm:$0xff]  ;;  %v4158_v1 = vld [vmem:[%s8698_s9 + $0x40] sm:$0xff] }
  0xf2   : > { %1127 = vmatprep.mubr.f32.mxu1 %v12047_v20  ;;  %2665 = vmatprep.mubr.f32.mxu0 %v12047_v20 }
  0xf5   : > { %1133 = vmatmul.mubr.f32.gmra.mrb[102].mxu1 %v1132_v2  ;;  %2669 = vmatmul.mubr.f32.gmra.mrb[104].mxu0 %v1141_v46  ;;  %v4155_v46 = vld [vmem:[%s8698_s9 + $0x28] sm:$0xff]  ;;  %v8727_v2 = vld [vmem:[%s8698_s9 + $0x20] sm:$0xff] }
  0xf6   : > { %1138 = vmatprep.mubr.f32.mxu1 %v12047_v20  ;;  %2674 = vmatprep.mubr.f32.mxu0 %v12047_v20 }
  0xf7   : > { %4226 = vperm.xlu0 %7754, %v8727_v2  }
  0xf9   : > { %1144 = vmatmul.mubr.f32.gmra.mrb[104].mxu1 %v1143_v40  ;;  %2678 = vmatmul.mubr.f32.gmra.mrb[106].mxu0 %v1152_v33  ;;  %v8738_v33 = vld [vmem:[%s8698_s9 + $0x30] sm:$0xff]  ;;  %v8747_v40 = vld [vmem:[%s8698_s9 + $0x48] sm:$0xff] }
  0xfa   : > { %1149 = vmatprep.mubr.f32.mxu1 %v12047_v20  ;;  %2760 = vmatprep.mubr.f32.mxu0 %v12047_v20 }
  0xfb   : > { %4236 = vperm.xlu0 %7754, %v8738_v33  }
  0xfd   : > { %1155 = vmatmul.mubr.f32.gmra.mrb[106].mxu1 %v1154_v34  ;;  %2762 = vmatmul.mubr.f32.vlgmr.msra.gmra.mrb[0].mxu0 %v8023_v32  ;;  %v4161_v34 = vld [vmem:[%s8698_s9 + $0x58] sm:$0xff] }
  0xfe   : > { %1245 = vmatprep.mubr.f32.mxu1 %v12047_v20  ;;  %2767 = vmatprep.mubr.f32.mxu0 %v12047_v20 }
  0xff   : > { %7169 = vmatpush1.bf16.msra.mxu0 %v7996_v15  ;;  %v4152_v15 = vld [vmem:[%s8698_s9 + $0x10] sm:$0xff]  ;;  %4246 = vperm.xlu0 %7754, %v4158_v1  }
 0x100   : > { %4216 = vperm.xlu1 %7755, %v4152_v15   ;;  %v8768_v15 = vld [vmem:[%s8698_s9 + $0x60] sm:$0xff]  ;;  %v4164_v1 = vld [vmem:[%s8698_s9 + $0x70] sm:$0xff] }
 0x101   : > { %1247 = vmatmul.mubr.f32.vlgmr.msra.gmra.mrb[0].mxu1 %v8023_v32  ;;  %2769 = vmatmul.mubr.f32.gmra.mrb[2].mxu0 %v8027_v37 }
 0x102   : > { %7157 = vmatpush1.bf16.msra.mxu1 %v7156_v21  ;;  %1252 = vmatprep.mubr.f32.mxu1 %v12047_v20  ;;  %v8757_v21 = vld [vmem:[%s8698_s9 + $0x50] sm:$0xff] }
 0x103   : > { %2774 = vmatprep.mubr.f32.mxu0 %v12047_v20  ;;  %4256 = vperm.xlu0 %7754, %v8757_v21  }
 0x104   : > { %4221 = vperm.xlu1 %7755, %v8714_v29  }
 0x105   : > { %1254 = vmatmul.mubr.f32.gmra.mrb[2].mxu1 %v8027_v37  ;;  %2776 = vmatmul.mubr.f32.gmra.mrb[4].mxu0 %v8034_v42 }
 0x106   : > { %1259 = vmatprep.mubr.f32.mxu1 %v12047_v20  ;;  %2781 = vmatprep.mubr.f32.mxu0 %v12047_v20 }
 0x107   : > { %4266 = vperm.xlu0 %7754, %v8768_v15  }
 0x108   : > { %4231 = vperm.xlu1 %7755, %v4155_v46   ;;  %v8777_v46 = vld [vmem:[%s8698_s9 + $0x78] sm:$0xff] }
 0x109   : > { %1261 = vmatmul.mubr.f32.gmra.mrb[4].mxu1 %v8034_v42  ;;  %2783 = vmatmul.mubr.f32.gmra.mrb[6].mxu0 %v8036_v43 }
 0x10a   : > { %1266 = vmatprep.mubr.f32.mxu1 %v12047_v20  ;;  %2788 = vmatprep.mubr.f32.mxu0 %v12047_v20 }
 0x10b   : > { %4276 = vperm.xlu0 %7754, %v4164_v1   ;;  %v8795_v1 = vld [vmem:[%s8698_s9 + $0x98] sm:$0xff] }
 0x10c   : > { %4241 = vperm.xlu1 %7755, %v8735_v19  }
 0x10d   : > { %1268 = vmatmul.mubr.f32.gmra.mrb[6].mxu1 %v8036_v43  ;;  %2790 = vmatmul.mubr.f32.gmra.mrb[8].mxu0 %v8054_v56 }
 0x10e   : > { %1273 = vmatprep.mubr.f32.mxu1 %v12047_v20  ;;  %2795 = vmatprep.mubr.f32.mxu0 %v12047_v20 }
 0x10f   : > { %4286 = vperm.xlu0 %7754, %v8787_v0  }
 0x110   : > { %4251 = vperm.xlu1 %7755, %v8747_v40  }
 0x111   : > { %1275 = vmatmul.mubr.f32.gmra.mrb[8].mxu1 %v8054_v56  ;;  %2797 = vmatmul.mubr.f32.gmra.mrb[10].mxu0 %v8059_v61 }
 0x112   : > { %1280 = vmatprep.mubr.f32.mxu1 %v12047_v20  ;;  %2802 = vmatprep.mubr.f32.mxu0 %v12047_v20 }
 0x113   : > { %4296 = vperm.xlu0 %7754, %v8798_v22  }
 0x114   : > { %4261 = vperm.xlu1 %7755, %v4161_v34   ;;  %v4167_v34 = vld [vmem:[%s8698_s9 + $0x88] sm:$0xff] }
 0x115   : > { %1282 = vmatmul.mubr.f32.gmra.mrb[10].mxu1 %v8059_v61  ;;  %2804 = vmatmul.mubr.f32.gmra.mrb[12].mxu0 %v8076_v11 }
 0x116   : > { %1287 = vmatprep.mubr.f32.mxu1 %v12047_v20  ;;  %2809 = vmatprep.mubr.f32.mxu0 %v12047_v20 }
 0x117   : > { %4306 = vperm.xlu0 %7754, %v4170_v60   ;;  %v8825_v60 = vld [vmem:[%s8698_s9 + $0xc8] sm:$0xff] }
 0x118   : > { %4271 = vperm.xlu1 %7755, %v8765_v12  }
 0x119   : > { %1289 = vmatmul.mubr.f32.gmra.mrb[12].mxu1 %v8076_v11  ;;  %2811 = vmatmul.mubr.f32.gmra.mrb[14].mxu0 %v8081_v17 }
 0x11a   : > { %1294 = vmatprep.mubr.f32.mxu1 %v12047_v20  ;;  %2816 = vmatprep.mubr.f32.mxu0 %v12047_v20 }
 0x11c   : > { %4281 = vperm.xlu1 %7755, %v8777_v46  }
 0x11d   : > { %1296 = vmatmul.mubr.f32.gmra.mrb[14].mxu1 %v8081_v17  ;;  %2818 = vmatmul.mubr.f32.gmra.mrb[16].mxu0 %v8097_v28 }
 0x11e   : > { %1301 = vmatprep.mubr.f32.mxu1 %v12047_v20  ;;  %2823 = vmatprep.mubr.f32.mxu0 %v12047_v20 }
 0x120   : > { %4291 = vperm.xlu1 %7755, %v4167_v34   ;;  %v8807_v34 = vld [vmem:[%s8698_s9 + $0xa8] sm:$0xff] }
 0x121   : > { %1303 = vmatmul.mubr.f32.gmra.mrb[16].mxu1 %v8097_v28  ;;  %2825 = vmatmul.mubr.f32.gmra.mrb[18].mxu0 %v8108_v36 }
 0x122   : > { %1308 = vmatprep.mubr.f32.mxu1 %v12047_v20  ;;  %2830 = vmatprep.mubr.f32.mxu0 %v12047_v20 }
 0x124   : > { %4301 = vperm.xlu1 %7755, %v8795_v1  }
 0x125   : > { %1310 = vmatmul.mubr.f32.gmra.mrb[18].mxu1 %v8108_v36  ;;  %2832 = vmatmul.mubr.f32.gmra.mrb[20].mxu0 %v8120_v49 }
 0x126   : > { %1315 = vmatprep.mubr.f32.mxu1 %v12047_v20  ;;  %2837 = vmatprep.mubr.f32.mxu0 %v12047_v20 }
 0x128   : > { %4311 = vperm.xlu1 %7755, %v8807_v34  }
 0x129   : > { %1317 = vmatmul.mubr.f32.gmra.mrb[20].mxu1 %v8120_v49  ;;  %2839 = vmatmul.mubr.f32.gmra.mrb[22].mxu0 %v8125_v52 }
 0x12a   : > { %1322 = vmatprep.mubr.f32.mxu1 %v12047_v20  ;;  %2844 = vmatprep.mubr.f32.mxu0 %v12047_v20 }
 0x12c   : > { %4321 = vperm.xlu1 %7755, %v4173_v50   ;;  %v8837_v50 = vld [vmem:[%s8698_s9 + $0xd8] sm:$0xff] }
 0x12d   : > { %1324 = vmatmul.mubr.f32.gmra.mrb[22].mxu1 %v8125_v52  ;;  %2846 = vmatmul.mubr.f32.gmra.mrb[24].mxu0 %v8139_v63 }
 0x12e   : > { %1329 = vmatprep.mubr.f32.mxu1 %v12047_v20  ;;  %2851 = vmatprep.mubr.f32.mxu0 %v12047_v20 }
 0x130   : > { %4331 = vperm.xlu1 %7755, %v8825_v60  }
 0x131   : > { %1331 = vmatmul.mubr.f32.gmra.mrb[24].mxu1 %v8139_v63  ;;  %2853 = vmatmul.mubr.f32.gmra.mrb[26].mxu0 %v8150_v9 }
 0x132   : > { %1336 = vmatprep.mubr.f32.mxu1 %v12047_v20  ;;  %2858 = vmatprep.mubr.f32.mxu0 %v12047_v20 }
 0x134   : > { %4341 = vperm.xlu1 %7755, %v8837_v50  }
 0x135   : > { %1338 = vmatmul.mubr.f32.gmra.mrb[26].mxu1 %v8150_v9  ;;  %2860 = vmatmul.mubr.f32.gmra.mrb[28].mxu0 %v8158_v23 }
 0x136   : > { %1343 = vmatprep.mubr.f32.mxu1 %v12047_v20  ;;  %2865 = vmatprep.mubr.f32.mxu0 %v12047_v20 }
 0x139   : > { %1345 = vmatmul.mubr.f32.gmra.mrb[28].mxu1 %v8158_v23  ;;  %2867 = vmatmul.mubr.f32.gmra.mrb[30].mxu0 %v8174_v41 }
 0x13a   : > { %1350 = vmatprep.mubr.f32.mxu1 %v12047_v20  ;;  %2872 = vmatprep.mubr.f32.mxu0 %v12047_v20 }
 0x13d   : > { %1352 = vmatmul.mubr.f32.gmra.mrb[30].mxu1 %v8174_v41  ;;  %2874 = vmatmul.mubr.f32.gmra.mrb[32].mxu0 %v8185_v57 }
 0x13e   : > { %1357 = vmatprep.mubr.f32.mxu1 %v12047_v20  ;;  %2879 = vmatprep.mubr.f32.mxu0 %v12047_v20 }
 0x141   : > { %1359 = vmatmul.mubr.f32.gmra.mrb[32].mxu1 %v8185_v57  ;;  %2881 = vmatmul.mubr.f32.gmra.mrb[34].mxu0 %v8196_v6  ;;  %v4908_v57 = vld [vmem:[%s8698_s9 + $0x3a] sm:$0xff] }
 0x142   : > { %1364 = vmatprep.mubr.f32.mxu1 %v12047_v20  ;;  %2886 = vmatprep.mubr.f32.mxu0 %v12047_v20 }
 0x145   : > { %1366 = vmatmul.mubr.f32.gmra.mrb[34].mxu1 %v8196_v6  ;;  %2888 = vmatmul.mubr.f32.gmra.mrb[36].mxu0 %v8208_v27 }
 0x146   : > { %1371 = vmatprep.mubr.f32.mxu1 %v12047_v20  ;;  %2893 = vmatprep.mubr.f32.mxu0 %v12047_v20 }
 0x149   : > { %1373 = vmatmul.mubr.f32.gmra.mrb[36].mxu1 %v8208_v27  ;;  %2895 = vmatmul.mubr.f32.gmra.mrb[38].mxu0 %v8213_v31  ;;  %v4878_v27 = vld [vmem:[%s8698_s9 + $0x39] sm:$0xff] }
 0x14a   : > { %1378 = vmatprep.mubr.f32.mxu1 %v12047_v20  ;;  %2900 = vmatprep.mubr.f32.mxu0 %v12047_v20 }
 0x14d   : > { %1380 = vmatmul.mubr.f32.gmra.mrb[38].mxu1 %v8213_v31  ;;  %2902 = vmatmul.mubr.f32.gmra.mrb[40].mxu0 %v8224_v51  ;;  %v4832_v31 = vld [vmem:[%s8698_s9 + $0x22] sm:$0xff] }
 0x14e   : > { %1385 = vmatprep.mubr.f32.mxu1 %v12047_v20  ;;  %2907 = vmatprep.mubr.f32.mxu0 %v12047_v20 }
 0x151   : > { %1387 = vmatmul.mubr.f32.gmra.mrb[40].mxu1 %v8224_v51  ;;  %2909 = vmatmul.mubr.f32.gmra.mrb[42].mxu0 %v8241_v25  ;;  %v4801_v51 = vld [vmem:[%s8698_s9 + $0x19] sm:$0xff] }
 0x152   : > { %1392 = vmatprep.mubr.f32.mxu1 %v12047_v20  ;;  %2914 = vmatprep.mubr.f32.mxu0 %v12047_v20  ;;  %v4803_v6 = vadd.f32 %v4801_v51, %v8714_v29 }
 0x155   : > { %1394 = vmatmul.mubr.f32.gmra.mrb[42].mxu1 %v8241_v25  ;;  %2916 = vmatmul.mubr.f32.gmra.mrb[44].mxu0 %v8247_v38 }
 0x156   : > { %1399 = vmatprep.mubr.f32.mxu1 %v12047_v20  ;;  %2921 = vmatprep.mubr.f32.mxu0 %v12047_v20 }
 0x159   : > { %1401 = vmatmul.mubr.f32.gmra.mrb[44].mxu1 %v8247_v38  ;;  %2923 = vmatmul.mubr.f32.gmra.mrb[46].mxu0 %v8262_v3 }
 0x15a   : > { %1406 = vmatprep.mubr.f32.mxu1 %v12047_v20  ;;  %2928 = vmatprep.mubr.f32.mxu0 %v12047_v20 }
 0x15d   : > { %1408 = vmatmul.mubr.f32.gmra.mrb[46].mxu1 %v8262_v3  ;;  %2930 = vmatmul.mubr.f32.gmra.mrb[48].mxu0 %v8273_v39  ;;  %v8910_v3 = vld [vmem:[%s8698_s9 + $0x140] sm:$0xff] }
 0x15e   : > { %1413 = vmatprep.mubr.f32.mxu1 %v12047_v20  ;;  %2935 = vmatprep.mubr.f32.mxu0 %v12047_v20 }
 0x161   : > { %1415 = vmatmul.mubr.f32.gmra.mrb[48].mxu1 %v8273_v39  ;;  %2937 = vmatmul.mubr.f32.gmra.mrb[50].mxu0 %v8280_v26  ;;  %v4725_v39 = vld [vmem:[%s8698_s9 + $0x1] sm:$0xff] }
 0x162   : > { %1420 = vmatprep.mubr.f32.mxu1 %v12047_v20  ;;  %2942 = vmatprep.mubr.f32.mxu0 %v12047_v20 }
 0x165   : > { %1422 = vmatmul.mubr.f32.gmra.mrb[50].mxu1 %v8280_v26  ;;  %2944 = vmatmul.mubr.f32.gmra.mrb[52].mxu0 %v8290_v5  ;;  %v4802_v26 = vld [vmem:[%s8698_s9 + $0x21] sm:$0xff] }
 0x166   : > { %1427 = vmatprep.mubr.f32.mxu1 %v12047_v20  ;;  %2949 = vmatprep.mubr.f32.mxu0 %v12047_v20  ;;  %v4804_v25 = vadd.f32 %v4802_v26, %v8727_v2  ;;  %v4877_v2 = vld [vmem:[%s8698_s9 + $0x31] sm:$0xff] }
 0x167   : > { %v4879_v51 = vadd.f32 %v4877_v2, %v8738_v33  ;;  %v4195_v33 = vld [vmem:[%s8698_s9 + $0x168] sm:$0xff] }
 0x168   : > { %v4834_v26 = vadd.f32 %v4832_v31, %v4804_v25  ;;  %v8936_v31 = vld [vmem:[%s8698_s9 + $0x150] sm:$0xff] }
 0x169   : > { %1429 = vmatmul.mubr.f32.gmra.mrb[52].mxu1 %v8290_v5  ;;  %2951 = vmatmul.mubr.f32.gmra.mrb[54].mxu0 %v8306_v13  ;;  %v4726_v5 = vld [vmem:[%s8698_s9 + $0x9] sm:$0xff]  ;;  %v4954_v25 = vld [vmem:[%s8698_s9 + $0x51] sm:$0xff] }
 0x16a   : > { %1434 = vmatprep.mubr.f32.mxu1 %v12047_v20  ;;  %2956 = vmatprep.mubr.f32.mxu0 %v12047_v20  ;;  %v4728_v38 = vadd.f32 %v4726_v5, %v8717_v58  ;;  %v4831_v58 = vld [vmem:[%s8698_s9 + $0x1a] sm:$0xff]  ;;  %4842 = vst.msk [vmem:[#allocation4 + $0x18] sm:$0xff] %vm4764_vm2, %v4834_v26 }
 0x16b   : > { %v4833_v23 = vadd.f32 %v4831_v58, %v4803_v6 }
 0x16d   : > { %1436 = vmatmul.mubr.f32.gmra.mrb[54].mxu1 %v8306_v13  ;;  %2958 = vmatmul.mubr.f32.gmra.mrb[56].mxu0 %v8317_v30  ;;  %v4185_v13 = vld [vmem:[%s8698_s9 + $0x118] sm:$0xff]  ;;  %4841 = vst.msk [vmem:[#allocation4 + $0x10] sm:$0xff] %vm4764_vm2, %v4833_v23 }
 0x16e   : > { %1441 = vmatprep.mubr.f32.mxu1 %v12047_v20  ;;  %2963 = vmatprep.mubr.f32.mxu0 %v12047_v20  ;;  %v12095_v23 = vld [vmem:[#allocation75_spill] sm:$0xff] }
 0x171   : > { %1443 = vmatmul.mubr.f32.gmra.mrb[56].mxu1 %v8317_v30  ;;  %2965 = vmatmul.mubr.f32.gmra.mrb[58].mxu0 %v8325_v53  ;;  %v4179_v30 = vld [vmem:[%s8698_s9 + $0xe8] sm:$0xff]  ;;  %v6076_v2 = vld [vmem:[#allocation4 + $0x18] sm:$0xff] }
 0x172   : > { %1448 = vmatprep.mubr.f32.mxu1 %v12047_v20  ;;  %2970 = vmatprep.mubr.f32.mxu0 %v12047_v20 }
 0x173   : > { %4351 = vperm.xlu1 %7755, %v4179_v30   ;;  %v8867_v30 = vld [vmem:[%s8698_s9 + $0x108] sm:$0xff] }
 0x175   : > { %1450 = vmatmul.mubr.f32.gmra.mrb[58].mxu1 %v8325_v53  ;;  %2972 = vmatmul.mubr.f32.gmra.mrb[60].mxu0 %v8341_v7  ;;  %v8817_v53 = vld [vmem:[%s8698_s9 + $0xb0] sm:$0xff] }
 0x176   : > { %1455 = vmatprep.mubr.f32.mxu1 %v12047_v20  ;;  %2977 = vmatprep.mubr.f32.mxu0 %v12047_v20 }
 0x177   : > { %4316 = vperm.xlu0 %7754, %v8817_v53  }
 0x179   : > { %1457 = vmatmul.mubr.f32.gmra.mrb[60].mxu1 %v8341_v7  ;;  %2979 = vmatmul.mubr.f32.gmra.mrb[62].mxu0 %v8352_v14  ;;  %v8828_v7 = vld [vmem:[%s8698_s9 + $0xc0] sm:$0xff] }
 0x17a   : > { %1462 = vmatprep.mubr.f32.mxu1 %v12047_v20  ;;  %2984 = vmatprep.mubr.f32.mxu0 %v12047_v20 }
 0x17b   : > { %4326 = vperm.xlu0 %7754, %v8828_v7  }
 0x17d   : > { %1464 = vmatmul.mubr.f32.gmra.mrb[62].mxu1 %v8352_v14  ;;  %2986 = vmatmul.mubr.f32.gmra.mrb[64].mxu0 %v8364_v44  ;;  %v4176_v14 = vld [vmem:[%s8698_s9 + $0xd0] sm:$0xff] }
 0x17e   : > { %1469 = vmatprep.mubr.f32.mxu1 %v12047_v20  ;;  %2991 = vmatprep.mubr.f32.mxu0 %v12047_v20 }
 0x17f   : > { %4336 = vperm.xlu0 %7754, %v4176_v14   ;;  %v8855_v14 = vld [vmem:[%s8698_s9 + $0xf8] sm:$0xff] }
 0x180   : > { %4361 = vperm.xlu1 %7755, %v8855_v14  }
 0x181   : > { %1471 = vmatmul.mubr.f32.gmra.mrb[64].mxu1 %v8364_v44  ;;  %2993 = vmatmul.mubr.f32.gmra.mrb[66].mxu0 %v8369_v62  ;;  %v8847_v44 = vld [vmem:[%s8698_s9 + $0xe0] sm:$0xff] }
 0x182   : > { %1476 = vmatprep.mubr.f32.mxu1 %v12047_v20  ;;  %2998 = vmatprep.mubr.f32.mxu0 %v12047_v20 }
 0x183   : > { %4346 = vperm.xlu0 %7754, %v8847_v44  }
 0x184   : > { %4371 = vperm.xlu1 %7755, %v8867_v30  }
 0x185   : > { %1478 = vmatmul.mubr.f32.gmra.mrb[66].mxu1 %v8369_v62  ;;  %3000 = vmatmul.mubr.f32.gmra.mrb[68].mxu0 %v8386_v18  ;;  %v8858_v62 = vld [vmem:[%s8698_s9 + $0xf0] sm:$0xff] }
 0x186   : > { %1483 = vmatprep.mubr.f32.mxu1 %v12047_v20  ;;  %3005 = vmatprep.mubr.f32.mxu0 %v12047_v20 }
 0x187   : > { %4356 = vperm.xlu0 %7754, %v8858_v62  }
 0x188   : > { %4381 = vperm.xlu1 %7755, %v4185_v13   ;;  %v8897_v13 = vld [vmem:[%s8698_s9 + $0x138] sm:$0xff] }
 0x189   : > { %1485 = vmatmul.mubr.f32.gmra.mrb[68].mxu1 %v8386_v18  ;;  %3007 = vmatmul.mubr.f32.gmra.mrb[70].mxu0 %v8391_v47  ;;  %v4182_v18 = vld [vmem:[%s8698_s9 + $0x100] sm:$0xff] }
 0x18a   : > { %1490 = vmatprep.mubr.f32.mxu1 %v12047_v20  ;;  %3012 = vmatprep.mubr.f32.mxu0 %v12047_v20 }
 0x18b   : > { %4366 = vperm.xlu0 %7754, %v4182_v18   ;;  %v8885_v18 = vld [vmem:[%s8698_s9 + $0x128] sm:$0xff] }
 0x18c   : > { %4391 = vperm.xlu1 %7755, %v8885_v18  }
 0x18d   : > { %1492 = vmatmul.mubr.f32.gmra.mrb[70].mxu1 %v8391_v47  ;;  %3014 = vmatmul.mubr.f32.gmra.mrb[72].mxu0 %v8402_v35  ;;  %v8877_v47 = vld [vmem:[%s8698_s9 + $0x110] sm:$0xff] }
 0x18e   : > { %1497 = vmatprep.mubr.f32.mxu1 %v12047_v20  ;;  %3019 = vmatprep.mubr.f32.mxu0 %v12047_v20 }
 0x18f   : > { %4376 = vperm.xlu0 %7754, %v8877_v47  }
 0x190   : > { %4401 = vperm.xlu1 %7755, %v8897_v13  }
 0x191   : > { %1499 = vmatmul.mubr.f32.gmra.mrb[72].mxu1 %v8402_v35  ;;  %3021 = vmatmul.mubr.f32.gmra.mrb[74].mxu0 %v8418_v8  ;;  %v8888_v35 = vld [vmem:[%s8698_s9 + $0x120] sm:$0xff] }
 0x192   : > { %1504 = vmatprep.mubr.f32.mxu1 %v12047_v20  ;;  %3026 = vmatprep.mubr.f32.mxu0 %v12047_v20 }
 0x193   : > { %4386 = vperm.xlu0 %7754, %v8888_v35  }
 0x195   : > { %1506 = vmatmul.mubr.f32.gmra.mrb[74].mxu1 %v8418_v8  ;;  %3028 = vmatmul.mubr.f32.gmra.mrb[76].mxu0 %v8429_v45  ;;  %v4188_v8 = vld [vmem:[%s8698_s9 + $0x130] sm:$0xff] }
 0x196   : > { %1511 = vmatprep.mubr.f32.mxu1 %v12047_v20  ;;  %3033 = vmatprep.mubr.f32.mxu0 %v12047_v20 }
 0x197   : > { %4396 = vperm.xlu0 %7754, %v4188_v8   ;;  %v4727_v8 = vadd.f32 %v4725_v39, %v8706_v16  ;;  %v4880_v39 = vadd.f32 %v4878_v27, %v8735_v19  ;;  %v4756_v16 = vld [vmem:[%s8698_s9 + $0x2] sm:$0xff]  ;;  %v4983_v19 = vld [vmem:[%s8698_s9 + $0x4a] sm:$0xff] }
 0x199   : > { %1513 = vmatmul.mubr.f32.gmra.mrb[76].mxu1 %v8429_v45  ;;  %3035 = vmatmul.mubr.f32.gmra.mrb[78].mxu0 %v8440_v10  ;;  %v4191_v45 = vld [vmem:[%s8698_s9 + $0x148] sm:$0xff]  ;;  %v4758_v41 = vadd.f32 %v4756_v16, %v4727_v8  ;;  %v4910_v27 = vadd.f32 %v4908_v57, %v4880_v39  ;;  %v4956_v57 = vadd.f32 %v4954_v25, %v8757_v21  ;;  %v4194_v8 = vld [vmem:[%s8698_s9 + $0x160] sm:$0xff] }
 0x19a   : > { %1518 = vmatprep.mubr.f32.mxu1 %v12047_v20  ;;  %3040 = vmatprep.mubr.f32.mxu0 %v12047_v20  ;;  %v5029_v21 = vld [vmem:[%s8698_s9 + $0x61] sm:$0xff] }
 0x19b   : > { %4411 = vperm.xlu1 %7755, %v4191_v45   ;;  %4406 = vperm.xlu0 %7754, %v8910_v3   ;;  %v4907_v45 = vld [vmem:[%s8698_s9 + $0x32] sm:$0xff]  ;;  %4765 = vst.msk [vmem:[#allocation4] sm:$0xff] %vm4764_vm2, %v4758_v41  ;;  %4918 = vst.msk [vmem:[#allocation4 + $0x28] sm:$0xff] %vm4764_vm2, %v4910_v27  ;;  %v5031_v16 = vadd.f32 %v5029_v21, %v8768_v15  ;;  %v6091_v21 = vld [vmem:[%s11848_s5] sm:$0xff] }
 0x19c   : > { %v4909_v6 = vadd.f32 %v4907_v45, %v4879_v51  ;;  %v4984_v41 = vld [vmem:[%s8698_s9 + $0x52] sm:$0xff]  ;;  %v5060_v51 = vld [vmem:[%s8698_s9 + $0x6a] sm:$0xff] }
 0x19d   : > { %1520 = vmatmul.mubr.f32.gmra.mrb[78].mxu1 %v8440_v10  ;;  %3042 = vmatmul.mubr.f32.gmra.mrb[80].mxu0 %v8452_v24  ;;  %v4757_v10 = vld [vmem:[%s8698_s9 + $0xa] sm:$0xff]  ;;  %v4197_v27 = vld [vmem:[%s8698_s9 + $0x178] sm:$0xff] }
 0x19e   : > { %1525 = vmatprep.mubr.f32.mxu1 %v12047_v20  ;;  %3047 = vmatprep.mubr.f32.mxu0 %v12047_v20  ;;  %v4759_v5 = vadd.f32 %v4757_v10, %v4728_v38  ;;  %v8933_v38 = vld [vmem:[%s8698_s9 + $0x158] sm:$0xff]  ;;  %v4953_v10 = vld [vmem:[%s8698_s9 + $0x49] sm:$0xff]  ;;  %4917 = vst.msk [vmem:[#allocation4 + $0x20] sm:$0xff] %vm4764_vm2, %v4909_v6 }
 0x19f   : > { %4421 = vperm.xlu1 %7755, %v8933_v38   ;;  %4416 = vperm.xlu0 %7754, %v8936_v31   ;;  %v4955_v29 = vadd.f32 %v4953_v10, %v8747_v40  ;;  %v5030_v40 = vld [vmem:[%s8698_s9 + $0x69] sm:$0xff] }
 0x1a0   : > { %4766 = vst.msk [vmem:[#allocation4 + $0x8] sm:$0xff] %vm4764_vm2, %v4759_v5  ;;  %v4986_v5 = vadd.f32 %v4984_v41, %v4956_v57  ;;  %v5032_v39 = vadd.f32 %v5030_v40, %v8765_v12  ;;  %v12096_v45 = vld [vmem:[#allocation77_spill] sm:$0xff]  ;;  %v4196_v6 = vld [vmem:[%s8698_s9 + $0x170] sm:$0xff] }
 0x1a1   : > { %1527 = vmatmul.mubr.f32.gmra.mrb[80].mxu1 %v8452_v24  ;;  %3049 = vmatmul.mubr.f32.gmra.mrb[82].mxu0 %v8457_v4  ;;  %v4985_v26 = vadd.f32 %v4983_v19, %v4955_v29  ;;  %v6075_v15 = vld [vmem:[#allocation4 + $0x10] sm:$0xff]  ;;  %v5059_v29 = vld [vmem:[%s8698_s9 + $0x62] sm:$0xff] }
 0x1a2   : > { %1532 = vmatprep.mubr.f32.mxu1 %v12047_v20  ;;  %3054 = vmatprep.mubr.f32.mxu0 %v12047_v20  ;;  %4994 = vst.msk [vmem:[#allocation4 + $0x38] sm:$0xff] %vm4764_vm2, %v4986_v5  ;;  %v6065_v10 = vld [vmem:[#allocation4] sm:$0xff]  ;;  %v5062_v57 = vadd.f32 %v5060_v51, %v5032_v39  ;;  %v6088_v12 = vld [vmem:[#allocation4 + $0x28] sm:$0xff] }
 0x1a3   : > { %4431 = vperm.xlu1 %7755, %v4195_v33   ;;  %4426 = vperm.xlu0 %7754, %v4194_v8   ;;  %4993 = vst.msk [vmem:[#allocation4 + $0x30] sm:$0xff] %vm4764_vm2, %v4985_v26  ;;  %v6077_v19 = vadd.f32 %v6075_v15, %v6065_v10  ;;  %v5061_v8 = vadd.f32 %v5059_v29, %v5031_v16  ;;  %v5106_v5 = vld [vmem:[%s8698_s9 + $0x81] sm:$0xff]  ;;  %v5105_v26 = vld [vmem:[%s8698_s9 + $0x79] sm:$0xff] }
 0x1a4   : > { %5070 = vst.msk [vmem:[#allocation4 + $0x48] sm:$0xff] %vm4764_vm2, %v5062_v57  ;;  %v6092_v40 = vld [vmem:[%s11848_s5 + $0x8] sm:$0xff]  ;;  %v5108_v39 = vadd.f32 %v5106_v5, %v8787_v0  ;;  %v5107_v51 = vadd.f32 %v5105_v26, %v8777_v46  ;;  %v6132_v57 = vadd.f32 %v6088_v12, %v6076_v2  ;;  %v5135_v29 = vld [vmem:[%s8698_s9 + $0x7a] sm:$0xff] }
 0x1a5   : > { %1534 = vmatmul.mubr.f32.gmra.mrb[82].mxu1 %v8457_v4  ;;  %3056 = vmatmul.mubr.f32.gmra.mrb[84].mxu0 %v12095_v23  ;;  %v6087_v33 = vld [vmem:[#allocation4 + $0x20] sm:$0xff]  ;;  %v4199_v16 = vld [vmem:[%s8698_s9 + $0x188] sm:$0xff]  ;;  %5069 = vst.msk [vmem:[#allocation4 + $0x40] sm:$0xff] %vm4764_vm2, %v5061_v8  ;;  %v5181_v8 = vld [vmem:[%s8698_s9 + $0x91] sm:$0xff] }
 0x1a6   : > { %1539 = vmatprep.mubr.f32.mxu1 %v12047_v20  ;;  %3061 = vmatprep.mubr.f32.mxu0 %v12047_v20  ;;  %v6089_v10 = vadd.f32 %v6087_v33, %v6077_v19  ;;  %v6131_v46 = vadd.f32 %v6087_v33, %v6075_v15  ;;  %v7051_v15 = vld [vmem:[%s11848_s5 + $0x18] sm:$0xff] }
 0x1a7   : > { %v6066_v58 = vld [vmem:[#allocation4 + $0x8] sm:$0xff]  ;;  %4441 = vperm.xlu1 %7755, %v4197_v27   ;;  %4436 = vperm.xlu0 %7754, %v4196_v6   ;;  %v12097_v27 = vld [vmem:[#allocation79_spill] sm:$0xff]  ;;  %v4198_v6 = vld [vmem:[%s8698_s9 + $0x180] sm:$0xff] }
 0x1a8   : > { %v6078_v25 = vadd.f32 %v6076_v2, %v6066_v58  ;;  %v5136_v58 = vld [vmem:[%s8698_s9 + $0x82] sm:$0xff]  ;;  %v6093_v2 = vadd.f32 %v6091_v21, %v6089_v10  ;;  %v5183_v21 = vadd.f32 %v5181_v8, %v8798_v22  ;;  %v5211_v10 = vld [vmem:[%s8698_s9 + $0x92] sm:$0xff] }
 0x1a9   : > { %1541 = vmatmul.mubr.f32.gmra.mrb[84].mxu1 %v12095_v23  ;;  %3063 = vmatmul.mubr.f32.gmra.mrb[86].mxu0 %v12096_v45  ;;  %v6142_v0 = vld [vmem:[#allocation4 + $0x38] sm:$0xff]  ;;  %v5138_v26 = vadd.f32 %v5136_v58, %v5108_v39  ;;  %v7050_v39 = vld [vmem:[%s11848_s5 + $0x10] sm:$0xff]  ;;  %v7056_v8 = vld [vmem:[%s11848_s5 + $0x20] sm:$0xff] }
 0x1aa   : > { %1546 = vmatprep.mubr.f32.mxu1 %v12047_v20  ;;  %3068 = vmatprep.mubr.f32.mxu0 %v12047_v20  ;;  %v6090_v41 = vadd.f32 %v6088_v12, %v6078_v25  ;;  %v6141_v5 = vld [vmem:[#allocation4 + $0x30] sm:$0xff]  ;;  %v5182_v23 = vld [vmem:[%s8698_s9 + $0x99] sm:$0xff] }
 0x1ab   : > { %4451 = vperm.xlu1 %7755, %v4199_v16   ;;  %4446 = vperm.xlu0 %7754, %v4198_v6   ;;  %v5184_v19 = vadd.f32 %v5182_v23, %v8795_v1  ;;  %5146 = vst.msk [vmem:[#allocation4 + $0x58] sm:$0xff] %vm4764_vm2, %v5138_v26  ;;  %v5212_v58 = vld [vmem:[%s8698_s9 + $0x9a] sm:$0xff]  ;;  %v12098_v1 = vld [vmem:[#allocation82_spill] sm:$0xff]  ;;  %v6188_v6 = vadd.f32 %v6142_v0, %v6088_v12 }
 0x1ac   : > { %v6094_v25 = vadd.f32 %v6092_v40, %v6090_v41  ;;  %v6144_v41 = vadd.f32 %v6142_v0, %v6132_v57  ;;  %v6143_v40 = vadd.f32 %v6141_v5, %v6131_v46  ;;  %v4201_v23 = vld [vmem:[%s8698_s9 + $0x198] sm:$0xff]  ;;  %v6198_v57 = vld [vmem:[#allocation4 + $0x48] sm:$0xff] }
 0x1ad   : > { %1548 = vmatmul.mubr.f32.gmra.mrb[86].mxu1 %v12096_v45  ;;  %3070 = vmatmul.mubr.f32.gmra.mrb[88].mxu0 %v12097_v27  ;;  %v5137_v45 = vadd.f32 %v5135_v29, %v5107_v51  ;;  %v4200_v51 = vld [vmem:[%s8698_s9 + $0x190] sm:$0xff]  ;;  %v5214_v22 = vadd.f32 %v5212_v58, %v5184_v19  ;;  %v5213_v29 = vadd.f32 %v5211_v10, %v5183_v21  ;;  %v6197_v19 = vld [vmem:[#allocation4 + $0x40] sm:$0xff] }
 0x1ae   : > { %1553 = vmatprep.mubr.f32.mxu1 %v12047_v20  ;;  %3075 = vmatprep.mubr.f32.mxu0 %v12047_v20  ;;  %7756 = vrcp.f32 %v6094_v25  ;;  %v6149_v16 = vadd.f32 %v7051_v15, %v6144_v41  ;;  %v6187_v25 = vadd.f32 %v6141_v5, %v6087_v33  ;;  %v5258_v46 = vld [vmem:[%s8698_s9 + $0xb1] sm:$0xff]  ;;  %v5257_v26 = vld [vmem:[%s8698_s9 + $0xa9] sm:$0xff]  ;;  %v4202_v15 = vld [vmem:[%s8698_s9 + $0x1a0] sm:$0xff]  ;;  %v6244_v58 = vadd.f32 %v6198_v57, %v6142_v0 }
 0x1af   : > { %5145 = vst.msk [vmem:[#allocation4 + $0x50] sm:$0xff] %vm4764_vm2, %v5137_v45  ;;  %7758 = vrcp.f32 %v6093_v2  ;;  %v6148_v45 = vadd.f32 %v7050_v39, %v6143_v40  ;;  %4461 = vperm.xlu1 %7755, %v4201_v23   ;;  %4456 = vperm.xlu0 %7754, %v4200_v51   ;;  %v6200_v2 = vadd.f32 %v6198_v57, %v6188_v6  ;;  %v7057_v41 = vld [vmem:[%s11848_s5 + $0x28] sm:$0xff]  ;;  %5222 = vst.msk [vmem:[#allocation4 + $0x68] sm:$0xff] %vm4764_vm2, %v5214_v22  ;;  %v5288_v21 = vld [vmem:[%s8698_s9 + $0xb2] sm:$0xff] }
 0x1b0   : > { %7760 = vrcp.f32 %v6149_v16  ;;  %v5260_v12 = vadd.f32 %v5258_v46, %v8817_v53  ;;  %v5259_v33 = vadd.f32 %v5257_v26, %v8807_v34  ;;  %5221 = vst.msk [vmem:[#allocation4 + $0x60] sm:$0xff] %vm4764_vm2, %v5213_v29  ;;  %v12099_v53 = vld [vmem:[#allocation84_spill] sm:$0xff]  ;;  %v4203_v34 = vld [vmem:[%s8698_s9 + $0x1a8] sm:$0xff]  ;;  %v6199_v39 = vadd.f32 %v6197_v19, %v6187_v25 }
 0x1b1   : > { %1555 = vmatmul.mubr.f32.gmra.mrb[88].mxu1 %v12097_v27  ;;  %3077 = vmatmul.mubr.f32.gmra.mrb[90].mxu0 %v12098_v1  ;;  %7762 = vrcp.f32 %v6148_v45  ;;  %v6205_v40 = vadd.f32 %v7057_v41, %v6200_v2  ;;  %v6243_v23 = vadd.f32 %v6197_v19, %v6141_v5  ;;  %v5287_v16 = vld [vmem:[%s8698_s9 + $0xaa] sm:$0xff]  ;;  %v5333_v10 = vld [vmem:[%s8698_s9 + $0xc1] sm:$0xff]  ;;  %v7063_v5 = vld [vmem:[%s11848_s5 + $0x38] sm:$0xff] }
 0x1b2   : > { %1560 = vmatprep.mubr.f32.mxu1 %v12047_v20  ;;  %3082 = vmatprep.mubr.f32.mxu0 %v12047_v20  ;;  %v5290_v51 = vadd.f32 %v5288_v21, %v5260_v12  ;;  %v5334_v6 = vld [vmem:[%s8698_s9 + $0xc9] sm:$0xff]  ;;  %v6204_v45 = vadd.f32 %v7056_v8, %v6199_v39  ;;  %v6254_v22 = vld [vmem:[#allocation4 + $0x58] sm:$0xff]  ;;  %v5289_v46 = vadd.f32 %v5287_v16, %v5259_v33  ;;  %v5410_v21 = vld [vmem:[%s8698_s9 + $0xe1] sm:$0xff] }
 0x1b3   : > { %4471 = vperm.xlu1 %7755, %v4203_v34   ;;  %4466 = vperm.xlu0 %7754, %v4202_v15   ;;  %7764 = vrcp.f32 %v6205_v40  ;;  %v5336_v0 = vadd.f32 %v5334_v6, %v8825_v60  ;;  %v6256_v25 = vadd.f32 %v6254_v22, %v6244_v58  ;;  %v7062_v2 = vld [vmem:[%s11848_s5 + $0x30] sm:$0xff]  ;;  %v5335_v41 = vadd.f32 %v5333_v10, %v8828_v7  ;;  %v5363_v40 = vld [vmem:[%s8698_s9 + $0xc2] sm:$0xff] }
 0x1b4   : > { %5298 = vst.msk [vmem:[#allocation4 + $0x78] sm:$0xff] %vm4764_vm2, %v5290_v51  ;;  %v5364_v12 = vld [vmem:[%s8698_s9 + $0xca] sm:$0xff]  ;;  %7766 = vrcp.f32 %v6204_v45  ;;  %v6300_v8 = vadd.f32 %v6254_v22, %v6198_v57  ;;  %5297 = vst.msk [vmem:[#allocation4 + $0x70] sm:$0xff] %vm4764_vm2, %v5289_v46  ;;  %v5412_v57 = vadd.f32 %v5410_v21, %v8847_v44 }
 0x1b5   : > { %1562 = vmatmul.mubr.f32.gmra.mrb[90].mxu1 %v12098_v1  ;;  %3084 = vmatmul.mubr.f32.gmra.mrb[92].mxu0 %v12099_v53  ;;  %v12100_v60 = vld [vmem:[#allocation86_spill] sm:$0xff]  ;;  %v5366_v15 = vadd.f32 %v5364_v12, %v5336_v0  ;;  %v6261_v39 = vadd.f32 %v7063_v5, %v6256_v25  ;;  %v5365_v7 = vadd.f32 %v5363_v40, %v5335_v41  ;;  %v7069_v45 = vld [vmem:[%s11848_s5 + $0x48] sm:$0xff]  ;;  %v7068_v0 = vld [vmem:[%s11848_s5 + $0x40] sm:$0xff] }
 0x1b6   : > { %1567 = vmatprep.mubr.f32.mxu1 %v12047_v20  ;;  %3089 = vmatprep.mubr.f32.mxu0 %v12047_v20  ;;  %v6253_v29 = vld [vmem:[#allocation4 + $0x50] sm:$0xff]  ;;  %v6310_v16 = vld [vmem:[#allocation4 + $0x68] sm:$0xff]  ;;  %v5439_v12 = vld [vmem:[%s8698_s9 + $0xda] sm:$0xff] }
 0x1b7   : > { %v6255_v26 = vadd.f32 %v6253_v29, %v6243_v23  ;;  %v6299_v34 = vadd.f32 %v6253_v29, %v6197_v19  ;;  %v5409_v23 = vld [vmem:[%s8698_s9 + $0xd9] sm:$0xff]  ;;  %5374 = vst.msk [vmem:[#allocation4 + $0x88] sm:$0xff] %vm4764_vm2, %v5366_v15  ;;  %7768 = vrcp.f32 %v6261_v39  ;;  %v6312_v10 = vadd.f32 %v6310_v16, %v6300_v8  ;;  %5373 = vst.msk [vmem:[#allocation4 + $0x80] sm:$0xff] %vm4764_vm2, %v5365_v7  ;;  %v5440_v25 = vld [vmem:[%s8698_s9 + $0xe2] sm:$0xff] }
 0x1b8   : > { %v7757_v33 = vpop.eup %7756  ;;  %v6309_v6 = vld [vmem:[#allocation4 + $0x60] sm:$0xff]  ;;  %v5411_v19 = vadd.f32 %v5409_v23, %v8837_v50  ;;  %v6356_v5 = vadd.f32 %v6310_v16, %v6254_v22  ;;  %v5485_v40 = vld [vmem:[%s8698_s9 + $0xf1] sm:$0xff] }
 0x1b9   : > { %1569 = vmatmul.mubr.f32.gmra.mrb[92].mxu1 %v12099_v53  ;;  %3091 = vmatmul.mubr.f32.gmra.mrb[94].mxu0 %v12100_v60  ;;  %v6260_v58 = vadd.f32 %v7062_v2, %v6255_v26  ;;  %v7759_v51 = vpop.eup %7758  ;;  %v6311_v46 = vadd.f32 %v6309_v6, %v6299_v34  ;;  %v12101_v50 = vld [vmem:[#allocation88_spill] sm:$0xff]  ;;  %v6355_v26 = vadd.f32 %v6309_v6, %v6253_v29  ;;  %v7075_v7 = vld [vmem:[%s11848_s5 + $0x58] sm:$0xff]  ;;  %v7074_v23 = vld [vmem:[%s11848_s5 + $0x50] sm:$0xff] }
 0x1ba   : > { %1574 = vmatprep.mubr.f32.mxu1 %v12047_v20  ;;  %3096 = vmatprep.mubr.f32.mxu0 %v12047_v20  ;;  %v7761_v44 = vpop.eup %7760  ;;  %v5442_v2 = vadd.f32 %v5440_v25, %v5412_v57  ;;  %v5441_v34 = vadd.f32 %v5439_v12, %v5411_v19  ;;  %v5486_v15 = vld [vmem:[%s8698_s9 + $0xf9] sm:$0xff]  ;;  %v5487_v22 = vadd.f32 %v5485_v40, %v8858_v62  ;;  %v12102_v62 = vld [vmem:[#allocation89_spill] sm:$0xff] }
 0x1bb   : > { %6104 = vperm.xlu1 %7755, %v7757_v33   ;;  %6099 = vperm.xlu0 %7754, %v7759_v51   ;;  %7770 = vrcp.f32 %v6260_v58  ;;  %v7763_v41 = vpop.eup %7762  ;;  %v6317_v33 = vadd.f32 %v7069_v45, %v6312_v10  ;;  %v6316_v8 = vadd.f32 %v7068_v0, %v6311_v46  ;;  %v6366_v39 = vld [vmem:[#allocation4 + $0x78] sm:$0xff]  ;;  %v5488_v58 = vadd.f32 %v5486_v15, %v8855_v14  ;;  %v6365_v21 = vld [vmem:[#allocation4 + $0x70] sm:$0xff]  ;;  %v7080_v15 = vld [vmem:[%s11848_s5 + $0x60] sm:$0xff] }
 0x1bc   : > { %5450 = vst.msk [vmem:[#allocation4 + $0x98] sm:$0xff] %vm4764_vm2, %v5442_v2  ;;  %v6368_v29 = vadd.f32 %v6366_v39, %v6356_v5  ;;  %5449 = vst.msk [vmem:[#allocation4 + $0x90] sm:$0xff] %vm4764_vm2, %v5441_v34  ;;  %v6367_v51 = vadd.f32 %v6365_v21, %v6355_v26  ;;  %v6412_v57 = vadd.f32 %v6366_v39, %v6310_v16  ;;  %v5516_v10 = vld [vmem:[%s8698_s9 + $0xfa] sm:$0xff]  ;;  %v5515_v45 = vld [vmem:[%s8698_s9 + $0xf2] sm:$0xff] }
 0x1bd   : > { %1576 = vmatmul.mubr.f32.gmra.mrb[94].mxu1 %v12100_v60  ;;  %3098 = vmatmul.mubr.f32.gmra.mrb[96].mxu0 %v12101_v50  ;;  %7772 = vrcp.f32 %v6317_v33  ;;  %v7765_v14 = vpop.eup %7764  ;;  %v6411_v19 = vadd.f32 %v6365_v21, %v6309_v6  ;;  %v5518_v25 = vadd.f32 %v5516_v10, %v5488_v58  ;;  %v5562_v5 = vld [vmem:[%s8698_s9 + $0x111] sm:$0xff]  ;;  %v5561_v2 = vld [vmem:[%s8698_s9 + $0x109] sm:$0xff] }
 0x1be   : > { %1581 = vmatprep.mubr.f32.mxu1 %v12047_v20  ;;  %3103 = vmatprep.mubr.f32.mxu0 %v12047_v20  ;;  %7774 = vrcp.f32 %v6316_v8  ;;  %v6373_v46 = vadd.f32 %v7075_v7, %v6368_v29  ;;  %v6422_v0 = vld [vmem:[#allocation4 + $0x88] sm:$0xff]  ;;  %v7767_v12 = vpop.eup %7766  ;;  %v6421_v26 = vld [vmem:[#allocation4 + $0x80] sm:$0xff]  ;;  %v5564_v16 = vadd.f32 %v5562_v5, %v8877_v47  ;;  %v5563_v6 = vadd.f32 %v5561_v2, %v8867_v30  ;;  %v5592_v47 = vld [vmem:[%s8698_s9 + $0x112] sm:$0xff] }
 0x1bf   : > { %6159 = vperm.xlu1 %7755, %v7761_v44   ;;  %6154 = vperm.xlu0 %7754, %v7763_v41   ;;  %v5517_v44 = vadd.f32 %v5515_v45, %v5487_v22  ;;  %v6372_v41 = vadd.f32 %v7074_v23, %v6367_v51  ;;  %v6424_v33 = vadd.f32 %v6422_v0, %v6412_v57  ;;  %v7081_v8 = vld [vmem:[%s11848_s5 + $0x68] sm:$0xff]  ;;  %v7086_v5 = vld [vmem:[%s11848_s5 + $0x70] sm:$0xff] }
 0x1c0   : > { %7776 = vrcp.f32 %v6373_v46  ;;  %v6423_v34 = vadd.f32 %v6421_v26, %v6411_v19  ;;  %5526 = vst.msk [vmem:[#allocation4 + $0xa8] sm:$0xff] %vm4764_vm2, %v5518_v25  ;;  %v6468_v40 = vadd.f32 %v6422_v0, %v6366_v39  ;;  %v6467_v58 = vadd.f32 %v6421_v26, %v6365_v21  ;;  %v5591_v22 = vld [vmem:[%s8698_s9 + $0x10a] sm:$0xff]  ;;  %v5637_v19 = vld [vmem:[%s8698_s9 + $0x121] sm:$0xff]  ;;  %v7087_v25 = vld [vmem:[%s11848_s5 + $0x78] sm:$0xff] }
 0x1c1   : > { %1583 = vmatmul.mubr.f32.gmra.mrb[96].mxu1 %v12101_v50  ;;  %3105 = vmatmul.mubr.f32.gmra.mrb[98].mxu0 %v12102_v62  ;;  %5525 = vst.msk [vmem:[#allocation4 + $0xa0] sm:$0xff] %vm4764_vm2, %v5517_v44  ;;  %7778 = vrcp.f32 %v6372_v41  ;;  %v6429_v30 = vadd.f32 %v7081_v8, %v6424_v33  ;;  %v7769_v29 = vpop.eup %7768  ;;  %v5593_v51 = vadd.f32 %v5591_v22, %v5563_v6  ;;  %v5638_v57 = vld [vmem:[%s8698_s9 + $0x129] sm:$0xff] }
 0x1c2   : > { %1588 = vmatprep.mubr.f32.mxu1 %v12047_v20  ;;  %3110 = vmatprep.mubr.f32.mxu0 %v12047_v20  ;;  %v6428_v7 = vadd.f32 %v7080_v15, %v6423_v34  ;;  %v5640_v39 = vadd.f32 %v5638_v57, %v8885_v18  ;;  %v5639_v21 = vadd.f32 %v5637_v19, %v8888_v35  ;;  %v5668_v18 = vld [vmem:[%s8698_s9 + $0x12a] sm:$0xff]  ;;  %v5667_v41 = vld [vmem:[%s8698_s9 + $0x122] sm:$0xff]  ;;  %v5713_v15 = vld [vmem:[%s8698_s9 + $0x139] sm:$0xff] }
 0x1c3   : > { %6215 = vperm.xlu1 %7755, %v7765_v14   ;;  %6210 = vperm.xlu0 %7754, %v7767_v12   ;;  %v6478_v23 = vld [vmem:[#allocation4 + $0x98] sm:$0xff]  ;;  %v5594_v14 = vadd.f32 %v5592_v47, %v5564_v16  ;;  %7780 = vrcp.f32 %v6429_v30  ;;  %v6477_v46 = vld [vmem:[#allocation4 + $0x90] sm:$0xff]  ;;  %5601 = vst.msk [vmem:[#allocation4 + $0xb0] sm:$0xff] %vm4764_vm2, %v5593_v51  ;;  %v5714_v34 = vld [vmem:[%s8698_s9 + $0x141] sm:$0xff] }
 0x1c4   : > { %v6480_v45 = vadd.f32 %v6478_v23, %v6468_v40  ;;  %7782 = vrcp.f32 %v6428_v7  ;;  %v6479_v44 = vadd.f32 %v6477_v46, %v6467_v58  ;;  %v6524_v2 = vadd.f32 %v6478_v23, %v6422_v0  ;;  %v7093_v22 = vld [vmem:[%s11848_s5 + $0x88] sm:$0xff]  ;;  %v7092_v7 = vld [vmem:[%s11848_s5 + $0x80] sm:$0xff] }
 0x1c5   : > { %1590 = vmatmul.mubr.f32.gmra.mrb[98].mxu1 %v12102_v62  ;;  %3112 = vmatmul.mubr.f32.gmra.mrb[100].mxu0 %v8556_v54  ;;  %v7771_v10 = vpop.eup %7770  ;;  %5602 = vst.msk [vmem:[#allocation4 + $0xb8] sm:$0xff] %vm4764_vm2, %v5594_v14  ;;  %v6523_v12 = vadd.f32 %v6477_v46, %v6421_v26  ;;  %v5670_v6 = vadd.f32 %v5668_v18, %v5640_v39  ;;  %v5743_v57 = vld [vmem:[%s8698_s9 + $0x13a] sm:$0xff] }
 0x1c6   : > { %1595 = vmatprep.mubr.f32.mxu1 %v12047_v20  ;;  %3117 = vmatprep.mubr.f32.mxu0 %v12047_v20  ;;  %v6485_v35 = vadd.f32 %v7087_v25, %v6480_v45  ;;  %v6484_v16 = vadd.f32 %v7086_v5, %v6479_v44  ;;  %v5669_v8 = vadd.f32 %v5667_v41, %v5639_v21  ;;  %v5790_v21 = vld [vmem:[%s8698_s9 + $0x159] sm:$0xff]  ;;  %v5789_v25 = vld [vmem:[%s8698_s9 + $0x151] sm:$0xff] }
 0x1c7   : > { %6271 = vperm.xlu1 %7755, %v7769_v29   ;;  %6266 = vperm.xlu0 %7754, %v7771_v10   ;;  %v7773_v33 = vpop.eup %7772  ;;  %v6534_v30 = vld [vmem:[#allocation4 + $0xa8] sm:$0xff]  ;;  %v5716_v0 = vadd.f32 %v5714_v34, %v8910_v3  ;;  %v5715_v26 = vadd.f32 %v5713_v15, %v8897_v13  ;;  %5678 = vst.msk [vmem:[#allocation4 + $0xc8] sm:$0xff] %vm4764_vm2, %v5670_v6  ;;  %v7098_v41 = vld [vmem:[%s11848_s5 + $0x90] sm:$0xff] }
 0x1c8   : > { %v7775_v47 = vpop.eup %7774  ;;  %7784 = vrcp.f32 %v6485_v35  ;;  %v6533_v40 = vld [vmem:[#allocation4 + $0xa0] sm:$0xff]  ;;  %v6536_v58 = vadd.f32 %v6534_v30, %v6524_v2  ;;  %5677 = vst.msk [vmem:[#allocation4 + $0xc0] sm:$0xff] %vm4764_vm2, %v5669_v8  ;;  %v6580_v13 = vadd.f32 %v6534_v30, %v6478_v23  ;;  %v5792_v23 = vadd.f32 %v5790_v21, %v8933_v38  ;;  %v7099_v2 = vld [vmem:[%s11848_s5 + $0x98] sm:$0xff] }
 0x1c9   : > { %1597 = vmatmul.mubr.f32.gmra.mrb[100].mxu1 %v8556_v54  ;;  %3119 = vmatmul.mubr.f32.gmra.mrb[102].mxu0 %v8572_v48  ;;  %7786 = vrcp.f32 %v6484_v16  ;;  %v6535_v29 = vadd.f32 %v6533_v40, %v6523_v12  ;;  %v5744_v3 = vld [vmem:[%s8698_s9 + $0x142] sm:$0xff]  ;;  %v6579_v14 = vadd.f32 %v6533_v40, %v6477_v46  ;;  %v5745_v39 = vadd.f32 %v5743_v57, %v5715_v26  ;;  %v5819_v8 = vld [vmem:[%s8698_s9 + $0x152] sm:$0xff] }
 0x1ca   : > { %1602 = vmatprep.mubr.f32.mxu1 %v12047_v20  ;;  %3124 = vmatprep.mubr.f32.mxu0 %v12047_v20  ;;  %v5746_v51 = vadd.f32 %v5744_v3, %v5716_v0  ;;  %v7777_v19 = vpop.eup %7776  ;;  %v6541_v10 = vadd.f32 %v7093_v22, %v6536_v58  ;;  %v6589_v18 = vld [vmem:[#allocation4 + $0xb0] sm:$0xff]  ;;  %v5791_v46 = vadd.f32 %v5789_v25, %v8936_v31  ;;  %v5835_v22 = vld [vmem:[%s8698_s9 + $0x168] sm:$0xff] }
 0x1cb   : > { %6327 = vperm.xlu1 %7755, %v7773_v33   ;;  %6322 = vperm.xlu0 %7754, %v7775_v47   ;;  %v6540_v45 = vadd.f32 %v7092_v7, %v6535_v29  ;;  %v7779_v44 = vpop.eup %7778  ;;  %v6591_v12 = vadd.f32 %v6589_v18, %v6579_v14  ;;  %5753 = vst.msk [vmem:[#allocation4 + $0xd0] sm:$0xff] %vm4764_vm2, %v5745_v39  ;;  %v5820_v33 = vld [vmem:[%s8698_s9 + $0x15a] sm:$0xff]  ;;  %v5836_v26 = vld [vmem:[%s8698_s9 + $0x170] sm:$0xff] }
 0x1cc   : > { %v6590_v5 = vld [vmem:[#allocation4 + $0xb8] sm:$0xff]  ;;  %5754 = vst.msk [vmem:[#allocation4 + $0xd8] sm:$0xff] %vm4764_vm2, %v5746_v51  ;;  %7788 = vrcp.f32 %v6541_v10  ;;  %v6635_v16 = vadd.f32 %v6589_v18, %v6533_v40  ;;  %v5822_v6 = vadd.f32 %v5820_v33, %v5792_v23  ;;  %v5821_v0 = vadd.f32 %v5819_v8, %v5791_v46  ;;  %v5865_v40 = vld [vmem:[%s8698_s9 + $0x169] sm:$0xff]  ;;  %v7104_v51 = vld [vmem:[%s11848_s5 + $0xa0] sm:$0xff] }
 0x1cd   : > { %1604 = vmatmul.mubr.f32.gmra.mrb[102].mxu1 %v8572_v48  ;;  %3126 = vmatmul.mubr.f32.gmra.mrb[104].mxu0 %v8583_v55  ;;  %v6592_v35 = vadd.f32 %v6590_v5, %v6580_v13  ;;  %v7781_v38 = vpop.eup %7780  ;;  %7790 = vrcp.f32 %v6540_v45  ;;  %v6636_v31 = vadd.f32 %v6590_v5, %v6534_v30  ;;  %v6596_v47 = vadd.f32 %v7098_v41, %v6591_v12  ;;  %v5866_v58 = vld [vmem:[%s8698_s9 + $0x171] sm:$0xff]  ;;  %v7105_v13 = vld [vmem:[%s11848_s5 + $0xa8] sm:$0xff]  ;;  %v5911_v33 = vld [vmem:[%s8698_s9 + $0x180] sm:$0xff] }
 0x1ce   : > { %1609 = vmatprep.mubr.f32.mxu1 %v12047_v20  ;;  %3131 = vmatprep.mubr.f32.mxu0 %v12047_v20  ;;  %v7783_v34 = vpop.eup %7782  ;;  %v6646_v29 = vld [vmem:[#allocation4 + $0xc8] sm:$0xff]  ;;  %5830 = vst.msk [vmem:[#allocation4 + $0xe8] sm:$0xff] %vm4764_vm2, %v5822_v6  ;;  %v5868_v30 = vadd.f32 %v5866_v58, %v5836_v26  ;;  %5829 = vst.msk [vmem:[#allocation4 + $0xe0] sm:$0xff] %vm4764_vm2, %v5821_v0  ;;  %v5896_v57 = vld [vmem:[%s8698_s9 + $0x172] sm:$0xff] }
 0x1cf   : > { %6383 = vperm.xlu1 %7755, %v7777_v19   ;;  %6378 = vperm.xlu0 %7754, %v7779_v44   ;;  %v6597_v15 = vadd.f32 %v7099_v2, %v6592_v35  ;;  %v6645_v7 = vld [vmem:[#allocation4 + $0xc0] sm:$0xff]  ;;  %v6648_v3 = vadd.f32 %v6646_v29, %v6636_v31  ;;  %v5867_v19 = vadd.f32 %v5865_v40, %v5835_v22  ;;  %v5895_v25 = vld [vmem:[%s8698_s9 + $0x16a] sm:$0xff]  ;;  %v7111_v31 = vld [vmem:[%s11848_s5 + $0xb8] sm:$0xff] }
 0x1d0   : > { %v6647_v14 = vadd.f32 %v6645_v7, %v6635_v16  ;;  %v6692_v45 = vadd.f32 %v6646_v29, %v6590_v5  ;;  %v6691_v39 = vadd.f32 %v6645_v7, %v6589_v18  ;;  %v5898_v21 = vadd.f32 %v5896_v57, %v5868_v30  ;;  %v5912_v12 = vld [vmem:[%s8698_s9 + $0x188] sm:$0xff]  ;;  %v7110_v6 = vld [vmem:[%s11848_s5 + $0xb0] sm:$0xff] }
 0x1d1   : > { %1611 = vmatmul.mubr.f32.gmra.mrb[104].mxu1 %v8583_v55  ;;  %3133 = vmatmul.mubr.f32.gmra.mrb[106].mxu0 %v8593_v59  ;;  %7792 = vrcp.f32 %v6597_v15  ;;  %v6653_v23 = vadd.f32 %v7105_v13, %v6648_v3  ;;  %v5897_v2 = vadd.f32 %v5895_v25, %v5867_v19  ;;  %v5942_v41 = vld [vmem:[%s8698_s9 + $0x189] sm:$0xff]  ;;  %v12103_v15 = vld [vmem:[#allocation8_spill] sm:$0xff]  ;;  %v5987_v19 = vld [vmem:[%s8698_s9 + $0x198] sm:$0xff] }
 0x1d2   : > { %1616 = vmatprep.mubr.f32.mxu1 %v12047_v20  ;;  %3207 = vmatprep.mubr.f32.mxu0 %v12047_v20  ;;  %v7785_v10 = vpop.eup %7784  ;;  %7794 = vrcp.f32 %v6596_v47  ;;  %v6652_v46 = vadd.f32 %v7104_v51, %v6647_v14  ;;  %v6701_v5 = vld [vmem:[#allocation4 + $0xd0] sm:$0xff]  ;;  %5906 = vst.msk [vmem:[#allocation4 + $0xf8] sm:$0xff] %vm4764_vm2, %v5898_v21  ;;  %v5944_v18 = vadd.f32 %v5942_v41, %v5912_v12  ;;  %v5971_v58 = vld [vmem:[%s8698_s9 + $0x182] sm:$0xff]  ;;  %v6049_v41 = vld [vmem:[%s8698_s9 + $0x19a] sm:$0xff] }
 0x1d3   : > { %6439 = vperm.xlu1 %7755, %v7781_v38   ;;  %6434 = vperm.xlu0 %7754, %v7783_v34   ;;  %v7787_v44 = vpop.eup %7786  ;;  %v6702_v35 = vld [vmem:[#allocation4 + $0xd8] sm:$0xff]  ;;  %v5941_v38 = vld [vmem:[%s8698_s9 + $0x181] sm:$0xff]  ;;  %7796 = vrcp.f32 %v6653_v23  ;;  %v6703_v16 = vadd.f32 %v6701_v5, %v6691_v39  ;;  %5905 = vst.msk [vmem:[#allocation4 + $0xf0] sm:$0xff] %vm4764_vm2, %v5897_v2  ;;  %v5972_v8 = vld [vmem:[%s8698_s9 + $0x18a] sm:$0xff]  ;;  %v6747_v26 = vadd.f32 %v6701_v5, %v6645_v7 }
 0x1d4   : > { %v5943_v34 = vadd.f32 %v5941_v38, %v5911_v33  ;;  %7798 = vrcp.f32 %v6652_v46  ;;  %v6748_v0 = vadd.f32 %v6702_v35, %v6646_v29  ;;  %v5974_v3 = vadd.f32 %v5972_v8, %v5944_v18  ;;  %v5988_v14 = vld [vmem:[%s8698_s9 + $0x1a0] sm:$0xff]  ;;  %v12104_v23 = vld [vmem:[#allocation9_spill] sm:$0xff] }
 0x1d5   : > { %1618 = vmatmul.mubr.f32.gmra.mrb[106].mxu1 %v8593_v59  ;;  %3209 = vmatmul.mubr.f32.vlgmr.msra.gmra.mrb[0].mxu0 %v8023_v32  ;;  %v6704_v32 = vadd.f32 %v6702_v35, %v6692_v45  ;;  %v6708_v30 = vadd.f32 %v7110_v6, %v6703_v16  ;;  %v6758_v40 = vld [vmem:[#allocation4 + $0xe8] sm:$0xff]  ;;  %v6757_v7 = vld [vmem:[#allocation4 + $0xe0] sm:$0xff] }
 0x1d6   : > { %1696 = vmatprep.mubr.f32.mxu1 %v12047_v20  ;;  %3214 = vmatprep.mubr.f32.mxu0 %v12047_v20  ;;  %v7789_v22 = vpop.eup %7788  ;;  %v5973_v13 = vadd.f32 %v5971_v58, %v5943_v34  ;;  %v6020_v51 = vld [vmem:[%s8698_s9 + $0x1a1] sm:$0xff]  ;;  %v6760_v29 = vadd.f32 %v6758_v40, %v6748_v0  ;;  %v6759_v39 = vadd.f32 %v6757_v7, %v6747_v26  ;;  %v12105_v34 = vld [vmem:[#allocation10_spill] sm:$0xff] }
 0x1d7   : > { %6495 = vperm.xlu1 %7755, %v7785_v10   ;;  %6490 = vperm.xlu0 %7754, %v7787_v44   ;;  %v6709_v47 = vadd.f32 %v7111_v31, %v6704_v32  ;;  %v6022_v57 = vadd.f32 %v6020_v51, %v5988_v14  ;;  %v6019_v10 = vld [vmem:[%s8698_s9 + $0x199] sm:$0xff]  ;;  %v7117_v45 = vld [vmem:[%s11848_s5 + $0xc8] sm:$0xff]  ;;  %5982 = vst.msk [vmem:[#allocation4 + $0x108] sm:$0xff] %vm4764_vm2, %v5974_v3 }
 0x1d8   : > { %v7116_v21 = vld [vmem:[%s11848_s5 + $0xc0] sm:$0xff]  ;;  %5981 = vst.msk [vmem:[#allocation4 + $0x100] sm:$0xff] %vm4764_vm2, %v5973_v13  ;;  %v6021_v44 = vadd.f32 %v6019_v10, %v5987_v19  ;;  %v6765_v46 = vadd.f32 %v7117_v45, %v6760_v29  ;;  %v6804_v2 = vadd.f32 %v6758_v40, %v6702_v35  ;;  %v6803_v12 = vadd.f32 %v6757_v7, %v6701_v5  ;;  %v7122_v5 = vld [vmem:[%s11848_s5 + $0xd0] sm:$0xff] }
 0x1d9   : > { %1699 = vmatmul.mubr.f32.vlgmr.msra.gmra.mrb[0].mxu1 %v12103_v15  ;;  %3216 = vmatmul.mubr.f32.gmra.mrb[2].mxu0 %v8027_v37  ;;  %v7791_v37 = vpop.eup %7790  ;;  %7800 = vrcp.f32 %v6709_v47  ;;  %v6050_v25 = vld [vmem:[%s8698_s9 + $0x1a2] sm:$0xff]  ;;  %v6764_v18 = vadd.f32 %v7116_v21, %v6759_v39  ;;  %v6814_v33 = vld [vmem:[#allocation4 + $0xf8] sm:$0xff]  ;;  %s9829_s9 = sshll.u32 %s257_s26, 9 }
 0x1da   : > { %1704 = vmatprep.mubr.f32.mxu1 %v12047_v20  ;;  %3221 = vmatprep.mubr.f32.mxu0 %v12047_v20  ;;  %7802 = vrcp.f32 %v6708_v30  ;;  %v6052_v38 = vadd.f32 %v6050_v25, %v6022_v57  ;;  %v6051_v31 = vadd.f32 %v6049_v41, %v6021_v44  ;;  %v6816_v6 = vadd.f32 %v6814_v33, %v6804_v2  ;;  %v6813_v8 = vld [vmem:[#allocation4 + $0xf0] sm:$0xff]  ;;  %v7128_v14 = vld [vmem:[%s11848_s5 + $0xe0] sm:$0xff]  ;;  %v7135_v25 = vld [vmem:[%s11848_s5 + $0xf8] sm:$0xff]  ;;  %s9884_s28 = scalar_lea.vmem [#allocation5], %s9829_s9 }
 0x1db   : > { %6551 = vperm.xlu1 %7755, %v7789_v22   ;;  %6546 = vperm.xlu0 %7754, %v7791_v37   ;;  %v7793_v32 = vpop.eup %7792  ;;  %7804 = vrcp.f32 %v6765_v46  ;;  %v6815_v35 = vadd.f32 %v6813_v8, %v6803_v12  ;;  %v6860_v47 = vadd.f32 %v6814_v33, %v6758_v40  ;;  %v6859_v0 = vadd.f32 %v6813_v8, %v6757_v7  ;;  %v12106_v37 = vld [vmem:[#allocation11_spill] sm:$0xff]  ;;  %v7134_v44 = vld [vmem:[%s11848_s5 + $0xf0] sm:$0xff]  ;;  %v12107_v46 = vld [vmem:[#allocation12_spill] sm:$0xff]  ;;  %s6969_s10 = sshll.u32 %s9884_s28, 4  ;;  %s11797_s10 = int_to_ptr.vmem [resolvable:$true] %s6969_s10 }
 0x1dc   : > { %v7795_v16 = vpop.eup %7794  ;;  %7806 = vrcp.f32 %v6764_v18  ;;  %6060 = vst.msk [vmem:[#allocation4 + $0x118] sm:$0xff] %vm4764_vm2, %v6052_v38  ;;  %6059 = vst.msk [vmem:[#allocation4 + $0x110] sm:$0xff] %vm4764_vm2, %v6051_v31  ;;  %v12108_v18 = vld [vmem:[#allocation13_spill] sm:$0xff]  ;;  %s7820_s15 = scalar_lea.vmem %s11797_s10, 8192  ;;  %p7827_p0 = scmp.lt.s32.totalorder %s11797_s10, %s7825_s16 }
 0x1dd   : > { %1707 = vmatmul.mubr.f32.gmra.mrb[2].mxu1 %v12104_v23  ;;  %3223 = vmatmul.mubr.f32.gmra.mrb[4].mxu0 %v8034_v42  ;;  %v7123_v42 = vld [vmem:[%s11848_s5 + $0xd8] sm:$0xff]  ;;  %v7797_v26 = vpop.eup %7796  ;;  %v6820_v58 = vadd.f32 %v7122_v5, %v6815_v35  ;;  %v12119_v35 = vld [vmem:[#allocation24_spill] sm:$0xff]  ;;  %v12121_v5 = vld [vmem:[#allocation26_spill] sm:$0xff]  ;;  %p7821_p11 = scmp.ne.s32.totalorder %s11797_s10, %s7820_s15  ;;  %p7828_p1 = scmp.lt.s32.totalorder %s7826_s17, %s7820_s15 }
 0x1de   : > { %1712 = vmatprep.mubr.f32.mxu1 %v12047_v20  ;;  %3228 = vmatprep.mubr.f32.mxu0 %v12047_v20  ;;  %v6821_v15 = vadd.f32 %v7123_v42, %v6816_v6  ;;  %v7799_v22 = vpop.eup %7798  ;;  %v6870_v30 = vld [vmem:[#allocation4 + $0x108] sm:$0xff] }
 0x1df   : > { %6607 = vperm.xlu1 %7755, %v7793_v32   ;;  %6602 = vperm.xlu0 %7754, %v7795_v16   ;;  %v6869_v3 = vld [vmem:[#allocation4 + $0x100] sm:$0xff]  ;;  %v6872_v13 = vadd.f32 %v6870_v30, %v6860_v47  ;;  %v6916_v29 = vadd.f32 %v6870_v30, %v6814_v33  ;;  %v12117_v42 = vld [vmem:[#allocation21_spill] sm:$0xff]  ;;  %p7822_p12 = pnand %p7821_p11, %p7962_p5  ;;  %p7829_p2 = por %p7828_p1, %p7827_p0 }
 0x1e0   : > { %7808 = vrcp.f32 %v6821_v15  ;;  %v6871_v40 = vadd.f32 %v6869_v3, %v6859_v0  ;;  %v6915_v7 = vadd.f32 %v6869_v3, %v6813_v8  ;;  %v12112_v8 = vld [vmem:[#allocation17_spill] sm:$0xff]  ;;  %v12123_v15 = vld [vmem:[#allocation28_spill] sm:$0xff]  ;;  %v12125_v0 = vld [vmem:[#allocation30_spill] sm:$0xff] }
 0x1e1   : > { %1715 = vmatmul.mubr.f32.gmra.mrb[4].mxu1 %v12105_v34  ;;  %3230 = vmatmul.mubr.f32.gmra.mrb[6].mxu0 %v8036_v43  ;;  %7810 = vrcp.f32 %v6820_v58  ;;  %v7129_v43 = vld [vmem:[%s11848_s5 + $0xe8] sm:$0xff]  ;;  %v12122_v34 = vld [vmem:[#allocation27_spill] sm:$0xff]  ;;  %p7823_p13 = pneg %p7822_p12 }
 0x1e2   : > { %1720 = vmatprep.mubr.f32.mxu1 %v12047_v20  ;;  %3235 = vmatprep.mubr.f32.mxu0 %v12047_v20  ;;  %v6877_v19 = vadd.f32 %v7129_v43, %v6872_v13  ;;  %v6876_v10 = vadd.f32 %v7128_v14, %v6871_v40  ;;  %v12124_v47 = vld [vmem:[#allocation29_spill] sm:$0xff]  ;;  %v12127_v58 = vld [vmem:[#allocation31_spill] sm:$0xff]  ;;  %v12131_v13 = vld [vmem:[#allocation36_spill] sm:$0xff] }
 0x1e3   : > { %6663 = vperm.xlu1 %7755, %v7797_v26   ;;  %6658 = vperm.xlu0 %7754, %v7799_v22   ;;  %v7801_v51 = vpop.eup %7800  ;;  %v6926_v45 = vld [vmem:[#allocation4 + $0x118] sm:$0xff]  ;;  %v6925_v39 = vld [vmem:[#allocation4 + $0x110] sm:$0xff]  ;;  %v12126_v26 = vld [vmem:[#allocation32_spill] sm:$0xff]  ;;  %p7830_p3 = pnand %p7829_p2, %p7823_p13 }
 0x1e4   : > { %v7803_v57 = vpop.eup %7802  ;;  %7812 = vrcp.f32 %v6877_v19  ;;  %v6928_v21 = vadd.f32 %v6926_v45, %v6916_v29  ;;  %v12128_v22 = vld [vmem:[#allocation34_spill] sm:$0xff]  ;;  %v12129_v30 = vld [vmem:[#allocation33_spill] sm:$0xff]  ;;  %v12130_v3 = vld [vmem:[#allocation35_spill] sm:$0xff]  ;;  %v9330_v45 = vpop.permute.xlu0 %4206 }
 0x1e5   : > { %1723 = vmatmul.mubr.f32.gmra.mrb[6].mxu1 %v12106_v37  ;;  %3237 = vmatmul.mubr.f32.gmra.mrb[8].mxu0 %v8054_v56  ;;  %v6927_v56 = vadd.f32 %v6925_v39, %v6915_v7  ;;  %v7805_v23 = vpop.eup %7804  ;;  %7814 = vrcp.f32 %v6876_v10  ;;  %v12132_v43 = vld [vmem:[#allocation38_spill] sm:$0xff]  ;;  %v12133_v40 = vld [vmem:[#allocation37_spill] sm:$0xff]  ;;  %v12134_v14 = vld [vmem:[#allocation39_spill] sm:$0xff] }
 0x1e6   : > { %1728 = vmatprep.mubr.f32.mxu1 %v12047_v20  ;;  %3242 = vmatprep.mubr.f32.mxu0 %v12047_v20  ;;  %v7807_v2 = vpop.eup %7806  ;;  %v6933_v12 = vadd.f32 %v7135_v25, %v6928_v21  ;;  %v12136_v37 = vld [vmem:[#allocation41_spill] sm:$0xff]  ;;  %v12137_v29 = vld [vmem:[#allocation42_spill] sm:$0xff]  ;;  %v12138_v7 = vld [vmem:[#allocation44_spill] sm:$0xff] }
 0x1e7   : > { %6719 = vperm.xlu1 %7755, %v7801_v51   ;;  %6714 = vperm.xlu0 %7754, %v7803_v57   ;;  %v6932_v41 = vadd.f32 %v7134_v44, %v6927_v56  ;;  %v12135_v51 = vld [vmem:[#allocation40_spill] sm:$0xff]  ;;  %v12139_v57 = vld [vmem:[#allocation43_spill] sm:$0xff]  ;;  %v12140_v19 = vld [vmem:[#allocation46_spill] sm:$0xff]  ;;  %v9338_v44 = vpop.permute.xlu1 %4216 }
 0x1e8   : > { %7816 = vrcp.f32 %v6933_v12  ;;  %v12141_v10 = vld [vmem:[#allocation45_spill] sm:$0xff]  ;;  %v12142_v39 = vld [vmem:[#allocation47_spill] sm:$0xff]  ;;  %v12143_v21 = vld [vmem:[#allocation48_spill] sm:$0xff] }
 0x1e9   : > { %1731 = vmatmul.mubr.f32.gmra.mrb[8].mxu1 %v12107_v46  ;;  %3244 = vmatmul.mubr.f32.gmra.mrb[10].mxu0 %v8059_v61  ;;  %7818 = vrcp.f32 %v6932_v41  ;;  %v12109_v61 = vld [vmem:[#allocation14_spill] sm:$0xff]  ;;  %v12144_v25 = vld [vmem:[#allocation49_spill] sm:$0xff]  ;;  %v12146_v46 = vld [vmem:[#allocation52_spill] sm:$0xff] }
 0x1ea   : > { %1736 = vmatprep.mubr.f32.mxu1 %v12047_v20  ;;  %3249 = vmatprep.mubr.f32.mxu0 %v12047_v20  ;;  %v7809_v32 = vpop.eup %7808  ;;  %v12145_v56 = vld [vmem:[#allocation50_spill] sm:$0xff] }
 0x1eb   : > { %6775 = vperm.xlu1 %7755, %v7805_v23   ;;  %6770 = vperm.xlu0 %7754, %v7807_v2   ;;  %v7811_v33 = vpop.eup %7810  ;;  %v9340_v23 = vpop.permute.xlu0 %4211  ;;  %v12147_v2 = vld [vmem:[#allocation51_spill] sm:$0xff] }
 0x1ec   : > { %v9348_v12 = vpop.permute.xlu1 %4221 }
 0x1ed   : > { %1739 = vmatmul.mubr.f32.gmra.mrb[10].mxu1 %v12108_v18  ;;  %3251 = vmatmul.mubr.f32.gmra.mrb[12].mxu0 %v8076_v11  ;;  %v12110_v11 = vld [vmem:[#allocation15_spill] sm:$0xff]  ;;  %v12149_v18 = vld [vmem:[#allocation54_spill] sm:$0xff] }
 0x1ee   : > { %1744 = vmatprep.mubr.f32.mxu1 %v12047_v20  ;;  %3256 = vmatprep.mubr.f32.mxu0 %v12047_v20  ;;  %v7813_v38 = vpop.eup %7812 }
 0x1ef   : > { %6831 = vperm.xlu1 %7755, %v7809_v32   ;;  %6826 = vperm.xlu0 %7754, %v7811_v33   ;;  %v7815_v31 = vpop.eup %7814  ;;  %v9350_v41 = vpop.permute.xlu0 %4226  ;;  %v12148_v32 = vld [vmem:[#allocation53_spill] sm:$0xff]  ;;  %v12150_v33 = vld [vmem:[#allocation55_spill] sm:$0xff] }
 0x1f1   : > { %1747 = vmatmul.mubr.f32.gmra.mrb[12].mxu1 %v12109_v61  ;;  %3258 = vmatmul.mubr.f32.gmra.mrb[14].mxu0 %v8081_v17  ;;  %v12111_v17 = vld [vmem:[#allocation16_spill] sm:$0xff] }
 0x1f2   : > { %1752 = vmatprep.mubr.f32.mxu1 %v12047_v20  ;;  %3263 = vmatprep.mubr.f32.mxu0 %v12047_v20  ;;  %v7817_v16 = vpop.eup %7816  ;;  %v12151_v61 = vld [vmem:[#allocation56_spill] sm:$0xff] }
 0x1f3   : > { %6887 = vperm.xlu1 %7755, %v7813_v38   ;;  %6882 = vperm.xlu0 %7754, %v7815_v31   ;;  %v7819_v6 = vpop.eup %7818  ;;  %v9358_v38 = vpop.permute.xlu1 %4231 }
 0x1f4   : > { %v9360_v31 = vpop.permute.xlu0 %4236 }
 0x1f5   : > { %1755 = vmatmul.mubr.f32.gmra.mrb[14].mxu1 %v12110_v11  ;;  %3265 = vmatmul.mubr.f32.gmra.mrb[16].mxu0 %v8097_v28  ;;  %v12113_v28 = vld [vmem:[#allocation18_spill] sm:$0xff]  ;;  %v12152_v11 = vld [vmem:[#allocation57_spill] sm:$0xff] }
 0x1f6   : > { %1760 = vmatprep.mubr.f32.mxu1 %v12047_v20  ;;  %3270 = vmatprep.mubr.f32.mxu0 %v12047_v20 }
 0x1f7   : > { %6943 = vperm.xlu1 %7755, %v7817_v16   ;;  %6938 = vperm.xlu0 %7754, %v7819_v6   ;;  %v12153_v16 = vld [vmem:[#allocation58_spill] sm:$0xff]  ;;  %v9368_v6 = vpop.permute.xlu1 %4241 }
 0x1f9   : > { %1763 = vmatmul.mubr.f32.gmra.mrb[16].mxu1 %v12111_v17  ;;  %3272 = vmatmul.mubr.f32.gmra.mrb[18].mxu0 %v8108_v36  ;;  %v12114_v36 = vld [vmem:[#allocation19_spill] sm:$0xff]  ;;  %v9370_v17 = vpop.permute.xlu0 %4246 }
 0x1fa   : > { %1768 = vmatprep.mubr.f32.mxu1 %v12047_v20  ;;  %3277 = vmatprep.mubr.f32.mxu0 %v12047_v20 }
 0x1fd   : > { %1771 = vmatmul.mubr.f32.gmra.mrb[18].mxu1 %v12112_v8  ;;  %3279 = vmatmul.mubr.f32.gmra.mrb[20].mxu0 %v8120_v49  ;;  %v12115_v49 = vld [vmem:[#allocation20_spill] sm:$0xff] }
 0x1fe   : > { %1776 = vmatprep.mubr.f32.mxu1 %v12047_v20  ;;  %3284 = vmatprep.mubr.f32.mxu0 %v12047_v20  ;;  %v12154_v8 = vld [vmem:[#allocation60_spill] sm:$0xff] }
 0x201   : > { %1779 = vmatmul.mubr.f32.gmra.mrb[20].mxu1 %v12113_v28  ;;  %3286 = vmatmul.mubr.f32.gmra.mrb[22].mxu0 %v8125_v52  ;;  %v12116_v52 = vld [vmem:[#allocation22_spill] sm:$0xff]  ;;  %v12155_v28 = vld [vmem:[#allocation59_spill] sm:$0xff] }
 0x202   : > { %1784 = vmatprep.mubr.f32.mxu1 %v12047_v20  ;;  %3291 = vmatprep.mubr.f32.mxu0 %v12047_v20 }
 0x205   : > { %1787 = vmatmul.mubr.f32.gmra.mrb[22].mxu1 %v12114_v36  ;;  %3293 = vmatmul.mubr.f32.gmra.mrb[24].mxu0 %v8139_v63  ;;  %v12118_v63 = vld [vmem:[#allocation23_spill] sm:$0xff]  ;;  %v9376_v36 = vpop.permute.xlu1 %4251 }
 0x206   : > { %1792 = vmatprep.mubr.f32.mxu1 %v12047_v20  ;;  %3298 = vmatprep.mubr.f32.mxu0 %v12047_v20 }
 0x209   : > { %1795 = vmatmul.mubr.f32.gmra.mrb[24].mxu1 %v12115_v49  ;;  %3300 = vmatmul.mubr.f32.gmra.mrb[26].mxu0 %v8150_v9  ;;  %v12120_v9 = vld [vmem:[#allocation25_spill] sm:$0xff] }
 0x20a   : > { %1800 = vmatprep.mubr.f32.mxu1 %v12047_v20  ;;  %3305 = vmatprep.mubr.f32.mxu0 %v12047_v20  ;;  %v12156_v49 = vld [vmem:[#allocation61_spill] sm:$0xff] }
 0x20d   : > { %1803 = vmatmul.mubr.f32.gmra.mrb[26].mxu1 %v12116_v52  ;;  %3307 = vmatmul.mubr.f32.gmra.mrb[28].mxu0 %v12117_v42  ;;  %v12157_v52 = vld [vmem:[#allocation62_spill] sm:$0xff]  ;;  %v9380_v42 = vpop.permute.xlu0 %4256 }
 0x20e   : > { %1808 = vmatprep.mubr.f32.mxu1 %v12047_v20  ;;  %3312 = vmatprep.mubr.f32.mxu0 %v12047_v20 }
 0x211   : > { %1811 = vmatmul.mubr.f32.gmra.mrb[28].mxu1 %v12118_v63  ;;  %3314 = vmatmul.mubr.f32.gmra.mrb[30].mxu0 %v12119_v35  ;;  %v12158_v63 = vld [vmem:[#allocation64_spill] sm:$0xff]  ;;  %v12159_v35 = vld [vmem:[#allocation63_spill] sm:$0xff] }
 0x212   : > { %1816 = vmatprep.mubr.f32.mxu1 %v12047_v20  ;;  %3319 = vmatprep.mubr.f32.mxu0 %v12047_v20 }
 0x215   : > { %1819 = vmatmul.mubr.f32.gmra.mrb[30].mxu1 %v12120_v9  ;;  %3321 = vmatmul.mubr.f32.gmra.mrb[32].mxu0 %v12121_v5  ;;  %v9388_v9 = vpop.permute.xlu1 %4261  ;;  %v9390_v5 = vpop.permute.xlu0 %4266 }
 0x216   : > { %1824 = vmatprep.mubr.f32.mxu1 %v12047_v20  ;;  %3326 = vmatprep.mubr.f32.mxu0 %v12047_v20 }
 0x219   : > { %1827 = vmatmul.mubr.f32.gmra.mrb[32].mxu1 %v12122_v34  ;;  %3328 = vmatmul.mubr.f32.gmra.mrb[34].mxu0 %v12123_v15  ;;  %v12160_v34 = vld [vmem:[#allocation66_spill] sm:$0xff]  ;;  %v12161_v15 = vld [vmem:[#allocation65_spill] sm:$0xff] }
 0x21a   : > { %1832 = vmatprep.mubr.f32.mxu1 %v12047_v20  ;;  %3333 = vmatprep.mubr.f32.mxu0 %v12047_v20 }
 0x21d   : > { %1835 = vmatmul.mubr.f32.gmra.mrb[34].mxu1 %v12124_v47  ;;  %3335 = vmatmul.mubr.f32.gmra.mrb[36].mxu0 %v12125_v0  ;;  %v9396_v47 = vpop.permute.xlu1 %4271  ;;  %v9398_v0 = vpop.permute.xlu0 %4276 }
 0x21e   : > { %1840 = vmatprep.mubr.f32.mxu1 %v12047_v20  ;;  %3340 = vmatprep.mubr.f32.mxu0 %v12047_v20 }
 0x221   : > { %1843 = vmatmul.mubr.f32.gmra.mrb[36].mxu1 %v12126_v26  ;;  %3342 = vmatmul.mubr.f32.gmra.mrb[38].mxu0 %v12127_v58  ;;  %v12162_v26 = vld [vmem:[#allocation67_spill] sm:$0xff]  ;;  %v12163_v58 = vld [vmem:[#allocation68_spill] sm:$0xff] }
 0x222   : > { %1848 = vmatprep.mubr.f32.mxu1 %v12047_v20  ;;  %3347 = vmatprep.mubr.f32.mxu0 %v12047_v20 }
 0x225   : > { %1851 = vmatmul.mubr.f32.gmra.mrb[38].mxu1 %v12128_v22  ;;  %3349 = vmatmul.mubr.f32.gmra.mrb[40].mxu0 %v12129_v30  ;;  %v12164_v22 = vld [vmem:[#allocation69_spill] sm:$0xff]  ;;  %v12165_v30 = vld [vmem:[#allocation70_spill] sm:$0xff] }
 0x226   : > { %1856 = vmatprep.mubr.f32.mxu1 %v12047_v20  ;;  %3354 = vmatprep.mubr.f32.mxu0 %v12047_v20 }
 0x229   : > { %1859 = vmatmul.mubr.f32.gmra.mrb[40].mxu1 %v12130_v3  ;;  %3356 = vmatmul.mubr.f32.gmra.mrb[42].mxu0 %v12131_v13  ;;  %v9408_v3 = vpop.permute.xlu1 %4281  ;;  %v9410_v13 = vpop.permute.xlu0 %4286 }
 0x22a   : > { %1864 = vmatprep.mubr.f32.mxu1 %v12047_v20  ;;  %3361 = vmatprep.mubr.f32.mxu0 %v12047_v20  ;;  %12166 = vst [vmem:[#allocation79_spill] sm:$0xff] %v9410_v13 }
 0x22d   : > { %1867 = vmatmul.mubr.f32.gmra.mrb[42].mxu1 %v12132_v43  ;;  %3363 = vmatmul.mubr.f32.gmra.mrb[44].mxu0 %v12133_v40  ;;  %v12167_v43 = vld [vmem:[#allocation71_spill] sm:$0xff]  ;;  %v12168_v40 = vld [vmem:[#allocation72_spill] sm:$0xff] }
 0x22e   : > { %1872 = vmatprep.mubr.f32.mxu1 %v12047_v20  ;;  %3368 = vmatprep.mubr.f32.mxu0 %v12047_v20 }
 0x231   : > { %1875 = vmatmul.mubr.f32.gmra.mrb[44].mxu1 %v12134_v14  ;;  %3370 = vmatmul.mubr.f32.gmra.mrb[46].mxu0 %v12135_v51  ;;  %v9416_v14 = vpop.permute.xlu1 %4291  ;;  %v9418_v51 = vpop.permute.xlu0 %4296 }
 0x232   : > { %1880 = vmatprep.mubr.f32.mxu1 %v12047_v20  ;;  %3375 = vmatprep.mubr.f32.mxu0 %v12047_v20  ;;  %12169 = vst [vmem:[#allocation82_spill] sm:$0xff] %v9416_v14  ;;  %12170 = vst [vmem:[#allocation84_spill] sm:$0xff] %v9418_v51 }
 0x235   : > { %1883 = vmatmul.mubr.f32.gmra.mrb[46].mxu1 %v12136_v37  ;;  %3377 = vmatmul.mubr.f32.gmra.mrb[48].mxu0 %v12137_v29  ;;  %v12171_v37 = vld [vmem:[#allocation73_spill] sm:$0xff]  ;;  %v12172_v29 = vld [vmem:[#allocation74_spill] sm:$0xff] }
 0x236   : > { %1888 = vmatprep.mubr.f32.mxu1 %v12047_v20  ;;  %3382 = vmatprep.mubr.f32.mxu0 %v12047_v20 }
 0x239   : > { %1891 = vmatmul.mubr.f32.gmra.mrb[48].mxu1 %v12138_v7  ;;  %3384 = vmatmul.mubr.f32.gmra.mrb[50].mxu0 %v12139_v57  ;;  %v9428_v7 = vpop.permute.xlu1 %4301  ;;  %v9430_v57 = vpop.permute.xlu0 %4306 }
 0x23a   : > { %1896 = vmatprep.mubr.f32.mxu1 %v12047_v20  ;;  %3389 = vmatprep.mubr.f32.mxu0 %v12047_v20  ;;  %12173 = vst [vmem:[#allocation86_spill] sm:$0xff] %v9428_v7  ;;  %12174 = vst [vmem:[#allocation88_spill] sm:$0xff] %v9430_v57 }
 0x23d   : > { %1899 = vmatmul.mubr.f32.gmra.mrb[50].mxu1 %v12140_v19  ;;  %3391 = vmatmul.mubr.f32.gmra.mrb[52].mxu0 %v12141_v10  ;;  %v12175_v19 = vld [vmem:[#allocation76_spill] sm:$0xff]  ;;  %v12176_v10 = vld [vmem:[#allocation75_spill] sm:$0xff] }
 0x23e   : > { %1904 = vmatprep.mubr.f32.mxu1 %v12047_v20  ;;  %3396 = vmatprep.mubr.f32.mxu0 %v12047_v20 }
 0x241   : > { %1907 = vmatmul.mubr.f32.gmra.mrb[52].mxu1 %v12142_v39  ;;  %3398 = vmatmul.mubr.f32.gmra.mrb[54].mxu0 %v12143_v21  ;;  %v9438_v39 = vpop.permute.xlu0 %4316  ;;  %v12180_v21 = vld [vmem:[#allocation77_spill] sm:$0xff] }
 0x242   : > { %1912 = vmatprep.mubr.f32.mxu1 %v12047_v20  ;;  %3403 = vmatprep.mubr.f32.mxu0 %v12047_v20  ;;  %12178 = vst [vmem:[#allocation8_spill] sm:$0xff] %v9438_v39 }
 0x245   : > { %1915 = vmatmul.mubr.f32.gmra.mrb[54].mxu1 %v12144_v25  ;;  %3405 = vmatmul.mubr.f32.gmra.mrb[56].mxu0 %v12145_v56  ;;  %v12181_v25 = vld [vmem:[#allocation80_spill] sm:$0xff] }
 0x246   : > { %1920 = vmatprep.mubr.f32.mxu1 %v12047_v20  ;;  %3410 = vmatprep.mubr.f32.mxu0 %v12047_v20 }
 0x249   : > { %1923 = vmatmul.mubr.f32.gmra.mrb[56].mxu1 %v12146_v46  ;;  %3412 = vmatmul.mubr.f32.gmra.mrb[58].mxu0 %v12147_v2  ;;  %v9450_v46 = vpop.permute.xlu0 %4326  ;;  %v12184_v2 = vld [vmem:[#allocation81_spill] sm:$0xff] }
 0x24a   : > { %1928 = vmatprep.mubr.f32.mxu1 %v12047_v20  ;;  %3417 = vmatprep.mubr.f32.mxu0 %v12047_v20  ;;  %12183 = vst [vmem:[#allocation10_spill] sm:$0xff] %v9450_v46 }
 0x24d   : > { %1931 = vmatmul.mubr.f32.gmra.mrb[58].mxu1 %v12148_v32  ;;  %3419 = vmatmul.mubr.f32.gmra.mrb[60].mxu0 %v12149_v18  ;;  %v9458_v18 = vpop.permute.xlu0 %4336 }
 0x24e   : > { %1936 = vmatprep.mubr.f32.mxu1 %v12047_v20  ;;  %3424 = vmatprep.mubr.f32.mxu0 %v12047_v20  ;;  %12186 = vst [vmem:[#allocation12_spill] sm:$0xff] %v9458_v18 }
 0x251   : > { %1939 = vmatmul.mubr.f32.gmra.mrb[60].mxu1 %v12150_v33  ;;  %3426 = vmatmul.mubr.f32.gmra.mrb[62].mxu0 %v12151_v61  ;;  %v12188_v33 = vld [vmem:[#allocation85_spill] sm:$0xff]  ;;  %v9470_v61 = vpop.permute.xlu0 %4346 }
 0x252   : > { %1944 = vmatprep.mubr.f32.mxu1 %v12047_v20  ;;  %3431 = vmatprep.mubr.f32.mxu0 %v12047_v20  ;;  %12190 = vst [vmem:[#allocation14_spill] sm:$0xff] %v9470_v61 }
 0x255   : > { %1947 = vmatmul.mubr.f32.gmra.mrb[62].mxu1 %v12152_v11  ;;  %3433 = vmatmul.mubr.f32.gmra.mrb[64].mxu0 %v12153_v16  ;;  %v12191_v11 = vld [vmem:[#allocation87_spill] sm:$0xff]  ;;  %v9478_v16 = vpop.permute.xlu0 %4356 }
 0x256   : > { %1952 = vmatprep.mubr.f32.mxu1 %v12047_v20  ;;  %3438 = vmatprep.mubr.f32.mxu0 %v12047_v20  ;;  %12193 = vst [vmem:[#allocation16_spill] sm:$0xff] %v9478_v16 }
 0x259   : > { %1955 = vmatmul.mubr.f32.gmra.mrb[64].mxu1 %v12154_v8  ;;  %3440 = vmatmul.mubr.f32.gmra.mrb[66].mxu0 %v12155_v28  ;;  %v12195_v8 = vld [vmem:[#allocation91_spill] sm:$0xff]  ;;  %v9490_v28 = vpop.permute.xlu0 %4366 }
 0x25a   : > { %1960 = vmatprep.mubr.f32.mxu1 %v12047_v20  ;;  %3445 = vmatprep.mubr.f32.mxu0 %v12047_v20  ;;  %12197 = vst [vmem:[#allocation18_spill] sm:$0xff] %v9490_v28 }
 0x25d   : > { %1963 = vmatmul.mubr.f32.gmra.mrb[66].mxu1 %v12156_v49  ;;  %3447 = vmatmul.mubr.f32.gmra.mrb[68].mxu0 %v12157_v52  ;;  %v3588_v49 = vlaneseq  ;;  %v12198_v52 = vld [vmem:[#allocation92_spill] sm:$0xff] }
 0x25e   : > { %1968 = vmatprep.mubr.f32.mxu1 %v12047_v20  ;;  %3452 = vmatprep.mubr.f32.mxu0 %v12047_v20 }
 0x261   : > { %1971 = vmatmul.mubr.f32.gmra.mrb[68].mxu1 %v12158_v63  ;;  %3454 = vmatmul.mubr.f32.gmra.mrb[70].mxu0 %v12159_v35  ;;  %v12201_v35 = vld [vmem:[#allocation93_spill] sm:$0xff] }
 0x262   : > { %1976 = vmatprep.mubr.f32.mxu1 %v12047_v20  ;;  %3459 = vmatprep.mubr.f32.mxu0 %v12047_v20 }
 0x265   : > { %1979 = vmatmul.mubr.f32.gmra.mrb[70].mxu1 %v12160_v34  ;;  %3461 = vmatmul.mubr.f32.gmra.mrb[72].mxu0 %v12161_v15 }
 0x266   : > { %1984 = vmatprep.mubr.f32.mxu1 %v12047_v20  ;;  %3466 = vmatprep.mubr.f32.mxu0 %v12047_v20 }
 0x269   : > { %1987 = vmatmul.mubr.f32.gmra.mrb[72].mxu1 %v12162_v26  ;;  %3468 = vmatmul.mubr.f32.gmra.mrb[74].mxu0 %v12163_v58  ;;  %v12202_v58 = vld [vmem:[#allocation94_spill] sm:$0xff] }
 0x26a   : > { %1992 = vmatprep.mubr.f32.mxu1 %v12047_v20  ;;  %3473 = vmatprep.mubr.f32.mxu0 %v12047_v20 }
 0x26d   : > { %1995 = vmatmul.mubr.f32.gmra.mrb[74].mxu1 %v12164_v22  ;;  %3475 = vmatmul.mubr.f32.gmra.mrb[76].mxu0 %v12165_v30 }
 0x26e   : > { %2000 = vmatprep.mubr.f32.mxu1 %v12047_v20  ;;  %3480 = vmatprep.mubr.f32.mxu0 %v12047_v20 }
 0x271   : > { %2003 = vmatmul.mubr.f32.gmra.mrb[76].mxu1 %v12167_v43  ;;  %3482 = vmatmul.mubr.f32.gmra.mrb[78].mxu0 %v12168_v40 }
 0x272   : > { %2008 = vmatprep.mubr.f32.mxu1 %v12047_v20  ;;  %3487 = vmatprep.mubr.f32.mxu0 %v12047_v20 }
 0x275   : > { %2011 = vmatmul.mubr.f32.gmra.mrb[78].mxu1 %v12171_v37  ;;  %3489 = vmatmul.mubr.f32.gmra.mrb[80].mxu0 %v8452_v24  ;;  %v9436_v24 = vpop.permute.xlu1 %4311 }
 0x276   : > { %2016 = vmatprep.mubr.f32.mxu1 %v12047_v20  ;;  %3494 = vmatprep.mubr.f32.mxu0 %v12047_v20  ;;  %12177 = vst [vmem:[#allocation89_spill] sm:$0xff] %v9436_v24 }
 0x279   : > { %2019 = vmatmul.mubr.f32.gmra.mrb[80].mxu1 %v12172_v29  ;;  %3496 = vmatmul.mubr.f32.gmra.mrb[82].mxu0 %v8457_v4  ;;  %v12179_v4 = vld [vmem:[#allocation78_spill] sm:$0xff]  ;;  %v9448_v56 = vpop.permute.xlu1 %4321 }
 0x27a   : > { %2024 = vmatprep.mubr.f32.mxu1 %v12047_v20  ;;  %3501 = vmatprep.mubr.f32.mxu0 %v12047_v20  ;;  %12182 = vst [vmem:[#allocation9_spill] sm:$0xff] %v9448_v56 }
 0x27d   : > { %2027 = vmatmul.mubr.f32.gmra.mrb[82].mxu1 %v12175_v19  ;;  %3503 = vmatmul.mubr.f32.gmra.mrb[84].mxu0 %v12176_v10  ;;  %v9456_v32 = vpop.permute.xlu1 %4331 }
 0x27e   : > { %2032 = vmatprep.mubr.f32.mxu1 %v12047_v20  ;;  %3508 = vmatprep.mubr.f32.mxu0 %v12047_v20  ;;  %12185 = vst [vmem:[#allocation11_spill] sm:$0xff] %v9456_v32 }
 0x281   : > { %2035 = vmatmul.mubr.f32.gmra.mrb[84].mxu1 %v12179_v4  ;;  %3510 = vmatmul.mubr.f32.gmra.mrb[86].mxu0 %v12180_v21  ;;  %v12205_v21 = vld [vmem:[#allocation95_spill] sm:$0xff] }
 0x282   : > { %2040 = vmatprep.mubr.f32.mxu1 %v12047_v20  ;;  %3515 = vmatprep.mubr.f32.mxu0 %v12047_v20 }
 0x285   : > { %2043 = vmatmul.mubr.f32.gmra.mrb[86].mxu1 %v12181_v25  ;;  %3517 = vmatmul.mubr.f32.gmra.mrb[88].mxu0 %v12097_v27  ;;  %v12187_v27 = vld [vmem:[#allocation83_spill] sm:$0xff] }
 0x286   : > { %2048 = vmatprep.mubr.f32.mxu1 %v12047_v20  ;;  %3522 = vmatprep.mubr.f32.mxu0 %v12047_v20 }
 0x289   : > { %2051 = vmatmul.mubr.f32.gmra.mrb[88].mxu1 %v12184_v2  ;;  %3524 = vmatmul.mubr.f32.gmra.mrb[90].mxu0 %v12098_v1  ;;  %v9468_v1 = vpop.permute.xlu1 %4341 }
 0x28a   : > { %2056 = vmatprep.mubr.f32.mxu1 %v12047_v20  ;;  %3529 = vmatprep.mubr.f32.mxu0 %v12047_v20  ;;  %12189 = vst [vmem:[#allocation13_spill] sm:$0xff] %v9468_v1 }
 0x28d   : > { %2059 = vmatmul.mubr.f32.gmra.mrb[90].mxu1 %v12187_v27  ;;  %3531 = vmatmul.mubr.f32.gmra.mrb[92].mxu0 %v12099_v53  ;;  %v9476_v53 = vpop.permute.xlu1 %4351 }
 0x28e   : > { %2064 = vmatprep.mubr.f32.mxu1 %v12047_v20  ;;  %3536 = vmatprep.mubr.f32.mxu0 %v12047_v20  ;;  %12192 = vst [vmem:[#allocation15_spill] sm:$0xff] %v9476_v53 }
 0x291   : > { %2067 = vmatmul.mubr.f32.gmra.mrb[92].mxu1 %v12188_v33  ;;  %3538 = vmatmul.mubr.f32.gmra.mrb[94].mxu0 %v12100_v60  ;;  %v12194_v60 = vld [vmem:[#allocation90_spill] sm:$0xff] }
 0x292   : > { %2072 = vmatprep.mubr.f32.mxu1 %v12047_v20  ;;  %3543 = vmatprep.mubr.f32.mxu0 %v12047_v20 }
 0x295   : > { %2075 = vmatmul.mubr.f32.gmra.mrb[94].mxu1 %v12191_v11  ;;  %3545 = vmatmul.mubr.f32.gmra.mrb[96].mxu0 %v12101_v50  ;;  %v9488_v50 = vpop.permute.xlu1 %4361 }
 0x296   : > { %2080 = vmatprep.mubr.f32.mxu1 %v12047_v20  ;;  %3550 = vmatprep.mubr.f32.mxu0 %v12047_v20  ;;  %12196 = vst [vmem:[#allocation17_spill] sm:$0xff] %v9488_v50 }
 0x299   : > { %2083 = vmatmul.mubr.f32.gmra.mrb[96].mxu1 %v12194_v60  ;;  %3552 = vmatmul.mubr.f32.gmra.mrb[98].mxu0 %v12102_v62  ;;  %v3589_v62 = vshrl.u32 %v3588_v49, 7  ;;  %v9496_v63 = vpop.permute.xlu1 %4371 }
 0x29a   : > { %2088 = vmatprep.mubr.f32.mxu1 %v12047_v20  ;;  %3557 = vmatprep.mubr.f32.mxu0 %v12047_v20  ;;  %12199 = vst [vmem:[#allocation19_spill] sm:$0xff] %v9496_v63 }
 0x29b   : > { %v3590_v34 = vsub.s32 0, %v3589_v62  ;;  %v3594_v26 = vsub.s32 1, %v3589_v62 }
 0x29d   : > { %2091 = vmatmul.mubr.f32.gmra.mrb[98].mxu1 %v12195_v8  ;;  %3559 = vmatmul.mubr.f32.gmra.mrb[100].mxu0 %v8556_v54  ;;  %v9498_v54 = vpop.permute.xlu0 %4376  ;;  %v9513_v30 = vpop.permute.xlu1 %4381 }
 0x29e   : > { %2096 = vmatprep.mubr.f32.mxu1 %v12047_v20  ;;  %3564 = vmatprep.mubr.f32.mxu0 %v12047_v20  ;;  %12200 = vst [vmem:[#allocation20_spill] sm:$0xff] %v9498_v54  ;;  %12203 = vst [vmem:[#allocation22_spill] sm:$0xff] %v9513_v30 }
 0x2a1   : > { %2099 = vmatmul.mubr.f32.gmra.mrb[100].mxu1 %v12198_v52  ;;  %3566 = vmatmul.mubr.f32.gmra.mrb[102].mxu0 %v8572_v48  ;;  %v3586_v48 = vld [vmem:[%s11846_s3] sm:$0x3]  ;;  %v9515_v43 = vpop.permute.xlu0 %4386 }
 0x2a2   : > { %2104 = vmatprep.mubr.f32.mxu1 %v12047_v20  ;;  %3571 = vmatprep.mubr.f32.mxu0 %v12047_v20  ;;  %12204 = vst [vmem:[#allocation21_spill] sm:$0xff] %v9515_v43  ;;  %v9517_v40 = vrot.slane %v3586_v48, %v3590_v34  ;;  %v9519_v19 = vrot.slane %v3586_v48, %v3594_v26 }
 0x2a5   : > { %2107 = vmatmul.mubr.f32.gmra.mrb[102].mxu1 %v12201_v35  ;;  %3573 = vmatmul.mubr.f32.gmra.mrb[104].mxu0 %v8583_v55  ;;  %v3706_v55 = vld [vmem:[%s11847_s4] sm:$0x3]  ;;  %v9532_v48 = vpop.permute.xlu0 %4396 }
 0x2a6   : > { %2112 = vmatprep.mubr.f32.mxu1 %v12047_v20  ;;  %3578 = vmatprep.mubr.f32.mxu0 %v12047_v20  ;;  %v9521_v4 = vrot.slane %v3706_v55, %v3590_v34  ;;  %v9524_v27 = vrot.slane %v3706_v55, %v3594_v26  ;;  %12207 = vst [vmem:[#allocation24_spill] sm:$0xff] %v9532_v48 }
 0x2a8   : > { %v3210_v15 = vpop.f32.mrb[0].mxu0 }
 0x2a9   : > { %2115 = vmatmul.mubr.f32.gmra.mrb[104].mxu1 %v12202_v58  ;;  %v3212_v22 = vpop.f32.mrb[1].mxu0  ;;  %3580 = vmatmul.mubr.f32.gmra.mrb[106].mxu0 %v8593_v59 }
 0x2aa   : > { %2120 = vmatprep.mubr.f32.mxu1 %v12047_v20 }
 0x2ac   : > { %v1700_v37 = vpop.f32.mrb[0].mxu1  ;;  %v3217_v29 = vpop.f32.mrb[2].mxu0 }
 0x2ad   : > { %v7170_v10 = vadd.f32 %v3210_v15, %v1700_v37  ;;  %v1702_v59 = vpop.f32.mrb[1].mxu1  ;;  %2123 = vmatmul.mubr.f32.gmra.mrb[106].mxu1 %v12205_v21  ;;  %v3219_v25 = vpop.f32.mrb[3].mxu0 }
 0x2ae   : > { %v7171_v2 = vadd.f32 %v3212_v22, %v1702_v59  ;;  %v9530_v15 = vpop.permute.xlu1 %4391 }
 0x2af   : > { %v3598_v20 = vmul.f32 %v7170_v10, %v9517_v40  ;;  %12206 = vst [vmem:[#allocation23_spill] sm:$0xff] %v9530_v15 }
 0x2b0   : > { %v3599_v33 = vmul.f32 %v7171_v2, %v9519_v19  ;;  %v1708_v11 = vpop.f32.mrb[2].mxu1  ;;  %v3224_v60 = vpop.f32.mrb[4].mxu0 }
 0x2b1   : > { %v3718_v8 = vadd.f32 %v9521_v4, %v3598_v20  ;;  %v7172_v49 = vadd.f32 %v3217_v29, %v1708_v11  ;;  %v1710_v52 = vpop.f32.mrb[3].mxu1  ;;  %v3226_v62 = vpop.f32.mrb[5].mxu0 }
 0x2b2   : > { %v3719_v35 = vadd.f32 %v9524_v27, %v3599_v33  ;;  %v7173_v34 = vadd.f32 %v3219_v25, %v1710_v52 }
 0x2b3   : > { %vm3826_vm3 = vcmp.ge.f32.partialorder %v3718_v8, 0.0  ;;  %v3934_v26 = vmul.f32 0.01, %v3718_v8  ;;  %v3600_v58 = vmul.f32 %v7172_v49, %v9517_v40 }
 0x2b4   : > { %vm3827_vm4 = vcmp.ge.f32.partialorder %v3719_v35, 0.0  ;;  %v3935_v22 = vmul.f32 0.01, %v3719_v35  ;;  %v3601_v55 = vmul.f32 %v7173_v34, %v9519_v19  ;;  %v1716_v37 = vpop.f32.mrb[4].mxu1  ;;  %v3231_v10 = vpop.f32.mrb[6].mxu0 }
 0x2b5   : > { %v4042_v29 = vsel %vm3826_vm3, %v3718_v8, %v3934_v26  ;;  %v3720_v59 = vadd.f32 %v9521_v4, %v3600_v58  ;;  %v7174_v21 = vadd.f32 %v3224_v60, %v1716_v37  ;;  %v1718_v2 = vpop.f32.mrb[5].mxu1  ;;  %v3233_v25 = vpop.f32.mrb[7].mxu0 }
 0x2b6   : > { %v9538_v20 = vmul.f32 %v9330_v45, %v4042_v29  ;;  %v4043_v33 = vsel %vm3827_vm4, %v3719_v35, %v3935_v22  ;;  %v3721_v11 = vadd.f32 %v9524_v27, %v3601_v55  ;;  %v7175_v52 = vadd.f32 %v3226_v62, %v1718_v2  ;;  %v9549_v37 = vpop.permute.xlu1 %4401  ;;  %v9551_v29 = vpop.permute.xlu0 %4406 }
 0x2b7   : > { %v9542_v49 = vmul.f32 %v9330_v45, %v4043_v33  ;;  %vm3828_vm5 = vcmp.ge.f32.partialorder %v3720_v59, 0.0  ;;  %v3936_v34 = vmul.f32 0.01, %v3720_v59  ;;  %v3602_v48 = vmul.f32 %v7174_v21, %v9517_v40  ;;  %12208 = vst [vmem:[#allocation25_spill] sm:$0xff] %v9549_v37  ;;  %12209 = vst [vmem:[#allocation26_spill] sm:$0xff] %v9551_v29 }
 0x2b8   : > { %4582 = vst [vmem:[#allocation2] sm:$0xff] %v9538_v20  ;;  %vm3829_vm6 = vcmp.ge.f32.partialorder %v3721_v11, 0.0  ;;  %v3937_v60 = vmul.f32 0.01, %v3721_v11  ;;  %v3603_v8 = vmul.f32 %v7175_v52, %v9519_v19  ;;  %v1724_v26 = vpop.f32.mrb[6].mxu1  ;;  %v3238_v58 = vpop.f32.mrb[8].mxu0 }
 0x2b9   : > { %4583 = vst [vmem:[#allocation2 + $0x8] sm:$0xff] %v9542_v49  ;;  %v4044_v35 = vsel %vm3828_vm5, %v3720_v59, %v3936_v34  ;;  %v3722_v62 = vadd.f32 %v9521_v4, %v3602_v48  ;;  %v7176_v45 = vadd.f32 %v3231_v10, %v1724_v26  ;;  %v1726_v22 = vpop.f32.mrb[7].mxu1  ;;  %v3240_v55 = vpop.f32.mrb[9].mxu0 }
 0x2ba   : > { %v9554_v21 = vmul.f32 %v9340_v23, %v4044_v35  ;;  %v4045_v2 = vsel %vm3829_vm6, %v3721_v11, %v3937_v60  ;;  %v3723_v33 = vadd.f32 %v9524_v27, %v3603_v8  ;;  %v7177_v52 = vadd.f32 %v3233_v25, %v1726_v22 }
 0x2bb   : > { %v9558_v15 = vmul.f32 %v9340_v23, %v4045_v2  ;;  %vm3830_vm8 = vcmp.ge.f32.partialorder %v3722_v62, 0.0  ;;  %v3938_v59 = vmul.f32 0.01, %v3722_v62  ;;  %v3604_v48 = vmul.f32 %v7176_v45, %v9517_v40 }
 0x2bc   : > { %vm3831_vm10 = vcmp.ge.f32.partialorder %v3723_v33, 0.0  ;;  %v3939_v34 = vmul.f32 0.01, %v3723_v33  ;;  %v1732_v26 = vpop.f32.mrb[8].mxu1  ;;  %v3245_v8 = vpop.f32.mrb[10].mxu0  ;;  %v3605_v45 = vmul.f32 %v7177_v52, %v9519_v19 }
 0x2bd   : > { %v4046_v60 = vsel %vm3830_vm8, %v3722_v62, %v3938_v59  ;;  %v3724_v25 = vadd.f32 %v9521_v4, %v3604_v48  ;;  %v1734_v23 = vpop.f32.mrb[9].mxu1  ;;  %v7178_v29 = vadd.f32 %v3238_v58, %v1732_v26  ;;  %v3247_v10 = vpop.f32.mrb[11].mxu0 }
 0x2be   : > { %v4478_v22 = vmul.f32 %v9338_v44, %v4046_v60  ;;  %v4047_v2 = vsel %vm3831_vm10, %v3723_v33, %v3939_v34  ;;  %v7179_v11 = vadd.f32 %v3240_v55, %v1734_v23  ;;  %v9569_v62 = vpop.permute.xlu1 %4411  ;;  %v9571_v59 = vpop.permute.xlu0 %4416  ;;  %v3725_v58 = vadd.f32 %v9524_v27, %v3605_v45 }
 0x2bf   : > { %v4696_v37 = vld [vmem:[#allocation2] sm:$0xfe]  ;;  %v4479_v35 = vmul.f32 %v9338_v44, %v4047_v2  ;;  %vm3832_vm11 = vcmp.ge.f32.partialorder %v3724_v25, 0.0  ;;  %12210 = vst [vmem:[#allocation27_spill] sm:$0xff] %v9569_v62  ;;  %12211 = vst [vmem:[#allocation28_spill] sm:$0xff] %v9571_v59  ;;  %v3606_v52 = vmul.f32 %v7178_v29, %v9517_v40  ;;  %v12212_v2 = vrot.slane %v9554_v21, 1 }
 0x2c0   : > { %v4729_v43 = vld [vmem:[#allocation2] sm:$0xfc]  ;;  %v4707_v48 = vrot.slane %v4696_v37, 1  ;;  %v4697_v60 = vld [vmem:[#allocation2 + $0x8] sm:$0xfe]  ;;  %4586 = vst [vmem:[#allocation2 + $0x20] sm:$0xff] %v4478_v22  ;;  %v3607_v44 = vmul.f32 %v7179_v11, %v9519_v19 }
 0x2c1   : > { %v4738_v54 = vrot.slane %v4729_v43, 2  ;;  %v4730_v33 = vld [vmem:[#allocation2 + $0x8] sm:$0xfc]  ;;  %v4710_v34 = vrot.slane %v4697_v60, 1  ;;  %4587 = vst [vmem:[#allocation2 + $0x28] sm:$0xff] %v4479_v35  ;;  %v1740_v55 = vpop.f32.mrb[10].mxu1  ;;  %v3726_v63 = vadd.f32 %v9521_v4, %v3606_v52 }
 0x2c2   : > { %v4741_v26 = vrot.slane %v4730_v33, 2  ;;  %v3940_v30 = vmul.f32 0.01, %v3724_v25  ;;  %v3252_v23 = vpop.f32.mrb[12].mxu0  ;;  %v4709_v37 = vsel %vm4706_vm7, %v4707_v48, %v12212_v2  ;;  %v12213_v43 = vrot.slane %v9554_v21, 2  ;;  %v1742_v59 = vpop.f32.mrb[11].mxu1 }
 0x2c3   : > { %vm3833_vm12 = vcmp.ge.f32.partialorder %v3725_v58, 0.0  ;;  %v3941_v45 = vmul.f32 0.01, %v3725_v58  ;;  %v3254_v29 = vpop.f32.mrb[13].mxu0  ;;  %v4721_v60 = vadd.f32 %v4709_v37, %v9538_v20  ;;  %v12214_v35 = vrot.slane %v9558_v15, 1 }
 0x2c4   : > { %v4740_v22 = vsel %vm4737_vm9, %v4738_v54, %v12213_v43  ;;  %v12215_v33 = vrot.slane %v9558_v15, 2  ;;  %v4048_v48 = vsel %vm3832_vm11, %v3724_v25, %v3940_v30  ;;  %v1748_v28 = vpop.f32.mrb[12].mxu1  ;;  %v9595_v20 = vpop.f32.mrb[14].mxu0  ;;  %vm3834_vm13 = vcmp.ge.f32.partialorder %v3726_v63, 0.0 }
 0x2c5   : > { %v4712_v11 = vsel %vm4706_vm7, %v4710_v34, %v12214_v35  ;;  %v9592_v54 = vmul.f32 %v9348_v12, %v4048_v48  ;;  %v4049_v43 = vsel %vm3833_vm12, %v3725_v58, %v3941_v45  ;;  %v9597_v37 = vadd.f32 %v4740_v22, %v4721_v60  ;;  %v1750_v30 = vpop.f32.mrb[13].mxu1  ;;  %v9603_v25 = vpop.f32.mrb[15].mxu0 }
 0x2c6   : > { %v4743_v62 = vsel %vm4737_vm9, %v4741_v26, %v12215_v33  ;;  %v4722_v2 = vadd.f32 %v4712_v11, %v9542_v49  ;;  %v9600_v34 = vmul.f32 %v9348_v12, %v4049_v43  ;;  %v3727_v26 = vadd.f32 %v9524_v27, %v3607_v44  ;;  %v9608_v45 = vpop.permute.xlu1 %4421  ;;  %v9610_v22 = vpop.permute.xlu0 %4426 }
 0x2c7   : > { %v7180_v35 = vadd.f32 %v3245_v8, %v1740_v55  ;;  %4588 = vst [vmem:[#allocation2 + $0x30] sm:$0xff] %v9592_v54  ;;  %v3942_v58 = vmul.f32 0.01, %v3726_v63  ;;  %v7181_v52 = vadd.f32 %v3247_v10, %v1742_v59  ;;  %12216 = vst [vmem:[#allocation29_spill] sm:$0xff] %v9608_v45  ;;  %v4698_v60 = vld [vmem:[#allocation2 + $0x20] sm:$0x1]  ;;  %v7182_v44 = vadd.f32 %v3252_v23, %v1748_v28 }
 0x2c8   : > { %v9605_v49 = vadd.f32 %v4743_v62, %v4722_v2  ;;  %12217 = vst [vmem:[#allocation30_spill] sm:$0xff] %v9610_v22  ;;  %v4731_v12 = vld [vmem:[#allocation2 + $0x20] sm:$0x3]  ;;  %4589 = vst [vmem:[#allocation2 + $0x38] sm:$0xff] %v9600_v34  ;;  %vm3835_vm14 = vcmp.ge.f32.partialorder %v3727_v26, 0.0  ;;  %v7183_v55 = vadd.f32 %v3254_v29, %v1750_v30  ;;  %v4713_v62 = vrot.slane %v4698_v60, 1 }
 0x2c9   : > { %v3608_v8 = vmul.f32 %v7180_v35, %v9517_v40  ;;  %v4744_v11 = vrot.slane %v4731_v12, 2  ;;  %v4699_v33 = vld [vmem:[#allocation2 + $0x28] sm:$0x1]  ;;  %v4050_v2 = vsel %vm3834_vm13, %v3726_v63, %v3942_v58  ;;  %v3609_v10 = vmul.f32 %v7181_v52, %v9519_v19  ;;  %v1756_v50 = vpop.f32.mrb[14].mxu1  ;;  %v3266_v16 = vpop.f32.mrb[16].mxu0 }
 0x2ca   : > { %v4732_v48 = vld [vmem:[#allocation2 + $0x28] sm:$0x3]  ;;  %v4715_v59 = vrot.slane %v4699_v33, 1  ;;  %v9617_v22 = vmul.f32 %v9350_v41, %v4050_v2  ;;  %v3943_v45 = vmul.f32 0.01, %v3727_v26  ;;  %v12218_v35 = vrot.slane %v9554_v21, 1 }
 0x2cb   : > { %v4746_v43 = vrot.slane %v4732_v48, 2  ;;  %v12219_v23 = vrot.slane %v9554_v21, 2  ;;  %v3728_v63 = vadd.f32 %v9521_v4, %v3608_v8  ;;  %v3729_v30 = vadd.f32 %v9524_v27, %v3609_v10  ;;  %v1758_v58 = vpop.f32.mrb[15].mxu1  ;;  %v9627_v52 = vpop.f32.mrb[17].mxu0 }
 0x2cc   : > { %v4714_v28 = vsel %vm4706_vm7, %v12218_v35, %v4713_v62  ;;  %v12220_v12 = vrot.slane %v9558_v15, 1  ;;  %v12221_v48 = vrot.slane %v9558_v15, 2  ;;  %v4051_v10 = vsel %vm3835_vm14, %v3727_v26, %v3943_v45  ;;  %v1764_v35 = vpop.f32.mrb[16].mxu1 }
 0x2cd   : > { %v4745_v29 = vsel %vm4737_vm9, %v12219_v23, %v4744_v11  ;;  %v4723_v60 = vadd.f32 %v4714_v28, %v9554_v21  ;;  %vm3836_vm15 = vcmp.ge.f32.partialorder %v3728_v63, 0.0  ;;  %v9640_v23 = vpop.f32.mrb[18].mxu0  ;;  %v9642_v21 = vpop.permute.xlu1 %4431  ;;  %vm3837_vm0 = vcmp.ge.f32.partialorder %v3729_v30, 0.0 }
 0x2ce   : > { %v4716_v33 = vsel %vm4706_vm7, %v12220_v12, %v4715_v59  ;;  %v4747_v62 = vsel %vm4737_vm9, %v12221_v48, %v4746_v43  ;;  %12222 = vst [vmem:[#allocation32_spill] sm:$0xff] %v9642_v21  ;;  %v9644_v28 = vpop.permute.xlu0 %4436  ;;  %v4773_v12 = vld [vmem:[#allocation2 + $0x30] sm:$0xfe]  ;;  %v9649_v48 = vmul.f32 %v9350_v41, %v4051_v10  ;;  %v3611_v21 = vmul.f32 %v7183_v55, %v9519_v19  ;;  %v1766_v1 = vpop.f32.mrb[17].mxu1 }
 0x2cf   : > { %v4724_v11 = vadd.f32 %v4716_v33, %v9558_v15  ;;  %12223 = vst [vmem:[#allocation31_spill] sm:$0xff] %v9644_v28  ;;  %v9646_v59 = vadd.f32 %v4745_v29, %v4723_v60  ;;  %v4805_v43 = vld [vmem:[#allocation2 + $0x30] sm:$0xfc]  ;;  %v3944_v15 = vmul.f32 0.01, %v3728_v63  ;;  %v3610_v33 = vmul.f32 %v7182_v44, %v9517_v40  ;;  %v3275_v41 = vpop.f32.mrb[19].mxu0 }
 0x2d0   : > { %v4783_v26 = vrot.slane %v4773_v12, 1  ;;  %v4813_v45 = vrot.slane %v4805_v43, 2  ;;  %v4774_v2 = vld [vmem:[#allocation2 + $0x38] sm:$0xfe]  ;;  %v11973_v29 = vrot.slane %v9649_v48, 1  ;;  %v11972_v60 = vrot.slane %v9649_v48, 2 }
 0x2d1   : > { %v9652_v8 = vadd.f32 %v4747_v62, %v4724_v11  ;;  %v4806_v53 = vld [vmem:[#allocation2 + $0x38] sm:$0xfc]  ;;  %v4786_v61 = vrot.slane %v4774_v2, 1  ;;  %v12224_v10 = vrot.slane %v9617_v22, 1  ;;  %v12225_v62 = vrot.slane %v9617_v22, 2  ;;  %v1772_v55 = vpop.f32.mrb[18].mxu1 }
 0x2d2   : > { %v4816_v28 = vrot.slane %v4806_v53, 2  ;;  %v4052_v12 = vsel %vm3836_vm15, %v3728_v63, %v3944_v15  ;;  %v3280_v2 = vpop.f32.mrb[20].mxu0  ;;  %v3945_v63 = vmul.f32 0.01, %v3729_v30  ;;  %v3730_v15 = vadd.f32 %v9521_v4, %v3610_v33 }
 0x2d3   : > { %v4785_v44 = vsel %vm4706_vm7, %v4783_v26, %v12224_v10  ;;  %v4815_v11 = vsel %vm4737_vm9, %v4813_v45, %v12225_v62  ;;  %v4788_v43 = vsel %vm4706_vm7, %v4786_v61, %v11973_v29  ;;  %v4484_v26 = vmul.f32 %v9358_v38, %v4052_v12  ;;  %v1774_v10 = vpop.f32.mrb[19].mxu1  ;;  %v3282_v32 = vpop.f32.mrb[21].mxu0 }
 0x2d4   : > { %v4797_v53 = vadd.f32 %v4785_v44, %v9592_v54  ;;  %v4818_v18 = vsel %vm4737_vm9, %v4816_v28, %v11972_v60  ;;  %v4798_v45 = vadd.f32 %v4788_v43, %v9600_v34  ;;  %v3731_v62 = vadd.f32 %v9524_v27, %v3611_v21  ;;  %v9675_v54 = vpop.permute.xlu1 %4441  ;;  %v9677_v44 = vpop.permute.xlu0 %4446 }
 0x2d5   : > { %12226 = vst [vmem:[#allocation34_spill] sm:$0xff] %v9675_v54  ;;  %12227 = vst [vmem:[#allocation33_spill] sm:$0xff] %v9677_v44  ;;  %v7184_v28 = vadd.f32 %v9595_v20, %v1756_v50  ;;  %v7185_v12 = vadd.f32 %v9603_v25, %v1758_v58  ;;  %v7186_v60 = vadd.f32 %v3266_v16, %v1764_v35  ;;  %vm3838_vm1 = vcmp.ge.f32.partialorder %v3730_v15, 0.0  ;;  %v1780_v43 = vpop.f32.mrb[20].mxu1  ;;  %v9686_v21 = vpop.f32.mrb[22].mxu0 }
 0x2d6   : > { %v9679_v61 = vadd.f32 %v4815_v11, %v4797_v53  ;;  %4592 = vst [vmem:[#allocation2 + $0x50] sm:$0xff] %v4484_v26  ;;  %v9683_v29 = vadd.f32 %v4818_v18, %v4798_v45  ;;  %v4053_v34 = vsel %vm3837_vm0, %v3729_v30, %v3945_v63  ;;  %v3946_v33 = vmul.f32 0.01, %v3730_v15  ;;  %v1782_v20 = vpop.f32.mrb[21].mxu1  ;;  %v9693_v25 = vpop.f32.mrb[23].mxu0 }
 0x2d7   : > { %v4485_v11 = vmul.f32 %v9358_v38, %v4053_v34  ;;  %vm3839_vm2 = vcmp.ge.f32.partialorder %v3731_v62, 0.0  ;;  %v3947_v50 = vmul.f32 0.01, %v3731_v62  ;;  %v3612_v30 = vmul.f32 %v7184_v28, %v9517_v40 }
 0x2d8   : > { %v9690_v44 = vadd.f32 %v9679_v61, %v9597_v37  ;;  %v9697_v18 = vadd.f32 %v9683_v29, %v9605_v49  ;;  %v4054_v16 = vsel %vm3838_vm1, %v3730_v15, %v3946_v33  ;;  %v3613_v58 = vmul.f32 %v7185_v12, %v9519_v19  ;;  %v9712_v15 = vpop.f32.mrb[22].mxu1  ;;  %v9714_v28 = vpop.f32.mrb[24].mxu0 }
 0x2d9   : > { %4593 = vst [vmem:[#allocation2 + $0x58] sm:$0xff] %v4485_v11  ;;  %v9702_v37 = vmul.f32 %v9360_v31, %v4054_v16  ;;  %v4055_v35 = vsel %vm3839_vm2, %v3731_v62, %v3947_v50  ;;  %v3614_v38 = vmul.f32 %v7186_v60, %v9517_v40  ;;  %v7187_v53 = vadd.f32 %v9627_v52, %v1766_v1  ;;  %v9723_v12 = vpop.f32.mrb[25].mxu0  ;;  %v9729_v11 = vpop.permute.xlu1 %4451 }
 0x2da   : > { %v9707_v26 = vmul.f32 %v9360_v31, %v4055_v35  ;;  %v3732_v49 = vadd.f32 %v9521_v4, %v3612_v30  ;;  %v3733_v45 = vadd.f32 %v9524_v27, %v3613_v58  ;;  %v7188_v63 = vadd.f32 %v9640_v23, %v1772_v55  ;;  %v9721_v31 = vpop.f32.mrb[23].mxu1  ;;  %12228 = vst [vmem:[#allocation35_spill] sm:$0xff] %v9729_v11  ;;  %v9731_v50 = vpop.permute.xlu0 %4456 }
 0x2db   : > { %4594 = vst [vmem:[#allocation2 + $0x60] sm:$0xff] %v9702_v37  ;;  %v3734_v62 = vadd.f32 %v9521_v4, %v3614_v38  ;;  %v3615_v60 = vmul.f32 %v7187_v53, %v9519_v19  ;;  %v7189_v1 = vadd.f32 %v3275_v41, %v1774_v10  ;;  %v9719_v52 = vadd.f32 %v3280_v2, %v1780_v43 }
 0x2dc   : > { %4595 = vst [vmem:[#allocation2 + $0x68] sm:$0xff] %v9707_v26  ;;  %vm3840_vm3 = vcmp.ge.f32.partialorder %v3732_v49, 0.0  ;;  %vm3841_vm4 = vcmp.ge.f32.partialorder %v3733_v45, 0.0  ;;  %v3616_v23 = vmul.f32 %v7188_v63, %v9517_v40  ;;  %v9727_v55 = vadd.f32 %v3282_v32, %v1782_v20  ;;  %12229 = vst [vmem:[#allocation36_spill] sm:$0xff] %v9731_v50  ;;  %v9739_v35 = vpop.f32.mrb[24].mxu1  ;;  %v9741_v32 = vpop.f32.mrb[26].mxu0 }
 0x2dd   : > { %v4775_v34 = vld [vmem:[#allocation2 + $0x50] sm:$0x1]  ;;  %v3948_v10 = vmul.f32 0.01, %v3732_v49  ;;  %v3949_v43 = vmul.f32 0.01, %v3733_v45  ;;  %v9734_v30 = vadd.f32 %v9524_v27, %v3615_v60 }
 0x2de   : > { %v4807_v33 = vld [vmem:[#allocation2 + $0x50] sm:$0x3]  ;;  %v4789_v41 = vrot.slane %v4775_v34, 1  ;;  %vm3842_vm5 = vcmp.ge.f32.partialorder %v3734_v62, 0.0  ;;  %v3950_v16 = vmul.f32 0.01, %v3734_v62  ;;  %v9737_v58 = vadd.f32 %v9521_v4, %v3616_v23 }
 0x2df   : > { %v4819_v2 = vrot.slane %v4807_v33, 2  ;;  %v12230_v20 = vrot.slane %v9617_v22, 1  ;;  %v12231_v53 = vrot.slane %v9617_v22, 2  ;;  %v4056_v34 = vsel %vm3840_vm3, %v3732_v49, %v3948_v10  ;;  %v9751_v33 = vpop.f32.mrb[25].mxu1  ;;  %v9753_v23 = vpop.f32.mrb[27].mxu0 }
 0x2e0   : > { %v4057_v60 = vsel %vm3841_vm4, %v3733_v45, %v3949_v43  ;;  %v4776_v11 = vld [vmem:[#allocation2 + $0x58] sm:$0x1]  ;;  %v9757_v46 = vmul.f32 %v9368_v6, %v4056_v34  ;;  %vm3843_vm6 = vcmp.ge.f32.partialorder %v9734_v30, 0.0  ;;  %v3617_v34 = vmul.f32 %v7189_v1, %v9519_v19  ;;  %v9785_v56 = vpop.f32.mrb[26].mxu1 }
 0x2e1   : > { %v4790_v38 = vsel %vm4706_vm7, %v12230_v20, %v4789_v41  ;;  %v4820_v63 = vsel %vm4737_vm9, %v12231_v53, %v4819_v2  ;;  %v4808_v54 = vld [vmem:[#allocation2 + $0x58] sm:$0x3]  ;;  %v9760_v41 = vmul.f32 %v9368_v6, %v4057_v60  ;;  %v4058_v2 = vsel %vm3842_vm5, %v3734_v62, %v3950_v16  ;;  %v9770_v6 = vpop.permute.xlu1 %4461  ;;  %v9772_v62 = vpop.permute.xlu0 %4466 }
 0x2e2   : > { %v4799_v50 = vadd.f32 %v4790_v38, %v9617_v22  ;;  %v4791_v20 = vrot.slane %v4776_v11, 1  ;;  %v4821_v49 = vrot.slane %v4808_v54, 2  ;;  %v4490_v45 = vmul.f32 %v9370_v17, %v4058_v2  ;;  %v4849_v43 = vld [vmem:[#allocation2 + $0x60] sm:$0xfe]  ;;  %12232 = vst [vmem:[#allocation38_spill] sm:$0xff] %v9770_v6  ;;  %12233 = vst [vmem:[#allocation37_spill] sm:$0xff] %v9772_v62 }
 0x2e3   : > { %v4881_v22 = vld [vmem:[#allocation2 + $0x60] sm:$0xfc]  ;;  %v12234_v54 = vrot.slane %v9649_v48, 1  ;;  %v4850_v2 = vld [vmem:[#allocation2 + $0x68] sm:$0xfe]  ;;  %vm3844_vm8 = vcmp.ge.f32.partialorder %v9737_v58, 0.0 }
 0x2e4   : > { %v9765_v10 = vadd.f32 %v4820_v63, %v4799_v50  ;;  %v12235_v50 = vrot.slane %v9649_v48, 2  ;;  %v4859_v63 = vrot.slane %v4849_v43, 1  ;;  %v4889_v60 = vrot.slane %v4881_v22, 2  ;;  %v4882_v38 = vld [vmem:[#allocation2 + $0x68] sm:$0xfc]  ;;  %4598 = vst [vmem:[#allocation2 + $0x80] sm:$0xff] %v4490_v45 }
 0x2e5   : > { %v4792_v11 = vsel %vm4706_vm7, %v12234_v54, %v4791_v20  ;;  %v4862_v62 = vrot.slane %v4850_v2, 1  ;;  %v4892_v6 = vrot.slane %v4882_v38, 2  ;;  %v9787_v20 = vpop.f32.mrb[28].mxu0  ;;  %v12237_v22 = vrot.slane %v9757_v46, 2 }
 0x2e6   : > { %v4822_v16 = vsel %vm4737_vm9, %v12235_v50, %v4821_v49  ;;  %v9782_v1 = vadd.f32 %v9765_v10, %v9646_v59  ;;  %v4800_v53 = vadd.f32 %v4792_v11, %v9649_v48  ;;  %v12236_v49 = vrot.slane %v9757_v46, 1  ;;  %v9798_v48 = vpop.f32.mrb[27].mxu1  ;;  %v9800_v38 = vpop.f32.mrb[29].mxu0 }
 0x2e7   : > { %v4891_v45 = vsel %vm4737_vm9, %v4889_v60, %v12237_v22  ;;  %v11983_v59 = vrot.slane %v9760_v41, 1  ;;  %v11984_v54 = vrot.slane %v9760_v41, 2  ;;  %v3951_v2 = vmul.f32 0.01, %v9734_v30  ;;  %v9809_v60 = vpop.f32.mrb[30].mxu0 }
 0x2e8   : > { %v4861_v43 = vsel %vm4706_vm7, %v4859_v63, %v12236_v49  ;;  %v9802_v11 = vadd.f32 %v4822_v16, %v4800_v53  ;;  %v9807_v63 = vpop.f32.mrb[28].mxu1  ;;  %v3952_v53 = vmul.f32 0.01, %v9737_v58 }
 0x2e9   : > { %v4873_v50 = vadd.f32 %v4861_v43, %v9702_v37  ;;  %v4864_v49 = vsel %vm4706_vm7, %v4862_v62, %v11983_v59  ;;  %v4894_v22 = vsel %vm4737_vm9, %v4892_v6, %v11984_v54  ;;  %v3737_v37 = vadd.f32 %v9524_v27, %v3617_v34  ;;  %v9819_v16 = vpop.f32.mrb[29].mxu1  ;;  %v9821_v43 = vpop.f32.mrb[31].mxu0 }
 0x2ea   : > { %v9825_v39 = vadd.f32 %v9802_v11, %v9652_v8  ;;  %v4874_v59 = vadd.f32 %v4864_v49, %v9707_v26  ;;  %v4059_v6 = vsel %vm3843_vm6, %v9734_v30, %v3951_v2  ;;  %v6100_v34 = vpop.permute.xlu0 %6099  ;;  %v4060_v24 = vsel %vm3844_vm8, %v9737_v58, %v3952_v53  ;;  %v9854_v49 = vpop.f32.mrb[32].mxu0 }
 0x2eb   : > { %v9831_v62 = vadd.f32 %v4891_v45, %v4873_v50  ;;  %v4491_v54 = vmul.f32 %v9370_v17, %v4059_v6  ;;  %vm3845_vm10 = vcmp.ge.f32.partialorder %v3737_v37, 0.0  ;;  %v3953_v8 = vmul.f32 0.01, %v3737_v37  ;;  %v4851_v50 = vld [vmem:[#allocation2 + $0x80] sm:$0x1]  ;;  %v9852_v17 = vpop.f32.mrb[30].mxu1 }
 0x2ec   : > { %v9847_v26 = vadd.f32 %v4894_v22, %v4874_v59  ;;  %v4883_v30 = vld [vmem:[#allocation2 + $0x80] sm:$0x3]  ;;  %v9850_v2 = vmul.f32 %v9376_v36, %v4060_v24  ;;  %v4865_v58 = vrot.slane %v4851_v50, 1  ;;  %v9858_v6 = vpop.f32.mrb[31].mxu1  ;;  %v9860_v59 = vpop.f32.mrb[33].mxu0 }
 0x2ed   : > { %v6083_v57 = vadd.f32 %v9690_v44, %v9831_v62  ;;  %v9845_v45 = vadd.f32 %v9831_v62, %v9679_v61  ;;  %v4895_v53 = vrot.slane %v4883_v30, 2  ;;  %4599 = vst [vmem:[#allocation2 + $0x88] sm:$0xff] %v4491_v54  ;;  %v4061_v44 = vsel %vm3845_vm10, %v3737_v37, %v3953_v8  ;;  %v9872_v37 = vpop.permute.xlu1 %4471 }
 0x2ee   : > { %v3618_v61 = vmul.f32 %v9719_v52, %v9517_v40  ;;  %v6084_v24 = vadd.f32 %v9697_v18, %v9847_v26  ;;  %v9866_v7 = vadd.f32 %v9847_v26, %v9683_v29  ;;  %4600 = vst [vmem:[#allocation2 + $0x90] sm:$0xff] %v9850_v2  ;;  %v9870_v54 = vmul.f32 %v9376_v36, %v4061_v44  ;;  %v9893_v44 = vpop.f32.mrb[32].mxu1 }
 0x2ef   : > { %v6107_v22 = vmul.f32 %v6100_v34, %v6083_v57  ;;  %12238 = vst [vmem:[#allocation39_spill] sm:$0xff] %v9872_v37  ;;  %v12239_v52 = vrot.slane %v9757_v46, 1  ;;  %v12240_v57 = vrot.slane %v9757_v46, 2  ;;  %v3619_v29 = vmul.f32 %v9727_v55, %v9519_v19 }
 0x2f0   : > { %v3738_v18 = vadd.f32 %v9521_v4, %v3618_v61  ;;  %v6108_v36 = vmul.f32 %v6100_v34, %v6084_v24  ;;  %4601 = vst [vmem:[#allocation2 + $0x98] sm:$0xff] %v9870_v54  ;;  %v9895_v61 = vpop.f32.mrb[34].mxu0  ;;  %v7194_v34 = vadd.f32 %v9714_v28, %v9739_v35 }
 0x2f1   : > { %v4866_v8 = vsel %vm4706_vm7, %v12239_v52, %v4865_v58  ;;  %v4896_v50 = vsel %vm4737_vm9, %v12240_v57, %v4895_v53  ;;  %6111 = vst [vmem:[%s9884_s28] sm:$0xff] %v6107_v22  ;;  %v7192_v58 = vadd.f32 %v9686_v21, %v9712_v15  ;;  %v7193_v53 = vadd.f32 %v9693_v25, %v9721_v31  ;;  %v9902_v22 = vpop.f32.mrb[35].mxu0 }
 0x2f2   : > { %v4875_v30 = vadd.f32 %v4866_v8, %v9757_v46  ;;  %vm3846_vm11 = vcmp.ge.f32.partialorder %v3738_v18, 0.0  ;;  %v3954_v55 = vmul.f32 0.01, %v3738_v18  ;;  %v3739_v52 = vadd.f32 %v9524_v27, %v3619_v29  ;;  %v9900_v46 = vpop.f32.mrb[33].mxu1  ;;  %12241 = vst [vmem:[#allocation40_spill] sm:$0xff] %v9902_v22  ;;  %6112 = vst [vmem:[%s9884_s28 + $0x8] sm:$0xff] %v6108_v36 }
 0x2f3   : > { %v3620_v25 = vmul.f32 %v7192_v58, %v9517_v40  ;;  %v3621_v15 = vmul.f32 %v7193_v53, %v9519_v19  ;;  %v9911_v31 = vadd.f32 %v9723_v12, %v9751_v33  ;;  %v9914_v28 = vmul.f32 %v7194_v34, %v9517_v40  ;;  %v9926_v33 = vpop.f32.mrb[34].mxu1 }
 0x2f4   : > { %v9905_v21 = vadd.f32 %v4896_v50, %v4875_v30  ;;  %v4062_v24 = vsel %vm3846_vm11, %v3738_v18, %v3954_v55  ;;  %vm3847_vm12 = vcmp.ge.f32.partialorder %v3739_v52, 0.0  ;;  %v3955_v8 = vmul.f32 0.01, %v3739_v52  ;;  %v4852_v50 = vld [vmem:[#allocation2 + $0x88] sm:$0x1]  ;;  %v9928_v18 = vpop.f32.mrb[36].mxu0  ;;  %v6105_v30 = vpop.permute.xlu1 %6104 }
 0x2f5   : > { %v4884_v29 = vld [vmem:[#allocation2 + $0x88] sm:$0x3]  ;;  %v9923_v36 = vmul.f32 %v9380_v42, %v4062_v24  ;;  %v3740_v12 = vadd.f32 %v9521_v4, %v3620_v25  ;;  %12242 = vst [vmem:[#allocation41_spill] sm:$0xff] %v9928_v18  ;;  %v4867_v58 = vrot.slane %v4852_v50, 1  ;;  %v4925_v55 = vld [vmem:[#allocation2 + $0x90] sm:$0xfe]  ;;  %v3741_v34 = vadd.f32 %v9524_v27, %v3621_v15 }
 0x2f6   : > { %v6085_v35 = vadd.f32 %v9782_v1, %v9905_v21  ;;  %v9920_v57 = vadd.f32 %v9905_v21, %v9765_v10  ;;  %v4897_v53 = vrot.slane %v4884_v29, 2  ;;  %v4957_v1 = vld [vmem:[#allocation2 + $0x90] sm:$0xfc]  ;;  %v4063_v10 = vsel %vm3847_vm12, %v3739_v52, %v3955_v8  ;;  %v9933_v25 = vpop.f32.mrb[35].mxu1  ;;  %v9935_v13 = vpop.f32.mrb[37].mxu0 }
 0x2f7   : > { %v4935_v51 = vrot.slane %v4925_v55, 1  ;;  %v4965_v24 = vrot.slane %v4957_v1, 2  ;;  %12243 = vst [vmem:[#allocation42_spill] sm:$0xff] %v9933_v25  ;;  %12244 = vst [vmem:[#allocation44_spill] sm:$0xff] %v9935_v13  ;;  %v12245_v18 = vrot.slane %v9760_v41, 1  ;;  %v12246_v29 = vrot.slane %v9760_v41, 2 }
 0x2f8   : > { %v6109_v37 = vmul.f32 %v6105_v30, %v6085_v35  ;;  %v4926_v52 = vld [vmem:[#allocation2 + $0x98] sm:$0xfe]  ;;  %v11994_v15 = vrot.slane %v9923_v36, 2  ;;  %v9945_v35 = vmul.f32 %v9380_v42, %v4063_v10  ;;  %v12247_v13 = vrot.slane %v9923_v36, 1  ;;  %v9954_v25 = vpop.f32.mrb[38].mxu0 }
 0x2f9   : > { %v4868_v50 = vsel %vm4706_vm7, %v12245_v18, %v4867_v58  ;;  %v4898_v22 = vsel %vm4737_vm9, %v12246_v29, %v4897_v53  ;;  %v4958_v8 = vld [vmem:[#allocation2 + $0x98] sm:$0xfc]  ;;  %v4938_v1 = vrot.slane %v4926_v52, 1  ;;  %v9952_v58 = vpop.f32.mrb[36].mxu1  ;;  %vm3848_vm13 = vcmp.ge.f32.partialorder %v3740_v12, 0.0 }
 0x2fa   : > { %6113 = vst [vmem:[%s9884_s28 + $0x10] sm:$0xff] %v6109_v37  ;;  %v4876_v55 = vadd.f32 %v4868_v50, %v9760_v41  ;;  %v4968_v14 = vrot.slane %v4958_v8, 2  ;;  %v4937_v18 = vsel %vm4706_vm7, %v4935_v51, %v12247_v13  ;;  %v4967_v42 = vsel %vm4737_vm9, %v4965_v24, %v11994_v15  ;;  %v9962_v10 = vpop.f32.mrb[37].mxu1  ;;  %v9964_v50 = vpop.f32.mrb[39].mxu0 }
 0x2fb   : > { %v4949_v53 = vadd.f32 %v4937_v18, %v9850_v2  ;;  %v11993_v37 = vrot.slane %v9945_v35, 1  ;;  %v11992_v41 = vrot.slane %v9945_v35, 2  ;;  %v3956_v13 = vmul.f32 0.01, %v3740_v12 }
 0x2fc   : > { %v9966_v29 = vadd.f32 %v4898_v22, %v4876_v55  ;;  %vm3849_vm14 = vcmp.ge.f32.partialorder %v3741_v34, 0.0  ;;  %v3957_v52 = vmul.f32 0.01, %v3741_v34 }
 0x2fd   : > { %v9968_v51 = vadd.f32 %v4967_v42, %v4949_v53  ;;  %v4940_v2 = vsel %vm4706_vm7, %v4938_v1, %v11993_v37  ;;  %v4970_v24 = vsel %vm4737_vm9, %v4968_v14, %v11992_v41  ;;  %v4064_v18 = vsel %vm3848_vm13, %v3740_v12, %v3956_v13  ;;  %v9983_v53 = vpop.f32.mrb[38].mxu1  ;;  %v9985_v42 = vpop.f32.mrb[40].mxu0 }
 0x2fe   : > { %v6086_v8 = vadd.f32 %v9825_v39, %v9966_v29  ;;  %v9980_v22 = vadd.f32 %v9966_v29, %v9802_v11  ;;  %v4950_v55 = vadd.f32 %v4940_v2, %v9870_v54  ;;  %v4496_v39 = vmul.f32 %v9388_v9, %v4064_v18  ;;  %v9994_v11 = vpop.f32.mrb[39].mxu1  ;;  %v9996_v37 = vpop.f32.mrb[41].mxu0 }
 0x2ff   : > { %v6137_v1 = vadd.f32 %v9845_v45, %v9968_v51  ;;  %v9991_v14 = vadd.f32 %v9968_v51, %v9831_v62  ;;  %v4065_v41 = vsel %vm3849_vm14, %v3741_v34, %v3957_v52  ;;  %v6155_v54 = vpop.permute.xlu0 %6154  ;;  %v3742_v45 = vadd.f32 %v9521_v4, %v9914_v28 }
 0x300   : > { %v6110_v12 = vmul.f32 %v6105_v30, %v6086_v8  ;;  %v9998_v13 = vadd.f32 %v4970_v24, %v4950_v55  ;;  %v4497_v2 = vmul.f32 %v9388_v9, %v4065_v41  ;;  %4604 = vst [vmem:[#allocation2 + $0xb0] sm:$0xff] %v4496_v39  ;;  %v3623_v62 = vmul.f32 %v9911_v31, %v9519_v19  ;;  %v10016_v41 = vpop.f32.mrb[40].mxu1  ;;  %v10018_v31 = vpop.f32.mrb[42].mxu0 }
 0x301   : > { %v6162_v15 = vmul.f32 %v6155_v54, %v6137_v1  ;;  %v7196_v34 = vadd.f32 %v9741_v32, %v9785_v56  ;;  %v7197_v52 = vadd.f32 %v9753_v23, %v9798_v48  ;;  %vm3850_vm15 = vcmp.ge.f32.partialorder %v3742_v45, 0.0  ;;  %v10026_v48 = vpop.f32.mrb[41].mxu1 }
 0x302   : > { %6114 = vst [vmem:[%s9884_s28 + $0x18] sm:$0xff] %v6110_v12  ;;  %v6138_v30 = vadd.f32 %v9866_v7, %v9998_v13  ;;  %v10014_v9 = vadd.f32 %v9998_v13, %v9847_v26  ;;  %4605 = vst [vmem:[#allocation2 + $0xb8] sm:$0xff] %v4497_v2  ;;  %v3958_v28 = vmul.f32 0.01, %v3742_v45  ;;  %v3743_v56 = vadd.f32 %v9524_v27, %v3623_v62  ;;  %v10028_v26 = vpop.f32.mrb[43].mxu0 }
 0x303   : > { %7052 = vst [vmem:[%s9884_s28 + $0x20] sm:$0xff] %v6162_v15  ;;  %v3624_v32 = vmul.f32 %v7196_v34, %v9517_v40  ;;  %v3625_v23 = vmul.f32 %v7197_v52, %v9519_v19  ;;  %v7198_v7 = vadd.f32 %v9787_v20, %v9807_v63  ;;  %v7199_v55 = vadd.f32 %v9800_v38, %v9819_v16  ;;  %v10043_v38 = vpop.f32.mrb[42].mxu1  ;;  %v10045_v16 = vpop.f32.mrb[44].mxu0 }
 0x304   : > { %v6163_v24 = vmul.f32 %v6155_v54, %v6138_v30  ;;  %v4066_v8 = vsel %vm3850_vm15, %v3742_v45, %v3958_v28  ;;  %v7200_v15 = vadd.f32 %v9809_v60, %v9852_v17  ;;  %vm3851_vm0 = vcmp.ge.f32.partialorder %v3743_v56, 0.0  ;;  %12248 = vst [vmem:[#allocation43_spill] sm:$0xff] %v10045_v16  ;;  %v10052_v45 = vpop.f32.mrb[43].mxu1  ;;  %v10054_v62 = vpop.f32.mrb[45].mxu0 }
 0x305   : > { %v10035_v18 = vmul.f32 %v9390_v5, %v4066_v8  ;;  %v3959_v1 = vmul.f32 0.01, %v3743_v56  ;;  %v3744_v39 = vadd.f32 %v9521_v4, %v3624_v32  ;;  %v3745_v20 = vadd.f32 %v9524_v27, %v3625_v23  ;;  %12249 = vst [vmem:[#allocation46_spill] sm:$0xff] %v10054_v62 }
 0x306   : > { %7053 = vst [vmem:[%s9884_s28 + $0x28] sm:$0xff] %v6163_v24  ;;  %v3626_v63 = vmul.f32 %v7198_v7, %v9517_v40  ;;  %v3627_v54 = vmul.f32 %v7199_v55, %v9519_v19  ;;  %v3628_v12 = vmul.f32 %v7200_v15, %v9517_v40  ;;  %v10050_v2 = vadd.f32 %v9821_v43, %v9858_v6 }
 0x307   : > { %4606 = vst [vmem:[#allocation2 + $0xc0] sm:$0xff] %v10035_v18  ;;  %v4067_v60 = vsel %vm3851_vm0, %v3743_v56, %v3959_v1  ;;  %vm3852_vm1 = vcmp.ge.f32.partialorder %v3744_v39, 0.0  ;;  %v3960_v17 = vmul.f32 0.01, %v3744_v39  ;;  %v4927_v34 = vld [vmem:[#allocation2 + $0xb0] sm:$0x1] }
 0x308   : > { %v4959_v52 = vld [vmem:[#allocation2 + $0xb0] sm:$0x3]  ;;  %v10057_v30 = vmul.f32 %v9390_v5, %v4067_v60  ;;  %vm3853_vm2 = vcmp.ge.f32.partialorder %v3745_v20, 0.0  ;;  %v3746_v28 = vadd.f32 %v9521_v4, %v3626_v63  ;;  %v3747_v56 = vadd.f32 %v9524_v27, %v3627_v54  ;;  %v10068_v1 = vpop.f32.mrb[44].mxu1  ;;  %v10070_v63 = vpop.f32.mrb[46].mxu0 }
 0x309   : > { %v4941_v32 = vrot.slane %v4927_v34, 1  ;;  %v4971_v23 = vrot.slane %v4959_v52, 2  ;;  %v4928_v7 = vld [vmem:[#allocation2 + $0xb8] sm:$0x1]  ;;  %v4068_v43 = vsel %vm3852_vm1, %v3744_v39, %v3960_v17  ;;  %v10062_v6 = vadd.f32 %v9521_v4, %v3628_v12  ;;  %12250 = vst [vmem:[#allocation45_spill] sm:$0xff] %v10070_v63  ;;  %v10078_v34 = vpop.f32.mrb[45].mxu1 }
 0x30a   : > { %v4960_v24 = vld [vmem:[#allocation2 + $0xb8] sm:$0x3]  ;;  %v4943_v8 = vrot.slane %v4928_v7, 1  ;;  %4607 = vst [vmem:[#allocation2 + $0xc8] sm:$0xff] %v10057_v30  ;;  %v10066_v5 = vmul.f32 %v9396_v47, %v4068_v43  ;;  %v3961_v15 = vmul.f32 0.01, %v3745_v20 }
 0x30b   : > { %v4973_v55 = vrot.slane %v4960_v24, 2  ;;  %v12251_v54 = vrot.slane %v9923_v36, 1  ;;  %v12252_v39 = vrot.slane %v9923_v36, 2  ;;  %vm3854_vm3 = vcmp.ge.f32.partialorder %v3746_v28, 0.0  ;;  %12253 = vst [vmem:[#allocation47_spill] sm:$0xff] %v10078_v34  ;;  %v10080_v52 = vpop.f32.mrb[47].mxu0 }
 0x30c   : > { %v3962_v17 = vmul.f32 0.01, %v3746_v28  ;;  %12254 = vst [vmem:[#allocation48_spill] sm:$0xff] %v10080_v52  ;;  %v12255_v24 = vrot.slane %v9945_v35, 1  ;;  %v12256_v63 = vrot.slane %v9945_v35, 2  ;;  %v4069_v62 = vsel %vm3853_vm2, %v3745_v20, %v3961_v15 }
 0x30d   : > { %v4942_v60 = vsel %vm4706_vm7, %v12251_v54, %v4941_v32  ;;  %v4972_v12 = vsel %vm4737_vm9, %v12252_v39, %v4971_v23  ;;  %v11995_v54 = vrot.slane %v10066_v5, 1  ;;  %v10096_v16 = vmul.f32 %v9396_v47, %v4069_v62  ;;  %v10103_v39 = vpop.f32.mrb[48].mxu0 }
 0x30e   : > { %v4951_v7 = vadd.f32 %v4942_v60, %v9923_v36  ;;  %v4944_v43 = vsel %vm4706_vm7, %v12255_v24, %v4943_v8  ;;  %v4974_v32 = vsel %vm4737_vm9, %v12256_v63, %v4973_v55  ;;  %v4070_v34 = vsel %vm3854_vm3, %v3746_v28, %v3962_v17  ;;  %v5001_v36 = vld [vmem:[#allocation2 + $0xc0] sm:$0xfe]  ;;  %v10099_v55 = vpop.f32.mrb[46].mxu1  ;;  %12257 = vst [vmem:[#allocation49_spill] sm:$0xff] %v10103_v39  ;;  %v6160_v17 = vpop.permute.xlu1 %6159 }
 0x30f   : > { %v4952_v23 = vadd.f32 %v4944_v43, %v9945_v35  ;;  %v5033_v60 = vld [vmem:[#allocation2 + $0xc0] sm:$0xfc]  ;;  %v4502_v8 = vmul.f32 %v9398_v0, %v4070_v34  ;;  %vm3855_vm4 = vcmp.ge.f32.partialorder %v3747_v56, 0.0  ;;  %v5011_v35 = vrot.slane %v5001_v36, 1  ;;  %v10105_v20 = vpop.f32.mrb[47].mxu1 }
 0x310   : > { %v10093_v52 = vadd.f32 %v4972_v12, %v4951_v7  ;;  %v5041_v24 = vrot.slane %v5033_v60, 2  ;;  %v3963_v43 = vmul.f32 0.01, %v3747_v56  ;;  %v10115_v12 = vpop.f32.mrb[49].mxu0  ;;  %v10130_v62 = vpop.f32.mrb[48].mxu1  ;;  %vm3856_vm5 = vcmp.ge.f32.partialorder %v10062_v6, 0.0 }
 0x311   : > { %v10101_v63 = vadd.f32 %v4974_v32, %v4952_v23  ;;  %4610 = vst [vmem:[#allocation2 + $0xe0] sm:$0xff] %v4502_v8  ;;  %12258 = vst [vmem:[#allocation50_spill] sm:$0xff] %v10115_v12  ;;  %v5034_v32 = vld [vmem:[#allocation2 + $0xc8] sm:$0xfc]  ;;  %v12259_v23 = vrot.slane %v10066_v5, 2 }
 0x312   : > { %v6139_v28 = vadd.f32 %v9920_v57, %v10093_v52  ;;  %v10111_v47 = vadd.f32 %v10093_v52, %v9905_v21  ;;  %v5002_v57 = vld [vmem:[#allocation2 + $0xc8] sm:$0xfe]  ;;  %v5013_v21 = vsel %vm4706_vm7, %v5011_v35, %v11995_v54  ;;  %v5044_v15 = vrot.slane %v5034_v32, 2  ;;  %v10137_v54 = vpop.f32.mrb[49].mxu1 }
 0x313   : > { %v6140_v34 = vadd.f32 %v9980_v22, %v10101_v63  ;;  %v10121_v7 = vadd.f32 %v10101_v63, %v9966_v29  ;;  %v5043_v36 = vsel %vm4737_vm9, %v5041_v24, %v12259_v23  ;;  %v5014_v8 = vrot.slane %v5002_v57, 1  ;;  %v10132_v29 = vpop.f32.mrb[50].mxu0 }
 0x314   : > { %v6164_v60 = vmul.f32 %v6160_v17, %v6139_v28  ;;  %v5025_v22 = vadd.f32 %v5013_v21, %v10035_v18  ;;  %v4071_v39 = vsel %vm3855_vm4, %v3747_v56, %v3963_v43  ;;  %v3964_v35 = vmul.f32 0.01, %v10062_v6  ;;  %v10139_v24 = vpop.f32.mrb[51].mxu0  ;;  %v6211_v43 = vpop.permute.xlu0 %6210 }
 0x315   : > { %v6165_v12 = vmul.f32 %v6160_v17, %v6140_v34  ;;  %v12260_v18 = vrot.slane %v10096_v16, 1  ;;  %v12261_v32 = vrot.slane %v10096_v16, 2  ;;  %v4503_v56 = vmul.f32 %v9398_v0, %v4071_v39 }
 0x316   : > { %7054 = vst [vmem:[%s9884_s28 + $0x30] sm:$0xff] %v6164_v60  ;;  %v10142_v28 = vadd.f32 %v5043_v36, %v5025_v22  ;;  %v4072_v21 = vsel %vm3856_vm5, %v10062_v6, %v3964_v35  ;;  %v3629_v23 = vmul.f32 %v10050_v2, %v9519_v19  ;;  %v7202_v36 = vadd.f32 %v9854_v49, %v9893_v44  ;;  %v10169_v6 = vpop.f32.mrb[50].mxu1  ;;  %v10171_v2 = vpop.f32.mrb[52].mxu0 }
 0x317   : > { %v5016_v57 = vsel %vm4706_vm7, %v5014_v8, %v12260_v18  ;;  %v5046_v17 = vsel %vm4737_vm9, %v5044_v15, %v12261_v32  ;;  %7055 = vst [vmem:[%s9884_s28 + $0x38] sm:$0xff] %v6165_v12  ;;  %4611 = vst [vmem:[#allocation2 + $0xe8] sm:$0xff] %v4503_v56  ;;  %v10165_v0 = vmul.f32 %v9408_v3, %v4072_v21  ;;  %v10179_v8 = vpop.f32.mrb[51].mxu1  ;;  %v10181_v22 = vpop.f32.mrb[53].mxu0  ;;  %v12264_v56 = vrot.slane %v10066_v5, 2 }
 0x318   : > { %v5026_v34 = vadd.f32 %v5016_v57, %v10057_v30  ;;  %v6193_v60 = vadd.f32 %v9991_v14, %v10142_v28  ;;  %v10162_v15 = vadd.f32 %v10142_v28, %v9968_v51  ;;  %v7203_v30 = vadd.f32 %v9860_v59, %v9900_v46  ;;  %v5003_v49 = vld [vmem:[#allocation2 + $0xe0] sm:$0x1]  ;;  %12262 = vst [vmem:[#allocation52_spill] sm:$0xff] %v10181_v22 }
 0x319   : > { %v5035_v44 = vld [vmem:[#allocation2 + $0xe0] sm:$0x3]  ;;  %v3749_v14 = vadd.f32 %v9524_v27, %v3629_v23  ;;  %v3630_v51 = vmul.f32 %v7202_v36, %v9517_v40  ;;  %v7204_v12 = vadd.f32 %v9895_v61, %v9926_v33  ;;  %v5017_v46 = vrot.slane %v5003_v49, 1  ;;  %4612 = vst [vmem:[#allocation2 + $0xf0] sm:$0xff] %v10165_v0  ;;  %v10200_v23 = vpop.f32.mrb[52].mxu1 }
 0x31a   : > { %v10173_v39 = vadd.f32 %v5046_v17, %v5026_v34  ;;  %v6218_v59 = vmul.f32 %v6211_v43, %v6193_v60  ;;  %v5047_v35 = vrot.slane %v5035_v44, 2  ;;  %v3631_v18 = vmul.f32 %v7203_v30, %v9519_v19  ;;  %v10206_v44 = vpop.f32.mrb[53].mxu1 }
 0x31b   : > { %vm3857_vm6 = vcmp.ge.f32.partialorder %v3749_v14, 0.0  ;;  %v3965_v61 = vmul.f32 0.01, %v3749_v14  ;;  %v12263_v33 = vrot.slane %v10066_v5, 1  ;;  %v3750_v21 = vadd.f32 %v9521_v4, %v3630_v51  ;;  %12266 = vst [vmem:[#allocation53_spill] sm:$0xff] %v10206_v44 }
 0x31c   : > { %v6194_v57 = vadd.f32 %v10014_v9, %v10173_v39  ;;  %v10189_v32 = vadd.f32 %v10173_v39, %v9998_v13  ;;  %7058 = vst [vmem:[%s9884_s28 + $0x40] sm:$0xff] %v6218_v59  ;;  %v5048_v34 = vsel %vm4737_vm9, %v12264_v56, %v5047_v35  ;;  %v3751_v9 = vadd.f32 %v9524_v27, %v3631_v18  ;;  %v10202_v13 = vpop.f32.mrb[54].mxu0  ;;  %v12270_v56 = vld [vmem:[#allocation41_spill] sm:$0xff] }
 0x31d   : > { %v5018_v17 = vsel %vm4706_vm7, %v12263_v33, %v5017_v46  ;;  %12265 = vst [vmem:[#allocation51_spill] sm:$0xff] %v10202_v13  ;;  %v4073_v30 = vsel %vm3857_vm6, %v3749_v14, %v3965_v61  ;;  %v3632_v49 = vmul.f32 %v7204_v12, %v9517_v40  ;;  %v10208_v59 = vpop.f32.mrb[55].mxu0  ;;  %vm3858_vm8 = vcmp.ge.f32.partialorder %v3750_v21, 0.0  ;;  %v12268_v14 = vld [vmem:[#allocation42_spill] sm:$0xff]  ;;  %v12269_v12 = vld [vmem:[#allocation40_spill] sm:$0xff] }
 0x31e   : > { %v6219_v36 = vmul.f32 %v6211_v43, %v6194_v57  ;;  %v5027_v60 = vadd.f32 %v5018_v17, %v10066_v5  ;;  %12267 = vst [vmem:[#allocation54_spill] sm:$0xff] %v10208_v59  ;;  %v10211_v46 = vmul.f32 %v9408_v3, %v4073_v30  ;;  %v3966_v51 = vmul.f32 0.01, %v3750_v21  ;;  %v5004_v18 = vld [vmem:[#allocation2 + $0xe8] sm:$0x1]  ;;  %v10222_v59 = vpop.f32.mrb[54].mxu1 }
 0x31f   : > { %vm3859_vm10 = vcmp.ge.f32.partialorder %v3751_v9, 0.0  ;;  %v5036_v43 = vld [vmem:[#allocation2 + $0xe8] sm:$0x3]  ;;  %v3967_v57 = vmul.f32 0.01, %v3751_v9  ;;  %v3752_v5 = vadd.f32 %v9521_v4, %v3632_v49  ;;  %v7205_v61 = vadd.f32 %v12269_v12, %v12268_v14  ;;  %12271 = vst [vmem:[#allocation55_spill] sm:$0xff] %v10222_v59  ;;  %v6216_v12 = vpop.permute.xlu1 %6215 }
 0x320   : > { %7059 = vst [vmem:[%s9884_s28 + $0x48] sm:$0xff] %v6219_v36  ;;  %v10214_v35 = vadd.f32 %v5048_v34, %v5027_v60  ;;  %v5019_v33 = vrot.slane %v5004_v18, 1  ;;  %v5049_v17 = vrot.slane %v5036_v43, 2  ;;  %4613 = vst [vmem:[#allocation2 + $0xf8] sm:$0xff] %v10211_v46  ;;  %v4074_v3 = vsel %vm3858_vm8, %v3750_v21, %v3966_v51  ;;  %v10224_v34 = vpop.f32.mrb[56].mxu0  ;;  %v12273_v43 = vld [vmem:[#allocation79_spill] sm:$0xff] }
 0x321   : > { %v7206_v30 = vadd.f32 %v12270_v56, %v9952_v58  ;;  %12272 = vst [vmem:[#allocation56_spill] sm:$0xff] %v10224_v34  ;;  %v5077_v49 = vld [vmem:[#allocation2 + $0xf0] sm:$0xfe]  ;;  %v10233_v14 = vmul.f32 %v12273_v43, %v4074_v3  ;;  %v4075_v21 = vsel %vm3859_vm10, %v3751_v9, %v3967_v57  ;;  %v10236_v51 = vpop.f32.mrb[55].mxu1  ;;  %v10238_v58 = vpop.f32.mrb[57].mxu0  ;;  %v12276_v56 = vrot.slane %v10096_v16, 1 }
 0x322   : > { %v6195_v36 = vadd.f32 %v10111_v47, %v10214_v35  ;;  %v10230_v60 = vadd.f32 %v10214_v35, %v10093_v52  ;;  %v5109_v18 = vld [vmem:[#allocation2 + $0xf0] sm:$0xfc]  ;;  %12274 = vst [vmem:[#allocation57_spill] sm:$0xff] %v10236_v51  ;;  %12275 = vst [vmem:[#allocation58_spill] sm:$0xff] %v10238_v58  ;;  %v12277_v52 = vrot.slane %v10096_v16, 2  ;;  %v5087_v13 = vrot.slane %v5077_v49, 1 }
 0x323   : > { %v5020_v47 = vsel %vm4706_vm7, %v12276_v56, %v5019_v33  ;;  %v5117_v59 = vrot.slane %v5109_v18, 2  ;;  %v11997_v9 = vrot.slane %v10233_v14, 1  ;;  %v11996_v57 = vrot.slane %v10233_v14, 2  ;;  %v10253_v56 = vpop.f32.mrb[56].mxu1  ;;  %v10255_v44 = vpop.f32.mrb[58].mxu0 }
 0x324   : > { %v5050_v34 = vsel %vm4737_vm9, %v12277_v52, %v5049_v17  ;;  %v6220_v3 = vmul.f32 %v6216_v12, %v6195_v36  ;;  %v5028_v22 = vadd.f32 %v5020_v47, %v10096_v16  ;;  %v10250_v58 = vmul.f32 %v12273_v43, %v4075_v21  ;;  %v10267_v18 = vpop.f32.mrb[57].mxu1  ;;  %v12279_v52 = vld [vmem:[#allocation82_spill] sm:$0xff]  ;;  %v12281_v21 = vld [vmem:[#allocation44_spill] sm:$0xff] }
 0x325   : > { %vm3860_vm11 = vcmp.ge.f32.partialorder %v3752_v5, 0.0  ;;  %v3968_v51 = vmul.f32 0.01, %v3752_v5  ;;  %v3633_v33 = vmul.f32 %v7205_v61, %v9519_v19  ;;  %v5089_v16 = vsel %vm4706_vm7, %v5087_v13, %v11997_v9  ;;  %v10269_v61 = vpop.f32.mrb[59].mxu0 }
 0x326   : > { %7060 = vst [vmem:[%s9884_s28 + $0x50] sm:$0xff] %v6220_v3  ;;  %v10258_v17 = vadd.f32 %v5050_v34, %v5028_v22  ;;  %v5119_v36 = vsel %vm4737_vm9, %v5117_v59, %v11996_v57  ;;  %v3634_v49 = vmul.f32 %v7206_v30, %v9517_v40  ;;  %12278 = vst [vmem:[#allocation60_spill] sm:$0xff] %v10269_v61 }
 0x327   : > { %v5101_v43 = vadd.f32 %v5089_v16, %v10165_v0  ;;  %v4076_v34 = vsel %vm3860_vm11, %v3752_v5, %v3968_v51  ;;  %v5078_v59 = vld [vmem:[#allocation2 + $0xf8] sm:$0xfe]  ;;  %v3753_v57 = vadd.f32 %v9524_v27, %v3633_v33  ;;  %v10285_v51 = vpop.f32.mrb[58].mxu1 }
 0x328   : > { %v6196_v13 = vadd.f32 %v10121_v7, %v10258_v17  ;;  %v10278_v47 = vadd.f32 %v10258_v17, %v10101_v63  ;;  %v5110_v30 = vld [vmem:[#allocation2 + $0xf8] sm:$0xfc]  ;;  %v4508_v3 = vmul.f32 %v12279_v52, %v4076_v34  ;;  %v5090_v9 = vrot.slane %v5078_v59, 1  ;;  %v10287_v7 = vpop.f32.mrb[60].mxu0  ;;  %v10291_v61 = vpop.f32.mrb[59].mxu1 }
 0x329   : > { %v5120_v0 = vrot.slane %v5110_v30, 2  ;;  %v10282_v16 = vadd.f32 %v5119_v36, %v5101_v43  ;;  %v3754_v5 = vadd.f32 %v9521_v4, %v3634_v49  ;;  %12280 = vst [vmem:[#allocation59_spill] sm:$0xff] %v10287_v7  ;;  %vm3861_vm12 = vcmp.ge.f32.partialorder %v3753_v57, 0.0  ;;  %v10293_v33 = vpop.f32.mrb[61].mxu0 }
 0x32a   : > { %v6221_v22 = vmul.f32 %v6216_v12, %v6196_v13  ;;  %4616 = vst [vmem:[#allocation2 + $0x110] sm:$0xff] %v4508_v3  ;;  %v3969_v63 = vmul.f32 0.01, %v3753_v57  ;;  %v7207_v34 = vadd.f32 %v12281_v21, %v9962_v10  ;;  %12282 = vst [vmem:[#allocation61_spill] sm:$0xff] %v10293_v33  ;;  %v12283_v43 = vrot.slane %v10250_v58, 1  ;;  %v6267_v10 = vpop.permute.xlu0 %6266  ;;  %v10315_v7 = vpop.f32.mrb[62].mxu0 }
 0x32b   : > { %v6249_v36 = vadd.f32 %v10162_v15, %v10282_v16  ;;  %v10299_v49 = vadd.f32 %v10282_v16, %v10142_v28  ;;  %v12284_v13 = vrot.slane %v10250_v58, 2  ;;  %vm3862_vm13 = vcmp.ge.f32.partialorder %v3754_v5, 0.0 }
 0x32c   : > { %v5092_v12 = vsel %vm4706_vm7, %v5090_v9, %v12283_v43  ;;  %7061 = vst [vmem:[%s9884_s28 + $0x58] sm:$0xff] %v6221_v22  ;;  %v4077_v30 = vsel %vm3861_vm12, %v3753_v57, %v3969_v63  ;;  %v3970_v15 = vmul.f32 0.01, %v3754_v5  ;;  %v3635_v33 = vmul.f32 %v7207_v34, %v9519_v19  ;;  %v10313_v43 = vpop.f32.mrb[60].mxu1 }
 0x32d   : > { %v5122_v59 = vsel %vm4737_vm9, %v5120_v0, %v12284_v13  ;;  %v5102_v21 = vadd.f32 %v5092_v12, %v10211_v46  ;;  %v6274_v3 = vmul.f32 %v6267_v10, %v6249_v36  ;;  %v4509_v28 = vmul.f32 %v12279_v52, %v4077_v30  ;;  %v10323_v63 = vpop.f32.mrb[61].mxu1  ;;  %v10325_v52 = vpop.f32.mrb[63].mxu0 }
 0x32e   : > { %v7208_v9 = vadd.f32 %v9954_v25, %v9983_v53  ;;  %v4078_v22 = vsel %vm3862_vm13, %v3754_v5, %v3970_v15  ;;  %v7209_v46 = vadd.f32 %v9964_v50, %v9994_v11  ;;  %v7210_v57 = vadd.f32 %v9985_v42, %v10016_v41  ;;  %v12285_v25 = vld [vmem:[#allocation84_spill] sm:$0xff]  ;;  %v10350_v15 = vpop.f32.mrb[64].mxu0 }
 0x32f   : > { %v10317_v0 = vadd.f32 %v5122_v59, %v5102_v21  ;;  %7064 = vst [vmem:[%s9884_s28 + $0x60] sm:$0xff] %v6274_v3  ;;  %4617 = vst [vmem:[#allocation2 + $0x118] sm:$0xff] %v4509_v28  ;;  %v10329_v53 = vmul.f32 %v12285_v25, %v4078_v22  ;;  %v3755_v34 = vadd.f32 %v9524_v27, %v3635_v33 }
 0x330   : > { %v3636_v36 = vmul.f32 %v7208_v9, %v9517_v40  ;;  %v7211_v5 = vadd.f32 %v9996_v37, %v10026_v48  ;;  %v3637_v11 = vmul.f32 %v7209_v46, %v9519_v19  ;;  %v3638_v41 = vmul.f32 %v7210_v57, %v9517_v40  ;;  %v10356_v46 = vpop.f32.mrb[65].mxu0 }
 0x331   : > { %v6250_v50 = vadd.f32 %v10189_v32, %v10317_v0  ;;  %v10339_v42 = vadd.f32 %v10317_v0, %v10173_v39  ;;  %v5079_v12 = vld [vmem:[#allocation2 + $0x110] sm:$0x1]  ;;  %4618 = vst [vmem:[#allocation2 + $0x120] sm:$0xff] %v10329_v53  ;;  %vm3863_vm14 = vcmp.ge.f32.partialorder %v3755_v34, 0.0  ;;  %v7212_v48 = vadd.f32 %v10018_v31, %v10043_v38  ;;  %v10348_v32 = vpop.f32.mrb[62].mxu1  ;;  %12286 = vst [vmem:[#allocation62_spill] sm:$0xff] %v10356_v46 }
 0x332   : > { %v5111_v13 = vld [vmem:[#allocation2 + $0x110] sm:$0x3]  ;;  %v3756_v33 = vadd.f32 %v9521_v4, %v3636_v36  ;;  %v3639_v37 = vmul.f32 %v7211_v5, %v9519_v19  ;;  %v5093_v59 = vrot.slane %v5079_v12, 1  ;;  %v3971_v30 = vmul.f32 0.01, %v3755_v34  ;;  %v10352_v3 = vpop.f32.mrb[63].mxu1 }
 0x333   : > { %v6275_v39 = vmul.f32 %v6267_v10, %v6250_v50  ;;  %v5123_v21 = vrot.slane %v5111_v13, 2  ;;  %v3757_v9 = vadd.f32 %v9524_v27, %v3637_v11  ;;  %v3758_v22 = vadd.f32 %v9521_v4, %v3638_v41  ;;  %v10371_v12 = vpop.f32.mrb[64].mxu1  ;;  %v10373_v13 = vpop.f32.mrb[66].mxu0 }
 0x334   : > { %vm3864_vm15 = vcmp.ge.f32.partialorder %v3756_v33, 0.0  ;;  %v3972_v28 = vmul.f32 0.01, %v3756_v33  ;;  %v12287_v31 = vrot.slane %v10233_v14, 1  ;;  %v12288_v10 = vrot.slane %v10233_v14, 2  ;;  %12289 = vst [vmem:[#allocation64_spill] sm:$0xff] %v10373_v13 }
 0x335   : > { %7065 = vst [vmem:[%s9884_s28 + $0x68] sm:$0xff] %v6275_v39  ;;  %v4079_v36 = vsel %vm3863_vm14, %v3755_v34, %v3971_v30  ;;  %v3759_v5 = vadd.f32 %v9524_v27, %v3639_v37  ;;  %vm3865_vm0 = vcmp.ge.f32.partialorder %v3757_v9, 0.0  ;;  %v3640_v34 = vmul.f32 %v7212_v48, %v9517_v40  ;;  %v10384_v30 = vpop.f32.mrb[65].mxu1 }
 0x336   : > { %v5094_v38 = vsel %vm4706_vm7, %v12287_v31, %v5093_v59  ;;  %v5124_v57 = vsel %vm4737_vm9, %v12288_v10, %v5123_v21  ;;  %v10369_v11 = vmul.f32 %v12285_v25, %v4079_v36  ;;  %v4080_v41 = vsel %vm3864_vm15, %v3756_v33, %v3972_v28  ;;  %v5080_v39 = vld [vmem:[#allocation2 + $0x118] sm:$0x1]  ;;  %v12290_v31 = vld [vmem:[#allocation86_spill] sm:$0xff]  ;;  %12291 = vst [vmem:[#allocation63_spill] sm:$0xff] %v10384_v30  ;;  %v10386_v28 = vpop.f32.mrb[67].mxu0  ;;  %v10404_v48 = vpop.f32.mrb[66].mxu1 }
 0x337   : > { %v5103_v50 = vadd.f32 %v5094_v38, %v10233_v14  ;;  %v5112_v59 = vld [vmem:[#allocation2 + $0x118] sm:$0x3]  ;;  %v10376_v46 = vmul.f32 %v12290_v31, %v4080_v41  ;;  %v3973_v21 = vmul.f32 0.01, %v3757_v9  ;;  %v7213_v14 = vadd.f32 %v10028_v26, %v10052_v45  ;;  %12292 = vst [vmem:[#allocation66_spill] sm:$0xff] %v10386_v28  ;;  %v6272_v38 = vpop.permute.xlu1 %6271  ;;  %12295 = vst [vmem:[#allocation65_spill] sm:$0xff] %v10404_v48 }
 0x338   : > { %v5095_v25 = vrot.slane %v5080_v39, 1  ;;  %v5125_v33 = vrot.slane %v5112_v59, 2  ;;  %4619 = vst [vmem:[#allocation2 + $0x128] sm:$0xff] %v10369_v11  ;;  %vm3866_vm1 = vcmp.ge.f32.partialorder %v3758_v22, 0.0  ;;  %v5153_v10 = vld [vmem:[#allocation2 + $0x120] sm:$0xfe]  ;;  %v3760_v45 = vadd.f32 %v9521_v4, %v3640_v34 }
 0x339   : > { %v10381_v37 = vadd.f32 %v5124_v57, %v5103_v50  ;;  %v5185_v36 = vld [vmem:[#allocation2 + $0x120] sm:$0xfc]  ;;  %v4081_v26 = vsel %vm3865_vm0, %v3757_v9, %v3973_v21  ;;  %v12293_v39 = vrot.slane %v10250_v58, 1  ;;  %v12294_v28 = vrot.slane %v10250_v58, 2  ;;  %v10406_v9 = vpop.f32.mrb[68].mxu0  ;;  %v10412_v13 = vpop.f32.mrb[67].mxu1 }
 0x33a   : > { %12296 = vst [vmem:[#allocation67_spill] sm:$0xff] %v10406_v9  ;;  %v5193_v34 = vrot.slane %v5185_v36, 2  ;;  %v10414_v30 = vpop.f32.mrb[69].mxu0  ;;  %vm3867_vm2 = vcmp.ge.f32.partialorder %v3759_v5, 0.0  ;;  %v12297_v48 = vrot.slane %v10376_v46, 1  ;;  %vm3868_vm3 = vcmp.ge.f32.partialorder %v3760_v45, 0.0 }
 0x33b   : > { %v6251_v57 = vadd.f32 %v10230_v60, %v10381_v37  ;;  %v10396_v50 = vadd.f32 %v10381_v37, %v10214_v35  ;;  %v5096_v59 = vsel %vm4706_vm7, %v12293_v39, %v5095_v25  ;;  %v5126_v41 = vsel %vm4737_vm9, %v12294_v28, %v5125_v33 }
 0x33c   : > { %v5104_v21 = vadd.f32 %v5096_v59, %v10250_v58  ;;  %v5163_v60 = vrot.slane %v5153_v10, 1  ;;  %v10410_v35 = vmul.f32 %v12290_v31, %v4081_v26  ;;  %v3974_v39 = vmul.f32 0.01, %v3758_v22 }
 0x33d   : > { %v6276_v25 = vmul.f32 %v6272_v38, %v6251_v57  ;;  %v3975_v33 = vmul.f32 0.01, %v3759_v5  ;;  %v12298_v58 = vrot.slane %v10376_v46, 2 }
 0x33e   : > { %v10416_v28 = vadd.f32 %v5126_v41, %v5104_v21  ;;  %v5165_v9 = vsel %vm4706_vm7, %v5163_v60, %v12297_v48  ;;  %v4082_v57 = vsel %vm3866_vm1, %v3758_v22, %v3974_v39  ;;  %v10429_v41 = vpop.f32.mrb[68].mxu1  ;;  %v10431_v21 = vpop.f32.mrb[70].mxu0 }
 0x33f   : > { %v5195_v10 = vsel %vm4737_vm9, %v5193_v34, %v12298_v58  ;;  %7066 = vst [vmem:[%s9884_s28 + $0x70] sm:$0xff] %v6276_v25  ;;  %v5177_v36 = vadd.f32 %v5165_v9, %v10329_v53  ;;  %v4083_v59 = vsel %vm3867_vm2, %v3759_v5, %v3975_v33  ;;  %12299 = vst [vmem:[#allocation68_spill] sm:$0xff] %v10431_v21  ;;  %v5154_v34 = vld [vmem:[#allocation2 + $0x128] sm:$0xfe]  ;;  %v12300_v58 = vld [vmem:[#allocation88_spill] sm:$0xff]  ;;  %v10441_v26 = vpop.f32.mrb[69].mxu1 }
 0x340   : > { %v6252_v48 = vadd.f32 %v10278_v47, %v10416_v28  ;;  %v10437_v60 = vadd.f32 %v10416_v28, %v10258_v17  ;;  %v5186_v25 = vld [vmem:[#allocation2 + $0x128] sm:$0xfc]  ;;  %v4514_v53 = vmul.f32 %v12300_v58, %v4082_v57  ;;  %v4515_v9 = vmul.f32 %v12300_v58, %v4083_v59  ;;  %v10443_v22 = vpop.f32.mrb[71].mxu0  ;;  %v6323_v47 = vpop.permute.xlu0 %6322  ;;  %v12302_v57 = vld [vmem:[#allocation43_spill] sm:$0xff] }
 0x341   : > { %12301 = vst [vmem:[#allocation69_spill] sm:$0xff] %v10443_v22  ;;  %v5166_v5 = vrot.slane %v5154_v34, 1  ;;  %v5196_v39 = vrot.slane %v5186_v25, 2  ;;  %v10445_v33 = vadd.f32 %v5195_v10, %v5177_v36  ;;  %v3976_v17 = vmul.f32 0.01, %v3760_v45  ;;  %v10462_v25 = vpop.f32.mrb[70].mxu1 }
 0x342   : > { %v6277_v31 = vmul.f32 %v6272_v38, %v6252_v48  ;;  %4622 = vst [vmem:[#allocation2 + $0x140] sm:$0xff] %v4514_v53  ;;  %4623 = vst [vmem:[#allocation2 + $0x148] sm:$0xff] %v4515_v9  ;;  %v3641_v21 = vmul.f32 %v7213_v14, %v9519_v19  ;;  %v7214_v59 = vadd.f32 %v12302_v57, %v10068_v1  ;;  %v12303_v10 = vrot.slane %v10410_v35, 1  ;;  %v10464_v14 = vpop.f32.mrb[72].mxu0  ;;  %v10471_v9 = vpop.f32.mrb[71].mxu1 }
 0x343   : > { %v6305_v58 = vadd.f32 %v10299_v49, %v10445_v33  ;;  %v10454_v34 = vadd.f32 %v10445_v33, %v10282_v16  ;;  %v12304_v38 = vrot.slane %v10410_v35, 2  ;;  %12305 = vst [vmem:[#allocation70_spill] sm:$0xff] %v10462_v25  ;;  %12306 = vst [vmem:[#allocation71_spill] sm:$0xff] %v10464_v14  ;;  %v4084_v49 = vsel %vm3868_vm3, %v3760_v45, %v3976_v17  ;;  %v12311_v14 = vld [vmem:[#allocation46_spill] sm:$0xff] }
 0x344   : > { %v5168_v36 = vsel %vm4706_vm7, %v5166_v5, %v12303_v10  ;;  %7067 = vst [vmem:[%s9884_s28 + $0x78] sm:$0xff] %v6277_v31  ;;  %v3761_v16 = vadd.f32 %v9524_v27, %v3641_v21  ;;  %v3642_v53 = vmul.f32 %v7214_v59, %v9517_v40  ;;  %12307 = vst [vmem:[#allocation72_spill] sm:$0xff] %v10471_v9  ;;  %v10473_v5 = vpop.f32.mrb[73].mxu0  ;;  %v12312_v31 = vld [vmem:[#allocation45_spill] sm:$0xff] }
 0x345   : > { %v5198_v48 = vsel %vm4737_vm9, %v5196_v39, %v12304_v38  ;;  %v5178_v1 = vadd.f32 %v5168_v36, %v10369_v11  ;;  %12308 = vst [vmem:[#allocation73_spill] sm:$0xff] %v10473_v5  ;;  %v6330_v57 = vmul.f32 %v6323_v47, %v6305_v58  ;;  %v12309_v39 = vld [vmem:[#allocation89_spill] sm:$0xff]  ;;  %v12310_v38 = vld [vmem:[#allocation47_spill] sm:$0xff]  ;;  %v7216_v11 = vadd.f32 %v12312_v31, %v10099_v55  ;;  %v12313_v58 = vld [vmem:[#allocation48_spill] sm:$0xff]  ;;  %v10495_v55 = vpop.f32.mrb[72].mxu1 }
 0x346   : > { %v10476_v10 = vmul.f32 %v12309_v39, %v4084_v49  ;;  %v7215_v22 = vadd.f32 %v12311_v14, %v12310_v38  ;;  %vm3869_vm4 = vcmp.ge.f32.partialorder %v3761_v16, 0.0  ;;  %v3977_v45 = vmul.f32 0.01, %v3761_v16  ;;  %v12314_v14 = vld [vmem:[#allocation49_spill] sm:$0xff]  ;;  %12315 = vst [vmem:[#allocation74_spill] sm:$0xff] %v10495_v55 }
 0x347   : > { %v10482_v36 = vadd.f32 %v5198_v48, %v5178_v1  ;;  %v3762_v21 = vadd.f32 %v9521_v4, %v3642_v53  ;;  %7070 = vst [vmem:[%s9884_s28 + $0x80] sm:$0xff] %v6330_v57  ;;  %v3644_v59 = vmul.f32 %v7216_v11, %v9517_v40  ;;  %v7217_v49 = vadd.f32 %v12313_v58, %v10105_v20  ;;  %v10497_v48 = vpop.f32.mrb[74].mxu0  ;;  %v10505_v57 = vpop.f32.mrb[73].mxu1 }
 0x348   : > { %4624 = vst [vmem:[#allocation2 + $0x150] sm:$0xff] %v10476_v10  ;;  %v3643_v17 = vmul.f32 %v7215_v22, %v9519_v19  ;;  %v10493_v38 = vadd.f32 %v12314_v14, %v10130_v62  ;;  %12316 = vst [vmem:[#allocation76_spill] sm:$0xff] %v10497_v48  ;;  %v4085_v22 = vsel %vm3869_vm4, %v3761_v16, %v3977_v45  ;;  %v10507_v20 = vpop.f32.mrb[75].mxu0 }
 0x349   : > { %v6306_v1 = vadd.f32 %v10339_v42, %v10482_v36  ;;  %v10503_v53 = vadd.f32 %v10482_v36, %v10317_v0  ;;  %vm3870_vm5 = vcmp.ge.f32.partialorder %v3762_v21, 0.0  ;;  %12317 = vst [vmem:[#allocation75_spill] sm:$0xff] %v10505_v57  ;;  %12318 = vst [vmem:[#allocation78_spill] sm:$0xff] %v10507_v20  ;;  %v5155_v31 = vld [vmem:[#allocation2 + $0x140] sm:$0x1]  ;;  %v10510_v58 = vmul.f32 %v12309_v39, %v4085_v22  ;;  %v10526_v22 = vpop.f32.mrb[74].mxu1 }
 0x34a   : > { %v5187_v62 = vld [vmem:[#allocation2 + $0x140] sm:$0x3]  ;;  %v5156_v11 = vld [vmem:[#allocation2 + $0x148] sm:$0x1]  ;;  %v3763_v14 = vadd.f32 %v9524_v27, %v3643_v17  ;;  %v3764_v42 = vadd.f32 %v9521_v4, %v3644_v59  ;;  %v3645_v0 = vmul.f32 %v7217_v49, %v9519_v19  ;;  %v5169_v16 = vrot.slane %v5155_v31, 1  ;;  %12322 = vst [vmem:[#allocation77_spill] sm:$0xff] %v10526_v22 }
 0x34b   : > { %v6331_v48 = vmul.f32 %v6323_v47, %v6306_v1  ;;  %v5199_v45 = vrot.slane %v5187_v62, 2  ;;  %v5171_v5 = vrot.slane %v5156_v11, 1  ;;  %v5188_v57 = vld [vmem:[#allocation2 + $0x148] sm:$0x3]  ;;  %4625 = vst [vmem:[#allocation2 + $0x158] sm:$0xff] %v10510_v58  ;;  %v12319_v39 = vrot.slane %v10376_v46, 1 }
 0x34c   : > { %v5201_v55 = vrot.slane %v5188_v57, 2  ;;  %v3978_v20 = vmul.f32 0.01, %v3762_v21  ;;  %vm3871_vm6 = vcmp.ge.f32.partialorder %v3763_v14, 0.0  ;;  %v3979_v9 = vmul.f32 0.01, %v3763_v14 }
 0x34d   : > { %7071 = vst [vmem:[%s9884_s28 + $0x88] sm:$0xff] %v6331_v48  ;;  %v5170_v17 = vsel %vm4706_vm7, %v12319_v39, %v5169_v16  ;;  %v12320_v59 = vrot.slane %v10376_v46, 2  ;;  %v12321_v47 = vrot.slane %v10410_v35, 1  ;;  %vm3872_vm8 = vcmp.ge.f32.partialorder %v3764_v42, 0.0  ;;  %v10528_v57 = vpop.f32.mrb[76].mxu0 }
 0x34e   : > { %12323 = vst [vmem:[#allocation80_spill] sm:$0xff] %v10528_v57  ;;  %v5179_v31 = vadd.f32 %v5170_v17, %v10376_v46  ;;  %v12324_v62 = vrot.slane %v10410_v35, 2  ;;  %v4086_v16 = vsel %vm3870_vm5, %v3762_v21, %v3978_v20  ;;  %v10538_v39 = vpop.f32.mrb[77].mxu0  ;;  %v4087_v57 = vsel %vm3871_vm6, %v3763_v14, %v3979_v9 }
 0x34f   : > { %v5200_v49 = vsel %vm4737_vm9, %v12320_v59, %v5199_v45  ;;  %v5172_v1 = vsel %vm4706_vm7, %v12321_v47, %v5171_v5  ;;  %v10536_v45 = vpop.f32.mrb[75].mxu1  ;;  %12326 = vst [vmem:[#allocation83_spill] sm:$0xff] %v10538_v39  ;;  %v5229_v5 = vld [vmem:[#allocation2 + $0x150] sm:$0xfe]  ;;  %v12327_v47 = vld [vmem:[#allocation8_spill] sm:$0xff]  ;;  %v3765_v17 = vadd.f32 %v9524_v27, %v3645_v0 }
 0x350   : > { %v5180_v48 = vadd.f32 %v5172_v1, %v10410_v35  ;;  %v5202_v11 = vsel %vm4737_vm9, %v12324_v62, %v5201_v55  ;;  %12325 = vst [vmem:[#allocation81_spill] sm:$0xff] %v10536_v45  ;;  %v5261_v59 = vld [vmem:[#allocation2 + $0x150] sm:$0xfc]  ;;  %v10541_v22 = vmul.f32 %v12327_v47, %v4086_v16  ;;  %v3980_v46 = vmul.f32 0.01, %v3764_v42  ;;  %v10549_v20 = vpop.f32.mrb[76].mxu1 }
 0x351   : > { %v10545_v1 = vadd.f32 %v5200_v49, %v5179_v31  ;;  %v5239_v55 = vrot.slane %v5229_v5, 1  ;;  %v5269_v21 = vrot.slane %v5261_v59, 2  ;;  %12328 = vst [vmem:[#allocation85_spill] sm:$0xff] %v10549_v20  ;;  %v10551_v62 = vpop.f32.mrb[78].mxu0  ;;  %v10556_v45 = vmul.f32 %v12327_v47, %v4087_v57  ;;  %v10559_v14 = vpop.f32.mrb[77].mxu1 }
 0x352   : > { %v10547_v35 = vadd.f32 %v5202_v11, %v5180_v48  ;;  %12329 = vst [vmem:[#allocation87_spill] sm:$0xff] %v10551_v62  ;;  %v11998_v39 = vrot.slane %v10541_v22, 1  ;;  %v11999_v16 = vrot.slane %v10541_v22, 2  ;;  %v4088_v9 = vsel %vm3872_vm8, %v3764_v42, %v3980_v46  ;;  %12330 = vst [vmem:[#allocation90_spill] sm:$0xff] %v10559_v14  ;;  %v10561_v0 = vpop.f32.mrb[79].mxu0  ;;  %v6328_v11 = vpop.permute.xlu1 %6327 }
 0x353   : > { %12331 = vst [vmem:[#allocation91_spill] sm:$0xff] %v10561_v0  ;;  %v6307_v49 = vadd.f32 %v10396_v50, %v10545_v1  ;;  %v10567_v31 = vadd.f32 %v10545_v1, %v10381_v37  ;;  %v5230_v42 = vld [vmem:[#allocation2 + $0x158] sm:$0xfe]  ;;  %v12001_v50 = vrot.slane %v10556_v45, 1  ;;  %v10583_v62 = vpop.f32.mrb[78].mxu1  ;;  %v10585_v14 = vpop.f32.mrb[80].mxu0 }
 0x354   : > { %v6308_v48 = vadd.f32 %v10437_v60, %v10547_v35  ;;  %v10573_v57 = vadd.f32 %v10547_v35, %v10416_v28  ;;  %v5262_v5 = vld [vmem:[#allocation2 + $0x158] sm:$0xfc]  ;;  %v5241_v59 = vsel %vm4706_vm7, %v5239_v55, %v11998_v39  ;;  %v5271_v37 = vsel %vm4737_vm9, %v5269_v21, %v11999_v16  ;;  %v12332_v39 = vld [vmem:[#allocation9_spill] sm:$0xff]  ;;  %v10589_v21 = vpop.f32.mrb[79].mxu1  ;;  %v10591_v16 = vpop.f32.mrb[81].mxu0 }
 0x355   : > { %v12000_v60 = vrot.slane %v10556_v45, 2  ;;  %v6332_v47 = vmul.f32 %v6328_v11, %v6307_v49  ;;  %v5242_v46 = vrot.slane %v5230_v42, 1  ;;  %v5272_v0 = vrot.slane %v5262_v5, 2 }
 0x356   : > { %v6333_v28 = vmul.f32 %v6328_v11, %v6308_v48  ;;  %v5253_v55 = vadd.f32 %v5241_v59, %v10476_v10  ;;  %v4520_v20 = vmul.f32 %v12332_v39, %v4088_v9  ;;  %vm3873_vm10 = vcmp.ge.f32.partialorder %v3765_v17, 0.0  ;;  %v12333_v9 = vld [vmem:[#allocation50_spill] sm:$0xff] }
 0x357   : > { %v3981_v25 = vmul.f32 0.01, %v3765_v17  ;;  %7072 = vst [vmem:[%s9884_s28 + $0x90] sm:$0xff] %v6332_v47  ;;  %v5244_v49 = vsel %vm4706_vm7, %v5242_v46, %v12001_v50  ;;  %v5274_v48 = vsel %vm4737_vm9, %v5272_v0, %v12000_v60  ;;  %v3646_v10 = vmul.f32 %v10493_v38, %v9517_v40  ;;  %v10615_v60 = vpop.f32.mrb[80].mxu1 }
 0x358   : > { %7073 = vst [vmem:[%s9884_s28 + $0x98] sm:$0xff] %v6333_v28  ;;  %v7219_v11 = vadd.f32 %v12333_v9, %v10137_v54  ;;  %v10605_v42 = vadd.f32 %v5271_v37, %v5253_v55  ;;  %v5254_v5 = vadd.f32 %v5244_v49, %v10510_v58  ;;  %4628 = vst [vmem:[#allocation2 + $0x170] sm:$0xff] %v4520_v20  ;;  %v10617_v54 = vpop.f32.mrb[82].mxu0 }
 0x359   : > { %v4089_v59 = vsel %vm3873_vm10, %v3765_v17, %v3981_v25  ;;  %v7220_v47 = vadd.f32 %v10132_v29, %v10169_v6  ;;  %v3766_v46 = vadd.f32 %v9521_v4, %v3646_v10  ;;  %v7221_v38 = vadd.f32 %v10139_v24, %v10179_v8  ;;  %12334 = vst [vmem:[#allocation92_spill] sm:$0xff] %v10617_v54  ;;  %v10630_v17 = vpop.f32.mrb[83].mxu0  ;;  %v6379_v24 = vpop.permute.xlu0 %6378 }
 0x35a   : > { %v4521_v28 = vmul.f32 %v12332_v39, %v4089_v59  ;;  %v3647_v0 = vmul.f32 %v7219_v11, %v9519_v19  ;;  %v6361_v58 = vadd.f32 %v10454_v34, %v10605_v42  ;;  %v10623_v25 = vadd.f32 %v10605_v42, %v10445_v33  ;;  %v10628_v39 = vpop.f32.mrb[81].mxu1  ;;  %12335 = vst [vmem:[#allocation93_spill] sm:$0xff] %v10630_v17 }
 0x35b   : > { %v10625_v29 = vadd.f32 %v5274_v48, %v5254_v5  ;;  %v3648_v6 = vmul.f32 %v7220_v47, %v9517_v40  ;;  %vm3874_vm11 = vcmp.ge.f32.partialorder %v3766_v46, 0.0  ;;  %v3982_v8 = vmul.f32 0.01, %v3766_v46  ;;  %v10642_v11 = vpop.f32.mrb[82].mxu1  ;;  %v10644_v5 = vpop.f32.mrb[84].mxu0  ;;  %v12337_v47 = vld [vmem:[#allocation10_spill] sm:$0xff] }
 0x35c   : > { %4629 = vst [vmem:[#allocation2 + $0x178] sm:$0xff] %v4521_v28  ;;  %v3767_v20 = vadd.f32 %v9524_v27, %v3647_v0  ;;  %v3649_v34 = vmul.f32 %v7221_v38, %v9519_v19  ;;  %v6386_v37 = vmul.f32 %v6379_v24, %v6361_v58  ;;  %12336 = vst [vmem:[#allocation94_spill] sm:$0xff] %v10644_v5  ;;  %v10650_v28 = vpop.f32.mrb[83].mxu1  ;;  %v10652_v0 = vpop.f32.mrb[85].mxu0 }
 0x35d   : > { %v6362_v33 = vadd.f32 %v10503_v53, %v10625_v29  ;;  %v10638_v55 = vadd.f32 %v10625_v29, %v10482_v36  ;;  %v3768_v49 = vadd.f32 %v9521_v4, %v3648_v6  ;;  %v4090_v48 = vsel %vm3874_vm11, %v3766_v46, %v3982_v8  ;;  %12338 = vst [vmem:[#allocation95_spill] sm:$0xff] %v10650_v28  ;;  %v12340_v8 = vld [vmem:[#allocation53_spill] sm:$0xff] }
 0x35e   : > { %vm3875_vm12 = vcmp.ge.f32.partialorder %v3767_v20, 0.0  ;;  %v3983_v10 = vmul.f32 0.01, %v3767_v20  ;;  %v3769_v9 = vadd.f32 %v9524_v27, %v3649_v34  ;;  %7076 = vst [vmem:[%s9884_s28 + $0xa0] sm:$0xff] %v6386_v37  ;;  %v10648_v53 = vmul.f32 %v12337_v47, %v4090_v48  ;;  %12339 = vst [vmem:[#allocation42_spill] sm:$0xff] %v10652_v0  ;;  %v12341_v34 = vld [vmem:[#allocation52_spill] sm:$0xff] }
 0x35f   : > { %v6387_v59 = vmul.f32 %v6379_v24, %v6362_v33  ;;  %vm3876_vm13 = vcmp.ge.f32.partialorder %v3768_v49, 0.0  ;;  %v3984_v36 = vmul.f32 0.01, %v3768_v49  ;;  %v5231_v46 = vld [vmem:[#allocation2 + $0x170] sm:$0x1]  ;;  %v7222_v6 = vadd.f32 %v10171_v2, %v10200_v23  ;;  %v12342_v0 = vld [vmem:[#allocation11_spill] sm:$0xff] }
 0x360   : > { %v5263_v38 = vld [vmem:[#allocation2 + $0x170] sm:$0x3]  ;;  %v4091_v58 = vsel %vm3875_vm12, %v3767_v20, %v3983_v10  ;;  %vm3877_vm14 = vcmp.ge.f32.partialorder %v3769_v9, 0.0  ;;  %v7223_v37 = vadd.f32 %v12341_v34, %v12340_v8  ;;  %v5245_v24 = vrot.slane %v5231_v46, 1  ;;  %4630 = vst [vmem:[#allocation2 + $0x180] sm:$0xff] %v10648_v53  ;;  %v10668_v23 = vpop.f32.mrb[84].mxu1 }
 0x361   : > { %7077 = vst [vmem:[%s9884_s28 + $0xa8] sm:$0xff] %v6387_v59  ;;  %v5275_v33 = vrot.slane %v5263_v38, 2  ;;  %v10661_v48 = vmul.f32 %v12337_v47, %v4091_v58  ;;  %v4092_v50 = vsel %vm3876_vm13, %v3768_v49, %v3984_v36  ;;  %v3985_v20 = vmul.f32 0.01, %v3769_v9  ;;  %12343 = vst [vmem:[#allocation40_spill] sm:$0xff] %v10668_v23  ;;  %v10670_v8 = vpop.f32.mrb[86].mxu0 }
 0x362   : > { %v10664_v5 = vmul.f32 %v12342_v0, %v4092_v50  ;;  %v3650_v10 = vmul.f32 %v7222_v6, %v9517_v40  ;;  %v3651_v2 = vmul.f32 %v7223_v37, %v9519_v19  ;;  %12344 = vst [vmem:[#allocation41_spill] sm:$0xff] %v10670_v8  ;;  %v12345_v59 = vrot.slane %v10541_v22, 1  ;;  %v12347_v38 = vld [vmem:[#allocation55_spill] sm:$0xff]  ;;  %v12349_v34 = vld [vmem:[#allocation57_spill] sm:$0xff]  ;;  %v12350_v37 = vld [vmem:[#allocation54_spill] sm:$0xff]  ;;  %v10685_v8 = vpop.f32.mrb[85].mxu1 }
 0x363   : > { %v12346_v47 = vrot.slane %v10541_v22, 2  ;;  %v5232_v36 = vld [vmem:[#allocation2 + $0x178] sm:$0x1]  ;;  %4631 = vst [vmem:[#allocation2 + $0x188] sm:$0xff] %v10661_v48  ;;  %v10683_v23 = vadd.f32 %v12350_v37, %v12349_v34  ;;  %12351 = vst [vmem:[#allocation79_spill] sm:$0xff] %v10685_v8  ;;  %v10687_v17 = vpop.f32.mrb[87].mxu0  ;;  %v4093_v54 = vsel %vm3877_vm14, %v3769_v9, %v3985_v20 }
 0x364   : > { %v5246_v46 = vsel %vm4706_vm7, %v12345_v59, %v5245_v24  ;;  %v5264_v50 = vld [vmem:[#allocation2 + $0x178] sm:$0x3]  ;;  %12352 = vst [vmem:[#allocation82_spill] sm:$0xff] %v10687_v17  ;;  %v5247_v59 = vrot.slane %v5232_v36, 1  ;;  %v12353_v37 = vrot.slane %v10556_v45, 1  ;;  %v10704_v36 = vmul.f32 %v12342_v0, %v4093_v54  ;;  %v10708_v9 = vpop.f32.mrb[88].mxu0 }
 0x365   : > { %v5276_v49 = vsel %vm4737_vm9, %v12346_v47, %v5275_v33  ;;  %v12348_v58 = vld [vmem:[#allocation51_spill] sm:$0xff]  ;;  %v5255_v24 = vadd.f32 %v5246_v46, %v10541_v22  ;;  %v5277_v28 = vrot.slane %v5264_v50, 2  ;;  %v12354_v22 = vrot.slane %v10556_v45, 2  ;;  %v10706_v50 = vpop.f32.mrb[86].mxu1  ;;  %12356 = vst [vmem:[#allocation84_spill] sm:$0xff] %v10708_v9 }
 0x366   : > { %v7224_v6 = vadd.f32 %v12348_v58, %v12347_v38  ;;  %v3770_v38 = vadd.f32 %v9521_v4, %v3650_v10  ;;  %v3771_v58 = vadd.f32 %v9524_v27, %v3651_v2  ;;  %v5248_v17 = vsel %vm4706_vm7, %v12353_v37, %v5247_v59  ;;  %12355 = vst [vmem:[#allocation44_spill] sm:$0xff] %v10706_v50  ;;  %v10711_v2 = vpop.f32.mrb[87].mxu1 }
 0x367   : > { %v10695_v34 = vadd.f32 %v5276_v49, %v5255_v24  ;;  %v5278_v46 = vsel %vm4737_vm9, %v12354_v22, %v5277_v28  ;;  %v5256_v20 = vadd.f32 %v5248_v17, %v10556_v45  ;;  %12357 = vst [vmem:[#allocation86_spill] sm:$0xff] %v10711_v2  ;;  %v10713_v49 = vpop.f32.mrb[89].mxu0  ;;  %v5305_v28 = vld [vmem:[#allocation2 + $0x180] sm:$0xfe]  ;;  %v6384_v17 = vpop.permute.xlu1 %6383 }
 0x368   : > { %vm3878_vm15 = vcmp.ge.f32.partialorder %v3770_v38, 0.0  ;;  %v3986_v10 = vmul.f32 0.01, %v3770_v38  ;;  %vm3879_vm0 = vcmp.ge.f32.partialorder %v3771_v58, 0.0  ;;  %12358 = vst [vmem:[#allocation88_spill] sm:$0xff] %v10713_v49  ;;  %v5315_v22 = vrot.slane %v5305_v28, 1 }
 0x369   : > { %v6363_v24 = vadd.f32 %v10567_v31, %v10695_v34  ;;  %v10719_v54 = vadd.f32 %v10695_v34, %v10545_v1  ;;  %v5337_v0 = vld [vmem:[#allocation2 + $0x180] sm:$0xfc]  ;;  %v10723_v37 = vadd.f32 %v5278_v46, %v5256_v20  ;;  %v3987_v1 = vmul.f32 0.01, %v3771_v58  ;;  %v10733_v28 = vpop.f32.mrb[88].mxu1 }
 0x36a   : > { %v5345_v47 = vrot.slane %v5337_v0, 2  ;;  %v4094_v33 = vsel %vm3878_vm15, %v3770_v38, %v3986_v10  ;;  %v5306_v9 = vld [vmem:[#allocation2 + $0x188] sm:$0xfe]  ;;  %v12359_v2 = vld [vmem:[#allocation12_spill] sm:$0xff]  ;;  %v3652_v8 = vmul.f32 %v7224_v6, %v9517_v40  ;;  %v10735_v38 = vpop.f32.mrb[90].mxu0  ;;  %v12361_v10 = vrot.slane %v10664_v5, 1 }
 0x36b   : > { %v6388_v49 = vmul.f32 %v6384_v17, %v6363_v24  ;;  %v5338_v31 = vld [vmem:[#allocation2 + $0x188] sm:$0xfc]  ;;  %v4526_v50 = vmul.f32 %v12359_v2, %v4094_v33  ;;  %v6364_v59 = vadd.f32 %v10573_v57, %v10723_v37  ;;  %v10731_v45 = vadd.f32 %v10723_v37, %v10547_v35  ;;  %12360 = vst [vmem:[#allocation43_spill] sm:$0xff] %v10735_v38  ;;  %v10748_v0 = vpop.f32.mrb[91].mxu0 }
 0x36c   : > { %v5318_v46 = vrot.slane %v5306_v9, 1  ;;  %v5348_v20 = vrot.slane %v5338_v31, 2  ;;  %v5317_v33 = vsel %vm4706_vm7, %v5315_v22, %v12361_v10  ;;  %v12362_v6 = vrot.slane %v10664_v5, 2  ;;  %v10746_v9 = vpop.f32.mrb[89].mxu1 }
 0x36d   : > { %7078 = vst [vmem:[%s9884_s28 + $0xb0] sm:$0xff] %v6388_v49  ;;  %4634 = vst [vmem:[#allocation2 + $0x1a0] sm:$0xff] %v4526_v50  ;;  %v4095_v35 = vsel %vm3879_vm0, %v3771_v58, %v3987_v1  ;;  %v3772_v57 = vadd.f32 %v9521_v4, %v3652_v8  ;;  %v6389_v31 = vmul.f32 %v6384_v17, %v6364_v59  ;;  %v12363_v38 = vrot.slane %v10704_v36, 1  ;;  %v10759_v1 = vpop.f32.mrb[90].mxu1  ;;  %v12365_v17 = vld [vmem:[#allocation56_spill] sm:$0xff] }
 0x36e   : > { %v5347_v24 = vsel %vm4737_vm9, %v5345_v47, %v12362_v6  ;;  %v5329_v49 = vadd.f32 %v5317_v33, %v10648_v53  ;;  %v12364_v10 = vrot.slane %v10704_v36, 2  ;;  %v4527_v58 = vmul.f32 %v12359_v2, %v4095_v35  ;;  %v10761_v6 = vpop.f32.mrb[92].mxu0 }
 0x36f   : > { %v5320_v22 = vsel %vm4706_vm7, %v5318_v46, %v12363_v38  ;;  %vm3880_vm1 = vcmp.ge.f32.partialorder %v3772_v57, 0.0  ;;  %v3988_v8 = vmul.f32 0.01, %v3772_v57  ;;  %7079 = vst [vmem:[%s9884_s28 + $0xb8] sm:$0xff] %v6389_v31  ;;  %v3653_v59 = vmul.f32 %v10683_v23, %v9519_v19  ;;  %v10772_v38 = vpop.f32.mrb[91].mxu1  ;;  %v10774_v2 = vpop.f32.mrb[93].mxu0 }
 0x370   : > { %v5350_v47 = vsel %vm4737_vm9, %v5348_v20, %v12364_v10  ;;  %v5330_v50 = vadd.f32 %v5320_v22, %v10661_v48  ;;  %v10764_v53 = vadd.f32 %v5347_v24, %v5329_v49  ;;  %v7226_v46 = vadd.f32 %v12365_v17, %v10253_v56  ;;  %v12366_v20 = vld [vmem:[#allocation58_spill] sm:$0xff]  ;;  %12367 = vst [vmem:[#allocation89_spill] sm:$0xff] %v10774_v2  ;;  %v12368_v31 = vld [vmem:[#allocation60_spill] sm:$0xff]  ;;  %v6435_v49 = vpop.permute.xlu0 %6434  ;;  %v12369_v22 = vld [vmem:[#allocation13_spill] sm:$0xff] }
 0x371   : > { %v7227_v48 = vadd.f32 %v12366_v20, %v10267_v18  ;;  %4635 = vst [vmem:[#allocation2 + $0x1a8] sm:$0xff] %v4527_v58  ;;  %v4096_v35 = vsel %vm3880_vm1, %v3772_v57, %v3988_v8  ;;  %v7228_v24 = vadd.f32 %v10255_v44, %v10285_v51  ;;  %v7229_v23 = vadd.f32 %v12368_v31, %v10291_v61 }
 0x372   : > { %v10776_v33 = vadd.f32 %v5350_v47, %v5330_v50  ;;  %v6417_v56 = vadd.f32 %v10623_v25, %v10764_v53  ;;  %v10786_v18 = vadd.f32 %v10764_v53, %v10605_v42  ;;  %v10789_v10 = vmul.f32 %v12369_v22, %v4096_v35  ;;  %v10800_v25 = vpop.f32.mrb[92].mxu1  ;;  %v10802_v42 = vpop.f32.mrb[94].mxu0 }
 0x373   : > { %v3773_v47 = vadd.f32 %v9524_v27, %v3653_v59  ;;  %v3654_v61 = vmul.f32 %v7226_v46, %v9517_v40  ;;  %v3655_v51 = vmul.f32 %v7227_v48, %v9519_v19  ;;  %12370 = vst [vmem:[#allocation47_spill] sm:$0xff] %v10802_v42  ;;  %v10807_v59 = vpop.f32.mrb[93].mxu1  ;;  %v10809_v35 = vpop.f32.mrb[95].mxu0 }
 0x374   : > { %v6418_v57 = vadd.f32 %v10638_v55, %v10776_v33  ;;  %v10796_v44 = vadd.f32 %v10776_v33, %v10625_v29  ;;  %v6442_v50 = vmul.f32 %v6435_v49, %v6417_v56  ;;  %v5307_v58 = vld [vmem:[#allocation2 + $0x1a0] sm:$0x1]  ;;  %4636 = vst [vmem:[#allocation2 + $0x1b0] sm:$0xff] %v10789_v10  ;;  %v3656_v55 = vmul.f32 %v7228_v24, %v9517_v40 }
 0x375   : > { %v5339_v8 = vld [vmem:[#allocation2 + $0x1a0] sm:$0x3]  ;;  %vm3881_vm2 = vcmp.ge.f32.partialorder %v3773_v47, 0.0  ;;  %v3657_v29 = vmul.f32 %v7229_v23, %v9519_v19  ;;  %12371 = vst [vmem:[#allocation46_spill] sm:$0xff] %v10807_v59  ;;  %v5321_v46 = vrot.slane %v5307_v58, 1  ;;  %12372 = vst [vmem:[#allocation45_spill] sm:$0xff] %v10809_v35  ;;  %v3774_v31 = vadd.f32 %v9521_v4, %v3654_v61 }
 0x376   : > { %v6443_v17 = vmul.f32 %v6435_v49, %v6418_v57  ;;  %v5351_v20 = vrot.slane %v5339_v8, 2  ;;  %v3989_v48 = vmul.f32 0.01, %v3773_v47  ;;  %7082 = vst [vmem:[%s9884_s28 + $0xc0] sm:$0xff] %v6442_v50  ;;  %v3775_v56 = vadd.f32 %v9524_v27, %v3655_v51  ;;  %v12375_v50 = vld [vmem:[#allocation59_spill] sm:$0xff]  ;;  %v10826_v8 = vpop.f32.mrb[94].mxu1 }
 0x377   : > { %v3776_v42 = vadd.f32 %v9521_v4, %v3656_v55  ;;  %v3777_v2 = vadd.f32 %v9524_v27, %v3657_v29  ;;  %v12373_v24 = vrot.slane %v10664_v5, 1  ;;  %v12374_v49 = vrot.slane %v10664_v5, 2  ;;  %12376 = vst [vmem:[#allocation48_spill] sm:$0xff] %v10826_v8  ;;  %v10828_v51 = vpop.f32.mrb[96].mxu0 }
 0x378   : > { %7083 = vst [vmem:[%s9884_s28 + $0xc8] sm:$0xff] %v6443_v17  ;;  %v4097_v58 = vsel %vm3881_vm2, %v3773_v47, %v3989_v48  ;;  %v7230_v61 = vadd.f32 %v12375_v50, %v10313_v43  ;;  %12377 = vst [vmem:[#allocation49_spill] sm:$0xff] %v10828_v51  ;;  %v5308_v29 = vld [vmem:[#allocation2 + $0x1a8] sm:$0x1]  ;;  %vm3882_vm3 = vcmp.ge.f32.partialorder %v3774_v31, 0.0  ;;  %vm3883_vm4 = vcmp.ge.f32.partialorder %v3775_v56, 0.0 }
 0x379   : > { %v5322_v23 = vsel %vm4706_vm7, %v12373_v24, %v5321_v46  ;;  %v5352_v57 = vsel %vm4737_vm9, %v12374_v49, %v5351_v20  ;;  %v5340_v17 = vld [vmem:[#allocation2 + $0x1a8] sm:$0x3]  ;;  %v10832_v35 = vmul.f32 %v12369_v22, %v4097_v58  ;;  %v5323_v46 = vrot.slane %v5308_v29, 1  ;;  %v10837_v49 = vpop.f32.mrb[95].mxu1 }
 0x37a   : > { %v5331_v55 = vadd.f32 %v5322_v23, %v10664_v5  ;;  %v5353_v20 = vrot.slane %v5340_v17, 2  ;;  %v3990_v24 = vmul.f32 0.01, %v3774_v31  ;;  %v3991_v47 = vmul.f32 0.01, %v3775_v56  ;;  %12378 = vst [vmem:[#allocation8_spill] sm:$0xff] %v10837_v49 }
 0x37b   : > { %4637 = vst [vmem:[#allocation2 + $0x1b8] sm:$0xff] %v10832_v35  ;;  %vm3884_vm5 = vcmp.ge.f32.partialorder %v3776_v42, 0.0  ;;  %v3992_v43 = vmul.f32 0.01, %v3776_v42  ;;  %vm3885_vm6 = vcmp.ge.f32.partialorder %v3777_v2, 0.0  ;;  %v10839_v5 = vpop.f32.mrb[97].mxu0 }
 0x37c   : > { %v10834_v48 = vadd.f32 %v5352_v57, %v5331_v55  ;;  %12379 = vst [vmem:[#allocation9_spill] sm:$0xff] %v10839_v5  ;;  %v12380_v22 = vrot.slane %v10704_v36, 1  ;;  %v12381_v58 = vrot.slane %v10704_v36, 2  ;;  %v5381_v29 = vld [vmem:[#allocation2 + $0x1b0] sm:$0xfe]  ;;  %v4098_v55 = vsel %vm3882_vm3, %v3774_v31, %v3990_v24  ;;  %v10849_v51 = vpop.f32.mrb[96].mxu1  ;;  %v6440_v31 = vpop.permute.xlu1 %6439 }
 0x37d   : > { %v5413_v57 = vld [vmem:[#allocation2 + $0x1b0] sm:$0xfc]  ;;  %v4099_v17 = vsel %vm3883_vm4, %v3775_v56, %v3991_v47  ;;  %12382 = vst [vmem:[#allocation50_spill] sm:$0xff] %v10849_v51  ;;  %v10851_v8 = vpop.f32.mrb[98].mxu0 }
 0x37e   : > { %v5324_v23 = vsel %vm4706_vm7, %v12380_v22, %v5323_v46  ;;  %v5354_v50 = vsel %vm4737_vm9, %v12381_v58, %v5353_v20  ;;  %12383 = vst [vmem:[#allocation10_spill] sm:$0xff] %v10851_v8  ;;  %v6419_v5 = vadd.f32 %v10719_v54, %v10834_v48  ;;  %v10857_v46 = vadd.f32 %v10834_v48, %v10695_v34  ;;  %v10860_v58 = vpop.f32.mrb[97].mxu1  ;;  %v10862_v49 = vpop.f32.mrb[99].mxu0  ;;  %v12386_v24 = vld [vmem:[#allocation14_spill] sm:$0xff] }
 0x37f   : > { %v5332_v22 = vadd.f32 %v5324_v23, %v10704_v36  ;;  %v5391_v20 = vrot.slane %v5381_v29, 1  ;;  %12384 = vst [vmem:[#allocation53_spill] sm:$0xff] %v10860_v58  ;;  %12385 = vst [vmem:[#allocation52_spill] sm:$0xff] %v10862_v49  ;;  %v5421_v56 = vrot.slane %v5413_v57, 2  ;;  %v10865_v47 = vmul.f32 %v12386_v24, %v4098_v55  ;;  %v12387_v36 = vld [vmem:[#allocation15_spill] sm:$0xff]  ;;  %v10878_v59 = vpop.f32.mrb[98].mxu1 }
 0x380   : > { %v10868_v8 = vmul.f32 %v12386_v24, %v4099_v17  ;;  %v4100_v54 = vsel %vm3884_vm5, %v3776_v42, %v3992_v43  ;;  %v6444_v34 = vmul.f32 %v6440_v31, %v6419_v5  ;;  %v3993_v29 = vmul.f32 0.01, %v3777_v2  ;;  %12388 = vst [vmem:[#allocation11_spill] sm:$0xff] %v10878_v59  ;;  %v10880_v17 = vpop.f32.mrb[100].mxu0  ;;  %v12390_v57 = vld [vmem:[#allocation61_spill] sm:$0xff] }
 0x381   : > { %v10871_v51 = vadd.f32 %v5354_v50, %v5332_v22  ;;  %v4532_v23 = vmul.f32 %v12387_v36, %v4100_v54  ;;  %v5392_v58 = vrot.slane %v10865_v47, 1  ;;  %v5422_v49 = vrot.slane %v10865_v47, 2  ;;  %12389 = vst [vmem:[#allocation55_spill] sm:$0xff] %v10880_v17  ;;  %v10891_v22 = vpop.f32.mrb[99].mxu1 }
 0x382   : > { %7084 = vst [vmem:[%s9884_s28 + $0xd0] sm:$0xff] %v6444_v34  ;;  %v4101_v5 = vsel %vm3885_vm6, %v3777_v2, %v3993_v29  ;;  %v3658_v50 = vmul.f32 %v7230_v61, %v9517_v40  ;;  %v5382_v24 = vld [vmem:[#allocation2 + $0x1b8] sm:$0xfe] }
 0x383   : > { %v6420_v42 = vadd.f32 %v10731_v45, %v10871_v51  ;;  %v10887_v43 = vadd.f32 %v10871_v51, %v10723_v37  ;;  %4640 = vst [vmem:[#allocation2 + $0x1d0] sm:$0xff] %v4532_v23  ;;  %v5414_v54 = vld [vmem:[#allocation2 + $0x1b8] sm:$0xfc]  ;;  %v5393_v55 = vsel %vm4706_vm7, %v5391_v20, %v5392_v58  ;;  %v5423_v34 = vsel %vm4737_vm9, %v5421_v56, %v5422_v49 }
 0x384   : > { %v4533_v45 = vmul.f32 %v12387_v36, %v4101_v5  ;;  %v7231_v37 = vadd.f32 %v12390_v57, %v10323_v63  ;;  %v5394_v23 = vrot.slane %v5382_v24, 1  ;;  %v5424_v59 = vrot.slane %v5414_v54, 2 }
 0x385   : > { %v6445_v17 = vmul.f32 %v6440_v31, %v6420_v42  ;;  %v5405_v2 = vadd.f32 %v5393_v55, %v10789_v10  ;;  %v3778_v61 = vadd.f32 %v9521_v4, %v3658_v50  ;;  %v7232_v20 = vadd.f32 %v10315_v7, %v10348_v32  ;;  %v10918_v32 = vpop.f32.mrb[101].mxu0 }
 0x386   : > { %4641 = vst [vmem:[#allocation2 + $0x1d8] sm:$0xff] %v4533_v45  ;;  %v3659_v29 = vmul.f32 %v7231_v37, %v9519_v19  ;;  %v7233_v56 = vadd.f32 %v10325_v52, %v10352_v3  ;;  %v12391_v63 = vrot.slane %v10868_v8, 1  ;;  %v12392_v10 = vrot.slane %v10868_v8, 2  ;;  %v12393_v37 = vld [vmem:[#allocation16_spill] sm:$0xff] }
 0x387   : > { %7085 = vst [vmem:[%s9884_s28 + $0xd8] sm:$0xff] %v6445_v17  ;;  %v10906_v36 = vadd.f32 %v5423_v34, %v5405_v2  ;;  %v7234_v55 = vadd.f32 %v10350_v15, %v10371_v12  ;;  %vm3886_vm8 = vcmp.ge.f32.partialorder %v3778_v61, 0.0  ;;  %v3994_v7 = vmul.f32 0.01, %v3778_v61  ;;  %v6491_v15 = vpop.permute.xlu0 %6490  ;;  %v10936_v2 = vpop.f32.mrb[102].mxu0 }
 0x388   : > { %v5396_v31 = vsel %vm4706_vm7, %v5394_v23, %v12391_v63  ;;  %v5426_v57 = vsel %vm4737_vm9, %v5424_v59, %v12392_v10  ;;  %v3779_v52 = vadd.f32 %v9524_v27, %v3659_v29  ;;  %v3660_v59 = vmul.f32 %v7232_v20, %v9517_v40  ;;  %v10934_v23 = vpop.f32.mrb[100].mxu1 }
 0x389   : > { %v5406_v42 = vadd.f32 %v5396_v31, %v10832_v35  ;;  %v6473_v3 = vadd.f32 %v10786_v18, %v10906_v36  ;;  %v10924_v17 = vadd.f32 %v10906_v36, %v10764_v53  ;;  %v3661_v5 = vmul.f32 %v7233_v56, %v9519_v19  ;;  %v10945_v63 = vpop.f32.mrb[101].mxu1 }
 0x38a   : > { %v5383_v35 = vld [vmem:[#allocation2 + $0x1d0] sm:$0x1]  ;;  %v4102_v24 = vsel %vm3886_vm8, %v3778_v61, %v3994_v7  ;;  %vm3887_vm10 = vcmp.ge.f32.partialorder %v3779_v52, 0.0  ;;  %v3662_v54 = vmul.f32 %v7234_v55, %v9517_v40  ;;  %v3995_v61 = vmul.f32 0.01, %v3779_v52 }
 0x38b   : > { %v10928_v12 = vadd.f32 %v5426_v57, %v5406_v42  ;;  %v5415_v50 = vld [vmem:[#allocation2 + $0x1d0] sm:$0x3]  ;;  %v6498_v34 = vmul.f32 %v6491_v15, %v6473_v3  ;;  %v5397_v18 = vrot.slane %v5383_v35, 1  ;;  %v10932_v53 = vmul.f32 %v12393_v37, %v4102_v24  ;;  %v10953_v42 = vpop.f32.mrb[103].mxu0 }
 0x38c   : > { %v5427_v45 = vrot.slane %v5415_v50, 2  ;;  %v3780_v56 = vadd.f32 %v9521_v4, %v3660_v59  ;;  %v12394_v24 = vrot.slane %v10868_v8, 1 }
 0x38d   : > { %v6474_v29 = vadd.f32 %v10796_v44, %v10928_v12  ;;  %v10942_v20 = vadd.f32 %v10928_v12, %v10776_v33  ;;  %7088 = vst [vmem:[%s9884_s28 + $0xe0] sm:$0xff] %v6498_v34  ;;  %v5398_v31 = vsel %vm4706_vm7, %v5392_v58, %v5397_v18  ;;  %v5384_v57 = vld [vmem:[#allocation2 + $0x1d8] sm:$0x1]  ;;  %4642 = vst [vmem:[#allocation2 + $0x1e0] sm:$0xff] %v10932_v53  ;;  %v10969_v34 = vpop.f32.mrb[102].mxu1 }
 0x38e   : > { %v5428_v10 = vsel %vm4737_vm9, %v5422_v49, %v5427_v45  ;;  %v5416_v55 = vld [vmem:[#allocation2 + $0x1d8] sm:$0x3]  ;;  %v3781_v44 = vadd.f32 %v9524_v27, %v3661_v5  ;;  %v3782_v33 = vadd.f32 %v9521_v4, %v3662_v54  ;;  %v5407_v3 = vadd.f32 %v5398_v31, %v10865_v47 }
 0x38f   : > { %v6499_v7 = vmul.f32 %v6491_v15, %v6474_v29  ;;  %v5399_v59 = vrot.slane %v5384_v57, 1  ;;  %v5429_v35 = vrot.slane %v5416_v55, 2  ;;  %v4103_v58 = vsel %vm3887_vm10, %v3779_v52, %v3995_v61  ;;  %v10972_v29 = vpop.f32.mrb[104].mxu0  ;;  %v10984_v55 = vpop.f32.mrb[103].mxu1 }
 0x390   : > { %vm3888_vm11 = vcmp.ge.f32.partialorder %v3780_v56, 0.0  ;;  %v3996_v50 = vmul.f32 0.01, %v3780_v56  ;;  %vm3889_vm12 = vcmp.ge.f32.partialorder %v3781_v44, 0.0  ;;  %v10958_v49 = vadd.f32 %v5428_v10, %v5407_v3  ;;  %12396 = vst [vmem:[#allocation51_spill] sm:$0xff] %v10972_v29  ;;  %v12399_v3 = vld [vmem:[#allocation63_spill] sm:$0xff] }
 0x391   : > { %7089 = vst [vmem:[%s9884_s28 + $0xe8] sm:$0xff] %v6499_v7  ;;  %v5400_v5 = vsel %vm4706_vm7, %v12394_v24, %v5399_v59  ;;  %v12395_v54 = vrot.slane %v10868_v8, 2  ;;  %v10967_v47 = vmul.f32 %v12393_v37, %v4103_v58  ;;  %v3997_v45 = vmul.f32 0.01, %v3781_v44  ;;  %v12397_v37 = vld [vmem:[#allocation17_spill] sm:$0xff]  ;;  %v12400_v59 = vld [vmem:[#allocation62_spill] sm:$0xff] }
 0x392   : > { %v5408_v52 = vadd.f32 %v5400_v5, %v10868_v8  ;;  %v4104_v18 = vsel %vm3888_vm11, %v3780_v56, %v3996_v50  ;;  %vm3890_vm13 = vcmp.ge.f32.partialorder %v3782_v33, 0.0  ;;  %v6475_v61 = vadd.f32 %v10857_v46, %v10958_v49  ;;  %v10986_v8 = vpop.f32.mrb[105].mxu0  ;;  %v6496_v56 = vpop.permute.xlu1 %6495  ;;  %v12402_v58 = vld [vmem:[#allocation64_spill] sm:$0xff] }
 0x393   : > { %v5430_v15 = vsel %vm4737_vm9, %v12395_v54, %v5429_v35  ;;  %v10978_v31 = vadd.f32 %v10958_v49, %v10834_v48  ;;  %4643 = vst [vmem:[#allocation2 + $0x1e8] sm:$0xff] %v10967_v47  ;;  %v10982_v10 = vmul.f32 %v12397_v37, %v4104_v18  ;;  %v3998_v57 = vmul.f32 0.01, %v3782_v33  ;;  %12398 = vst [vmem:[#allocation57_spill] sm:$0xff] %v10986_v8  ;;  %v12401_v35 = vld [vmem:[#allocation65_spill] sm:$0xff] }
 0x394   : > { %v10988_v7 = vadd.f32 %v5430_v15, %v5408_v52  ;;  %v4105_v46 = vsel %vm3889_vm12, %v3781_v44, %v3997_v45  ;;  %v7235_v48 = vadd.f32 %v12400_v59, %v12399_v3  ;;  %v7236_v50 = vadd.f32 %v12402_v58, %v12401_v35  ;;  %v5457_v5 = vld [vmem:[#allocation2 + $0x1e0] sm:$0xfe]  ;;  %v12404_v58 = vld [vmem:[#allocation18_spill] sm:$0xff] }
 0x395   : > { %v6500_v24 = vmul.f32 %v6496_v56, %v6475_v61  ;;  %v5489_v54 = vld [vmem:[#allocation2 + $0x1e0] sm:$0xfc]  ;;  %v12003_v18 = vrot.slane %v10982_v10, 1  ;;  %v12002_v29 = vrot.slane %v10982_v10, 2  ;;  %v10998_v8 = vmul.f32 %v12397_v37, %v4105_v46  ;;  %v11006_v61 = vpop.f32.mrb[104].mxu1 }
 0x396   : > { %v6476_v15 = vadd.f32 %v10887_v43, %v10988_v7  ;;  %v11004_v44 = vadd.f32 %v10988_v7, %v10871_v51  ;;  %v5467_v52 = vrot.slane %v5457_v5, 1  ;;  %v5497_v45 = vrot.slane %v5489_v54, 2  ;;  %12403 = vst [vmem:[#allocation54_spill] sm:$0xff] %v11006_v61 }
 0x397   : > { %7090 = vst [vmem:[%s9884_s28 + $0xf0] sm:$0xff] %v6500_v24  ;;  %v4106_v37 = vsel %vm3890_vm13, %v3782_v33, %v3998_v57  ;;  %v3663_v46 = vmul.f32 %v7235_v48, %v9519_v19  ;;  %v3664_v59 = vmul.f32 %v7236_v50, %v9517_v40  ;;  %v12405_v33 = vld [vmem:[#allocation66_spill] sm:$0xff] }
 0x398   : > { %v6501_v35 = vmul.f32 %v6496_v56, %v6476_v15  ;;  %v5469_v51 = vsel %vm4706_vm7, %v5467_v52, %v12003_v18  ;;  %v5499_v43 = vsel %vm4737_vm9, %v5497_v45, %v12002_v29  ;;  %v4538_v5 = vmul.f32 %v12404_v58, %v4106_v37  ;;  %v12406_v15 = vld [vmem:[#allocation67_spill] sm:$0xff]  ;;  %v12407_v37 = vld [vmem:[#allocation70_spill] sm:$0xff]  ;;  %v12408_v29 = vld [vmem:[#allocation68_spill] sm:$0xff] }
 0x399   : > { %v5481_v24 = vadd.f32 %v5469_v51, %v10932_v53  ;;  %v3783_v54 = vadd.f32 %v9524_v27, %v3663_v46  ;;  %v7237_v57 = vadd.f32 %v12405_v33, %v10412_v13  ;;  %v7238_v52 = vadd.f32 %v12406_v15, %v10429_v41  ;;  %v12409_v51 = vld [vmem:[#allocation72_spill] sm:$0xff]  ;;  %v12410_v46 = vld [vmem:[#allocation69_spill] sm:$0xff]  ;;  %v11039_v33 = vpop.f32.mrb[106].mxu0 }
 0x39a   : > { %7091 = vst [vmem:[%s9884_s28 + $0xf8] sm:$0xff] %v6501_v35  ;;  %v5458_v56 = vld [vmem:[#allocation2 + $0x1e8] sm:$0xfe]  ;;  %4646 = vst [vmem:[#allocation2 + $0x200] sm:$0xff] %v4538_v5  ;;  %v7239_v45 = vadd.f32 %v10414_v30, %v10441_v26  ;;  %v7240_v53 = vadd.f32 %v12408_v29, %v12407_v37  ;;  %v7241_v18 = vadd.f32 %v12410_v46, %v12409_v51  ;;  %v12412_v29 = vrot.slane %v10998_v8, 1 }
 0x39b   : > { %v5490_v48 = vld [vmem:[#allocation2 + $0x1e8] sm:$0xfc]  ;;  %v5470_v50 = vrot.slane %v5458_v56, 1  ;;  %v11034_v61 = vadd.f32 %v5499_v43, %v5481_v24  ;;  %vm3891_vm14 = vcmp.ge.f32.partialorder %v3783_v54, 0.0  ;;  %v3999_v13 = vmul.f32 0.01, %v3783_v54 }
 0x39c   : > { %v5500_v3 = vrot.slane %v5490_v48, 2  ;;  %v3784_v35 = vadd.f32 %v9521_v4, %v3664_v59  ;;  %v3665_v5 = vmul.f32 %v7237_v57, %v9519_v19  ;;  %v3666_v41 = vmul.f32 %v7238_v52, %v9517_v40  ;;  %12411 = vst [vmem:[#allocation12_spill] sm:$0xff] %v11039_v33  ;;  %v11053_v57 = vpop.f32.mrb[105].mxu1  ;;  %v11055_v56 = vpop.f32.mrb[107].mxu0 }
 0x39d   : > { %v6529_v30 = vadd.f32 %v10924_v17, %v11034_v61  ;;  %v11045_v26 = vadd.f32 %v11034_v61, %v10906_v36  ;;  %v5472_v43 = vsel %vm4706_vm7, %v5470_v50, %v12412_v29  ;;  %v12413_v24 = vrot.slane %v10998_v8, 2  ;;  %12414 = vst [vmem:[#allocation56_spill] sm:$0xff] %v11055_v56  ;;  %v6547_v48 = vpop.permute.xlu0 %6546  ;;  %v11065_v56 = vpop.f32.mrb[106].mxu1 }
 0x39e   : > { %v5482_v17 = vadd.f32 %v5472_v43, %v10967_v47  ;;  %v4107_v15 = vsel %vm3891_vm14, %v3783_v54, %v3999_v13  ;;  %vm3892_vm15 = vcmp.ge.f32.partialorder %v3784_v35, 0.0  ;;  %v4000_v36 = vmul.f32 0.01, %v3784_v35  ;;  %v12415_v13 = vld [vmem:[#allocation19_spill] sm:$0xff] }
 0x39f   : > { %v5502_v59 = vsel %vm4737_vm9, %v5500_v3, %v12413_v24  ;;  %v6554_v52 = vmul.f32 %v6547_v48, %v6529_v30  ;;  %v4539_v37 = vmul.f32 %v12404_v58, %v4107_v15  ;;  %v3785_v51 = vadd.f32 %v9524_v27, %v3665_v5 }
 0x3a0   : > { %v3786_v46 = vadd.f32 %v9521_v4, %v3666_v41  ;;  %v11061_v50 = vadd.f32 %v5502_v59, %v5482_v17  ;;  %v4108_v3 = vsel %vm3892_vm15, %v3784_v35, %v4000_v36  ;;  %v3667_v29 = vmul.f32 %v7239_v45, %v9519_v19  ;;  %v11078_v41 = vpop.f32.mrb[107].mxu1 }
 0x3a1   : > { %v3668_v24 = vmul.f32 %v7240_v53, %v9517_v40  ;;  %7094 = vst [vmem:[%s9884_s28 + $0x100] sm:$0xff] %v6554_v52  ;;  %v5459_v47 = vld [vmem:[#allocation2 + $0x200] sm:$0x1]  ;;  %4647 = vst [vmem:[#allocation2 + $0x208] sm:$0xff] %v4539_v37  ;;  %v11069_v30 = vmul.f32 %v12415_v13, %v4108_v3  ;;  %vm3893_vm0 = vcmp.ge.f32.partialorder %v3785_v51, 0.0  ;;  %v3669_v58 = vmul.f32 %v7241_v18, %v9519_v19 }
 0x3a2   : > { %v5491_v54 = vld [vmem:[#allocation2 + $0x200] sm:$0x3]  ;;  %vm3894_vm1 = vcmp.ge.f32.partialorder %v3786_v46, 0.0  ;;  %v6530_v35 = vadd.f32 %v10942_v20, %v11061_v50  ;;  %v11076_v45 = vadd.f32 %v11061_v50, %v10928_v12  ;;  %v5473_v53 = vrot.slane %v5459_v47, 1  ;;  %12416 = vst [vmem:[#allocation58_spill] sm:$0xff] %v11078_v41 }
 0x3a3   : > { %v5503_v5 = vrot.slane %v5491_v54, 2  ;;  %4648 = vst [vmem:[#allocation2 + $0x210] sm:$0xff] %v11069_v30  ;;  %v4001_v43 = vmul.f32 0.01, %v3785_v51  ;;  %v4002_v59 = vmul.f32 0.01, %v3786_v46  ;;  %v3787_v17 = vadd.f32 %v9524_v27, %v3667_v29 }
 0x3a4   : > { %v3788_v18 = vadd.f32 %v9521_v4, %v3668_v24  ;;  %v6555_v15 = vmul.f32 %v6547_v48, %v6530_v35  ;;  %v12417_v20 = vrot.slane %v10982_v10, 1  ;;  %v12418_v12 = vrot.slane %v10982_v10, 2  ;;  %v12419_v29 = vld [vmem:[#allocation20_spill] sm:$0xff] }
 0x3a5   : > { %v3789_v37 = vadd.f32 %v9524_v27, %v3669_v58  ;;  %v4109_v47 = vsel %vm3893_vm0, %v3785_v51, %v4001_v43  ;;  %v4110_v54 = vsel %vm3894_vm1, %v3786_v46, %v4002_v59  ;;  %vm3895_vm2 = vcmp.ge.f32.partialorder %v3787_v17, 0.0  ;;  %v12420_v43 = vld [vmem:[#allocation74_spill] sm:$0xff]  ;;  %v12421_v59 = vld [vmem:[#allocation71_spill] sm:$0xff] }
 0x3a6   : > { %v5474_v36 = vsel %vm4706_vm7, %v12417_v20, %v5473_v53  ;;  %v5504_v52 = vsel %vm4737_vm9, %v12418_v12, %v5503_v5  ;;  %7095 = vst [vmem:[%s9884_s28 + $0x108] sm:$0xff] %v6555_v15  ;;  %v11095_v48 = vmul.f32 %v12415_v13, %v4109_v47  ;;  %v11098_v24 = vmul.f32 %v12419_v29, %v4110_v54  ;;  %v6552_v47 = vpop.permute.xlu1 %6551 }
 0x3a7   : > { %v5483_v3 = vadd.f32 %v5474_v36, %v10982_v10  ;;  %v4003_v35 = vmul.f32 0.01, %v3787_v17  ;;  %vm3896_vm3 = vcmp.ge.f32.partialorder %v3788_v18, 0.0  ;;  %v4004_v5 = vmul.f32 0.01, %v3788_v18 }
 0x3a8   : > { %vm3897_vm4 = vcmp.ge.f32.partialorder %v3789_v37, 0.0  ;;  %v4005_v58 = vmul.f32 0.01, %v3789_v37  ;;  %v5460_v10 = vld [vmem:[#allocation2 + $0x208] sm:$0x1]  ;;  %4649 = vst [vmem:[#allocation2 + $0x218] sm:$0xff] %v11095_v48  ;;  %v7242_v15 = vadd.f32 %v12421_v59, %v12420_v43 }
 0x3a9   : > { %v11100_v53 = vadd.f32 %v5504_v52, %v5483_v3  ;;  %v5492_v20 = vld [vmem:[#allocation2 + $0x208] sm:$0x3]  ;;  %v4111_v13 = vsel %vm3895_vm2, %v3787_v17, %v4003_v35  ;;  %v5475_v52 = vrot.slane %v5460_v10, 1  ;;  %v4112_v17 = vsel %vm3896_vm3, %v3788_v18, %v4004_v5 }
 0x3aa   : > { %v5505_v3 = vrot.slane %v5492_v20, 2  ;;  %v5533_v54 = vld [vmem:[#allocation2 + $0x210] sm:$0xfe]  ;;  %v11114_v51 = vmul.f32 %v12419_v29, %v4111_v13  ;;  %v4113_v35 = vsel %vm3897_vm4, %v3789_v37, %v4005_v58  ;;  %v3670_v43 = vmul.f32 %v7242_v15, %v9517_v40 }
 0x3ab   : > { %v6531_v36 = vadd.f32 %v10978_v31, %v11100_v53  ;;  %v11111_v12 = vadd.f32 %v11100_v53, %v10958_v49  ;;  %v5565_v41 = vld [vmem:[#allocation2 + $0x210] sm:$0xfc]  ;;  %v12422_v59 = vrot.slane %v10998_v8, 1  ;;  %v12423_v10 = vrot.slane %v10998_v8, 2 }
 0x3ac   : > { %v5543_v46 = vrot.slane %v5533_v54, 1  ;;  %v5573_v29 = vrot.slane %v5565_v41, 2  ;;  %v5547_v13 = vrot.slane %v11114_v51, 1  ;;  %v12424_v37 = vrot.slane %v11098_v24, 1  ;;  %v12425_v58 = vld [vmem:[#allocation22_spill] sm:$0xff] }
 0x3ad   : > { %v6556_v31 = vmul.f32 %v6552_v47, %v6531_v36  ;;  %v5476_v49 = vsel %vm4706_vm7, %v12422_v59, %v5475_v52  ;;  %v5506_v20 = vsel %vm4737_vm9, %v12423_v10, %v5505_v3  ;;  %v4544_v15 = vmul.f32 %v12425_v58, %v4112_v17  ;;  %v12427_v59 = vld [vmem:[#allocation75_spill] sm:$0xff]  ;;  %v12430_v17 = vld [vmem:[#allocation76_spill] sm:$0xff] }
 0x3ae   : > { %v5484_v33 = vadd.f32 %v5476_v49, %v10998_v8  ;;  %v5545_v5 = vsel %vm4706_vm7, %v5543_v46, %v12424_v37  ;;  %v4545_v36 = vmul.f32 %v12425_v58, %v4113_v35  ;;  %v3790_v52 = vadd.f32 %v9521_v4, %v3670_v43  ;;  %v12429_v46 = vld [vmem:[#allocation77_spill] sm:$0xff] }
 0x3af   : > { %7096 = vst [vmem:[%s9884_s28 + $0x110] sm:$0xff] %v6556_v31  ;;  %v5557_v8 = vadd.f32 %v5545_v5, %v11069_v30  ;;  %v12426_v41 = vrot.slane %v11098_v24, 2  ;;  %v12428_v31 = vld [vmem:[#allocation73_spill] sm:$0xff]  ;;  %v5534_v10 = vld [vmem:[#allocation2 + $0x218] sm:$0xfe]  ;;  %4652 = vst [vmem:[#allocation2 + $0x230] sm:$0xff] %v4544_v15  ;;  %v7244_v35 = vadd.f32 %v12430_v17, %v12429_v46 }
 0x3b0   : > { %v11135_v3 = vadd.f32 %v5506_v20, %v5484_v33  ;;  %v7243_v49 = vadd.f32 %v12428_v31, %v12427_v59  ;;  %v5566_v18 = vld [vmem:[#allocation2 + $0x218] sm:$0xfc]  ;;  %4653 = vst [vmem:[#allocation2 + $0x238] sm:$0xff] %v4545_v36  ;;  %vm3898_vm5 = vcmp.ge.f32.partialorder %v3790_v52, 0.0  ;;  %v12431_v43 = vld [vmem:[#allocation81_spill] sm:$0xff]  ;;  %v12432_v33 = vld [vmem:[#allocation78_spill] sm:$0xff] }
 0x3b1   : > { %v5575_v54 = vsel %vm4737_vm9, %v5573_v29, %v12426_v41  ;;  %v7245_v20 = vadd.f32 %v12432_v33, %v12431_v43  ;;  %v12433_v37 = vld [vmem:[#allocation85_spill] sm:$0xff]  ;;  %v12434_v30 = vld [vmem:[#allocation80_spill] sm:$0xff]  ;;  %v5546_v15 = vrot.slane %v5534_v10, 1  ;;  %v5576_v36 = vrot.slane %v5566_v18, 2 }
 0x3b2   : > { %v7246_v5 = vadd.f32 %v12434_v30, %v12433_v37  ;;  %v6532_v29 = vadd.f32 %v11004_v44, %v11135_v3  ;;  %v11153_v58 = vadd.f32 %v11135_v3, %v10988_v7  ;;  %v11155_v41 = vadd.f32 %v5575_v54, %v5557_v8  ;;  %v12436_v10 = vld [vmem:[#allocation21_spill] sm:$0xff] }
 0x3b3   : > { %v4006_v59 = vmul.f32 0.01, %v3790_v52  ;;  %v3671_v31 = vmul.f32 %v7243_v49, %v9519_v19  ;;  %v3672_v46 = vmul.f32 %v7244_v35, %v9517_v40  ;;  %v5548_v43 = vsel %vm4706_vm7, %v5546_v15, %v5547_v13  ;;  %v6603_v49 = vpop.permute.xlu0 %6602  ;;  %v12438_v15 = vld [vmem:[#allocation83_spill] sm:$0xff] }
 0x3b4   : > { %v6557_v17 = vmul.f32 %v6552_v47, %v6532_v29  ;;  %v12435_v44 = vrot.slane %v11114_v51, 2  ;;  %v3673_v33 = vmul.f32 %v7245_v20, %v9519_v19  ;;  %v6585_v18 = vadd.f32 %v11045_v26, %v11155_v41 }
 0x3b5   : > { %v11170_v8 = vadd.f32 %v11155_v41, %v11034_v61  ;;  %v5558_v54 = vadd.f32 %v5548_v43, %v11095_v48  ;;  %v4114_v47 = vsel %vm3898_vm5, %v3790_v52, %v4006_v59  ;;  %v3791_v37 = vadd.f32 %v9524_v27, %v3671_v31  ;;  %v12437_v48 = vld [vmem:[#allocation90_spill] sm:$0xff]  ;;  %v12439_v43 = vld [vmem:[#allocation87_spill] sm:$0xff] }
 0x3b6   : > { %v5578_v7 = vsel %vm4737_vm9, %v5576_v36, %v12435_v44  ;;  %7097 = vst [vmem:[%s9884_s28 + $0x118] sm:$0xff] %v6557_v17  ;;  %v11176_v35 = vmul.f32 %v12436_v10, %v4114_v47  ;;  %v3792_v20 = vadd.f32 %v9521_v4, %v3672_v46  ;;  %v3793_v26 = vadd.f32 %v9524_v27, %v3673_v33  ;;  %v5535_v36 = vld [vmem:[#allocation2 + $0x230] sm:$0x1]  ;;  %v12440_v46 = vld [vmem:[#allocation91_spill] sm:$0xff] }
 0x3b7   : > { %v6610_v30 = vmul.f32 %v6603_v49, %v6585_v18  ;;  %v11181_v29 = vadd.f32 %v5578_v7, %v5558_v54  ;;  %v3674_v61 = vmul.f32 %v7246_v5, %v9517_v40  ;;  %v7247_v52 = vadd.f32 %v12438_v15, %v12437_v48  ;;  %v5567_v59 = vld [vmem:[#allocation2 + $0x230] sm:$0x3]  ;;  %v5536_v17 = vld [vmem:[#allocation2 + $0x238] sm:$0x1] }
 0x3b8   : > { %4654 = vst [vmem:[#allocation2 + $0x240] sm:$0xff] %v11176_v35  ;;  %v7248_v31 = vadd.f32 %v12439_v43, %v10583_v62  ;;  %v7249_v44 = vadd.f32 %v12440_v46, %v10589_v21  ;;  %v11193_v7 = vadd.f32 %v10585_v14, %v10615_v60  ;;  %v11197_v5 = vadd.f32 %v10591_v16, %v10628_v39  ;;  %v5568_v21 = vld [vmem:[#allocation2 + $0x238] sm:$0x3] }
 0x3b9   : > { %7100 = vst [vmem:[%s9884_s28 + $0x120] sm:$0xff] %v6610_v30  ;;  %v6586_v33 = vadd.f32 %v11076_v45, %v11181_v29  ;;  %v11204_v18 = vadd.f32 %v11181_v29, %v11061_v50  ;;  %v5549_v62 = vrot.slane %v5535_v36, 1  ;;  %v5579_v54 = vrot.slane %v5567_v59, 2 }
 0x3ba   : > { %v5551_v47 = vrot.slane %v5536_v17, 1  ;;  %v5581_v48 = vrot.slane %v5568_v21, 2  ;;  %vm3899_vm6 = vcmp.ge.f32.partialorder %v3791_v37, 0.0  ;;  %v4007_v14 = vmul.f32 0.01, %v3791_v37 }
 0x3bb   : > { %v6611_v60 = vmul.f32 %v6603_v49, %v6586_v33  ;;  %v12441_v16 = vrot.slane %v11098_v24, 1  ;;  %v12442_v30 = vrot.slane %v11098_v24, 2  ;;  %vm3900_vm8 = vcmp.ge.f32.partialorder %v3792_v20, 0.0 }
 0x3bc   : > { %v5552_v15 = vsel %vm4706_vm7, %v5547_v13, %v5551_v47  ;;  %v12443_v36 = vrot.slane %v11114_v51, 2  ;;  %v4115_v49 = vsel %vm3899_vm6, %v3791_v37, %v4007_v14  ;;  %v4008_v46 = vmul.f32 0.01, %v3792_v20 }
 0x3bd   : > { %v5550_v39 = vsel %vm4706_vm7, %v12441_v16, %v5549_v62  ;;  %v5580_v45 = vsel %vm4737_vm9, %v12442_v30, %v5579_v54  ;;  %7101 = vst [vmem:[%s9884_s28 + $0x128] sm:$0xff] %v6611_v60  ;;  %v5560_v17 = vadd.f32 %v5552_v15, %v11114_v51  ;;  %v4547_v43 = vmul.f32 %v12436_v10, %v4115_v49  ;;  %v6608_v60 = vpop.permute.xlu1 %6607 }
 0x3be   : > { %v5559_v50 = vadd.f32 %v5550_v39, %v11098_v24  ;;  %v5582_v59 = vsel %vm4737_vm9, %v12443_v36, %v5581_v48  ;;  %vm3901_vm10 = vcmp.ge.f32.partialorder %v3793_v26, 0.0  ;;  %v4009_v62 = vmul.f32 0.01, %v3793_v26 }
 0x3bf   : > { %v3794_v24 = vadd.f32 %v9521_v4, %v3674_v61  ;;  %v3675_v54 = vmul.f32 %v7247_v52, %v9519_v19  ;;  %v11226_v13 = vadd.f32 %v5582_v59, %v5560_v17  ;;  %v5609_v21 = vld [vmem:[#allocation2 + $0x240] sm:$0xfe]  ;;  %4655 = vst [vmem:[#allocation2 + $0x248] sm:$0xff] %v4547_v43  ;;  %v4116_v37 = vsel %vm3900_vm8, %v3792_v20, %v4008_v46 }
 0x3c0   : > { %v11222_v33 = vadd.f32 %v5580_v45, %v5559_v50  ;;  %v5641_v47 = vld [vmem:[#allocation2 + $0x240] sm:$0xfc]  ;;  %v3676_v51 = vmul.f32 %v7248_v31, %v9517_v40  ;;  %v3677_v10 = vmul.f32 %v7249_v44, %v9519_v19  ;;  %v5619_v61 = vrot.slane %v5609_v21, 1  ;;  %v12444_v31 = vld [vmem:[#allocation23_spill] sm:$0xff] }
 0x3c1   : > { %v5649_v52 = vrot.slane %v5641_v47, 2  ;;  %v6588_v16 = vadd.f32 %v11153_v58, %v11226_v13  ;;  %v11241_v20 = vadd.f32 %v11226_v13, %v11135_v3  ;;  %v11244_v44 = vmul.f32 %v12444_v31, %v4116_v37  ;;  %v12445_v46 = vld [vmem:[#allocation24_spill] sm:$0xff] }
 0x3c2   : > { %v6587_v48 = vadd.f32 %v11111_v12, %v11222_v33  ;;  %v11235_v14 = vadd.f32 %v11222_v33, %v11100_v53  ;;  %v4117_v12 = vsel %vm3901_vm10, %v3793_v26, %v4009_v62  ;;  %vm3902_vm11 = vcmp.ge.f32.partialorder %v3794_v24, 0.0 }
 0x3c3   : > { %v11248_v53 = vmul.f32 %v12444_v31, %v4117_v12  ;;  %v4010_v30 = vmul.f32 0.01, %v3794_v24  ;;  %v6613_v45 = vmul.f32 %v6608_v60, %v6588_v16  ;;  %v5620_v50 = vrot.slane %v11244_v44, 1 }
 0x3c4   : > { %v6612_v39 = vmul.f32 %v6608_v60, %v6587_v48  ;;  %v5650_v58 = vrot.slane %v11244_v44, 2  ;;  %v3795_v3 = vadd.f32 %v9524_v27, %v3675_v54  ;;  %v3796_v26 = vadd.f32 %v9521_v4, %v3676_v51 }
 0x3c5   : > { %v5623_v15 = vrot.slane %v11248_v53, 1  ;;  %v5653_v36 = vrot.slane %v11248_v53, 2  ;;  %v4118_v59 = vsel %vm3902_vm11, %v3794_v24, %v4010_v30  ;;  %7103 = vst [vmem:[%s9884_s28 + $0x138] sm:$0xff] %v6613_v45  ;;  %v5621_v49 = vsel %vm4706_vm7, %v5619_v61, %v5620_v50 }
 0x3c6   : > { %7102 = vst [vmem:[%s9884_s28 + $0x130] sm:$0xff] %v6612_v39  ;;  %v5651_v17 = vsel %vm4737_vm9, %v5649_v52, %v5650_v58  ;;  %v4550_v62 = vmul.f32 %v12445_v46, %v4118_v59  ;;  %vm3903_vm12 = vcmp.ge.f32.partialorder %v3795_v3, 0.0  ;;  %v5610_v54 = vld [vmem:[#allocation2 + $0x248] sm:$0xfe]  ;;  %v5633_v47 = vadd.f32 %v5621_v49, %v11176_v35  ;;  %v6659_v49 = vpop.permute.xlu0 %6658 }
 0x3c7   : > { %v5642_v21 = vld [vmem:[#allocation2 + $0x248] sm:$0xfc]  ;;  %v4011_v37 = vmul.f32 0.01, %v3795_v3  ;;  %v3797_v24 = vadd.f32 %v9524_v27, %v3677_v10  ;;  %v3678_v51 = vmul.f32 %v11193_v7, %v9517_v40  ;;  %v5622_v48 = vrot.slane %v5610_v54, 1 }
 0x3c8   : > { %v5652_v60 = vrot.slane %v5642_v21, 2  ;;  %4658 = vst [vmem:[#allocation2 + $0x260] sm:$0xff] %v4550_v62  ;;  %vm3904_vm13 = vcmp.ge.f32.partialorder %v3796_v26, 0.0  ;;  %v4012_v61 = vmul.f32 0.01, %v3796_v26  ;;  %v11269_v16 = vadd.f32 %v5651_v17, %v5633_v47  ;;  %v12449_v47 = vld [vmem:[#allocation93_spill] sm:$0xff] }
 0x3c9   : > { %v4119_v52 = vsel %vm3903_vm12, %v3795_v3, %v4011_v37  ;;  %vm3905_vm14 = vcmp.ge.f32.partialorder %v3797_v24, 0.0  ;;  %v4013_v31 = vmul.f32 0.01, %v3797_v24  ;;  %v5624_v35 = vsel %vm4706_vm7, %v5622_v48, %v5623_v15  ;;  %v12446_v3 = vld [vmem:[#allocation25_spill] sm:$0xff] }
 0x3ca   : > { %v5654_v10 = vsel %vm4737_vm9, %v5652_v60, %v5653_v36  ;;  %v4551_v7 = vmul.f32 %v12445_v46, %v4119_v52  ;;  %v4120_v12 = vsel %vm3904_vm13, %v3796_v26, %v4012_v61  ;;  %v6641_v39 = vadd.f32 %v11170_v8, %v11269_v16  ;;  %v12447_v46 = vld [vmem:[#allocation92_spill] sm:$0xff] }
 0x3cb   : > { %v11282_v30 = vadd.f32 %v11269_v16, %v11155_v41  ;;  %v5634_v45 = vadd.f32 %v5624_v35, %v4547_v43  ;;  %v11285_v59 = vmul.f32 %v12446_v3, %v4120_v12  ;;  %v4121_v17 = vsel %vm3905_vm14, %v3797_v24, %v4013_v31  ;;  %v12448_v43 = vld [vmem:[#allocation95_spill] sm:$0xff]  ;;  %v12450_v31 = vld [vmem:[#allocation40_spill] sm:$0xff]  ;;  %v12451_v35 = vld [vmem:[#allocation94_spill] sm:$0xff] }
 0x3cc   : > { %4659 = vst [vmem:[#allocation2 + $0x268] sm:$0xff] %v4551_v7  ;;  %v3798_v62 = vadd.f32 %v9521_v4, %v3678_v51  ;;  %v3679_v26 = vmul.f32 %v11197_v5, %v9519_v19  ;;  %v7252_v8 = vadd.f32 %v12447_v46, %v10642_v11  ;;  %v6666_v54 = vmul.f32 %v6659_v49, %v6641_v39 }
 0x3cd   : > { %v11292_v21 = vadd.f32 %v5654_v10, %v5634_v45  ;;  %4660 = vst [vmem:[#allocation2 + $0x270] sm:$0xff] %v11285_v59  ;;  %v11296_v41 = vmul.f32 %v12446_v3, %v4121_v17  ;;  %v7253_v37 = vadd.f32 %v12449_v47, %v12448_v43  ;;  %v7254_v10 = vadd.f32 %v12451_v35, %v12450_v31 }
 0x3ce   : > { %vm3906_vm15 = vcmp.ge.f32.partialorder %v3798_v62, 0.0  ;;  %v4014_v24 = vmul.f32 0.01, %v3798_v62  ;;  %v3799_v51 = vadd.f32 %v9524_v27, %v3679_v26  ;;  %v3680_v5 = vmul.f32 %v7252_v8, %v9517_v40  ;;  %7106 = vst [vmem:[%s9884_s28 + $0x140] sm:$0xff] %v6666_v54 }
 0x3cf   : > { %v6642_v11 = vadd.f32 %v11204_v18, %v11292_v21  ;;  %v11307_v48 = vadd.f32 %v11292_v21, %v11181_v29  ;;  %v5611_v60 = vld [vmem:[#allocation2 + $0x260] sm:$0x1]  ;;  %4661 = vst [vmem:[#allocation2 + $0x278] sm:$0xff] %v11296_v41  ;;  %v3681_v52 = vmul.f32 %v7253_v37, %v9519_v19  ;;  %v12452_v18 = vld [vmem:[#allocation26_spill] sm:$0xff] }
 0x3d0   : > { %v5643_v61 = vld [vmem:[#allocation2 + $0x260] sm:$0x3]  ;;  %v5625_v7 = vrot.slane %v5611_v60, 1  ;;  %v4122_v39 = vsel %vm3906_vm15, %v3798_v62, %v4014_v24  ;;  %vm3907_vm0 = vcmp.ge.f32.partialorder %v3799_v51, 0.0  ;;  %v4015_v29 = vmul.f32 0.01, %v3799_v51 }
 0x3d1   : > { %v5655_v12 = vrot.slane %v5643_v61, 2  ;;  %v6667_v45 = vmul.f32 %v6659_v49, %v6642_v11  ;;  %v11314_v3 = vmul.f32 %v12452_v18, %v4122_v39  ;;  %v3800_v17 = vadd.f32 %v9521_v4, %v3680_v5 }
 0x3d2   : > { %v5626_v26 = vsel %vm4706_vm7, %v5620_v50, %v5625_v7  ;;  %v3801_v8 = vadd.f32 %v9524_v27, %v3681_v52  ;;  %v3682_v62 = vmul.f32 %v7254_v10, %v9517_v40  ;;  %v4123_v24 = vsel %vm3907_vm0, %v3799_v51, %v4015_v29 }
 0x3d3   : > { %v5656_v46 = vsel %vm4737_vm9, %v5650_v58, %v5655_v12  ;;  %7107 = vst [vmem:[%s9884_s28 + $0x148] sm:$0xff] %v6667_v45  ;;  %v5635_v49 = vadd.f32 %v5626_v26, %v11244_v44  ;;  %v5612_v54 = vld [vmem:[#allocation2 + $0x268] sm:$0x1]  ;;  %v5696_v47 = vrot.slane %v11314_v3, 1  ;;  %v5726_v37 = vrot.slane %v11314_v3, 2  ;;  %v6664_v26 = vpop.permute.xlu1 %6663 }
 0x3d4   : > { %v5644_v43 = vld [vmem:[#allocation2 + $0x268] sm:$0x3]  ;;  %v5627_v5 = vrot.slane %v5612_v54, 1  ;;  %v5685_v11 = vld [vmem:[#allocation2 + $0x270] sm:$0xfe]  ;;  %v11330_v58 = vmul.f32 %v12452_v18, %v4123_v24  ;;  %v3802_v61 = vadd.f32 %v9521_v4, %v3682_v62  ;;  %vm3908_vm1 = vcmp.ge.f32.partialorder %v3800_v17, 0.0 }
 0x3d5   : > { %v5657_v50 = vrot.slane %v5644_v43, 2  ;;  %v5717_v60 = vld [vmem:[#allocation2 + $0x270] sm:$0xfc]  ;;  %v11333_v52 = vadd.f32 %v5656_v46, %v5635_v49  ;;  %v5695_v31 = vrot.slane %v5685_v11, 1  ;;  %v4016_v49 = vmul.f32 0.01, %v3800_v17 }
 0x3d6   : > { %v5725_v44 = vrot.slane %v5717_v60, 2  ;;  %v5628_v35 = vsel %vm4706_vm7, %v5623_v15, %v5627_v5  ;;  %v5686_v10 = vld [vmem:[#allocation2 + $0x278] sm:$0xfe]  ;;  %v5699_v12 = vrot.slane %v11330_v58, 1  ;;  %v5729_v39 = vrot.slane %v11330_v58, 2 }
 0x3d7   : > { %v5658_v51 = vsel %vm4737_vm9, %v5653_v36, %v5657_v50  ;;  %v5718_v7 = vld [vmem:[#allocation2 + $0x278] sm:$0xfc]  ;;  %v6643_v45 = vadd.f32 %v11235_v14, %v11333_v52  ;;  %v11347_v18 = vadd.f32 %v11333_v52, %v11222_v33  ;;  %v5636_v15 = vadd.f32 %v5628_v35, %v11248_v53 }
 0x3d8   : > { %v5698_v29 = vrot.slane %v5686_v10, 1  ;;  %v5728_v46 = vrot.slane %v5718_v7, 2  ;;  %v5697_v36 = vsel %vm4706_vm7, %v5695_v31, %v5696_v47  ;;  %v5727_v62 = vsel %vm4737_vm9, %v5725_v44, %v5726_v37  ;;  %v12453_v60 = vld [vmem:[#allocation27_spill] sm:$0xff]  ;;  %v12455_v10 = vld [vmem:[#allocation42_spill] sm:$0xff] }
 0x3d9   : > { %v6668_v14 = vmul.f32 %v6664_v26, %v6643_v45  ;;  %v11356_v54 = vadd.f32 %v5658_v51, %v5636_v15  ;;  %v5709_v33 = vadd.f32 %v5697_v36, %v11285_v59  ;;  %v4124_v5 = vsel %vm3908_vm1, %v3800_v17, %v4016_v49  ;;  %v6715_v45 = vpop.permute.xlu0 %6714  ;;  %v12456_v36 = vld [vmem:[#allocation28_spill] sm:$0xff] }
 0x3da   : > { %v5700_v53 = vsel %vm4706_vm7, %v5698_v29, %v5699_v12  ;;  %v5730_v24 = vsel %vm4737_vm9, %v5728_v46, %v5729_v39  ;;  %vm3909_vm2 = vcmp.ge.f32.partialorder %v3801_v8, 0.0  ;;  %v4017_v44 = vmul.f32 0.01, %v3801_v8 }
 0x3db   : > { %v5710_v43 = vadd.f32 %v5700_v53, %v11296_v41  ;;  %7108 = vst [vmem:[%s9884_s28 + $0x150] sm:$0xff] %v6668_v14  ;;  %v6644_v50 = vadd.f32 %v11241_v20, %v11356_v54  ;;  %v11372_v59 = vadd.f32 %v11356_v54, %v11226_v13  ;;  %v11374_v11 = vadd.f32 %v5727_v62, %v5709_v33  ;;  %v12454_v13 = vld [vmem:[#allocation79_spill] sm:$0xff]  ;;  %v12457_v33 = vld [vmem:[#allocation44_spill] sm:$0xff] }
 0x3dc   : > { %v4556_v41 = vmul.f32 %v12453_v60, %v4124_v5  ;;  %vm3910_vm3 = vcmp.ge.f32.partialorder %v3802_v61, 0.0  ;;  %v4018_v35 = vmul.f32 0.01, %v3802_v61  ;;  %v7255_v7 = vadd.f32 %v12455_v10, %v12454_v13 }
 0x3dd   : > { %v11377_v31 = vadd.f32 %v5730_v24, %v5710_v43  ;;  %v6669_v17 = vmul.f32 %v6664_v26, %v6644_v50  ;;  %v6697_v51 = vadd.f32 %v11282_v30, %v11374_v11  ;;  %v11383_v20 = vadd.f32 %v11374_v11, %v11269_v16  ;;  %v12459_v43 = vld [vmem:[#allocation86_spill] sm:$0xff]  ;;  %v12462_v50 = vld [vmem:[#allocation88_spill] sm:$0xff] }
 0x3de   : > { %4664 = vst [vmem:[#allocation2 + $0x290] sm:$0xff] %v4556_v41  ;;  %v4125_v26 = vsel %vm3909_vm2, %v3801_v8, %v4017_v44  ;;  %v4126_v30 = vsel %vm3910_vm3, %v3802_v61, %v4018_v35  ;;  %v3683_v49 = vmul.f32 %v7255_v7, %v9519_v19  ;;  %v12461_v8 = vld [vmem:[#allocation84_spill] sm:$0xff]  ;;  %v12463_v41 = vld [vmem:[#allocation43_spill] sm:$0xff]  ;;  %v7261_v35 = vadd.f32 %v10748_v0, %v10772_v38 }
 0x3df   : > { %v6698_v15 = vadd.f32 %v11307_v48, %v11377_v31  ;;  %v11391_v29 = vadd.f32 %v11377_v31, %v11292_v21  ;;  %7109 = vst [vmem:[%s9884_s28 + $0x158] sm:$0xff] %v6669_v17  ;;  %v6722_v16 = vmul.f32 %v6715_v45, %v6697_v51  ;;  %v4557_v46 = vmul.f32 %v12453_v60, %v4125_v26  ;;  %v12458_v48 = vld [vmem:[#allocation41_spill] sm:$0xff]  ;;  %v12460_v21 = vld [vmem:[#allocation82_spill] sm:$0xff] }
 0x3e0   : > { %v11397_v62 = vmul.f32 %v12456_v36, %v4126_v30  ;;  %v7256_v53 = vadd.f32 %v12458_v48, %v12457_v33  ;;  %v7257_v24 = vadd.f32 %v12460_v21, %v12459_v43  ;;  %v7258_v61 = vadd.f32 %v12461_v8, %v10733_v28 }
 0x3e1   : > { %v6723_v14 = vmul.f32 %v6715_v45, %v6698_v15  ;;  %7112 = vst [vmem:[%s9884_s28 + $0x160] sm:$0xff] %v6722_v16  ;;  %4665 = vst [vmem:[#allocation2 + $0x298] sm:$0xff] %v4557_v46  ;;  %v3803_v5 = vadd.f32 %v9524_v27, %v3683_v49  ;;  %v7259_v60 = vadd.f32 %v12462_v50, %v10746_v9 }
 0x3e2   : > { %4666 = vst [vmem:[#allocation2 + $0x2a0] sm:$0xff] %v11397_v62  ;;  %v7260_v44 = vadd.f32 %v12463_v41, %v10759_v1  ;;  %v3684_v17 = vmul.f32 %v7256_v53, %v9517_v40  ;;  %v3685_v28 = vmul.f32 %v7257_v24, %v9519_v19  ;;  %v3686_v51 = vmul.f32 %v7258_v61, %v9517_v40  ;;  %v12464_v41 = vld [vmem:[#allocation29_spill] sm:$0xff] }
 0x3e3   : > { %7113 = vst [vmem:[%s9884_s28 + $0x168] sm:$0xff] %v6723_v14  ;;  %v7262_v13 = vadd.f32 %v10761_v6, %v10800_v25  ;;  %vm3911_vm4 = vcmp.ge.f32.partialorder %v3803_v5, 0.0  ;;  %v4019_v10 = vmul.f32 0.01, %v3803_v5  ;;  %v3687_v9 = vmul.f32 %v7259_v60, %v9519_v19 }
 0x3e4   : > { %v3688_v7 = vmul.f32 %v7260_v44, %v9517_v40  ;;  %v3804_v0 = vadd.f32 %v9521_v4, %v3684_v17  ;;  %v3805_v38 = vadd.f32 %v9524_v27, %v3685_v28  ;;  %v3806_v15 = vadd.f32 %v9521_v4, %v3686_v51 }
 0x3e5   : > { %v5687_v1 = vld [vmem:[#allocation2 + $0x290] sm:$0x1]  ;;  %v3689_v26 = vmul.f32 %v7261_v35, %v9519_v19  ;;  %v4127_v46 = vsel %vm3911_vm4, %v3803_v5, %v4019_v10  ;;  %v11428_v6 = vadd.f32 %v9524_v27, %v3687_v9 }
 0x3e6   : > { %v5719_v45 = vld [vmem:[#allocation2 + $0x290] sm:$0x3]  ;;  %v5701_v30 = vrot.slane %v5687_v1, 1  ;;  %v11431_v25 = vmul.f32 %v12456_v36, %v4127_v46  ;;  %vm3912_vm5 = vcmp.ge.f32.partialorder %v3804_v0, 0.0  ;;  %v4020_v49 = vmul.f32 0.01, %v3804_v0 }
 0x3e7   : > { %v5731_v16 = vrot.slane %v5719_v45, 2  ;;  %vm3913_vm6 = vcmp.ge.f32.partialorder %v3805_v38, 0.0  ;;  %v4021_v48 = vmul.f32 0.01, %v3805_v38  ;;  %vm3914_vm8 = vcmp.ge.f32.partialorder %v3806_v15, 0.0 }
 0x3e8   : > { %v5702_v14 = vsel %vm4706_vm7, %v5696_v47, %v5701_v30  ;;  %v5688_v43 = vld [vmem:[#allocation2 + $0x298] sm:$0x1]  ;;  %4667 = vst [vmem:[#allocation2 + $0x2a8] sm:$0xff] %v11431_v25  ;;  %v4128_v36 = vsel %vm3912_vm5, %v3804_v0, %v4020_v49  ;;  %v3808_v8 = vadd.f32 %v9521_v4, %v3688_v7  ;;  %v3809_v61 = vadd.f32 %v9524_v27, %v3689_v26 }
 0x3e9   : > { %v5732_v33 = vsel %vm4737_vm9, %v5726_v37, %v5731_v16  ;;  %v5711_v53 = vadd.f32 %v5702_v14, %v11314_v3  ;;  %v5720_v21 = vld [vmem:[#allocation2 + $0x298] sm:$0x3]  ;;  %v5761_v24 = vld [vmem:[#allocation2 + $0x2a0] sm:$0xfe]  ;;  %v5703_v5 = vrot.slane %v5688_v43, 1  ;;  %v11444_v37 = vmul.f32 %v12464_v41, %v4128_v36  ;;  %v12465_v14 = vld [vmem:[#allocation30_spill] sm:$0xff] }
 0x3ea   : > { %v5733_v47 = vrot.slane %v5720_v21, 2  ;;  %v5771_v50 = vrot.slane %v5761_v24, 1  ;;  %v5793_v60 = vld [vmem:[#allocation2 + $0x2a0] sm:$0xfc]  ;;  %v4129_v35 = vsel %vm3913_vm6, %v3805_v38, %v4021_v48  ;;  %v4022_v17 = vmul.f32 0.01, %v3806_v15 }
 0x3eb   : > { %v11446_v44 = vadd.f32 %v5732_v33, %v5711_v53  ;;  %v5801_v3 = vrot.slane %v5793_v60, 2  ;;  %v5704_v28 = vsel %vm4706_vm7, %v5699_v12, %v5703_v5  ;;  %v5772_v10 = vrot.slane %v11444_v37, 1  ;;  %v6720_v12 = vpop.permute.xlu1 %6719 }
 0x3ec   : > { %v5734_v51 = vsel %vm4737_vm9, %v5729_v39, %v5733_v47  ;;  %v5802_v9 = vrot.slane %v11444_v37, 2  ;;  %v5712_v45 = vadd.f32 %v5704_v28, %v11330_v58  ;;  %v11465_v0 = vmul.f32 %v12464_v41, %v4129_v35 }
 0x3ed   : > { %v6699_v7 = vadd.f32 %v11347_v18, %v11446_v44  ;;  %v11461_v1 = vadd.f32 %v11446_v44, %v11333_v52  ;;  %v5773_v39 = vsel %vm4706_vm7, %v5771_v50, %v5772_v10  ;;  %v4130_v18 = vsel %vm3914_vm8, %v3806_v15, %v4022_v17 }
 0x3ee   : > { %v5803_v38 = vsel %vm4737_vm9, %v5801_v3, %v5802_v9  ;;  %vm3915_vm10 = vcmp.ge.f32.partialorder %v11428_v6, 0.0  ;;  %v11475_v26 = vadd.f32 %v5734_v51, %v5712_v45  ;;  %v5785_v58 = vadd.f32 %v5773_v39, %v11397_v62  ;;  %v6771_v3 = vpop.permute.xlu0 %6770  ;;  %v12468_v39 = vld [vmem:[#allocation89_spill] sm:$0xff] }
 0x3ef   : > { %v6724_v52 = vmul.f32 %v6720_v12, %v6699_v7  ;;  %v5775_v30 = vrot.slane %v11465_v0, 1  ;;  %v5762_v16 = vld [vmem:[#allocation2 + $0x2a8] sm:$0xfe]  ;;  %v5805_v49 = vrot.slane %v11465_v0, 2  ;;  %v4562_v33 = vmul.f32 %v12465_v14, %v4130_v18  ;;  %v12469_v18 = vld [vmem:[#allocation48_spill] sm:$0xff] }
 0x3f0   : > { %v5794_v46 = vld [vmem:[#allocation2 + $0x2a8] sm:$0xfc]  ;;  %vm3916_vm11 = vcmp.ge.f32.partialorder %v3808_v8, 0.0  ;;  %v3690_v48 = vmul.f32 %v7262_v13, %v9517_v40  ;;  %v6700_v15 = vadd.f32 %v11372_v59, %v11475_v26  ;;  %v11487_v53 = vadd.f32 %v11475_v26, %v11356_v54 }
 0x3f1   : > { %7114 = vst [vmem:[%s9884_s28 + $0x170] sm:$0xff] %v6724_v52  ;;  %v5774_v62 = vrot.slane %v5762_v16, 1  ;;  %v5804_v43 = vrot.slane %v5794_v46, 2  ;;  %v11489_v21 = vadd.f32 %v5803_v38, %v5785_v58  ;;  %4670 = vst [vmem:[#allocation2 + $0x2c0] sm:$0xff] %v4562_v33  ;;  %v4023_v24 = vmul.f32 0.01, %v11428_v6 }
 0x3f2   : > { %v4024_v36 = vmul.f32 0.01, %v3808_v8  ;;  %vm3917_vm12 = vcmp.ge.f32.partialorder %v3809_v61, 0.0  ;;  %v6725_v5 = vmul.f32 %v6720_v12, %v6700_v15  ;;  %v4025_v59 = vmul.f32 0.01, %v3809_v61  ;;  %v12467_v12 = vld [vmem:[#allocation46_spill] sm:$0xff] }
 0x3f3   : > { %v5776_v13 = vsel %vm4706_vm7, %v5774_v62, %v5775_v30  ;;  %v5806_v54 = vsel %vm4737_vm9, %v5804_v43, %v5805_v49  ;;  %v6753_v47 = vadd.f32 %v11383_v20, %v11489_v21  ;;  %v11502_v50 = vadd.f32 %v11489_v21, %v11374_v11  ;;  %v12466_v11 = vld [vmem:[#allocation32_spill] sm:$0xff]  ;;  %v12472_v46 = vld [vmem:[#allocation45_spill] sm:$0xff]  ;;  %v12473_v33 = vld [vmem:[#allocation50_spill] sm:$0xff] }
 0x3f4   : > { %v5786_v60 = vadd.f32 %v5776_v13, %v11431_v25  ;;  %v4131_v41 = vsel %vm3915_vm10, %v11428_v6, %v4023_v24  ;;  %7115 = vst [vmem:[%s9884_s28 + $0x178] sm:$0xff] %v6725_v5  ;;  %v4132_v17 = vsel %vm3916_vm11, %v3808_v8, %v4024_v36  ;;  %v4133_v28 = vsel %vm3917_vm12, %v3809_v61, %v4025_v59  ;;  %v12470_v8 = vld [vmem:[#allocation47_spill] sm:$0xff]  ;;  %v12471_v16 = vld [vmem:[#allocation8_spill] sm:$0xff]  ;;  %v12476_v5 = vld [vmem:[#allocation9_spill] sm:$0xff] }
 0x3f5   : > { %v4563_v35 = vmul.f32 %v12465_v14, %v4131_v41  ;;  %v3810_v20 = vadd.f32 %v9521_v4, %v3690_v48  ;;  %v6778_v51 = vmul.f32 %v6771_v3, %v6753_v47  ;;  %v11515_v45 = vmul.f32 %v12466_v11, %v4132_v17  ;;  %v12474_v48 = vld [vmem:[#allocation49_spill] sm:$0xff] }
 0x3f6   : > { %v11512_v7 = vadd.f32 %v5806_v54, %v5786_v60  ;;  %v11518_v25 = vmul.f32 %v12466_v11, %v4133_v28  ;;  %v7263_v38 = vadd.f32 %v12468_v39, %v12467_v12  ;;  %v7264_v61 = vadd.f32 %v12470_v8, %v12469_v18  ;;  %v12477_v60 = vld [vmem:[#allocation31_spill] sm:$0xff] }
 0x3f7   : > { %4671 = vst [vmem:[#allocation2 + $0x2c8] sm:$0xff] %v4563_v35  ;;  %vm3918_vm13 = vcmp.ge.f32.partialorder %v3810_v20, 0.0  ;;  %v4026_v6 = vmul.f32 0.01, %v3810_v20  ;;  %7118 = vst [vmem:[%s9884_s28 + $0x180] sm:$0xff] %v6778_v51  ;;  %v7265_v14 = vadd.f32 %v12472_v46, %v12471_v16  ;;  %v7266_v15 = vadd.f32 %v12474_v48, %v12473_v33 }
 0x3f8   : > { %v6754_v52 = vadd.f32 %v11391_v29, %v11512_v7  ;;  %v11529_v58 = vadd.f32 %v11512_v7, %v11377_v31  ;;  %4672 = vst [vmem:[#allocation2 + $0x2d0] sm:$0xff] %v11515_v45  ;;  %4673 = vst [vmem:[#allocation2 + $0x2d8] sm:$0xff] %v11518_v25  ;;  %v5763_v62 = vld [vmem:[#allocation2 + $0x2c0] sm:$0x1]  ;;  %v3691_v29 = vmul.f32 %v7263_v38, %v9519_v19  ;;  %v12475_v31 = vld [vmem:[#allocation53_spill] sm:$0xff] }
 0x3f9   : > { %v5795_v43 = vld [vmem:[#allocation2 + $0x2c0] sm:$0x3]  ;;  %v4134_v24 = vsel %vm3918_vm13, %v3810_v20, %v4026_v6  ;;  %v3692_v36 = vmul.f32 %v7264_v61, %v9517_v40  ;;  %v7267_v13 = vadd.f32 %v12476_v5, %v12475_v31  ;;  %v5777_v59 = vrot.slane %v5763_v62, 1 }
 0x3fa   : > { %v6779_v54 = vmul.f32 %v6771_v3, %v6754_v52  ;;  %v5807_v47 = vrot.slane %v5795_v43, 2  ;;  %v11542_v41 = vmul.f32 %v12477_v60, %v4134_v24  ;;  %v3811_v35 = vadd.f32 %v9524_v27, %v3691_v29 }
 0x3fb   : > { %v3812_v17 = vadd.f32 %v9521_v4, %v3692_v36  ;;  %v3693_v28 = vmul.f32 %v7265_v14, %v9519_v19  ;;  %v3694_v20 = vmul.f32 %v7266_v15, %v9517_v40  ;;  %v5778_v51 = vsel %vm4706_vm7, %v5772_v10, %v5777_v59 }
 0x3fc   : > { %7119 = vst [vmem:[%s9884_s28 + $0x188] sm:$0xff] %v6779_v54  ;;  %v5808_v3 = vsel %vm4737_vm9, %v5802_v9, %v5807_v47  ;;  %v5848_v11 = vrot.slane %v11542_v41, 1  ;;  %v5878_v6 = vrot.slane %v11542_v41, 2  ;;  %v5787_v12 = vadd.f32 %v5778_v51, %v11444_v37  ;;  %v6776_v54 = vpop.permute.xlu1 %6775 }
 0x3fd   : > { %vm3919_vm14 = vcmp.ge.f32.partialorder %v3811_v35, 0.0  ;;  %v4027_v39 = vmul.f32 0.01, %v3811_v35  ;;  %vm3920_vm15 = vcmp.ge.f32.partialorder %v3812_v17, 0.0  ;;  %v4028_v8 = vmul.f32 0.01, %v3812_v17 }
 0x3fe   : > { %v5764_v38 = vld [vmem:[#allocation2 + $0x2c8] sm:$0x1]  ;;  %v3813_v61 = vadd.f32 %v9524_v27, %v3693_v28  ;;  %v3814_v10 = vadd.f32 %v9521_v4, %v3694_v20  ;;  %v3695_v52 = vmul.f32 %v7267_v13, %v9519_v19  ;;  %v11561_v16 = vadd.f32 %v5808_v3, %v5787_v12 }
 0x3ff   : > { %v5796_v18 = vld [vmem:[#allocation2 + $0x2c8] sm:$0x3]  ;;  %v5779_v9 = vrot.slane %v5764_v38, 1  ;;  %v5837_v14 = vld [vmem:[#allocation2 + $0x2d0] sm:$0xfe]  ;;  %v4135_v48 = vsel %vm3919_vm14, %v3811_v35, %v4027_v39  ;;  %v4136_v29 = vsel %vm3920_vm15, %v3812_v17, %v4028_v8 }
 0x400   : > { %v5809_v46 = vrot.slane %v5796_v18, 2  ;;  %v5869_v33 = vld [vmem:[#allocation2 + $0x2d0] sm:$0xfc]  ;;  %v5847_v37 = vrot.slane %v5837_v14, 1  ;;  %v5838_v62 = vld [vmem:[#allocation2 + $0x2d8] sm:$0xfe]  ;;  %v11564_v24 = vmul.f32 %v12477_v60, %v4135_v48  ;;  %v6755_v36 = vadd.f32 %v11461_v1, %v11561_v16 }
 0x401   : > { %v5877_v15 = vrot.slane %v5869_v33, 2  ;;  %v5870_v43 = vld [vmem:[#allocation2 + $0x2d8] sm:$0xfc]  ;;  %v11571_v31 = vadd.f32 %v11561_v16, %v11446_v44  ;;  %v5780_v5 = vsel %vm4706_vm7, %v5775_v30, %v5779_v9  ;;  %v5850_v47 = vrot.slane %v5838_v62, 1 }
 0x402   : > { %v5810_v13 = vsel %vm4737_vm9, %v5805_v49, %v5809_v46  ;;  %v5788_v59 = vadd.f32 %v5780_v5, %v11465_v0  ;;  %v5880_v60 = vrot.slane %v5870_v43, 2  ;;  %v5849_v1 = vsel %vm4706_vm7, %v5847_v37, %v5848_v11  ;;  %v12478_v0 = vld [vmem:[#allocation34_spill] sm:$0xff]  ;;  %v12479_v48 = vld [vmem:[#allocation11_spill] sm:$0xff] }
 0x403   : > { %v6780_v44 = vmul.f32 %v6776_v54, %v6755_v36  ;;  %v5861_v35 = vadd.f32 %v5849_v1, %v11515_v45  ;;  %v5879_v30 = vsel %vm4737_vm9, %v5877_v15, %v5878_v6  ;;  %v5851_v17 = vrot.slane %v11564_v24, 1  ;;  %v12480_v37 = vld [vmem:[#allocation10_spill] sm:$0xff] }
 0x404   : > { %v11588_v28 = vadd.f32 %v5810_v13, %v5788_v59  ;;  %v5881_v49 = vrot.slane %v11564_v24, 2  ;;  %v4568_v20 = vmul.f32 %v12478_v0, %v4136_v29  ;;  %vm3921_vm0 = vcmp.ge.f32.partialorder %v3813_v61, 0.0 }
 0x405   : > { %7120 = vst [vmem:[%s9884_s28 + $0x190] sm:$0xff] %v6780_v44  ;;  %v11593_v51 = vadd.f32 %v5879_v30, %v5861_v35  ;;  %v5852_v45 = vsel %vm4706_vm7, %v5850_v47, %v5851_v17  ;;  %v4029_v3 = vmul.f32 0.01, %v3813_v61  ;;  %vm3922_vm1 = vcmp.ge.f32.partialorder %v3814_v10, 0.0 }
 0x406   : > { %v6756_v12 = vadd.f32 %v11487_v53, %v11588_v28  ;;  %v11602_v39 = vadd.f32 %v11588_v28, %v11475_v26  ;;  %v5862_v38 = vadd.f32 %v5852_v45, %v11518_v25  ;;  %v5882_v18 = vsel %vm4737_vm9, %v5880_v60, %v5881_v49  ;;  %4676 = vst [vmem:[#allocation2 + $0x2f0] sm:$0xff] %v4568_v20  ;;  %v6827_v53 = vpop.permute.xlu0 %6826 }
 0x407   : > { %v6809_v8 = vadd.f32 %v11502_v50, %v11593_v51  ;;  %v4137_v9 = vsel %vm3921_vm0, %v3813_v61, %v4029_v3  ;;  %v4030_v46 = vmul.f32 0.01, %v3814_v10  ;;  %v3815_v14 = vadd.f32 %v9524_v27, %v3695_v52  ;;  %v12481_v61 = vld [vmem:[#allocation33_spill] sm:$0xff] }
 0x408   : > { %v6781_v33 = vmul.f32 %v6776_v54, %v6756_v12  ;;  %v11611_v26 = vadd.f32 %v5882_v18, %v5862_v38  ;;  %v4569_v25 = vmul.f32 %v12478_v0, %v4137_v9  ;;  %v7268_v15 = vadd.f32 %v12480_v37, %v12479_v48 }
 0x409   : > { %v6834_v62 = vmul.f32 %v6827_v53, %v6809_v8  ;;  %v4138_v43 = vsel %vm3922_vm1, %v3814_v10, %v4030_v46  ;;  %vm3923_vm2 = vcmp.ge.f32.partialorder %v3815_v14, 0.0  ;;  %v4031_v29 = vmul.f32 0.01, %v3815_v14  ;;  %v12482_v10 = vld [vmem:[#allocation52_spill] sm:$0xff]  ;;  %v12484_v46 = vld [vmem:[#allocation35_spill] sm:$0xff] }
 0x40a   : > { %7121 = vst [vmem:[%s9884_s28 + $0x198] sm:$0xff] %v6781_v33  ;;  %v6810_v50 = vadd.f32 %v11529_v58, %v11611_v26  ;;  %4677 = vst [vmem:[#allocation2 + $0x2f8] sm:$0xff] %v4569_v25  ;;  %v11621_v52 = vmul.f32 %v12481_v61, %v4138_v43  ;;  %v3696_v36 = vmul.f32 %v7268_v15, %v9517_v40  ;;  %v12483_v58 = vld [vmem:[#allocation55_spill] sm:$0xff] }
 0x40b   : > { %v11626_v5 = vadd.f32 %v11593_v51, %v11489_v21  ;;  %7124 = vst [vmem:[%s9884_s28 + $0x1a0] sm:$0xff] %v6834_v62  ;;  %v4139_v13 = vsel %vm3923_vm2, %v3815_v14, %v4031_v29  ;;  %v7269_v54 = vadd.f32 %v12482_v10, %v10891_v22  ;;  %v11633_v59 = vadd.f32 %v11611_v26, %v11512_v7 }
 0x40c   : > { %v7270_v47 = vadd.f32 %v12483_v58, %v10934_v23  ;;  %v6835_v60 = vmul.f32 %v6827_v53, %v6810_v50  ;;  %4678 = vst [vmem:[#allocation2 + $0x300] sm:$0xff] %v11621_v52  ;;  %v11639_v1 = vmul.f32 %v12481_v61, %v4139_v13  ;;  %v3816_v21 = vadd.f32 %v9521_v4, %v3696_v36 }
 0x40d   : > { %v7271_v44 = vadd.f32 %v10918_v32, %v10945_v63  ;;  %v5839_v35 = vld [vmem:[#allocation2 + $0x2f0] sm:$0x1]  ;;  %v3697_v30 = vmul.f32 %v7269_v54, %v9519_v19  ;;  %v7272_v23 = vadd.f32 %v10936_v2, %v10969_v34  ;;  %v7273_v0 = vadd.f32 %v10953_v42, %v10984_v55 }
 0x40e   : > { %v5871_v22 = vld [vmem:[#allocation2 + $0x2f0] sm:$0x3]  ;;  %v3698_v7 = vmul.f32 %v7270_v47, %v9517_v40  ;;  %7125 = vst [vmem:[%s9884_s28 + $0x1a8] sm:$0xff] %v6835_v60  ;;  %v5853_v20 = vrot.slane %v5839_v35, 1  ;;  %4679 = vst [vmem:[#allocation2 + $0x308] sm:$0xff] %v11639_v1  ;;  %vm3924_vm3 = vcmp.ge.f32.partialorder %v3816_v21, 0.0  ;;  %v6832_v60 = vpop.permute.xlu1 %6831 }
 0x40f   : > { %v5883_v45 = vrot.slane %v5871_v22, 2  ;;  %v4032_v3 = vmul.f32 0.01, %v3816_v21  ;;  %v3817_v32 = vadd.f32 %v9524_v27, %v3697_v30  ;;  %v3699_v12 = vmul.f32 %v7271_v44, %v9519_v19  ;;  %v12485_v30 = vld [vmem:[#allocation36_spill] sm:$0xff] }
 0x410   : > { %v3818_v63 = vadd.f32 %v9521_v4, %v3698_v7  ;;  %v3700_v38 = vmul.f32 %v7272_v23, %v9517_v40  ;;  %v5854_v2 = vsel %vm4706_vm7, %v5848_v11, %v5853_v20  ;;  %v3701_v55 = vmul.f32 %v7273_v0, %v9519_v19 }
 0x411   : > { %v5884_v42 = vsel %vm4737_vm9, %v5878_v6, %v5883_v45  ;;  %v4140_v34 = vsel %vm3924_vm3, %v3816_v21, %v4032_v3  ;;  %v5863_v18 = vadd.f32 %v5854_v2, %v11542_v41  ;;  %v5840_v8 = vld [vmem:[#allocation2 + $0x2f8] sm:$0x1]  ;;  %vm3925_vm4 = vcmp.ge.f32.partialorder %v3817_v32, 0.0 }
 0x412   : > { %v5872_v9 = vld [vmem:[#allocation2 + $0x2f8] sm:$0x3]  ;;  %v11665_v14 = vmul.f32 %v12484_v46, %v4140_v34  ;;  %vm3926_vm5 = vcmp.ge.f32.partialorder %v3818_v63, 0.0  ;;  %v5855_v53 = vrot.slane %v5840_v8, 1  ;;  %v4033_v25 = vmul.f32 0.01, %v3817_v32 }
 0x413   : > { %v5885_v33 = vrot.slane %v5872_v9, 2  ;;  %v4034_v11 = vmul.f32 0.01, %v3818_v63  ;;  %v11667_v48 = vadd.f32 %v5884_v42, %v5863_v18  ;;  %v5913_v37 = vld [vmem:[#allocation2 + $0x300] sm:$0xfe]  ;;  %v3819_v41 = vadd.f32 %v9524_v27, %v3699_v12  ;;  %v6883_v18 = vpop.permute.xlu0 %6882 }
 0x414   : > { %v5945_v6 = vld [vmem:[#allocation2 + $0x300] sm:$0xfc]  ;;  %v5924_v15 = vrot.slane %v11665_v14, 1  ;;  %v5954_v62 = vrot.slane %v11665_v14, 2  ;;  %v5856_v43 = vsel %vm4706_vm7, %v5851_v17, %v5855_v53  ;;  %v5923_v50 = vrot.slane %v5913_v37, 1  ;;  %v12487_v53 = vld [vmem:[#allocation51_spill] sm:$0xff] }
 0x415   : > { %v5886_v29 = vsel %vm4737_vm9, %v5881_v49, %v5885_v33  ;;  %v5953_v61 = vrot.slane %v5945_v6, 2  ;;  %v6811_v36 = vadd.f32 %v11571_v31, %v11667_v48  ;;  %v5864_v13 = vadd.f32 %v5856_v43, %v11564_v24  ;;  %v5914_v10 = vld [vmem:[#allocation2 + $0x308] sm:$0xfe]  ;;  %v12490_v43 = vld [vmem:[#allocation58_spill] sm:$0xff] }
 0x416   : > { %v5946_v54 = vld [vmem:[#allocation2 + $0x308] sm:$0xfc]  ;;  %v4141_v58 = vsel %vm3925_vm4, %v3817_v32, %v4033_v25  ;;  %v4142_v47 = vsel %vm3926_vm5, %v3818_v63, %v4034_v11  ;;  %v5926_v17 = vrot.slane %v5914_v10, 1  ;;  %v5925_v49 = vsel %vm4706_vm7, %v5923_v50, %v5924_v15  ;;  %v12489_v11 = vld [vmem:[#allocation12_spill] sm:$0xff] }
 0x417   : > { %v5956_v21 = vrot.slane %v5946_v54, 2  ;;  %v5955_v31 = vsel %vm4737_vm9, %v5953_v61, %v5954_v62  ;;  %v6836_v44 = vmul.f32 %v6832_v60, %v6811_v36  ;;  %v11689_v24 = vadd.f32 %v5886_v29, %v5864_v13  ;;  %v12488_v25 = vld [vmem:[#allocation57_spill] sm:$0xff]  ;;  %v12491_v29 = vld [vmem:[#allocation56_spill] sm:$0xff]  ;;  %v12492_v13 = vld [vmem:[#allocation38_spill] sm:$0xff] }
 0x418   : > { %v5937_v35 = vadd.f32 %v5925_v49, %v11621_v52  ;;  %v11693_v22 = vmul.f32 %v12484_v46, %v4141_v58  ;;  %v4574_v7 = vmul.f32 %v12485_v30, %v4142_v47  ;;  %v11698_v23 = vadd.f32 %v11667_v48, %v11561_v16  ;;  %v12486_v46 = vld [vmem:[#allocation54_spill] sm:$0xff] }
 0x419   : > { %vm3927_vm6 = vcmp.ge.f32.partialorder %v3819_v41, 0.0  ;;  %v4035_v0 = vmul.f32 0.01, %v3819_v41  ;;  %7126 = vst [vmem:[%s9884_s28 + $0x1b0] sm:$0xff] %v6836_v44  ;;  %v6812_v20 = vadd.f32 %v11602_v39, %v11689_v24  ;;  %v11707_v63 = vadd.f32 %v11689_v24, %v11588_v28 }
 0x41a   : > { %v5967_v45 = vadd.f32 %v5955_v31, %v5937_v35  ;;  %v5927_v3 = vrot.slane %v11693_v22, 1  ;;  %v5957_v52 = vrot.slane %v11693_v22, 2  ;;  %4682 = vst [vmem:[#allocation2 + $0x320] sm:$0xff] %v4574_v7  ;;  %v3820_v16 = vadd.f32 %v9521_v4, %v3700_v38 }
 0x41b   : > { %v4143_v32 = vsel %vm3927_vm6, %v3819_v41, %v4035_v0  ;;  %v3821_v12 = vadd.f32 %v9524_v27, %v3701_v55  ;;  %v6837_v2 = vmul.f32 %v6832_v60, %v6812_v20  ;;  %v7274_v33 = vadd.f32 %v12487_v53, %v12486_v46 }
 0x41c   : > { %v6865_v42 = vadd.f32 %v11626_v5, %v5967_v45  ;;  %v11713_v39 = vadd.f32 %v5967_v45, %v11593_v51  ;;  %v5928_v34 = vsel %vm4706_vm7, %v5926_v17, %v5927_v3  ;;  %v5958_v28 = vsel %vm4737_vm9, %v5956_v21, %v5957_v52 }
 0x41d   : > { %v5938_v8 = vadd.f32 %v5928_v34, %v11639_v1  ;;  %v4575_v38 = vmul.f32 %v12485_v30, %v4143_v32  ;;  %vm3928_vm8 = vcmp.ge.f32.partialorder %v3820_v16, 0.0  ;;  %7127 = vst [vmem:[%s9884_s28 + $0x1b8] sm:$0xff] %v6837_v2  ;;  %v4036_v55 = vmul.f32 0.01, %v3820_v16 }
 0x41e   : > { %v6890_v5 = vmul.f32 %v6883_v18, %v6865_v42  ;;  %vm3929_vm10 = vcmp.ge.f32.partialorder %v3821_v12, 0.0  ;;  %v4037_v51 = vmul.f32 0.01, %v3821_v12  ;;  %v7275_v1 = vadd.f32 %v12488_v25, %v11053_v57 }
 0x41f   : > { %v5968_v9 = vadd.f32 %v5958_v28, %v5938_v8  ;;  %4683 = vst [vmem:[#allocation2 + $0x328] sm:$0xff] %v4575_v38  ;;  %v7276_v37 = vadd.f32 %v12489_v11, %v11065_v56  ;;  %v4144_v6 = vsel %vm3928_vm8, %v3820_v16, %v4036_v55  ;;  %v7277_v50 = vadd.f32 %v12491_v29, %v12490_v43  ;;  %v12493_v38 = vld [vmem:[#allocation37_spill] sm:$0xff] }
 0x420   : > { %7130 = vst [vmem:[%s9884_s28 + $0x1c0] sm:$0xff] %v6890_v5  ;;  %v4145_v41 = vsel %vm3929_vm10, %v3821_v12, %v4037_v51  ;;  %v4576_v10 = vmul.f32 %v12492_v13, %v4144_v6  ;;  %v3702_v56 = vmul.f32 %v7274_v33, %v9517_v40  ;;  %v3703_v47 = vmul.f32 %v7275_v1, %v9519_v19 }
 0x421   : > { %v6866_v61 = vadd.f32 %v11633_v59, %v5968_v9  ;;  %v11735_v36 = vadd.f32 %v5968_v9, %v11611_v26  ;;  %v11739_v54 = vmul.f32 %v12492_v13, %v4145_v41  ;;  %v5915_v57 = vld [vmem:[#allocation2 + $0x320] sm:$0x1]  ;;  %v3704_v60 = vmul.f32 %v7276_v37, %v9517_v40  ;;  %v12494_v41 = vld [vmem:[#allocation39_spill] sm:$0xff] }
 0x422   : > { %v5947_v58 = vld [vmem:[#allocation2 + $0x320] sm:$0x3]  ;;  %v5929_v21 = vrot.slane %v5915_v57, 1  ;;  %4684 = vst [vmem:[#allocation2 + $0x330] sm:$0xff] %v4576_v10  ;;  %v3822_v26 = vadd.f32 %v9521_v4, %v3702_v56  ;;  %v3823_v49 = vadd.f32 %v9524_v27, %v3703_v47  ;;  %v3705_v44 = vmul.f32 %v7277_v50, %v9519_v19 }
 0x423   : > { %v6891_v17 = vmul.f32 %v6883_v18, %v6866_v61  ;;  %v5959_v59 = vrot.slane %v5947_v58, 2  ;;  %4685 = vst [vmem:[#allocation2 + $0x338] sm:$0xff] %v11739_v54  ;;  %v3824_v31 = vadd.f32 %v9521_v4, %v3704_v60 }
 0x424   : > { %v5930_v35 = vsel %vm4706_vm7, %v5924_v15, %v5929_v21  ;;  %vm3930_vm11 = vcmp.ge.f32.partialorder %v3822_v26, 0.0  ;;  %vm3931_vm12 = vcmp.ge.f32.partialorder %v3823_v49, 0.0  ;;  %v4038_v4 = vmul.f32 0.01, %v3822_v26  ;;  %v6939_v21 = vpop.permute.xlu0 %6938 }
 0x425   : > { %7131 = vst [vmem:[%s9884_s28 + $0x1c8] sm:$0xff] %v6891_v17  ;;  %v5939_v40 = vadd.f32 %v5930_v35, %v11665_v14  ;;  %v5960_v30 = vsel %vm4737_vm9, %v5954_v62, %v5959_v59  ;;  %v4039_v32 = vmul.f32 0.01, %v3823_v49  ;;  %vm3932_vm13 = vcmp.ge.f32.partialorder %v3824_v31, 0.0 }
 0x426   : > { %v5916_v7 = vld [vmem:[#allocation2 + $0x328] sm:$0x1]  ;;  %v3825_v16 = vadd.f32 %v9524_v27, %v3705_v44  ;;  %v4146_v12 = vsel %vm3930_vm11, %v3822_v26, %v4038_v4  ;;  %v4040_v2 = vmul.f32 0.01, %v3824_v31  ;;  %v6888_v27 = vpop.permute.xlu1 %6887 }
 0x427   : > { %v5948_v0 = vld [vmem:[#allocation2 + $0x328] sm:$0x3]  ;;  %v5931_v20 = vrot.slane %v5916_v7, 1  ;;  %v5969_v19 = vadd.f32 %v5960_v30, %v5939_v40  ;;  %v4147_v14 = vsel %vm3931_vm12, %v3823_v49, %v4039_v32  ;;  %v4578_v5 = vmul.f32 %v12493_v38, %v4146_v12 }
 0x428   : > { %v5961_v45 = vrot.slane %v5948_v0, 2  ;;  %v4148_v37 = vsel %vm3932_vm13, %v3824_v31, %v4040_v2  ;;  %vm3933_vm14 = vcmp.ge.f32.partialorder %v3825_v16, 0.0  ;;  %v4041_v56 = vmul.f32 0.01, %v3825_v16 }
 0x429   : > { %v5932_v15 = vsel %vm4706_vm7, %v5927_v3, %v5931_v20  ;;  %v6867_v62 = vadd.f32 %v11698_v23, %v5969_v19  ;;  %v6911_v42 = vadd.f32 %v5969_v19, %v11667_v48  ;;  %v5989_v18 = vld [vmem:[#allocation2 + $0x330] sm:$0xfe]  ;;  %v4579_v23 = vmul.f32 %v12493_v38, %v4147_v14 }
 0x42a   : > { %v5940_v34 = vadd.f32 %v5932_v15, %v11693_v22  ;;  %v6023_v8 = vld [vmem:[#allocation2 + $0x330] sm:$0xfc]  ;;  %v5990_v28 = vld [vmem:[#allocation2 + $0x338] sm:$0xfe]  ;;  %v5962_v3 = vsel %vm4737_vm9, %v5957_v52, %v5961_v45  ;;  %v6001_v55 = vrot.slane %v5989_v18, 1  ;;  %v6002_v33 = vrot.slane %v4578_v5, 1  ;;  %v6944_v19 = vpop.permute.xlu1 %6943 }
 0x42b   : > { %v6004_v51 = vrot.slane %v5990_v28, 1  ;;  %v6024_v9 = vld [vmem:[#allocation2 + $0x338] sm:$0xfc]  ;;  %v6892_v46 = vmul.f32 %v6888_v27, %v6867_v62  ;;  %v6031_v53 = vrot.slane %v6023_v8, 2  ;;  %v6032_v1 = vrot.slane %v4578_v5, 2 }
 0x42c   : > { %v5970_v48 = vadd.f32 %v5962_v3, %v5940_v34  ;;  %v6034_v25 = vrot.slane %v6024_v9, 2  ;;  %v6005_v11 = vrot.slane %v4579_v23, 1  ;;  %v6003_v6 = vsel %vm4706_vm7, %v6001_v55, %v6002_v33 }
 0x42d   : > { %7132 = vst [vmem:[%s9884_s28 + $0x1d0] sm:$0xff] %v6892_v46  ;;  %v4580_v43 = vmul.f32 %v12494_v41, %v4148_v37  ;;  %v6015_v29 = vadd.f32 %v6003_v6, %v4576_v10  ;;  %v6035_v61 = vrot.slane %v4579_v23, 2  ;;  %v6033_v57 = vsel %vm4737_vm9, %v6031_v53, %v6032_v1 }
 0x42e   : > { %v6868_v22 = vadd.f32 %v11707_v63, %v5970_v48  ;;  %v6912_v52 = vadd.f32 %v5970_v48, %v11689_v24  ;;  %v6006_v50 = vsel %vm4706_vm7, %v6004_v51, %v6005_v11  ;;  %v4149_v60 = vsel %vm3933_vm14, %v3825_v16, %v4041_v56 }
 0x42f   : > { %v6016_v58 = vadd.f32 %v6006_v50, %v11739_v54  ;;  %4688 = vst [vmem:[#allocation2 + $0x350] sm:$0xff] %v4580_v43  ;;  %v6045_v63 = vadd.f32 %v6033_v57, %v6015_v29  ;;  %v6036_v24 = vsel %vm4737_vm9, %v6034_v25, %v6035_v61  ;;  %v4581_v17 = vmul.f32 %v12494_v41, %v4149_v60 }
 0x430   : > { %v6893_v13 = vmul.f32 %v6888_v27, %v6868_v22 }
 0x431   : > { %v6046_v47 = vadd.f32 %v6036_v24, %v6016_v58  ;;  %v6921_v10 = vadd.f32 %v11713_v39, %v6045_v63  ;;  %4689 = vst [vmem:[#allocation2 + $0x358] sm:$0xff] %v4581_v17 }
 0x432   : > { %7133 = vst [vmem:[%s9884_s28 + $0x1d8] sm:$0xff] %v6893_v13 }
 0x433   : > { %v6922_v59 = vadd.f32 %v11735_v36, %v6046_v47  ;;  %v6946_v26 = vmul.f32 %v6939_v21, %v6921_v10 }
 0x435   : > { %v6947_v49 = vmul.f32 %v6939_v21, %v6922_v59  ;;  %7136 = vst [vmem:[%s9884_s28 + $0x1e0] sm:$0xff] %v6946_v26 }
 0x436   : > { %v5993_v54 = vld [vmem:[#allocation2 + $0x350] sm:$0x1] }
 0x437   : > { %v6025_v31 = vld [vmem:[#allocation2 + $0x350] sm:$0x3]  ;;  %7137 = vst [vmem:[%s9884_s28 + $0x1e8] sm:$0xff] %v6947_v49  ;;  %v6007_v44 = vrot.slane %v5993_v54, 1 }
 0x438   : > { %v6037_v35 = vrot.slane %v6025_v31, 2  ;;  %v5994_v7 = vld [vmem:[#allocation2 + $0x358] sm:$0x1] }
 0x439   : > { %v6008_v40 = vsel %vm4706_vm7, %v6002_v33, %v6007_v44  ;;  %v6026_v0 = vld [vmem:[#allocation2 + $0x358] sm:$0x3]  ;;  %v6009_v20 = vrot.slane %v5994_v7, 1 }
 0x43a   : > { %v6017_v30 = vadd.f32 %v6008_v40, %v4578_v5  ;;  %v6038_v39 = vsel %vm4737_vm9, %v6032_v1, %v6037_v35  ;;  %v6039_v45 = vrot.slane %v6026_v0, 2 }
 0x43b   : > { %v6010_v32 = vsel %vm4706_vm7, %v6005_v11, %v6009_v20 }
 0x43c   : > { %v6047_v36 = vadd.f32 %v6038_v39, %v6017_v30  ;;  %v6018_v16 = vadd.f32 %v6010_v32, %v4579_v23  ;;  %v6040_v12 = vsel %vm4737_vm9, %v6035_v61, %v6039_v45 }
 0x43e   : > { %v6923_v4 = vadd.f32 %v6911_v42, %v6047_v36  ;;  %v6048_v14 = vadd.f32 %v6040_v12, %v6018_v16 }
 0x440   : > { %v6948_v15 = vmul.f32 %v6944_v19, %v6923_v4  ;;  %v6924_v2 = vadd.f32 %v6912_v52, %v6048_v14 }
 0x442   : > { %7138 = vst [vmem:[%s9884_s28 + $0x1f0] sm:$0xff] %v6948_v15  ;;  %v6949_v62 = vmul.f32 %v6944_v19, %v6924_v2 }
 0x444   : > { %7139 = vst [vmem:[%s9884_s28 + $0x1f8] sm:$0xff] %v6949_v62 }
 0x445   : > { %7833 = shalt.err (!%p7830_p3)
}
 0x446   : > { %s7834_s18 = scalar_lea.hbm %s11795_s13, 8192  ;;  %s7838_s26 = scalar_lea.hbm %s11849_s6, 16384 }
 0x447   : > { %p7835_p4 = scmp.ne.s32.totalorder %s11795_s13, %s7834_s18  ;;  %p7839_p9 = scmp.lt.u32.totalorder %s11795_s13, %s11849_s6 }
 0x448   : > { %p7840_p10 = scmp.lt.u32.totalorder %s7838_s26, %s7834_s18  ;;  %p7842_p12 = scmp.lt.u32.totalorder %s7834_s18, %s11795_s13 }
 0x449   : > { %p7836_p7 = pnand %p7835_p4, %p7962_p5 }
 0x44a   : > { %p7841_p11 = por %p7840_p10, %p7839_p9 }
 0x44b   : > { %p7837_p8 = pneg %p7836_p7 }
 0x44c   : > { %p7843_p13 = por %p7842_p12, %p7841_p11 }
 0x44e   : > { %p7844_p0 = pnand %p7843_p13, %p7837_p8 }
 0x450   : > { %7847 = shalt.err (!%p7844_p0)
}
 0x451   : > { %s7887_s29 = smov 256   ;;  %s7888_s11 = smov 16  }
 0x452   : > { %7711 = dma.vmem_to_hbm [thread:$0]  (%p7962_p5), %s11797_s10, 8192, %s11795_s13, %s11802_s14, %s7887_s29, %s7887_s29, %s7888_s11  }
 0x453 PF: > { %p7717_p1 = scmp.ge.s32.totalorder %s7882_s24, 2  ;;  %s6984_s12 = sand.u32 1, %s7870_s21  }
 0x454   : > { %s6985_s15 = scalar_lea.sflag [#allocation6], %s6984_s12 }
 0x455   : > { %p7714_p2 = pnand %p7717_p1, %p7966_p6 }
 0x457   : > { %7865 = dma.done.wait (!%p7714_p2), %s6985_s15, 8192  }
 0x458   : > { %7867 = vsyncadd (!%p7714_p2), %s6985_s15, 4294959104  ;;  %p16_p3 = scmp.ge.s32.totalorder %s7949_s27, 4   ;;  %s12495_s21 = smov %s7874_s22 }
 0x459   : > { %s12496_s22 = smov %s7878_s23  ;;  %s12497_s23 = smov %s7960_s30 }
 0x45a   : > { %s12498_s24 = smov %s7949_s27  ;;  %18 = sbr.rel (!%p16_p3) target bundleno = 3 (0x3), region = 146 }
 0x461   :  { %6990 = vsyncpa [#allocation6], 1 }
 0x462   :  { %6992 = vsyncpa [#allocation6 + $0x1], 1 }

</bundles_post_ra>
